<compile_context>
chip_gen: v5e
topology: v5e:2x2
jax: 0.10.0
libtpu: 0.0.40
codegen_flags: <defaults>
</compile_context>

<pallas_src>
import itertools

import jax
import jax.numpy as jnp
from jax import lax
from jax.experimental import pallas as pl
from jax.experimental.pallas import tpu as pltpu

TB = 8                       # batch tile = one sublane group; tunable upward to
                             # amortize per-grid-step overhead at large batch.
MXU_DTYPE = jnp.bfloat16     # matmul operand dtype (accumulation stays float32)

_TAPS = tuple(itertools.product(range(3), range(3)))   # (ki, kj), k = ki*3 + kj


def _tap_slices(t, out_size):
    """3x3/stride-2 tap coordinate t -> (pair-slice, parity index) after an
    (n, 2) split of a padded spatial axis of length 2*out_size + 2."""
    if t < 2:
        return slice(0, out_size), t
    return slice(1, out_size + 1), 0


# ----------------------------------------------------------------------------
# Fused Pallas kernel: conv1 -> conv2 -> conv3 -> avg-pool -> logits + CE
# ----------------------------------------------------------------------------
def _mnist_fused_kernel(p1_ref, w1_ref, b1_ref, w2_ref, b2_ref, w3_ref, b3_ref,
                        onehot_ref, logits_ref, nll_ref, c2_ref, c3_ref):
    f32 = jnp.float32

    # ---- conv1: 1 -> 16.  Pre-gathered patches (oh, ow, t, tap<=16); one
    # dense (14*14*TB, 16) x (16, 16) MXU matmul. ----------------------------
    p1 = p1_ref[0].reshape(14 * 14 * TB, 16)
    acc1 = jnp.dot(p1.astype(MXU_DTYPE), w1_ref[...], preferred_element_type=f32)
    h1 = jnp.maximum(acc1 + b1_ref[...], 0.0).reshape(14, 14, TB, 16)

    # ---- conv2: 16 -> 16.  Zero-padded 16x16 canvas in VMEM scratch; the 9
    # stride-2 taps are leading-dim reshapes + static slices (in-kernel
    # im2col), each feeding an accumulated MXU matmul. -----------------------
    c2_ref[...] = jnp.zeros_like(c2_ref)
    c2_ref[1:15, 1:15, :, :] = h1
    c2 = c2_ref[...].reshape(8, 2, 8, 2, TB, 16)

    w2 = w2_ref[...]
    acc2 = jnp.zeros((7 * 7 * TB, 16), f32)
    for k, (ki, kj) in enumerate(_TAPS):
        rs, rp = _tap_slices(ki, 7)
        cs, cp = _tap_slices(kj, 7)
        tap = c2[rs, rp, cs, cp, :, :].reshape(7 * 7 * TB, 16)
        acc2 = acc2 + jnp.dot(tap.astype(MXU_DTYPE), w2[k],
                              preferred_element_type=f32)
    h2 = jnp.maximum(acc2 + b2_ref[...], 0.0).reshape(7, 7, TB, 16)

    # ---- conv3: 16 -> 10 (output channels zero-padded to 128 lanes). -------
    c3_ref[...] = jnp.zeros_like(c3_ref)
    c3_ref[1:8, 1:8, :, :] = h2
    c3 = c3_ref[...].reshape(5, 2, 5, 2, TB, 16)

    w3 = w3_ref[...]
    acc3 = jnp.zeros((4 * 4 * TB, 128), f32)
    for k, (ki, kj) in enumerate(_TAPS):
        rs, rp = _tap_slices(ki, 4)
        cs, cp = _tap_slices(kj, 4)
        tap = c3[rs, rp, cs, cp, :, :].reshape(4 * 4 * TB, 16)
        acc3 = acc3 + jnp.dot(tap.astype(MXU_DTYPE), w3[k],
                              preferred_element_type=f32)
    h3 = jnp.maximum(acc3 + b3_ref[...], 0.0)             # (16*TB, 128)

    # ---- avg_pool2d(4) + flatten -> lane-dense (TB, 128) logits ------------
    logits = jnp.mean(h3.reshape(16, TB, 128), axis=0)    # == mean over 4x4
    logits_ref[...] = logits

    # ---- cross-entropy (per-example NLL; padded classes >= 10 masked) ------
    cls = lax.broadcasted_iota(jnp.int32, (TB, 128), 1)
    masked = jnp.where(cls < 10, logits, -1e30)
    m = jnp.max(masked, axis=-1, keepdims=True)
    lse = jnp.log(jnp.sum(jnp.exp(masked - m), axis=-1, keepdims=True)) + m
    picked = jnp.sum(logits * onehot_ref[...], axis=-1, keepdims=True)
    nll_ref[...] = jnp.broadcast_to(lse - picked, (TB, 128))


# ----------------------------------------------------------------------------
# Wrapper-side preparation (raw-input-only glue + weight repacking)
# ----------------------------------------------------------------------------
def _conv1_patches(x, nt):
    """x: (Np, 28, 28) f32 -> (nt, 14, 14, TB, 16) stride-2 3x3 im2col patches
    of the zero-padded input; tap axis zero-padded 9 -> 16."""
    xp = jnp.pad(x, ((0, 0), (1, 1), (1, 1)))                  # (Np, 30, 30)
    taps = [xp[:, ki:ki + 27:2, kj:kj + 27:2] for ki, kj in _TAPS]
    p = jnp.stack(taps, axis=-1)                               # (Np, 14, 14, 9)
    p = jnp.pad(p, ((0, 0), (0, 0), (0, 0), (0, 7)))           # -> 16 taps
    return p.reshape(nt, TB, 14, 14, 16).transpose(0, 2, 3, 1, 4)


def _prep_params(params):
    (w1, b1), (w2, b2), (w3, b3) = params
    w1e = jnp.zeros((16, 16), jnp.float32).at[:9, :].set(
        jnp.asarray(w1, jnp.float32).reshape(16, 9).T).astype(MXU_DTYPE)
    b1p = jnp.asarray(b1, jnp.float32).reshape(1, 16)
    w2p = jnp.asarray(w2, jnp.float32).transpose(2, 3, 1, 0)
    w2p = w2p.reshape(9, 16, 16).astype(MXU_DTYPE)
    b2p = jnp.asarray(b2, jnp.float32).reshape(1, 16)
    w3t = jnp.asarray(w3, jnp.float32).transpose(2, 3, 1, 0).reshape(9, 16, 10)
    w3p = jnp.zeros((9, 16, 128), jnp.float32).at[:, :, :10].set(w3t)
    w3p = w3p.astype(MXU_DTYPE)
    b3p = jnp.zeros((1, 128), jnp.float32).at[0, :10].set(
        jnp.asarray(b3, jnp.float32))
    return w1e, b1p, w2p, b2p, w3p, b3p


def mnist_cnn_forward(inputs, targets, params):
    assert list(inputs.shape[-2:]) == [28, 28]
    N = inputs.shape[0]
    nt = (N + TB - 1) // TB
    Np = nt * TB

    x = inputs.reshape(N, 28, 28).astype(jnp.float32)
    x = jnp.pad(x, ((0, Np - N), (0, 0), (0, 0)))
    patches = _conv1_patches(x, nt)                            # (nt,14,14,TB,16)

    onehot = jax.nn.one_hot(targets.astype(jnp.int32), 128, dtype=jnp.float32)
    onehot = jnp.pad(onehot, ((0, Np - N), (0, 0)))            # (Np, 128)

    w1e, b1p, w2p, b2p, w3p, b3p = _prep_params(params)

    grid_spec = pltpu.PrefetchScalarGridSpec(
        num_scalar_prefetch=0,
        grid=(nt,),
        in_specs=[
            pl.BlockSpec((1, 14, 14, TB, 16), lambda i: (i, 0, 0, 0, 0)),
            pl.BlockSpec((16, 16), lambda i: (0, 0)),
            pl.BlockSpec((1, 16), lambda i: (0, 0)),
            pl.BlockSpec((9, 16, 16), lambda i: (0, 0, 0)),
            pl.BlockSpec((1, 16), lambda i: (0, 0)),
            pl.BlockSpec((9, 16, 128), lambda i: (0, 0, 0)),
            pl.BlockSpec((1, 128), lambda i: (0, 0)),
            pl.BlockSpec((TB, 128), lambda i: (i, 0)),
        ],
        out_specs=(
            pl.BlockSpec((TB, 128), lambda i: (i, 0)),
            pl.BlockSpec((TB, 128), lambda i: (i, 0)),
        ),
        scratch_shapes=[
            pltpu.VMEM((16, 16, TB, 16), jnp.float32),   # padded conv1 output
            pltpu.VMEM((10, 10, TB, 16), jnp.float32),   # padded conv2 output
        ],
    )
    logits_pad, nll_pad = pl.pallas_call(
        _mnist_fused_kernel,
        out_shape=(jax.ShapeDtypeStruct((Np, 128), jnp.float32),
                   jax.ShapeDtypeStruct((Np, 128), jnp.float32)),
        grid_spec=grid_spec,
        compiler_params=pltpu.CompilerParams(
            dimension_semantics=("parallel",)),
    )(patches, w1e, b1p, w2p, b2p, w3p, b3p, onehot)

    outputs = logits_pad[:N, :10]
    loss = jnp.mean(nll_pad[:N, 0])
    return {'outputs': outputs, 'loss': loss}


# ----------------------------------------------------------------------------
# Deterministic PyTorch-style parameter init (uniform +-1/sqrt(fan_in))
# ----------------------------------------------------------------------------
def init_params(key):
    specs = [(16, 1, 3, 3), (16, 16, 3, 3), (10, 16, 3, 3)]
    params = []
    for shape in specs:
        key, kw, kb = jax.random.split(key, 3)
        fan_in = shape[1] * shape[2] * shape[3]
        bound = 1.0 / jnp.sqrt(float(fan_in))
        w = jax.random.uniform(kw, shape, jnp.float32, -bound, bound)
        b = jax.random.uniform(kb, (shape[0],), jnp.float32, -bound, bound)
        params.append((w, b))
    return params


# ----------------------------------------------------------------------------
if __name__ == "__main__":
    key = jax.random.PRNGKey(0)
    k_in, k_tgt, k_par = jax.random.split(key, 3)

    batch = 2
    inputs = jax.random.normal(k_in, (batch, 1, 28, 28), jnp.float32)
    targets = jax.random.randint(k_tgt, (batch,), 0, 10, jnp.int32)
    params = init_params(k_par)

    fwd = jax.jit(lambda x, t: mnist_cnn_forward(x, t, params))
    result = fwd(inputs, targets)
    jax.block_until_ready(result)

    assert result['outputs'].shape == (batch, 10)
    assert result['loss'].shape == ()
    assert bool(jnp.isfinite(result['loss']))
    print("KERNEL_OK")
</pallas_src>

<mosaic_0001>
module attributes {stable_mosaic.version = 11 : i64} {
  func.func @_mnist_fused_kernel(%arg0: i32, %arg1: memref<1x14x14x8x16xf32, #tpu.memory_space<vmem>>, %arg2: memref<16x16xbf16, #tpu.memory_space<vmem>>, %arg3: memref<1x16xf32, #tpu.memory_space<vmem>>, %arg4: memref<9x16x16xbf16, #tpu.memory_space<vmem>>, %arg5: memref<1x16xf32, #tpu.memory_space<vmem>>, %arg6: memref<9x16x128xbf16, #tpu.memory_space<vmem>>, %arg7: memref<1x128xf32, #tpu.memory_space<vmem>>, %arg8: memref<8x128xf32, #tpu.memory_space<vmem>>, %arg9: memref<8x128xf32, #tpu.memory_space<vmem>>, %arg10: memref<8x128xf32, #tpu.memory_space<vmem>>, %arg11: memref<16x16x8x16xf32, #tpu.memory_space<vmem>>, %arg12: memref<10x10x8x16xf32, #tpu.memory_space<vmem>>) attributes {dimension_semantics = [#tpu.dimension_semantics<parallel>], iteration_bounds = array<i64: 1>, scalar_prefetch = 0 : i64, scratch_operands = 2 : i64, tpu.core_type = #tpu.core_type<tc>, window_params = [{transform_indices = @transform_0, window_bounds = array<i64: 1, 14, 14, 8, 16>}, {pipeline_mode = #tpu.pipeline_mode<synchronous>, transform_indices = @transform_1, window_bounds = array<i64: 16, 16>}, {pipeline_mode = #tpu.pipeline_mode<synchronous>, transform_indices = @transform_2, window_bounds = array<i64: 1, 16>}, {pipeline_mode = #tpu.pipeline_mode<synchronous>, transform_indices = @transform_3, window_bounds = array<i64: 9, 16, 16>}, {pipeline_mode = #tpu.pipeline_mode<synchronous>, transform_indices = @transform_4, window_bounds = array<i64: 1, 16>}, {pipeline_mode = #tpu.pipeline_mode<synchronous>, transform_indices = @transform_5, window_bounds = array<i64: 9, 16, 128>}, {pipeline_mode = #tpu.pipeline_mode<synchronous>, transform_indices = @transform_6, window_bounds = array<i64: 1, 128>}, {transform_indices = @transform_7, window_bounds = array<i64: 8, 128>}, {transform_indices = @transform_8, window_bounds = array<i64: 8, 128>}, {transform_indices = @transform_9, window_bounds = array<i64: 8, 128>}]} {
    %c0 = arith.constant 0 : index
    %c0_0 = arith.constant 0 : index
    %c0_1 = arith.constant 0 : index
    %c0_2 = arith.constant 0 : index
    %c0_3 = arith.constant 0 : index
    %0 = vector.load %arg1[%c0, %c0_0, %c0_1, %c0_2, %c0_3] : memref<1x14x14x8x16xf32, #tpu.memory_space<vmem>>, vector<1x14x14x8x16xf32>
    %1 = vector.shape_cast %0 : vector<1x14x14x8x16xf32> to vector<14x14x8x16xf32>
    %2 = vector.shape_cast %1 : vector<14x14x8x16xf32> to vector<1568x16xf32>
    %3 = arith.truncf %2 : vector<1568x16xf32> to vector<1568x16xbf16>
    %c0_4 = arith.constant 0 : index
    %c0_5 = arith.constant 0 : index
    %4 = vector.load %arg2[%c0_4, %c0_5] : memref<16x16xbf16, #tpu.memory_space<vmem>>, vector<16x16xbf16>
    %cst = arith.constant dense<0.000000e+00> : vector<1568x16xf32>
    %5 = tpu.matmul %3, %4, %cst {dimension_numbers = #tpu.dot_dimension_numbers<[1], [0], [0], [1], [0, 0, 1, 1], [], []>} : vector<1568x16xbf16>, vector<16x16xbf16>, vector<1568x16xf32> -> vector<1568x16xf32>
    %c0_6 = arith.constant 0 : index
    %c0_7 = arith.constant 0 : index
    %6 = vector.load %arg3[%c0_6, %c0_7] : memref<1x16xf32, #tpu.memory_space<vmem>>, vector<1x16xf32>
    %7 = vector.broadcast %6 : vector<1x16xf32> to vector<1568x16xf32>
    %8 = arith.addf %5, %7 : vector<1568x16xf32>
    %cst_8 = arith.constant 0.000000e+00 : f32
    %9 = vector.broadcast %cst_8 : f32 to vector<1568x16xf32>
    %10 = arith.maximumf %8, %9 : vector<1568x16xf32>
    %11 = vector.shape_cast %10 : vector<1568x16xf32> to vector<14x14x8x16xf32>
    %cst_9 = arith.constant 0.000000e+00 : f32
    %12 = vector.broadcast %cst_9 : f32 to vector<16x16x8x16xf32>
    %c0_10 = arith.constant 0 : index
    %c0_11 = arith.constant 0 : index
    %c0_12 = arith.constant 0 : index
    %c0_13 = arith.constant 0 : index
    %13 = vector.load %arg11[%c0_10, %c0_11, %c0_12, %c0_13] : memref<16x16x8x16xf32, #tpu.memory_space<vmem>>, vector<16x16x8x16xf32>
    tpu.vector_store %arg11[%c0_10, %c0_11, %c0_12, %c0_13], %12 {strides = array<i32>} : memref<16x16x8x16xf32, #tpu.memory_space<vmem>>, vector<16x16x8x16xf32>,
    %c1 = arith.constant 1 : index
    %c1_14 = arith.constant 1 : index
    %c0_15 = arith.constant 0 : index
    %c0_16 = arith.constant 0 : index
    %14 = vector.load %arg11[%c1, %c1_14, %c0_15, %c0_16] : memref<16x16x8x16xf32, #tpu.memory_space<vmem>>, vector<14x14x8x16xf32>
    tpu.vector_store %arg11[%c1, %c1_14, %c0_15, %c0_16], %11 {strides = array<i32>} : memref<16x16x8x16xf32, #tpu.memory_space<vmem>>, vector<14x14x8x16xf32>,
    %c0_17 = arith.constant 0 : index
    %c0_18 = arith.constant 0 : index
    %c0_19 = arith.constant 0 : index
    %c0_20 = arith.constant 0 : index
    %15 = vector.load %arg11[%c0_17, %c0_18, %c0_19, %c0_20] : memref<16x16x8x16xf32, #tpu.memory_space<vmem>>, vector<16x16x8x16xf32>
    %16 = vector.shape_cast %15 : vector<16x16x8x16xf32> to vector<8x2x8x2x8x16xf32>
    %c0_21 = arith.constant 0 : index
    %c0_22 = arith.constant 0 : index
    %c0_23 = arith.constant 0 : index
    %17 = vector.load %arg4[%c0_21, %c0_22, %c0_23] : memref<9x16x16xbf16, #tpu.memory_space<vmem>>, vector<9x16x16xbf16>
    %cst_24 = arith.constant 0.000000e+00 : f32
    %18 = vector.broadcast %cst_24 : f32 to vector<392x16xf32>
    %19 = vector.extract_strided_slice %16 {offsets = [0, 0, 0, 0, 0, 0], sizes = [7, 1, 7, 1, 8, 16], strides = [1, 1, 1, 1, 1, 1]} : vector<8x2x8x2x8x16xf32> to vector<7x1x7x1x8x16xf32>
    %20 = vector.shape_cast %19 : vector<7x1x7x1x8x16xf32> to vector<7x7x8x16xf32>
    %21 = vector.shape_cast %20 : vector<7x7x8x16xf32> to vector<392x16xf32>
    %22 = arith.truncf %21 : vector<392x16xf32> to vector<392x16xbf16>
    %23 = vector.extract_strided_slice %17 {offsets = [0, 0, 0], sizes = [1, 16, 16], strides = [1, 1, 1]} : vector<9x16x16xbf16> to vector<1x16x16xbf16>
    %24 = vector.shape_cast %23 : vector<1x16x16xbf16> to vector<16x16xbf16>
    %cst_25 = arith.constant dense<0.000000e+00> : vector<392x16xf32>
    %25 = tpu.matmul %22, %24, %cst_25 {dimension_numbers = #tpu.dot_dimension_numbers<[1], [0], [0], [1], [0, 0, 1, 1], [], []>} : vector<392x16xbf16>, vector<16x16xbf16>, vector<392x16xf32> -> vector<392x16xf32>
    %26 = arith.addf %18, %25 : vector<392x16xf32>
    %27 = vector.extract_strided_slice %16 {offsets = [0, 0, 0, 1, 0, 0], sizes = [7, 1, 7, 1, 8, 16], strides = [1, 1, 1, 1, 1, 1]} : vector<8x2x8x2x8x16xf32> to vector<7x1x7x1x8x16xf32>
    %28 = vector.shape_cast %27 : vector<7x1x7x1x8x16xf32> to vector<7x7x8x16xf32>
    %29 = vector.shape_cast %28 : vector<7x7x8x16xf32> to vector<392x16xf32>
    %30 = arith.truncf %29 : vector<392x16xf32> to vector<392x16xbf16>
    %31 = vector.extract_strided_slice %17 {offsets = [1, 0, 0], sizes = [1, 16, 16], strides = [1, 1, 1]} : vector<9x16x16xbf16> to vector<1x16x16xbf16>
    %32 = vector.shape_cast %31 : vector<1x16x16xbf16> to vector<16x16xbf16>
    %cst_26 = arith.constant dense<0.000000e+00> : vector<392x16xf32>
    %33 = tpu.matmul %30, %32, %cst_26 {dimension_numbers = #tpu.dot_dimension_numbers<[1], [0], [0], [1], [0, 0, 1, 1], [], []>} : vector<392x16xbf16>, vector<16x16xbf16>, vector<392x16xf32> -> vector<392x16xf32>
    %34 = arith.addf %26, %33 : vector<392x16xf32>
    %35 = vector.extract_strided_slice %16 {offsets = [0, 0, 1, 0, 0, 0], sizes = [7, 1, 7, 1, 8, 16], strides = [1, 1, 1, 1, 1, 1]} : vector<8x2x8x2x8x16xf32> to vector<7x1x7x1x8x16xf32>
    %36 = vector.shape_cast %35 : vector<7x1x7x1x8x16xf32> to vector<7x7x8x16xf32>
    %37 = vector.shape_cast %36 : vector<7x7x8x16xf32> to vector<392x16xf32>
    %38 = arith.truncf %37 : vector<392x16xf32> to vector<392x16xbf16>
    %39 = vector.extract_strided_slice %17 {offsets = [2, 0, 0], sizes = [1, 16, 16], strides = [1, 1, 1]} : vector<9x16x16xbf16> to vector<1x16x16xbf16>
    %40 = vector.shape_cast %39 : vector<1x16x16xbf16> to vector<16x16xbf16>
    %cst_27 = arith.constant dense<0.000000e+00> : vector<392x16xf32>
    %41 = tpu.matmul %38, %40, %cst_27 {dimension_numbers = #tpu.dot_dimension_numbers<[1], [0], [0], [1], [0, 0, 1, 1], [], []>} : vector<392x16xbf16>, vector<16x16xbf16>, vector<392x16xf32> -> vector<392x16xf32>
    %42 = arith.addf %34, %41 : vector<392x16xf32>
    %43 = vector.extract_strided_slice %16 {offsets = [0, 1, 0, 0, 0, 0], sizes = [7, 1, 7, 1, 8, 16], strides = [1, 1, 1, 1, 1, 1]} : vector<8x2x8x2x8x16xf32> to vector<7x1x7x1x8x16xf32>
    %44 = vector.shape_cast %43 : vector<7x1x7x1x8x16xf32> to vector<7x7x8x16xf32>
    %45 = vector.shape_cast %44 : vector<7x7x8x16xf32> to vector<392x16xf32>
    %46 = arith.truncf %45 : vector<392x16xf32> to vector<392x16xbf16>
    %47 = vector.extract_strided_slice %17 {offsets = [3, 0, 0], sizes = [1, 16, 16], strides = [1, 1, 1]} : vector<9x16x16xbf16> to vector<1x16x16xbf16>
    %48 = vector.shape_cast %47 : vector<1x16x16xbf16> to vector<16x16xbf16>
    %cst_28 = arith.constant dense<0.000000e+00> : vector<392x16xf32>
    %49 = tpu.matmul %46, %48, %cst_28 {dimension_numbers = #tpu.dot_dimension_numbers<[1], [0], [0], [1], [0, 0, 1, 1], [], []>} : vector<392x16xbf16>, vector<16x16xbf16>, vector<392x16xf32> -> vector<392x16xf32>
    %50 = arith.addf %42, %49 : vector<392x16xf32>
    %51 = vector.extract_strided_slice %16 {offsets = [0, 1, 0, 1, 0, 0], sizes = [7, 1, 7, 1, 8, 16], strides = [1, 1, 1, 1, 1, 1]} : vector<8x2x8x2x8x16xf32> to vector<7x1x7x1x8x16xf32>
    %52 = vector.shape_cast %51 : vector<7x1x7x1x8x16xf32> to vector<7x7x8x16xf32>
    %53 = vector.shape_cast %52 : vector<7x7x8x16xf32> to vector<392x16xf32>
    %54 = arith.truncf %53 : vector<392x16xf32> to vector<392x16xbf16>
    %55 = vector.extract_strided_slice %17 {offsets = [4, 0, 0], sizes = [1, 16, 16], strides = [1, 1, 1]} : vector<9x16x16xbf16> to vector<1x16x16xbf16>
    %56 = vector.shape_cast %55 : vector<1x16x16xbf16> to vector<16x16xbf16>
    %cst_29 = arith.constant dense<0.000000e+00> : vector<392x16xf32>
    %57 = tpu.matmul %54, %56, %cst_29 {dimension_numbers = #tpu.dot_dimension_numbers<[1], [0], [0], [1], [0, 0, 1, 1], [], []>} : vector<392x16xbf16>, vector<16x16xbf16>, vector<392x16xf32> -> vector<392x16xf32>
    %58 = arith.addf %50, %57 : vector<392x16xf32>
    %59 = vector.extract_strided_slice %16 {offsets = [0, 1, 1, 0, 0, 0], sizes = [7, 1, 7, 1, 8, 16], strides = [1, 1, 1, 1, 1, 1]} : vector<8x2x8x2x8x16xf32> to vector<7x1x7x1x8x16xf32>
    %60 = vector.shape_cast %59 : vector<7x1x7x1x8x16xf32> to vector<7x7x8x16xf32>
    %61 = vector.shape_cast %60 : vector<7x7x8x16xf32> to vector<392x16xf32>
    %62 = arith.truncf %61 : vector<392x16xf32> to vector<392x16xbf16>
    %63 = vector.extract_strided_slice %17 {offsets = [5, 0, 0], sizes = [1, 16, 16], strides = [1, 1, 1]} : vector<9x16x16xbf16> to vector<1x16x16xbf16>
    %64 = vector.shape_cast %63 : vector<1x16x16xbf16> to vector<16x16xbf16>
    %cst_30 = arith.constant dense<0.000000e+00> : vector<392x16xf32>
    %65 = tpu.matmul %62, %64, %cst_30 {dimension_numbers = #tpu.dot_dimension_numbers<[1], [0], [0], [1], [0, 0, 1, 1], [], []>} : vector<392x16xbf16>, vector<16x16xbf16>, vector<392x16xf32> -> vector<392x16xf32>
    %66 = arith.addf %58, %65 : vector<392x16xf32>
    %67 = vector.extract_strided_slice %16 {offsets = [1, 0, 0, 0, 0, 0], sizes = [7, 1, 7, 1, 8, 16], strides = [1, 1, 1, 1, 1, 1]} : vector<8x2x8x2x8x16xf32> to vector<7x1x7x1x8x16xf32>
    %68 = vector.shape_cast %67 : vector<7x1x7x1x8x16xf32> to vector<7x7x8x16xf32>
    %69 = vector.shape_cast %68 : vector<7x7x8x16xf32> to vector<392x16xf32>
    %70 = arith.truncf %69 : vector<392x16xf32> to vector<392x16xbf16>
    %71 = vector.extract_strided_slice %17 {offsets = [6, 0, 0], sizes = [1, 16, 16], strides = [1, 1, 1]} : vector<9x16x16xbf16> to vector<1x16x16xbf16>
    %72 = vector.shape_cast %71 : vector<1x16x16xbf16> to vector<16x16xbf16>
    %cst_31 = arith.constant dense<0.000000e+00> : vector<392x16xf32>
    %73 = tpu.matmul %70, %72, %cst_31 {dimension_numbers = #tpu.dot_dimension_numbers<[1], [0], [0], [1], [0, 0, 1, 1], [], []>} : vector<392x16xbf16>, vector<16x16xbf16>, vector<392x16xf32> -> vector<392x16xf32>
    %74 = arith.addf %66, %73 : vector<392x16xf32>
    %75 = vector.extract_strided_slice %16 {offsets = [1, 0, 0, 1, 0, 0], sizes = [7, 1, 7, 1, 8, 16], strides = [1, 1, 1, 1, 1, 1]} : vector<8x2x8x2x8x16xf32> to vector<7x1x7x1x8x16xf32>
    %76 = vector.shape_cast %75 : vector<7x1x7x1x8x16xf32> to vector<7x7x8x16xf32>
    %77 = vector.shape_cast %76 : vector<7x7x8x16xf32> to vector<392x16xf32>
    %78 = arith.truncf %77 : vector<392x16xf32> to vector<392x16xbf16>
    %79 = vector.extract_strided_slice %17 {offsets = [7, 0, 0], sizes = [1, 16, 16], strides = [1, 1, 1]} : vector<9x16x16xbf16> to vector<1x16x16xbf16>
    %80 = vector.shape_cast %79 : vector<1x16x16xbf16> to vector<16x16xbf16>
    %cst_32 = arith.constant dense<0.000000e+00> : vector<392x16xf32>
    %81 = tpu.matmul %78, %80, %cst_32 {dimension_numbers = #tpu.dot_dimension_numbers<[1], [0], [0], [1], [0, 0, 1, 1], [], []>} : vector<392x16xbf16>, vector<16x16xbf16>, vector<392x16xf32> -> vector<392x16xf32>
    %82 = arith.addf %74, %81 : vector<392x16xf32>
    %83 = vector.extract_strided_slice %16 {offsets = [1, 0, 1, 0, 0, 0], sizes = [7, 1, 7, 1, 8, 16], strides = [1, 1, 1, 1, 1, 1]} : vector<8x2x8x2x8x16xf32> to vector<7x1x7x1x8x16xf32>
    %84 = vector.shape_cast %83 : vector<7x1x7x1x8x16xf32> to vector<7x7x8x16xf32>
    %85 = vector.shape_cast %84 : vector<7x7x8x16xf32> to vector<392x16xf32>
    %86 = arith.truncf %85 : vector<392x16xf32> to vector<392x16xbf16>
    %87 = vector.extract_strided_slice %17 {offsets = [8, 0, 0], sizes = [1, 16, 16], strides = [1, 1, 1]} : vector<9x16x16xbf16> to vector<1x16x16xbf16>
    %88 = vector.shape_cast %87 : vector<1x16x16xbf16> to vector<16x16xbf16>
    %cst_33 = arith.constant dense<0.000000e+00> : vector<392x16xf32>
    %89 = tpu.matmul %86, %88, %cst_33 {dimension_numbers = #tpu.dot_dimension_numbers<[1], [0], [0], [1], [0, 0, 1, 1], [], []>} : vector<392x16xbf16>, vector<16x16xbf16>, vector<392x16xf32> -> vector<392x16xf32>
    %90 = arith.addf %82, %89 : vector<392x16xf32>
    %c0_34 = arith.constant 0 : index
    %c0_35 = arith.constant 0 : index
    %91 = vector.load %arg5[%c0_34, %c0_35] : memref<1x16xf32, #tpu.memory_space<vmem>>, vector<1x16xf32>
    %92 = vector.broadcast %91 : vector<1x16xf32> to vector<392x16xf32>
    %93 = arith.addf %90, %92 : vector<392x16xf32>
    %cst_36 = arith.constant 0.000000e+00 : f32
    %94 = vector.broadcast %cst_36 : f32 to vector<392x16xf32>
    %95 = arith.maximumf %93, %94 : vector<392x16xf32>
    %96 = vector.shape_cast %95 : vector<392x16xf32> to vector<7x7x8x16xf32>
    %cst_37 = arith.constant 0.000000e+00 : f32
    %97 = vector.broadcast %cst_37 : f32 to vector<10x10x8x16xf32>
    %c0_38 = arith.constant 0 : index
    %c0_39 = arith.constant 0 : index
    %c0_40 = arith.constant 0 : index
    %c0_41 = arith.constant 0 : index
    %98 = vector.load %arg12[%c0_38, %c0_39, %c0_40, %c0_41] : memref<10x10x8x16xf32, #tpu.memory_space<vmem>>, vector<10x10x8x16xf32>
    tpu.vector_store %arg12[%c0_38, %c0_39, %c0_40, %c0_41], %97 {strides = array<i32>} : memref<10x10x8x16xf32, #tpu.memory_space<vmem>>, vector<10x10x8x16xf32>,
    %c1_42 = arith.constant 1 : index
    %c1_43 = arith.constant 1 : index
    %c0_44 = arith.constant 0 : index
    %c0_45 = arith.constant 0 : index
    %99 = vector.load %arg12[%c1_42, %c1_43, %c0_44, %c0_45] : memref<10x10x8x16xf32, #tpu.memory_space<vmem>>, vector<7x7x8x16xf32>
    tpu.vector_store %arg12[%c1_42, %c1_43, %c0_44, %c0_45], %96 {strides = array<i32>} : memref<10x10x8x16xf32, #tpu.memory_space<vmem>>, vector<7x7x8x16xf32>,
    %c0_46 = arith.constant 0 : index
    %c0_47 = arith.constant 0 : index
    %c0_48 = arith.constant 0 : index
    %c0_49 = arith.constant 0 : index
    %100 = vector.load %arg12[%c0_46, %c0_47, %c0_48, %c0_49] : memref<10x10x8x16xf32, #tpu.memory_space<vmem>>, vector<10x10x8x16xf32>
    %101 = vector.shape_cast %100 : vector<10x10x8x16xf32> to vector<5x2x5x2x8x16xf32>
    %c0_50 = arith.constant 0 : index
    %c0_51 = arith.constant 0 : index
    %c0_52 = arith.constant 0 : index
    %102 = vector.load %arg6[%c0_50, %c0_51, %c0_52] : memref<9x16x128xbf16, #tpu.memory_space<vmem>>, vector<9x16x128xbf16>
    %cst_53 = arith.constant 0.000000e+00 : f32
    %103 = vector.broadcast %cst_53 : f32 to vector<128x128xf32>
    %104 = vector.extract_strided_slice %101 {offsets = [0, 0, 0, 0, 0, 0], sizes = [4, 1, 4, 1, 8, 16], strides = [1, 1, 1, 1, 1, 1]} : vector<5x2x5x2x8x16xf32> to vector<4x1x4x1x8x16xf32>
    %105 = vector.shape_cast %104 : vector<4x1x4x1x8x16xf32> to vector<4x4x8x16xf32>
    %106 = vector.shape_cast %105 : vector<4x4x8x16xf32> to vector<128x16xf32>
    %107 = arith.truncf %106 : vector<128x16xf32> to vector<128x16xbf16>
    %108 = vector.extract_strided_slice %102 {offsets = [0, 0, 0], sizes = [1, 16, 128], strides = [1, 1, 1]} : vector<9x16x128xbf16> to vector<1x16x128xbf16>
    %109 = vector.shape_cast %108 : vector<1x16x128xbf16> to vector<16x128xbf16>
    %cst_54 = arith.constant dense<0.000000e+00> : vector<128x128xf32>
    %110 = tpu.matmul %107, %109, %cst_54 {dimension_numbers = #tpu.dot_dimension_numbers<[1], [0], [0], [1], [0, 0, 1, 1], [], []>} : vector<128x16xbf16>, vector<16x128xbf16>, vector<128x128xf32> -> vector<128x128xf32>
    %111 = arith.addf %103, %110 : vector<128x128xf32>
    %112 = vector.extract_strided_slice %101 {offsets = [0, 0, 0, 1, 0, 0], sizes = [4, 1, 4, 1, 8, 16], strides = [1, 1, 1, 1, 1, 1]} : vector<5x2x5x2x8x16xf32> to vector<4x1x4x1x8x16xf32>
    %113 = vector.shape_cast %112 : vector<4x1x4x1x8x16xf32> to vector<4x4x8x16xf32>
    %114 = vector.shape_cast %113 : vector<4x4x8x16xf32> to vector<128x16xf32>
    %115 = arith.truncf %114 : vector<128x16xf32> to vector<128x16xbf16>
    %116 = vector.extract_strided_slice %102 {offsets = [1, 0, 0], sizes = [1, 16, 128], strides = [1, 1, 1]} : vector<9x16x128xbf16> to vector<1x16x128xbf16>
    %117 = vector.shape_cast %116 : vector<1x16x128xbf16> to vector<16x128xbf16>
    %cst_55 = arith.constant dense<0.000000e+00> : vector<128x128xf32>
    %118 = tpu.matmul %115, %117, %cst_55 {dimension_numbers = #tpu.dot_dimension_numbers<[1], [0], [0], [1], [0, 0, 1, 1], [], []>} : vector<128x16xbf16>, vector<16x128xbf16>, vector<128x128xf32> -> vector<128x128xf32>
    %119 = arith.addf %111, %118 : vector<128x128xf32>
    %120 = vector.extract_strided_slice %101 {offsets = [0, 0, 1, 0, 0, 0], sizes = [4, 1, 4, 1, 8, 16], strides = [1, 1, 1, 1, 1, 1]} : vector<5x2x5x2x8x16xf32> to vector<4x1x4x1x8x16xf32>
    %121 = vector.shape_cast %120 : vector<4x1x4x1x8x16xf32> to vector<4x4x8x16xf32>
    %122 = vector.shape_cast %121 : vector<4x4x8x16xf32> to vector<128x16xf32>
    %123 = arith.truncf %122 : vector<128x16xf32> to vector<128x16xbf16>
    %124 = vector.extract_strided_slice %102 {offsets = [2, 0, 0], sizes = [1, 16, 128], strides = [1, 1, 1]} : vector<9x16x128xbf16> to vector<1x16x128xbf16>
    %125 = vector.shape_cast %124 : vector<1x16x128xbf16> to vector<16x128xbf16>
    %cst_56 = arith.constant dense<0.000000e+00> : vector<128x128xf32>
    %126 = tpu.matmul %123, %125, %cst_56 {dimension_numbers = #tpu.dot_dimension_numbers<[1], [0], [0], [1], [0, 0, 1, 1], [], []>} : vector<128x16xbf16>, vector<16x128xbf16>, vector<128x128xf32> -> vector<128x128xf32>
    %127 = arith.addf %119, %126 : vector<128x128xf32>
    %128 = vector.extract_strided_slice %101 {offsets = [0, 1, 0, 0, 0, 0], sizes = [4, 1, 4, 1, 8, 16], strides = [1, 1, 1, 1, 1, 1]} : vector<5x2x5x2x8x16xf32> to vector<4x1x4x1x8x16xf32>
    %129 = vector.shape_cast %128 : vector<4x1x4x1x8x16xf32> to vector<4x4x8x16xf32>
    %130 = vector.shape_cast %129 : vector<4x4x8x16xf32> to vector<128x16xf32>
    %131 = arith.truncf %130 : vector<128x16xf32> to vector<128x16xbf16>
    %132 = vector.extract_strided_slice %102 {offsets = [3, 0, 0], sizes = [1, 16, 128], strides = [1, 1, 1]} : vector<9x16x128xbf16> to vector<1x16x128xbf16>
    %133 = vector.shape_cast %132 : vector<1x16x128xbf16> to vector<16x128xbf16>
    %cst_57 = arith.constant dense<0.000000e+00> : vector<128x128xf32>
    %134 = tpu.matmul %131, %133, %cst_57 {dimension_numbers = #tpu.dot_dimension_numbers<[1], [0], [0], [1], [0, 0, 1, 1], [], []>} : vector<128x16xbf16>, vector<16x128xbf16>, vector<128x128xf32> -> vector<128x128xf32>
    %135 = arith.addf %127, %134 : vector<128x128xf32>
    %136 = vector.extract_strided_slice %101 {offsets = [0, 1, 0, 1, 0, 0], sizes = [4, 1, 4, 1, 8, 16], strides = [1, 1, 1, 1, 1, 1]} : vector<5x2x5x2x8x16xf32> to vector<4x1x4x1x8x16xf32>
    %137 = vector.shape_cast %136 : vector<4x1x4x1x8x16xf32> to vector<4x4x8x16xf32>
    %138 = vector.shape_cast %137 : vector<4x4x8x16xf32> to vector<128x16xf32>
    %139 = arith.truncf %138 : vector<128x16xf32> to vector<128x16xbf16>
    %140 = vector.extract_strided_slice %102 {offsets = [4, 0, 0], sizes = [1, 16, 128], strides = [1, 1, 1]} : vector<9x16x128xbf16> to vector<1x16x128xbf16>
    %141 = vector.shape_cast %140 : vector<1x16x128xbf16> to vector<16x128xbf16>
    %cst_58 = arith.constant dense<0.000000e+00> : vector<128x128xf32>
    %142 = tpu.matmul %139, %141, %cst_58 {dimension_numbers = #tpu.dot_dimension_numbers<[1], [0], [0], [1], [0, 0, 1, 1], [], []>} : vector<128x16xbf16>, vector<16x128xbf16>, vector<128x128xf32> -> vector<128x128xf32>
    %143 = arith.addf %135, %142 : vector<128x128xf32>
    %144 = vector.extract_strided_slice %101 {offsets = [0, 1, 1, 0, 0, 0], sizes = [4, 1, 4, 1, 8, 16], strides = [1, 1, 1, 1, 1, 1]} : vector<5x2x5x2x8x16xf32> to vector<4x1x4x1x8x16xf32>
    %145 = vector.shape_cast %144 : vector<4x1x4x1x8x16xf32> to vector<4x4x8x16xf32>
    %146 = vector.shape_cast %145 : vector<4x4x8x16xf32> to vector<128x16xf32>
    %147 = arith.truncf %146 : vector<128x16xf32> to vector<128x16xbf16>
    %148 = vector.extract_strided_slice %102 {offsets = [5, 0, 0], sizes = [1, 16, 128], strides = [1, 1, 1]} : vector<9x16x128xbf16> to vector<1x16x128xbf16>
    %149 = vector.shape_cast %148 : vector<1x16x128xbf16> to vector<16x128xbf16>
    %cst_59 = arith.constant dense<0.000000e+00> : vector<128x128xf32>
    %150 = tpu.matmul %147, %149, %cst_59 {dimension_numbers = #tpu.dot_dimension_numbers<[1], [0], [0], [1], [0, 0, 1, 1], [], []>} : vector<128x16xbf16>, vector<16x128xbf16>, vector<128x128xf32> -> vector<128x128xf32>
    %151 = arith.addf %143, %150 : vector<128x128xf32>
    %152 = vector.extract_strided_slice %101 {offsets = [1, 0, 0, 0, 0, 0], sizes = [4, 1, 4, 1, 8, 16], strides = [1, 1, 1, 1, 1, 1]} : vector<5x2x5x2x8x16xf32> to vector<4x1x4x1x8x16xf32>
    %153 = vector.shape_cast %152 : vector<4x1x4x1x8x16xf32> to vector<4x4x8x16xf32>
    %154 = vector.shape_cast %153 : vector<4x4x8x16xf32> to vector<128x16xf32>
    %155 = arith.truncf %154 : vector<128x16xf32> to vector<128x16xbf16>
    %156 = vector.extract_strided_slice %102 {offsets = [6, 0, 0], sizes = [1, 16, 128], strides = [1, 1, 1]} : vector<9x16x128xbf16> to vector<1x16x128xbf16>
    %157 = vector.shape_cast %156 : vector<1x16x128xbf16> to vector<16x128xbf16>
    %cst_60 = arith.constant dense<0.000000e+00> : vector<128x128xf32>
    %158 = tpu.matmul %155, %157, %cst_60 {dimension_numbers = #tpu.dot_dimension_numbers<[1], [0], [0], [1], [0, 0, 1, 1], [], []>} : vector<128x16xbf16>, vector<16x128xbf16>, vector<128x128xf32> -> vector<128x128xf32>
    %159 = arith.addf %151, %158 : vector<128x128xf32>
    %160 = vector.extract_strided_slice %101 {offsets = [1, 0, 0, 1, 0, 0], sizes = [4, 1, 4, 1, 8, 16], strides = [1, 1, 1, 1, 1, 1]} : vector<5x2x5x2x8x16xf32> to vector<4x1x4x1x8x16xf32>
    %161 = vector.shape_cast %160 : vector<4x1x4x1x8x16xf32> to vector<4x4x8x16xf32>
    %162 = vector.shape_cast %161 : vector<4x4x8x16xf32> to vector<128x16xf32>
    %163 = arith.truncf %162 : vector<128x16xf32> to vector<128x16xbf16>
    %164 = vector.extract_strided_slice %102 {offsets = [7, 0, 0], sizes = [1, 16, 128], strides = [1, 1, 1]} : vector<9x16x128xbf16> to vector<1x16x128xbf16>
    %165 = vector.shape_cast %164 : vector<1x16x128xbf16> to vector<16x128xbf16>
    %cst_61 = arith.constant dense<0.000000e+00> : vector<128x128xf32>
    %166 = tpu.matmul %163, %165, %cst_61 {dimension_numbers = #tpu.dot_dimension_numbers<[1], [0], [0], [1], [0, 0, 1, 1], [], []>} : vector<128x16xbf16>, vector<16x128xbf16>, vector<128x128xf32> -> vector<128x128xf32>
    %167 = arith.addf %159, %166 : vector<128x128xf32>
    %168 = vector.extract_strided_slice %101 {offsets = [1, 0, 1, 0, 0, 0], sizes = [4, 1, 4, 1, 8, 16], strides = [1, 1, 1, 1, 1, 1]} : vector<5x2x5x2x8x16xf32> to vector<4x1x4x1x8x16xf32>
    %169 = vector.shape_cast %168 : vector<4x1x4x1x8x16xf32> to vector<4x4x8x16xf32>
    %170 = vector.shape_cast %169 : vector<4x4x8x16xf32> to vector<128x16xf32>
    %171 = arith.truncf %170 : vector<128x16xf32> to vector<128x16xbf16>
    %172 = vector.extract_strided_slice %102 {offsets = [8, 0, 0], sizes = [1, 16, 128], strides = [1, 1, 1]} : vector<9x16x128xbf16> to vector<1x16x128xbf16>
    %173 = vector.shape_cast %172 : vector<1x16x128xbf16> to vector<16x128xbf16>
    %cst_62 = arith.constant dense<0.000000e+00> : vector<128x128xf32>
    %174 = tpu.matmul %171, %173, %cst_62 {dimension_numbers = #tpu.dot_dimension_numbers<[1], [0], [0], [1], [0, 0, 1, 1], [], []>} : vector<128x16xbf16>, vector<16x128xbf16>, vector<128x128xf32> -> vector<128x128xf32>
    %175 = arith.addf %167, %174 : vector<128x128xf32>
    %c0_63 = arith.constant 0 : index
    %c0_64 = arith.constant 0 : index
    %176 = vector.load %arg7[%c0_63, %c0_64] : memref<1x128xf32, #tpu.memory_space<vmem>>, vector<1x128xf32>
    %177 = vector.broadcast %176 : vector<1x128xf32> to vector<128x128xf32>
    %178 = arith.addf %175, %177 : vector<128x128xf32>
    %cst_65 = arith.constant 0.000000e+00 : f32
    %179 = vector.broadcast %cst_65 : f32 to vector<128x128xf32>
    %180 = arith.maximumf %178, %179 : vector<128x128xf32>
    %181 = vector.shape_cast %180 : vector<128x128xf32> to vector<16x8x128xf32>
    %cst_66 = arith.constant dense<0.000000e+00> : vector<8x128xf32>
    %182 = vector.multi_reduction <add>, %181, %cst_66 [0] : vector<16x8x128xf32> to vector<8x128xf32>
    %cst_67 = arith.constant 1.600000e+01 : f32
    %183 = vector.broadcast %cst_67 : f32 to vector<8x128xf32>
    %184 = arith.divf %182, %183 : vector<8x128xf32>
    %c0_68 = arith.constant 0 : index
    %c0_69 = arith.constant 0 : index
    %185 = vector.load %arg9[%c0_68, %c0_69] : memref<8x128xf32, #tpu.memory_space<vmem>>, vector<8x128xf32>
    tpu.vector_store %arg9[%c0_68, %c0_69], %184 {strides = array<i32>} : memref<8x128xf32, #tpu.memory_space<vmem>>, vector<8x128xf32>,
    %186 = tpu.iota {dimensions = array<i32: 1>} : vector<8x128xi32>
    %c10_i32 = arith.constant 10 : i32
    %187 = vector.broadcast %c10_i32 : i32 to vector<8x128xi32>
    %188 = arith.cmpi slt, %186, %187 : vector<8x128xi32>
    %cst_70 = arith.constant -1.000000e+30 : f32
    %189 = vector.broadcast %cst_70 : f32 to vector<8x128xf32>
    %190 = arith.select %188, %184, %189 : vector<8x128xi1>, vector<8x128xf32>
    %cst_71 = arith.constant dense<0xFF800000> : vector<8xf32>
    %191 = vector.multi_reduction <maximumf>, %190, %cst_71 [1] : vector<8x128xf32> to vector<8xf32>
    %192 = vector.shape_cast %191 : vector<8xf32> to vector<8x1xf32>
    %193 = vector.broadcast %192 : vector<8x1xf32> to vector<8x128xf32>
    %194 = arith.subf %190, %193 : vector<8x128xf32>
    %195 = math.exp %194 : vector<8x128xf32>
    %cst_72 = arith.constant dense<0.000000e+00> : vector<8xf32>
    %196 = vector.multi_reduction <add>, %195, %cst_72 [1] : vector<8x128xf32> to vector<8xf32>
    %197 = vector.shape_cast %196 : vector<8xf32> to vector<8x1xf32>
    %198 = math.log %197 : vector<8x1xf32>
    %199 = arith.addf %198, %192 : vector<8x1xf32>
    %c0_73 = arith.constant 0 : index
    %c0_74 = arith.constant 0 : index
    %200 = vector.load %arg8[%c0_73, %c0_74] : memref<8x128xf32, #tpu.memory_space<vmem>>, vector<8x128xf32>
    %201 = arith.mulf %184, %200 : vector<8x128xf32>
    %cst_75 = arith.constant dense<0.000000e+00> : vector<8xf32>
    %202 = vector.multi_reduction <add>, %201, %cst_75 [1] : vector<8x128xf32> to vector<8xf32>
    %203 = vector.shape_cast %202 : vector<8xf32> to vector<8x1xf32>
    %204 = arith.subf %199, %203 : vector<8x1xf32>
    %205 = vector.shape_cast %204 : vector<8x1xf32> to vector<8x1xf32>
    %206 = vector.broadcast %205 : vector<8x1xf32> to vector<8x128xf32>
    %c0_76 = arith.constant 0 : index
    %c0_77 = arith.constant 0 : index
    %207 = vector.load %arg10[%c0_76, %c0_77] : memref<8x128xf32, #tpu.memory_space<vmem>>, vector<8x128xf32>
    tpu.vector_store %arg10[%c0_76, %c0_77], %206 {strides = array<i32>} : memref<8x128xf32, #tpu.memory_space<vmem>>, vector<8x128xf32>,
    return
  }
  func.func @transform_0(%arg0: i32) -> (i32, i32, i32, i32, i32) {
    %c0_i32 = arith.constant 0 : i32
    %c0_i32_0 = arith.constant 0 : i32
    %c0_i32_1 = arith.constant 0 : i32
    %c0_i32_2 = arith.constant 0 : i32
    %c0_i32_3 = arith.constant 0 : i32
    return %arg0, %c0_i32, %c0_i32_0, %c0_i32_1, %c0_i32_2 : i32, i32, i32, i32, i32
  }
  func.func @transform_1(%arg0: i32) -> (i32, i32) {
    %c0_i32 = arith.constant 0 : i32
    %c0_i32_0 = arith.constant 0 : i32
    %c0_i32_1 = arith.constant 0 : i32
    return %c0_i32, %c0_i32_0 : i32, i32
  }
  func.func @transform_2(%arg0: i32) -> (i32, i32) {
    %c0_i32 = arith.constant 0 : i32
    %c0_i32_0 = arith.constant 0 : i32
    %c0_i32_1 = arith.constant 0 : i32
    return %c0_i32, %c0_i32_0 : i32, i32
  }
  func.func @transform_3(%arg0: i32) -> (i32, i32, i32) {
    %c0_i32 = arith.constant 0 : i32
    %c0_i32_0 = arith.constant 0 : i32
    %c0_i32_1 = arith.constant 0 : i32
    %c0_i32_2 = arith.constant 0 : i32
    return %c0_i32, %c0_i32_0, %c0_i32_1 : i32, i32, i32
  }
  func.func @transform_4(%arg0: i32) -> (i32, i32) {
    %c0_i32 = arith.constant 0 : i32
    %c0_i32_0 = arith.constant 0 : i32
    %c0_i32_1 = arith.constant 0 : i32
    return %c0_i32, %c0_i32_0 : i32, i32
  }
  func.func @transform_5(%arg0: i32) -> (i32, i32, i32) {
    %c0_i32 = arith.constant 0 : i32
    %c0_i32_0 = arith.constant 0 : i32
    %c0_i32_1 = arith.constant 0 : i32
    %c0_i32_2 = arith.constant 0 : i32
    return %c0_i32, %c0_i32_0, %c0_i32_1 : i32, i32, i32
  }
  func.func @transform_6(%arg0: i32) -> (i32, i32) {
    %c0_i32 = arith.constant 0 : i32
    %c0_i32_0 = arith.constant 0 : i32
    %c0_i32_1 = arith.constant 0 : i32
    return %c0_i32, %c0_i32_0 : i32, i32
  }
  func.func @transform_7(%arg0: i32) -> (i32, i32) {
    %c0_i32 = arith.constant 0 : i32
    %c0_i32_0 = arith.constant 0 : i32
    return %arg0, %c0_i32 : i32, i32
  }
  func.func @transform_8(%arg0: i32) -> (i32, i32) {
    %c0_i32 = arith.constant 0 : i32
    %c0_i32_0 = arith.constant 0 : i32
    return %arg0, %c0_i32 : i32, i32
  }
  func.func @transform_9(%arg0: i32) -> (i32, i32) {
    %c0_i32 = arith.constant 0 : i32
    %c0_i32_0 = arith.constant 0 : i32
    return %arg0, %c0_i32 : i32, i32
  }
}

</mosaic_0001>

<bundles_post_ra>
// kernel: _lambda_.1
= control target key start
LH: loop header
LB: loop body
LE: loop exit
PB: predicated region body
PF: predicated region fallthrough
CT: control target
= control target key end

     0   :  { %vm338_vm0 = vcmask 130048   ;;  %v6197_v22 = vmov 0.0   ;;  %s9384_s1 = inlined_call_operand.vmem [shape: bf16[16,16], index: 1, kind: input, shape index: {}]   ;;  %s9385_s0 = inlined_call_operand.vmem [shape: f32[1,14,14,8,16], index: 0, kind: input, shape index: {}]   ;;  %s9386_s2 = inlined_call_operand.vmem [shape: f32[1,16], index: 2, kind: input, shape index: {}]   ;;  %s9387_s3 = inlined_call_operand.vmem [shape: bf16[9,16,16], index: 3, kind: input, shape index: {}]   ;;  %s9388_s5 = inlined_call_operand.vmem [shape: bf16[9,16,128], index: 5, kind: input, shape index: {}]   ;;  %s9389_s4 = inlined_call_operand.vmem [shape: f32[1,16], index: 4, kind: input, shape index: {}]   ;;  %s9390_s6 = inlined_call_operand.vmem [shape: f32[1,128], index: 6, kind: input, shape index: {}]   ;;  %s9391_s7 = inlined_call_operand.vmem [shape: f32[8,128], index: 7, kind: input, shape index: {}]   ;;  %s9392_s8 = inlined_call_operand.vmem [shape: f32[8,128], index: 8, kind: output, shape index: {0}]   ;;  %s9393_s9 = inlined_call_operand.vmem [shape: f32[8,128], index: 9, kind: output, shape index: {1}]  }
   0x1   :  { %v6131_v0 = vld [vmem:[%s9384_s1] sm:$0xff]  ;;  %v33_v2 = vld [vmem:[%s9385_s0 + $0x8] sm:$0xff]  ;;  %v34_v4 = vld [vmem:[%s9385_s0 + $0x10] sm:$0xff]  ;;  %1345 = vst.msk [vmem:[#allocation2 + $0x88] sm:$0xff] %vm338_vm0, %v6197_v22 }
   0x2   :  { %v32_v1 = vld [vmem:[%s9385_s0] sm:$0xff]  ;;  %640 = vmatpush.bf16.msra.mxu0 %v6131_v0  ;;  %v35_v5 = vld [vmem:[%s9385_s0 + $0x18] sm:$0xff]  ;;  %v37_v8 = vld [vmem:[%s9385_s0 + $0x28] sm:$0xff]  ;;  %1328 = vst.msk [vmem:[#allocation2] sm:$0xff] %vm338_vm0, %v6197_v22 }
   0x3   :  { %v228_v3 = vpack.c.bf16 %v33_v2, %v32_v1  ;;  %v229_v6 = vpack.c.bf16 %v35_v5, %v34_v4  ;;  %v36_v7 = vld [vmem:[%s9385_s0 + $0x20] sm:$0xff]  ;;  %v38_v10 = vld [vmem:[%s9385_s0 + $0x30] sm:$0xff]  ;;  %v39_v11 = vld [vmem:[%s9385_s0 + $0x38] sm:$0xff]  ;;  %1329 = vst.msk [vmem:[#allocation2 + $0x8] sm:$0xff] %vm338_vm0, %v6197_v22 }
   0x4   :  { %v230_v9 = vpack.c.bf16 %v37_v8, %v36_v7  ;;  %v231_v12 = vpack.c.bf16 %v39_v11, %v38_v10  ;;  %v40_v13 = vld [vmem:[%s9385_s0 + $0x40] sm:$0xff]  ;;  %v41_v14 = vld [vmem:[%s9385_s0 + $0x48] sm:$0xff]  ;;  %v42_v16 = vld [vmem:[%s9385_s0 + $0x50] sm:$0xff]  ;;  %1330 = vst.msk [vmem:[#allocation2 + $0x10] sm:$0xff] %vm338_vm0, %v6197_v22 }
   0x5   :  { %5664 = vmatmul.msk.bf16.vlgmr.msra.gmra.mxu0 %vm338_vm0, %v228_v3  ;;  %v232_v15 = vpack.c.bf16 %v41_v14, %v40_v13  ;;  %v43_v17 = vld [vmem:[%s9385_s0 + $0x58] sm:$0xff]  ;;  %v44_v19 = vld [vmem:[%s9385_s0 + $0x60] sm:$0xff]  ;;  %v45_v20 = vld [vmem:[%s9385_s0 + $0x68] sm:$0xff]  ;;  %1331 = vst.msk [vmem:[#allocation2 + $0x18] sm:$0xff] %vm338_vm0, %v6197_v22 }
   0x6   :  { %v233_v18 = vpack.c.bf16 %v43_v17, %v42_v16  ;;  %v234_v21 = vpack.c.bf16 %v45_v20, %v44_v19  ;;  %1332 = vst.msk [vmem:[#allocation2 + $0x20] sm:$0xff] %vm338_vm0, %v6197_v22  ;;  %v46_v23 = vld [vmem:[%s9385_s0 + $0x70] sm:$0xff]  ;;  %v47_v24 = vld [vmem:[%s9385_s0 + $0x78] sm:$0xff]  ;;  %v48_v26 = vld [vmem:[%s9385_s0 + $0x80] sm:$0xff] }
   0x7   :  { %1333 = vst.msk [vmem:[#allocation2 + $0x28] sm:$0xff] %vm338_vm0, %v6197_v22  ;;  %v235_v25 = vpack.c.bf16 %v47_v24, %v46_v23  ;;  %v49_v27 = vld [vmem:[%s9385_s0 + $0x88] sm:$0xff]  ;;  %v6365_v28 = vld [vmem:[%s9386_s2] ss:$0 sm:$0xff]  ;;  %v50_v35 = vld [vmem:[%s9385_s0 + $0x90] sm:$0xff] }
   0x8   :  { %1334 = vst.msk [vmem:[#allocation2 + $0x30] sm:$0xff] %vm338_vm0, %v6197_v22  ;;  %v236_v29 = vpack.c.bf16 %v49_v27, %v48_v26  ;;  %v51_v36 = vld [vmem:[%s9385_s0 + $0x98] sm:$0xff]  ;;  %v52_v39 = vld [vmem:[%s9385_s0 + $0xa0] sm:$0xff]  ;;  %v53_v40 = vld [vmem:[%s9385_s0 + $0xa8] sm:$0xff] }
   0x9   :  { %1335 = vst.msk [vmem:[#allocation2 + $0x38] sm:$0xff] %vm338_vm0, %v6197_v22  ;;  %v237_v37 = vpack.c.bf16 %v51_v36, %v50_v35  ;;  %v238_v42 = vpack.c.bf16 %v53_v40, %v52_v39  ;;  %v6132_v43 = vld [vmem:[%s9387_s3] sm:$0xff]  ;;  %v54_v51 = vld [vmem:[%s9385_s0 + $0xb0] sm:$0xff]  ;;  %v55_v52 = vld [vmem:[%s9385_s0 + $0xb8] sm:$0xff] }
   0xa   :  { %1336 = vst.msk [vmem:[#allocation2 + $0x40] sm:$0xff] %vm338_vm0, %v6197_v22  ;;  %2376 = vmatpush.bf16.msra.mxu2 %v6132_v43  ;;  %v1781_v54 = vld [vmem:[#allocation2] sm:$0xff]  ;;  %v6133_v56 = vld [vmem:[%s9387_s3 + $0x8] sm:$0xff]  ;;  %v239_v1 = vpack.c.bf16 %v55_v52, %v54_v51  ;;  %v6134_v4 = vld [vmem:[%s9387_s3 + $0x10] sm:$0xff] }
   0xb   :  { %1337 = vst.msk [vmem:[#allocation2 + $0x48] sm:$0xff] %vm338_vm0, %v6197_v22  ;;  %v1783_v55 = vld [vmem:[#allocation2 + $0x10] sm:$0xff]  ;;  %v1782_v59 = vld [vmem:[#allocation2 + $0x8] sm:$0xff]  ;;  %2162 = vmatpush.bf16.msra.mxu1 %v6133_v56  ;;  %2615 = vmatpush.bf16.msra.mxu3 %v6134_v4  ;;  %v56_v10 = vld [vmem:[%s9385_s0 + $0xc0] sm:$0xff] }
   0xc   :  { %1338 = vst.msk [vmem:[#allocation2 + $0x50] sm:$0xff] %vm338_vm0, %v6197_v22  ;;  %v2024_v58 = vpack.c.bf16 %v1783_v55, %v1781_v54  ;;  %v1784_v60 = vld [vmem:[#allocation2 + $0x18] sm:$0xff]  ;;  %v57_v11 = vld [vmem:[%s9385_s0 + $0xc8] sm:$0xff]  ;;  %v58_v26 = vld [vmem:[%s9385_s0 + $0xd0] sm:$0xff] }
   0xd   :  { %1339 = vst.msk [vmem:[#allocation2 + $0x58] sm:$0xff] %vm338_vm0, %v6197_v22  ;;  %v2049_v62 = vpack.c.bf16 %v1784_v60, %v1782_v59  ;;  %v1785_v5 = vld [vmem:[#allocation2 + $0x20] sm:$0xff]  ;;  %v59_v27 = vld [vmem:[%s9385_s0 + $0xd8] sm:$0xff]  ;;  %v62_v54 = vld [vmem:[%s9385_s0 + $0xf0] sm:$0xff] }
   0xe   :  { %1340 = vst.msk [vmem:[#allocation2 + $0x60] sm:$0xff] %vm338_vm0, %v6197_v22  ;;  %5795 = vmatmul.msk.bf16.vlgmr.msra.gmra.mxu2 %vm338_vm0, %v2024_v58  ;;  %v1786_v13 = vld [vmem:[#allocation2 + $0x28] sm:$0xff]  ;;  %v241_v35 = vpack.c.bf16 %v59_v27, %v58_v26  ;;  %v60_v43 = vld [vmem:[%s9385_s0 + $0xe0] sm:$0xff] }
   0xf   :  { %1341 = vst.msk [vmem:[#allocation2 + $0x68] sm:$0xff] %vm338_vm0, %v6197_v22  ;;  %5766 = vmatmul.msk.bf16.vlgmr.msra.gmra.mxu1 %vm338_vm0, %v2049_v62 }
  0x10   :  { %1342 = vst.msk [vmem:[#allocation2 + $0x70] sm:$0xff] %vm338_vm0, %v6197_v22  ;;  %v1788_v14 = vld [vmem:[#allocation2 + $0x38] sm:$0xff] }
  0x11   :  { %1344 = vst.msk [vmem:[#allocation2 + $0x80] sm:$0xff] %vm338_vm0, %v6197_v22  ;;  %v2050_v16 = vpack.c.bf16 %v1788_v14, %v1786_v13 }
  0x12   :  { %1346 = vst.msk [vmem:[#allocation2 + $0x90] sm:$0xff] %vm338_vm0, %v6197_v22 }
  0x13   :  { %1347 = vst.msk [vmem:[#allocation2 + $0x98] sm:$0xff] %vm338_vm0, %v6197_v22 }
  0x14   :  { %1348 = vst.msk [vmem:[#allocation2 + $0xa0] sm:$0xff] %vm338_vm0, %v6197_v22 }
  0x15   :  { %5665 = vmatmul.msk.bf16.gmra.mxu0 %vm338_vm0, %v229_v6  ;;  %1349 = vst.msk [vmem:[#allocation2 + $0xa8] sm:$0xff] %vm338_vm0, %v6197_v22  ;;  %v2502_v6 = vpack.c.bf16 %v1785_v5, %v1783_v55  ;;  %v63_v55 = vld [vmem:[%s9385_s0 + $0xf8] sm:$0xff] }
  0x16   :  { %1350 = vst.msk [vmem:[#allocation2 + $0xb0] sm:$0xff] %vm338_vm0, %v6197_v22  ;;  %v1794_v62 = vld [vmem:[#allocation2 + $0x68] sm:$0xff] }
  0x17   :  { %1351 = vst.msk [vmem:[#allocation2 + $0xb8] sm:$0xff] %vm338_vm0, %v6197_v22  ;;  %5824 = vmatmul.msk.bf16.vlgmr.msra.gmra.mxu3 %vm338_vm0, %v2502_v6 }
  0x18   :  { %1352 = vst.msk [vmem:[#allocation2 + $0xc0] sm:$0xff] %vm338_vm0, %v6197_v22 }
  0x19   :  { %1353 = vst.msk [vmem:[#allocation2 + $0xc8] sm:$0xff] %vm338_vm0, %v6197_v22 }
  0x1a   :  { %1354 = vst.msk [vmem:[#allocation2 + $0xd0] sm:$0xff] %vm338_vm0, %v6197_v22 }
  0x1b   :  { %1355 = vst.msk [vmem:[#allocation2 + $0xd8] sm:$0xff] %vm338_vm0, %v6197_v22 }
  0x1c   :  { %1356 = vst.msk [vmem:[#allocation2 + $0xe0] sm:$0xff] %vm338_vm0, %v6197_v22 }
  0x1d   :  { %1357 = vst.msk [vmem:[#allocation2 + $0xe8] sm:$0xff] %vm338_vm0, %v6197_v22 }
  0x1e   :  { %1358 = vst.msk [vmem:[#allocation2 + $0xf0] sm:$0xff] %vm338_vm0, %v6197_v22 }
  0x1f   :  { %1360 = vst.msk [vmem:[#allocation2 + $0x100] sm:$0xff] %vm338_vm0, %v6197_v22  ;;  %5767 = vmatmul.msk.bf16.gmra.mxu1 %vm338_vm0, %v2050_v16  ;;  %v66_v16 = vld [vmem:[%s9385_s0 + $0x110] sm:$0xff] }
  0x20   :  { %1361 = vst.msk [vmem:[#allocation2 + $0x108] sm:$0xff] %vm338_vm0, %v6197_v22 }
  0x21   :  { %1362 = vst.msk [vmem:[#allocation2 + $0x110] sm:$0xff] %vm338_vm0, %v6197_v22 }
  0x22   :  { %1363 = vst.msk [vmem:[#allocation2 + $0x118] sm:$0xff] %vm338_vm0, %v6197_v22 }
  0x23   :  { %1364 = vst.msk [vmem:[#allocation2 + $0x120] sm:$0xff] %vm338_vm0, %v6197_v22 }
  0x24   :  { %1365 = vst.msk [vmem:[#allocation2 + $0x128] sm:$0xff] %vm338_vm0, %v6197_v22 }
  0x25   :  { %5666 = vmatmul.msk.bf16.gmra.mxu0 %vm338_vm0, %v230_v9  ;;  %1366 = vst.msk [vmem:[#allocation2 + $0x130] sm:$0xff] %vm338_vm0, %v6197_v22 }
  0x26   :  { %1367 = vst.msk [vmem:[#allocation2 + $0x138] sm:$0xff] %vm338_vm0, %v6197_v22 }
  0x27   :  { %1368 = vst.msk [vmem:[#allocation2 + $0x140] sm:$0xff] %vm338_vm0, %v6197_v22 }
  0x28   :  { %1369 = vst.msk [vmem:[#allocation2 + $0x148] sm:$0xff] %vm338_vm0, %v6197_v22 }
  0x29   :  { %1370 = vst.msk [vmem:[#allocation2 + $0x150] sm:$0xff] %vm338_vm0, %v6197_v22 }
  0x2a   :  { %1371 = vst.msk [vmem:[#allocation2 + $0x158] sm:$0xff] %vm338_vm0, %v6197_v22 }
  0x2b   :  { %1372 = vst.msk [vmem:[#allocation2 + $0x160] sm:$0xff] %vm338_vm0, %v6197_v22 }
  0x2c   :  { %1373 = vst.msk [vmem:[#allocation2 + $0x168] sm:$0xff] %vm338_vm0, %v6197_v22 }
  0x2d   :  { %1374 = vst.msk [vmem:[#allocation2 + $0x170] sm:$0xff] %vm338_vm0, %v6197_v22 }
  0x2e   :  { %1376 = vst.msk [vmem:[#allocation2 + $0x180] sm:$0xff] %vm338_vm0, %v6197_v22 }
  0x2f   :  { %1377 = vst.msk [vmem:[#allocation2 + $0x188] sm:$0xff] %vm338_vm0, %v6197_v22 }
  0x30   :  { %1378 = vst.msk [vmem:[#allocation2 + $0x190] sm:$0xff] %vm338_vm0, %v6197_v22 }
  0x31   :  { %1379 = vst.msk [vmem:[#allocation2 + $0x198] sm:$0xff] %vm338_vm0, %v6197_v22 }
  0x32   :  { %1380 = vst.msk [vmem:[#allocation2 + $0x1a0] sm:$0xff] %vm338_vm0, %v6197_v22 }
  0x33   :  { %1381 = vst.msk [vmem:[#allocation2 + $0x1a8] sm:$0xff] %vm338_vm0, %v6197_v22 }
  0x34   :  { %1382 = vst.msk [vmem:[#allocation2 + $0x1b0] sm:$0xff] %vm338_vm0, %v6197_v22 }
  0x35   :  { %5667 = vmatmul.msk.bf16.gmra.mxu0 %vm338_vm0, %v231_v12  ;;  %1383 = vst.msk [vmem:[#allocation2 + $0x1b8] sm:$0xff] %vm338_vm0, %v6197_v22  ;;  %v1787_v12 = vld [vmem:[#allocation2 + $0x30] sm:$0xff] }
  0x36   :  { %1384 = vst.msk [vmem:[#allocation2 + $0x1c0] sm:$0xff] %vm338_vm0, %v6197_v22 }
  0x37   :  { %1385 = vst.msk [vmem:[#allocation2 + $0x1c8] sm:$0xff] %vm338_vm0, %v6197_v22 }
  0x38   :  { %1386 = vst.msk [vmem:[#allocation2 + $0x1d0] sm:$0xff] %vm338_vm0, %v6197_v22 }
  0x39   :  { %1387 = vst.msk [vmem:[#allocation2 + $0x1d8] sm:$0xff] %vm338_vm0, %v6197_v22 }
  0x3a   :  { %1388 = vst.msk [vmem:[#allocation2 + $0x1e0] sm:$0xff] %vm338_vm0, %v6197_v22 }
  0x3b   :  { %1389 = vst.msk [vmem:[#allocation2 + $0x1e8] sm:$0xff] %vm338_vm0, %v6197_v22 }
  0x3c   :  { %1390 = vst.msk [vmem:[#allocation2 + $0x1f0] sm:$0xff] %vm338_vm0, %v6197_v22 }
  0x3d   :  { %1392 = vst.msk [vmem:[#allocation2 + $0x200] sm:$0xff] %vm338_vm0, %v6197_v22 }
  0x3e   :  { %1393 = vst.msk [vmem:[#allocation2 + $0x208] sm:$0xff] %vm338_vm0, %v6197_v22 }
  0x3f   :  { %1394 = vst.msk [vmem:[#allocation2 + $0x210] sm:$0xff] %vm338_vm0, %v6197_v22 }
  0x40   :  { %1395 = vst.msk [vmem:[#allocation2 + $0x218] sm:$0xff] %vm338_vm0, %v6197_v22 }
  0x41   :  { %1396 = vst.msk [vmem:[#allocation2 + $0x220] sm:$0xff] %vm338_vm0, %v6197_v22 }
  0x42   :  { %1397 = vst.msk [vmem:[#allocation2 + $0x228] sm:$0xff] %vm338_vm0, %v6197_v22 }
  0x43   :  { %1398 = vst.msk [vmem:[#allocation2 + $0x230] sm:$0xff] %vm338_vm0, %v6197_v22 }
  0x44   :  { %1399 = vst.msk [vmem:[#allocation2 + $0x238] sm:$0xff] %vm338_vm0, %v6197_v22 }
  0x45   :  { %5668 = vmatmul.msk.bf16.gmra.mxu0 %vm338_vm0, %v232_v15  ;;  %1400 = vst.msk [vmem:[#allocation2 + $0x240] sm:$0xff] %vm338_vm0, %v6197_v22  ;;  %v2025_v15 = vpack.c.bf16 %v1787_v12, %v1785_v5 }
  0x46   :  { %1401 = vst.msk [vmem:[#allocation2 + $0x248] sm:$0xff] %vm338_vm0, %v6197_v22 }
  0x47   :  { %1402 = vst.msk [vmem:[#allocation2 + $0x250] sm:$0xff] %vm338_vm0, %v6197_v22  ;;  %5796 = vmatmul.msk.bf16.gmra.mxu2 %vm338_vm0, %v2025_v15 }
  0x48   :  { %1403 = vst.msk [vmem:[#allocation2 + $0x258] sm:$0xff] %vm338_vm0, %v6197_v22 }
  0x49   :  { %1404 = vst.msk [vmem:[#allocation2 + $0x260] sm:$0xff] %vm338_vm0, %v6197_v22 }
  0x4a   :  { %1405 = vst.msk [vmem:[#allocation2 + $0x268] sm:$0xff] %vm338_vm0, %v6197_v22 }
  0x4b   :  { %1406 = vst.msk [vmem:[#allocation2 + $0x270] sm:$0xff] %vm338_vm0, %v6197_v22 }
  0x4c   :  { %1408 = vst.msk [vmem:[#allocation2 + $0x280] sm:$0xff] %vm338_vm0, %v6197_v22 }
  0x4d   :  { %1409 = vst.msk [vmem:[#allocation2 + $0x288] sm:$0xff] %vm338_vm0, %v6197_v22 }
  0x4e   :  { %1410 = vst.msk [vmem:[#allocation2 + $0x290] sm:$0xff] %vm338_vm0, %v6197_v22 }
  0x4f   :  { %1411 = vst.msk [vmem:[#allocation2 + $0x298] sm:$0xff] %vm338_vm0, %v6197_v22 }
  0x50   :  { %1412 = vst.msk [vmem:[#allocation2 + $0x2a0] sm:$0xff] %vm338_vm0, %v6197_v22 }
  0x51   :  { %1413 = vst.msk [vmem:[#allocation2 + $0x2a8] sm:$0xff] %vm338_vm0, %v6197_v22 }
  0x52   :  { %1414 = vst.msk [vmem:[#allocation2 + $0x2b0] sm:$0xff] %vm338_vm0, %v6197_v22 }
  0x53   :  { %1415 = vst.msk [vmem:[#allocation2 + $0x2b8] sm:$0xff] %vm338_vm0, %v6197_v22 }
  0x54   :  { %1416 = vst.msk [vmem:[#allocation2 + $0x2c0] sm:$0xff] %vm338_vm0, %v6197_v22 }
  0x55   :  { %5669 = vmatmul.msk.bf16.gmra.mxu0 %vm338_vm0, %v233_v18  ;;  %1417 = vst.msk [vmem:[#allocation2 + $0x2c8] sm:$0xff] %vm338_vm0, %v6197_v22  ;;  %v240_v18 = vpack.c.bf16 %v57_v11, %v56_v10 }
  0x56   :  { %1418 = vst.msk [vmem:[#allocation2 + $0x2d0] sm:$0xff] %vm338_vm0, %v6197_v22 }
  0x57   :  { %1419 = vst.msk [vmem:[#allocation2 + $0x2d8] sm:$0xff] %vm338_vm0, %v6197_v22 }
  0x58   :  { %1420 = vst.msk [vmem:[#allocation2 + $0x2e0] sm:$0xff] %vm338_vm0, %v6197_v22 }
  0x59   :  { %1421 = vst.msk [vmem:[#allocation2 + $0x2e8] sm:$0xff] %vm338_vm0, %v6197_v22 }
  0x5a   :  { %1422 = vst.msk [vmem:[#allocation2 + $0x2f0] sm:$0xff] %vm338_vm0, %v6197_v22 }
  0x5b   :  { %1424 = vst.msk [vmem:[#allocation2 + $0x300] sm:$0xff] %vm338_vm0, %v6197_v22 }
  0x5c   :  { %1425 = vst.msk [vmem:[#allocation2 + $0x308] sm:$0xff] %vm338_vm0, %v6197_v22 }
  0x5d   :  { %1426 = vst.msk [vmem:[#allocation2 + $0x310] sm:$0xff] %vm338_vm0, %v6197_v22 }
  0x5e   :  { %1427 = vst.msk [vmem:[#allocation2 + $0x318] sm:$0xff] %vm338_vm0, %v6197_v22 }
  0x5f   :  { %1428 = vst.msk [vmem:[#allocation2 + $0x320] sm:$0xff] %vm338_vm0, %v6197_v22 }
  0x60   :  { %1429 = vst.msk [vmem:[#allocation2 + $0x328] sm:$0xff] %vm338_vm0, %v6197_v22 }
  0x61   :  { %1430 = vst.msk [vmem:[#allocation2 + $0x330] sm:$0xff] %vm338_vm0, %v6197_v22 }
  0x62   :  { %1431 = vst.msk [vmem:[#allocation2 + $0x338] sm:$0xff] %vm338_vm0, %v6197_v22 }
  0x63   :  { %1432 = vst.msk [vmem:[#allocation2 + $0x340] sm:$0xff] %vm338_vm0, %v6197_v22 }
  0x64   :  { %1433 = vst.msk [vmem:[#allocation2 + $0x348] sm:$0xff] %vm338_vm0, %v6197_v22 }
  0x65   :  { %5670 = vmatmul.msk.bf16.gmra.mxu0 %vm338_vm0, %v234_v21  ;;  %1434 = vst.msk [vmem:[#allocation2 + $0x350] sm:$0xff] %vm338_vm0, %v6197_v22  ;;  %v1789_v21 = vld [vmem:[#allocation2 + $0x40] sm:$0xff] }
  0x66   :  { %1435 = vst.msk [vmem:[#allocation2 + $0x358] sm:$0xff] %vm338_vm0, %v6197_v22 }
  0x67   :  { %1436 = vst.msk [vmem:[#allocation2 + $0x360] sm:$0xff] %vm338_vm0, %v6197_v22 }
  0x68   :  { %1437 = vst.msk [vmem:[#allocation2 + $0x368] sm:$0xff] %vm338_vm0, %v6197_v22 }
  0x69   :  { %1438 = vst.msk [vmem:[#allocation2 + $0x370] sm:$0xff] %vm338_vm0, %v6197_v22 }
  0x6a   :  { %1440 = vst.msk [vmem:[#allocation2 + $0x380] sm:$0xff] %vm338_vm0, %v6197_v22 }
  0x6b   :  { %1441 = vst.msk [vmem:[#allocation2 + $0x388] sm:$0xff] %vm338_vm0, %v6197_v22 }
  0x6c   :  { %1442 = vst.msk [vmem:[#allocation2 + $0x390] sm:$0xff] %vm338_vm0, %v6197_v22 }
  0x6d   :  { %1443 = vst.msk [vmem:[#allocation2 + $0x398] sm:$0xff] %vm338_vm0, %v6197_v22 }
  0x6e   :  { %1444 = vst.msk [vmem:[#allocation2 + $0x3a0] sm:$0xff] %vm338_vm0, %v6197_v22 }
  0x6f   :  { %1445 = vst.msk [vmem:[#allocation2 + $0x3a8] sm:$0xff] %vm338_vm0, %v6197_v22 }
  0x70   :  { %1446 = vst.msk [vmem:[#allocation2 + $0x3b0] sm:$0xff] %vm338_vm0, %v6197_v22 }
  0x71   :  { %1447 = vst.msk [vmem:[#allocation2 + $0x3b8] sm:$0xff] %vm338_vm0, %v6197_v22 }
  0x72   :  { %1448 = vst.msk [vmem:[#allocation2 + $0x3c0] sm:$0xff] %vm338_vm0, %v6197_v22 }
  0x73   :  { %1449 = vst.msk [vmem:[#allocation2 + $0x3c8] sm:$0xff] %vm338_vm0, %v6197_v22 }
  0x74   :  { %1450 = vst.msk [vmem:[#allocation2 + $0x3d0] sm:$0xff] %vm338_vm0, %v6197_v22 }
  0x75   :  { %5671 = vmatmul.msk.bf16.gmra.mxu0 %vm338_vm0, %v235_v25  ;;  %1451 = vst.msk [vmem:[#allocation2 + $0x3d8] sm:$0xff] %vm338_vm0, %v6197_v22 }
  0x76   :  { %1452 = vst.msk [vmem:[#allocation2 + $0x3e0] sm:$0xff] %vm338_vm0, %v6197_v22 }
  0x77   :  { %1453 = vst.msk [vmem:[#allocation2 + $0x3e8] sm:$0xff] %vm338_vm0, %v6197_v22 }
  0x78   :  { %1454 = vst.msk [vmem:[#allocation2 + $0x3f0] sm:$0xff] %vm338_vm0, %v6197_v22 }
  0x79   :  { %1456 = vst.msk [vmem:[#allocation2 + $0x400] sm:$0xff] %vm338_vm0, %v6197_v22 }
  0x7a   :  { %1457 = vst.msk [vmem:[#allocation2 + $0x408] sm:$0xff] %vm338_vm0, %v6197_v22 }
  0x7b   :  { %1458 = vst.msk [vmem:[#allocation2 + $0x410] sm:$0xff] %vm338_vm0, %v6197_v22 }
  0x7c   :  { %1459 = vst.msk [vmem:[#allocation2 + $0x418] sm:$0xff] %vm338_vm0, %v6197_v22 }
  0x7d   :  { %1460 = vst.msk [vmem:[#allocation2 + $0x420] sm:$0xff] %vm338_vm0, %v6197_v22 }
  0x7e   :  { %1461 = vst.msk [vmem:[#allocation2 + $0x428] sm:$0xff] %vm338_vm0, %v6197_v22 }
  0x7f   :  { %1462 = vst.msk [vmem:[#allocation2 + $0x430] sm:$0xff] %vm338_vm0, %v6197_v22 }
  0x80   :  { %1463 = vst.msk [vmem:[#allocation2 + $0x438] sm:$0xff] %vm338_vm0, %v6197_v22 }
  0x81   :  { %1464 = vst.msk [vmem:[#allocation2 + $0x440] sm:$0xff] %vm338_vm0, %v6197_v22 }
  0x82   :  { %v642_v30 = vpop.f32.mrf.mxu0  ;;  %1465 = vst.msk [vmem:[#allocation2 + $0x448] sm:$0xff] %vm338_vm0, %v6197_v22 }
  0x83   :  { %v643_v31 = vadd.f32 %v6365_v28, %v642_v30  ;;  %1466 = vst.msk [vmem:[#allocation2 + $0x450] sm:$0xff] %vm338_vm0, %v6197_v22  ;;  %v1790_v30 = vld [vmem:[#allocation2 + $0x48] sm:$0xff] }
  0x84   :  { %1467 = vst.msk [vmem:[#allocation2 + $0x458] sm:$0xff] %vm338_vm0, %v6197_v22 }
  0x85   :  { %v1132_v32 = vmax.f32 %v643_v31, 0.0  ;;  %5672 = vmatmul.msk.bf16.gmra.mxu0 %vm338_vm0, %v236_v29  ;;  %1468 = vst.msk [vmem:[#allocation2 + $0x460] sm:$0xff] %vm338_vm0, %v6197_v22  ;;  %v1791_v29 = vld [vmem:[#allocation2 + $0x50] sm:$0xff]  ;;  %v1792_v31 = vld [vmem:[#allocation2 + $0x58] sm:$0xff] }
  0x86   :  { %1469 = vst.msk [vmem:[#allocation2 + $0x468] sm:$0xff] %vm338_vm0, %v6197_v22 }
  0x87   :  { %1585 = vst.msk [vmem:[#allocation2 + $0x88] sm:$0xff] %vm338_vm0, %v1132_v32  ;;  %v2026_v32 = vpack.c.bf16 %v1791_v29, %v1789_v21 }
  0x88   :  { %1470 = vst.msk [vmem:[#allocation2 + $0x470] sm:$0xff] %vm338_vm0, %v6197_v22 }
  0x89   :  { %1472 = vst.msk [vmem:[#allocation2 + $0x480] sm:$0xff] %vm338_vm0, %v6197_v22  ;;  %5797 = vmatmul.msk.bf16.gmra.mxu2 %vm338_vm0, %v2026_v32 }
  0x8a   :  { %1473 = vst.msk [vmem:[#allocation2 + $0x488] sm:$0xff] %vm338_vm0, %v6197_v22  ;;  %v644_v33 = vpop.f32.mrf.mxu0 }
  0x8b   :  { %1474 = vst.msk [vmem:[#allocation2 + $0x490] sm:$0xff] %vm338_vm0, %v6197_v22  ;;  %v645_v44 = vadd.f32 %v6365_v28, %v644_v33  ;;  %v2051_v33 = vpack.c.bf16 %v1792_v31, %v1790_v30  ;;  %v68_v30 = vld [vmem:[%s9385_s0 + $0x120] sm:$0xff]  ;;  %v69_v31 = vld [vmem:[%s9385_s0 + $0x128] sm:$0xff] }
  0x8c   :  { %1475 = vst.msk [vmem:[#allocation2 + $0x498] sm:$0xff] %vm338_vm0, %v6197_v22 }
  0x8d   :  { %1476 = vst.msk [vmem:[#allocation2 + $0x4a0] sm:$0xff] %vm338_vm0, %v6197_v22  ;;  %v1133_v49 = vmax.f32 %v645_v44, 0.0  ;;  %5768 = vmatmul.msk.bf16.gmra.mxu1 %vm338_vm0, %v2051_v33  ;;  %v61_v44 = vld [vmem:[%s9385_s0 + $0xe8] sm:$0xff]  ;;  %v246_v33 = vpack.c.bf16 %v69_v31, %v68_v30 }
  0x8e   :  { %1477 = vst.msk [vmem:[#allocation2 + $0x4a8] sm:$0xff] %vm338_vm0, %v6197_v22 }
  0x8f   :  { %1478 = vst.msk [vmem:[#allocation2 + $0x4b0] sm:$0xff] %vm338_vm0, %v6197_v22 }
  0x90   :  { %1479 = vst.msk [vmem:[#allocation2 + $0x4b8] sm:$0xff] %vm338_vm0, %v6197_v22 }
  0x91   :  { %1480 = vst.msk [vmem:[#allocation2 + $0x4c0] sm:$0xff] %vm338_vm0, %v6197_v22 }
  0x92   :  { %1481 = vst.msk [vmem:[#allocation2 + $0x4c8] sm:$0xff] %vm338_vm0, %v6197_v22  ;;  %v647_v34 = vpop.f32.mrf.mxu0 }
  0x93   :  { %1482 = vst.msk [vmem:[#allocation2 + $0x4d0] sm:$0xff] %vm338_vm0, %v6197_v22  ;;  %v648_v46 = vadd.f32 %v6365_v28, %v647_v34 }
  0x94   :  { %1483 = vst.msk [vmem:[#allocation2 + $0x4d8] sm:$0xff] %vm338_vm0, %v6197_v22 }
  0x95   :  { %1484 = vst.msk [vmem:[#allocation2 + $0x4e0] sm:$0xff] %vm338_vm0, %v6197_v22  ;;  %5673 = vmatmul.msk.bf16.gmra.mxu0 %vm338_vm0, %v237_v37  ;;  %v1134_v53 = vmax.f32 %v648_v46, 0.0  ;;  %v242_v46 = vpack.c.bf16 %v61_v44, %v60_v43  ;;  %v71_v43 = vld [vmem:[%s9385_s0 + $0x138] sm:$0xff] }
  0x96   :  { %1485 = vst.msk [vmem:[#allocation2 + $0x4e8] sm:$0xff] %vm338_vm0, %v6197_v22 }
  0x97   :  { %1486 = vst.msk [vmem:[#allocation2 + $0x4f0] sm:$0xff] %vm338_vm0, %v6197_v22 }
  0x98   :  { %1488 = vst.msk [vmem:[#allocation2 + $0x500] sm:$0xff] %vm338_vm0, %v6197_v22 }
  0x99   :  { %1489 = vst.msk [vmem:[#allocation2 + $0x508] sm:$0xff] %vm338_vm0, %v6197_v22 }
  0x9a   :  { %1490 = vst.msk [vmem:[#allocation2 + $0x510] sm:$0xff] %vm338_vm0, %v6197_v22  ;;  %v649_v38 = vpop.f32.mrf.mxu0 }
  0x9b   :  { %1491 = vst.msk [vmem:[#allocation2 + $0x518] sm:$0xff] %vm338_vm0, %v6197_v22  ;;  %v650_v47 = vadd.f32 %v6365_v28, %v649_v38  ;;  %v1793_v38 = vld [vmem:[#allocation2 + $0x60] sm:$0xff] }
  0x9c   :  { %1492 = vst.msk [vmem:[#allocation2 + $0x520] sm:$0xff] %vm338_vm0, %v6197_v22  ;;  %v2504_v39 = vpack.c.bf16 %v1793_v38, %v1791_v29 }
  0x9d   :  { %1493 = vst.msk [vmem:[#allocation2 + $0x528] sm:$0xff] %vm338_vm0, %v6197_v22  ;;  %v1135_v57 = vmax.f32 %v650_v47, 0.0 }
  0x9e   :  { %1494 = vst.msk [vmem:[#allocation2 + $0x530] sm:$0xff] %vm338_vm0, %v6197_v22 }
  0x9f   :  { %1495 = vst.msk [vmem:[#allocation2 + $0x538] sm:$0xff] %vm338_vm0, %v6197_v22 }
  0xa0   :  { %1496 = vst.msk [vmem:[#allocation2 + $0x540] sm:$0xff] %vm338_vm0, %v6197_v22 }
  0xa1   :  { %1497 = vst.msk [vmem:[#allocation2 + $0x548] sm:$0xff] %vm338_vm0, %v6197_v22 }
  0xa2   :  { %1498 = vst.msk [vmem:[#allocation2 + $0x550] sm:$0xff] %vm338_vm0, %v6197_v22  ;;  %v652_v41 = vpop.f32.mrf.mxu0 }
  0xa3   :  { %1499 = vst.msk [vmem:[#allocation2 + $0x558] sm:$0xff] %vm338_vm0, %v6197_v22  ;;  %v653_v48 = vadd.f32 %v6365_v28, %v652_v41 }
  0xa4   :  { %1500 = vst.msk [vmem:[#allocation2 + $0x560] sm:$0xff] %vm338_vm0, %v6197_v22 }
  0xa5   :  { %1501 = vst.msk [vmem:[#allocation2 + $0x568] sm:$0xff] %vm338_vm0, %v6197_v22  ;;  %5674 = vmatmul.msk.bf16.gmra.mxu0 %vm338_vm0, %v238_v42  ;;  %v1136_v61 = vmax.f32 %v653_v48, 0.0  ;;  %v7016_v48 = vld [vmem:[#allocation2 + $0x100] sm:$0xff] }
  0xa6   :  { %1502 = vst.msk [vmem:[#allocation2 + $0x570] sm:$0xff] %vm338_vm0, %v6197_v22 }
  0xa7   :  { %1504 = vst.msk [vmem:[#allocation2 + $0x580] sm:$0xff] %vm338_vm0, %v6197_v22 }
  0xa8   :  { %1505 = vst.msk [vmem:[#allocation2 + $0x588] sm:$0xff] %vm338_vm0, %v6197_v22 }
  0xa9   :  { %1506 = vst.msk [vmem:[#allocation2 + $0x590] sm:$0xff] %vm338_vm0, %v6197_v22 }
  0xaa   :  { %1507 = vst.msk [vmem:[#allocation2 + $0x598] sm:$0xff] %vm338_vm0, %v6197_v22  ;;  %v654_v45 = vpop.f32.mrf.mxu0 }
  0xab   :  { %1508 = vst.msk [vmem:[#allocation2 + $0x5a0] sm:$0xff] %vm338_vm0, %v6197_v22  ;;  %v655_v50 = vadd.f32 %v6365_v28, %v654_v45 }
  0xac   :  { %1509 = vst.msk [vmem:[#allocation2 + $0x5a8] sm:$0xff] %vm338_vm0, %v6197_v22 }
  0xad   :  { %1510 = vst.msk [vmem:[#allocation2 + $0x5b0] sm:$0xff] %vm338_vm0, %v6197_v22  ;;  %v1137_v63 = vmax.f32 %v655_v50, 0.0  ;;  %v2027_v50 = vpack.c.bf16 %v7016_v48, %v1793_v38 }
  0xae   :  { %1511 = vst.msk [vmem:[#allocation2 + $0x5b8] sm:$0xff] %vm338_vm0, %v6197_v22 }
  0xaf   :  { %1512 = vst.msk [vmem:[#allocation2 + $0x5c0] sm:$0xff] %vm338_vm0, %v6197_v22  ;;  %5798 = vmatmul.msk.bf16.gmra.mxu2 %vm338_vm0, %v2027_v50 }
  0xb0   :  { %1513 = vst.msk [vmem:[#allocation2 + $0x5c8] sm:$0xff] %vm338_vm0, %v6197_v22 }
  0xb1   :  { %1514 = vst.msk [vmem:[#allocation2 + $0x5d0] sm:$0xff] %vm338_vm0, %v6197_v22 }
  0xb2   :  { %1515 = vst.msk [vmem:[#allocation2 + $0x5d8] sm:$0xff] %vm338_vm0, %v6197_v22  ;;  %v657_v0 = vpop.f32.mrf.mxu0 }
  0xb3   :  { %1516 = vst.msk [vmem:[#allocation2 + $0x5e0] sm:$0xff] %vm338_vm0, %v6197_v22  ;;  %v658_v2 = vadd.f32 %v6365_v28, %v657_v0 }
  0xb4   :  { %1517 = vst.msk [vmem:[#allocation2 + $0x5e8] sm:$0xff] %vm338_vm0, %v6197_v22 }
  0xb5   :  { %1518 = vst.msk [vmem:[#allocation2 + $0x5f0] sm:$0xff] %vm338_vm0, %v6197_v22  ;;  %v1138_v3 = vmax.f32 %v658_v2, 0.0  ;;  %5675 = vmatmul.msk.bf16.gmra.mxu0 %vm338_vm0, %v239_v1  ;;  %v64_v2 = vld [vmem:[%s9385_s0 + $0x100] sm:$0xff] }
  0xb6   :  { %1520 = vst.msk [vmem:[#allocation2 + $0x600] sm:$0xff] %vm338_vm0, %v6197_v22 }
  0xb7   :  { %1521 = vst.msk [vmem:[#allocation2 + $0x608] sm:$0xff] %vm338_vm0, %v6197_v22 }
  0xb8   :  { %1522 = vst.msk [vmem:[#allocation2 + $0x610] sm:$0xff] %vm338_vm0, %v6197_v22 }
  0xb9   :  { %1523 = vst.msk [vmem:[#allocation2 + $0x618] sm:$0xff] %vm338_vm0, %v6197_v22 }
  0xba   :  { %1524 = vst.msk [vmem:[#allocation2 + $0x620] sm:$0xff] %vm338_vm0, %v6197_v22  ;;  %v659_v7 = vpop.f32.mrf.mxu0 }
  0xbb   :  { %1525 = vst.msk [vmem:[#allocation2 + $0x628] sm:$0xff] %vm338_vm0, %v6197_v22  ;;  %v660_v8 = vadd.f32 %v6365_v28, %v659_v7  ;;  %v1795_v7 = vld [vmem:[#allocation2 + $0x70] sm:$0xff] }
  0xbc   :  { %1526 = vst.msk [vmem:[#allocation2 + $0x630] sm:$0xff] %vm338_vm0, %v6197_v22 }
  0xbd   :  { %1527 = vst.msk [vmem:[#allocation2 + $0x638] sm:$0xff] %vm338_vm0, %v6197_v22  ;;  %v1139_v9 = vmax.f32 %v660_v8, 0.0 }
  0xbe   :  { %1528 = vst.msk [vmem:[#allocation2 + $0x640] sm:$0xff] %vm338_vm0, %v6197_v22 }
  0xbf   :  { %1529 = vst.msk [vmem:[#allocation2 + $0x648] sm:$0xff] %vm338_vm0, %v6197_v22 }
  0xc0   :  { %1530 = vst.msk [vmem:[#allocation2 + $0x650] sm:$0xff] %vm338_vm0, %v6197_v22 }
  0xc1   :  { %1531 = vst.msk [vmem:[#allocation2 + $0x658] sm:$0xff] %vm338_vm0, %v6197_v22 }
  0xc2   :  { %1532 = vst.msk [vmem:[#allocation2 + $0x660] sm:$0xff] %vm338_vm0, %v6197_v22  ;;  %v662_v17 = vpop.f32.mrf.mxu0 }
  0xc3   :  { %1533 = vst.msk [vmem:[#allocation2 + $0x668] sm:$0xff] %vm338_vm0, %v6197_v22  ;;  %v663_v19 = vadd.f32 %v6365_v28, %v662_v17  ;;  %v67_v17 = vld [vmem:[%s9385_s0 + $0x118] sm:$0xff] }
  0xc4   :  { %1534 = vst.msk [vmem:[#allocation2 + $0x670] sm:$0xff] %vm338_vm0, %v6197_v22 }
  0xc5   :  { %1536 = vst.msk [vmem:[#allocation2 + $0x680] sm:$0xff] %vm338_vm0, %v6197_v22  ;;  %v1140_v20 = vmax.f32 %v663_v19, 0.0  ;;  %5676 = vmatmul.msk.bf16.gmra.mxu0 %vm338_vm0, %v240_v18  ;;  %v245_v19 = vpack.c.bf16 %v67_v17, %v66_v16 }
  0xc6   :  { %1537 = vst.msk [vmem:[#allocation2 + $0x688] sm:$0xff] %vm338_vm0, %v6197_v22 }
  0xc7   :  { %1538 = vst.msk [vmem:[#allocation2 + $0x690] sm:$0xff] %vm338_vm0, %v6197_v22 }
  0xc8   :  { %1539 = vst.msk [vmem:[#allocation2 + $0x698] sm:$0xff] %vm338_vm0, %v6197_v22 }
  0xc9   :  { %1540 = vst.msk [vmem:[#allocation2 + $0x6a0] sm:$0xff] %vm338_vm0, %v6197_v22 }
  0xca   :  { %1541 = vst.msk [vmem:[#allocation2 + $0x6a8] sm:$0xff] %vm338_vm0, %v6197_v22  ;;  %v664_v23 = vpop.f32.mrf.mxu0 }
  0xcb   :  { %1542 = vst.msk [vmem:[#allocation2 + $0x6b0] sm:$0xff] %vm338_vm0, %v6197_v22  ;;  %v665_v24 = vadd.f32 %v6365_v28, %v664_v23 }
  0xcc   :  { %1543 = vst.msk [vmem:[#allocation2 + $0x6b8] sm:$0xff] %vm338_vm0, %v6197_v22 }
  0xcd   :  { %1544 = vst.msk [vmem:[#allocation2 + $0x6c0] sm:$0xff] %vm338_vm0, %v6197_v22  ;;  %v1141_v25 = vmax.f32 %v665_v24, 0.0 }
  0xce   :  { %1545 = vst.msk [vmem:[#allocation2 + $0x6c8] sm:$0xff] %vm338_vm0, %v6197_v22 }
  0xcf   :  { %1546 = vst.msk [vmem:[#allocation2 + $0x6d0] sm:$0xff] %vm338_vm0, %v6197_v22 }
  0xd0   :  { %1547 = vst.msk [vmem:[#allocation2 + $0x6d8] sm:$0xff] %vm338_vm0, %v6197_v22 }
  0xd1   :  { %1548 = vst.msk [vmem:[#allocation2 + $0x6e0] sm:$0xff] %vm338_vm0, %v6197_v22 }
  0xd2   :  { %1549 = vst.msk [vmem:[#allocation2 + $0x6e8] sm:$0xff] %vm338_vm0, %v6197_v22  ;;  %v667_v34 = vpop.f32.mrf.mxu0 }
  0xd3   :  { %1550 = vst.msk [vmem:[#allocation2 + $0x6f0] sm:$0xff] %vm338_vm0, %v6197_v22  ;;  %v668_v36 = vadd.f32 %v6365_v28, %v667_v34  ;;  %v7090_v34 = vld [vmem:[%s9386_s2] ss:$0 sm:$0xff] }
  0xd4   :  { %1552 = vst.msk [vmem:[#allocation2 + $0x700] sm:$0xff] %vm338_vm0, %v6197_v22 }
  0xd5   :  { %1553 = vst.msk [vmem:[#allocation2 + $0x708] sm:$0xff] %vm338_vm0, %v6197_v22  ;;  %v1142_v37 = vmax.f32 %v668_v36, 0.0  ;;  %5677 = vmatmul.msk.bf16.gmra.mxu0 %vm338_vm0, %v241_v35 }
  0xd6   :  { %1554 = vst.msk [vmem:[#allocation2 + $0x710] sm:$0xff] %vm338_vm0, %v6197_v22 }
  0xd7   :  { %1555 = vst.msk [vmem:[#allocation2 + $0x718] sm:$0xff] %vm338_vm0, %v6197_v22 }
  0xd8   :  { %1556 = vst.msk [vmem:[#allocation2 + $0x720] sm:$0xff] %vm338_vm0, %v6197_v22 }
  0xd9   :  { %1557 = vst.msk [vmem:[#allocation2 + $0x728] sm:$0xff] %vm338_vm0, %v6197_v22 }
  0xda   :  { %1558 = vst.msk [vmem:[#allocation2 + $0x730] sm:$0xff] %vm338_vm0, %v6197_v22  ;;  %v669_v40 = vpop.f32.mrf.mxu0 }
  0xdb   :  { %1559 = vst.msk [vmem:[#allocation2 + $0x738] sm:$0xff] %vm338_vm0, %v6197_v22  ;;  %v670_v41 = vadd.f32 %v6365_v28, %v669_v40 }
  0xdc   :  { %1560 = vst.msk [vmem:[#allocation2 + $0x740] sm:$0xff] %vm338_vm0, %v6197_v22 }
  0xdd   :  { %1561 = vst.msk [vmem:[#allocation2 + $0x748] sm:$0xff] %vm338_vm0, %v6197_v22  ;;  %v1143_v42 = vmax.f32 %v670_v41, 0.0 }
  0xde   :  { %1562 = vst.msk [vmem:[#allocation2 + $0x750] sm:$0xff] %vm338_vm0, %v6197_v22 }
  0xdf   :  { %1563 = vst.msk [vmem:[#allocation2 + $0x758] sm:$0xff] %vm338_vm0, %v6197_v22 }
  0xe0   :  { %1564 = vst.msk [vmem:[#allocation2 + $0x760] sm:$0xff] %vm338_vm0, %v6197_v22 }
  0xe1   :  { %1565 = vst.msk [vmem:[#allocation2 + $0x768] sm:$0xff] %vm338_vm0, %v6197_v22 }
  0xe2   :  { %1566 = vst.msk [vmem:[#allocation2 + $0x770] sm:$0xff] %vm338_vm0, %v6197_v22  ;;  %v672_v45 = vpop.f32.mrf.mxu0 }
  0xe3   :  { %4500 = vst.msk [vmem:[#allocation3] sm:$0xff] %vm338_vm0, %v6197_v22  ;;  %v673_v47 = vadd.f32 %v6365_v28, %v672_v45 }
  0xe4   :  { %4501 = vst.msk [vmem:[#allocation3 + $0x8] sm:$0xff] %vm338_vm0, %v6197_v22 }
  0xe5   :  { %4502 = vst.msk [vmem:[#allocation3 + $0x10] sm:$0xff] %vm338_vm0, %v6197_v22  ;;  %5678 = vmatmul.msk.bf16.gmra.mxu0 %vm338_vm0, %v242_v46  ;;  %v2164_v46 = vpop.f32.mrf.mxu1 }
  0xe6   :  { %4503 = vst.msk [vmem:[#allocation3 + $0x18] sm:$0xff] %vm338_vm0, %v6197_v22 }
  0xe7   :  { %4504 = vst.msk [vmem:[#allocation3 + $0x20] sm:$0xff] %vm338_vm0, %v6197_v22 }
  0xe8   :  { %4505 = vst.msk [vmem:[#allocation3 + $0x28] sm:$0xff] %vm338_vm0, %v6197_v22 }
  0xe9   :  { %4506 = vst.msk [vmem:[#allocation3 + $0x30] sm:$0xff] %vm338_vm0, %v6197_v22 }
  0xea   :  { %4507 = vst.msk [vmem:[#allocation3 + $0x38] sm:$0xff] %vm338_vm0, %v6197_v22  ;;  %v674_v51 = vpop.f32.mrf.mxu0 }
  0xeb   :  { %4508 = vst.msk [vmem:[#allocation3 + $0x40] sm:$0xff] %vm338_vm0, %v6197_v22  ;;  %v675_v52 = vadd.f32 %v6365_v28, %v674_v51  ;;  %v2378_v51 = vpop.f32.mrf.mxu2 }
  0xec   :  { %4510 = vst.msk [vmem:[#allocation3 + $0x50] sm:$0xff] %vm338_vm0, %v6197_v22 }
  0xed   :  { %4511 = vst.msk [vmem:[#allocation3 + $0x58] sm:$0xff] %vm338_vm0, %v6197_v22 }
  0xee   :  { %4512 = vst.msk [vmem:[#allocation3 + $0x60] sm:$0xff] %vm338_vm0, %v6197_v22 }
  0xef   :  { %4513 = vst.msk [vmem:[#allocation3 + $0x68] sm:$0xff] %vm338_vm0, %v6197_v22 }
  0xf0   :  { %4514 = vst.msk [vmem:[#allocation3 + $0x70] sm:$0xff] %vm338_vm0, %v6197_v22 }
  0xf1   :  { %4515 = vst.msk [vmem:[#allocation3 + $0x78] sm:$0xff] %vm338_vm0, %v6197_v22 }
  0xf2   :  { %4516 = vst.msk [vmem:[#allocation3 + $0x80] sm:$0xff] %vm338_vm0, %v6197_v22  ;;  %v677_v56 = vpop.f32.mrf.mxu0 }
  0xf3   :  { %4517 = vst.msk [vmem:[#allocation3 + $0x88] sm:$0xff] %vm338_vm0, %v6197_v22  ;;  %v678_v58 = vadd.f32 %v6365_v28, %v677_v56  ;;  %v7116_v56 = vpop.f32.mrf.mxu1 }
  0xf4   :  { %4518 = vst.msk [vmem:[#allocation3 + $0x90] sm:$0xff] %vm338_vm0, %v6197_v22 }
  0xf5   :  { %4520 = vst.msk [vmem:[#allocation3 + $0xa0] sm:$0xff] %vm338_vm0, %v6197_v22  ;;  %v1146_v59 = vmax.f32 %v678_v58, 0.0 }
  0xf6   :  { %4521 = vst.msk [vmem:[#allocation3 + $0xa8] sm:$0xff] %vm338_vm0, %v6197_v22 }
  0xf7   :  { %4522 = vst.msk [vmem:[#allocation3 + $0xb0] sm:$0xff] %vm338_vm0, %v6197_v22 }
  0xf8   :  { %4523 = vst.msk [vmem:[#allocation3 + $0xb8] sm:$0xff] %vm338_vm0, %v6197_v22 }
  0xf9   :  { %4524 = vst.msk [vmem:[#allocation3 + $0xc0] sm:$0xff] %vm338_vm0, %v6197_v22 }
  0xfa   :  { %4525 = vst.msk [vmem:[#allocation3 + $0xc8] sm:$0xff] %vm338_vm0, %v6197_v22  ;;  %v679_v60 = vpop.f32.mrf.mxu0 }
  0xfb   :  { %4526 = vst.msk [vmem:[#allocation3 + $0xd0] sm:$0xff] %vm338_vm0, %v6197_v22 }
  0xfc   :  { %4527 = vst.msk [vmem:[#allocation3 + $0xd8] sm:$0xff] %vm338_vm0, %v6197_v22 }
  0xfd   :  { %4528 = vst.msk [vmem:[#allocation3 + $0xe0] sm:$0xff] %vm338_vm0, %v6197_v22 }
  0xfe   :  { %4530 = vst.msk [vmem:[#allocation3 + $0xf0] sm:$0xff] %vm338_vm0, %v6197_v22 }
  0xff   :  { %4531 = vst.msk [vmem:[#allocation3 + $0xf8] sm:$0xff] %vm338_vm0, %v6197_v22 }
 0x100   :  { %4532 = vst.msk [vmem:[#allocation3 + $0x100] sm:$0xff] %vm338_vm0, %v6197_v22 }
 0x101   :  { %4533 = vst.msk [vmem:[#allocation3 + $0x108] sm:$0xff] %vm338_vm0, %v6197_v22 }
 0x102   :  { %4534 = vst.msk [vmem:[#allocation3 + $0x110] sm:$0xff] %vm338_vm0, %v6197_v22  ;;  %v682_v4 = vpop.f32.mrf.mxu0 }
 0x103   :  { %4535 = vst.msk [vmem:[#allocation3 + $0x118] sm:$0xff] %vm338_vm0, %v6197_v22  ;;  %v683_v6 = vadd.f32 %v6365_v28, %v682_v4  ;;  %v2169_v4 = vpop.f32.mrf.mxu1 }
 0x104   :  { %4536 = vst.msk [vmem:[#allocation3 + $0x120] sm:$0xff] %vm338_vm0, %v6197_v22 }
 0x105   :  { %4537 = vst.msk [vmem:[#allocation3 + $0x128] sm:$0xff] %vm338_vm0, %v6197_v22  ;;  %v1148_v8 = vmax.f32 %v683_v6, 0.0 }
 0x106   :  { %4538 = vst.msk [vmem:[#allocation3 + $0x130] sm:$0xff] %vm338_vm0, %v6197_v22 }
 0x107   :  { %4540 = vst.msk [vmem:[#allocation3 + $0x140] sm:$0xff] %vm338_vm0, %v6197_v22 }
 0x108   :  { %4541 = vst.msk [vmem:[#allocation3 + $0x148] sm:$0xff] %vm338_vm0, %v6197_v22 }
 0x109   :  { %4542 = vst.msk [vmem:[#allocation3 + $0x150] sm:$0xff] %vm338_vm0, %v6197_v22 }
 0x10a   :  { %4543 = vst.msk [vmem:[#allocation3 + $0x158] sm:$0xff] %vm338_vm0, %v6197_v22 }
 0x10b   :  { %4544 = vst.msk [vmem:[#allocation3 + $0x160] sm:$0xff] %vm338_vm0, %v6197_v22 }
 0x10c   :  { %4545 = vst.msk [vmem:[#allocation3 + $0x168] sm:$0xff] %vm338_vm0, %v6197_v22 }
 0x10d   :  { %4546 = vst.msk [vmem:[#allocation3 + $0x170] sm:$0xff] %vm338_vm0, %v6197_v22 }
 0x10e   :  { %4547 = vst.msk [vmem:[#allocation3 + $0x178] sm:$0xff] %vm338_vm0, %v6197_v22 }
 0x10f   :  { %4548 = vst.msk [vmem:[#allocation3 + $0x180] sm:$0xff] %vm338_vm0, %v6197_v22 }
 0x110   :  { %4550 = vst.msk [vmem:[#allocation3 + $0x190] sm:$0xff] %vm338_vm0, %v6197_v22 }
 0x111   :  { %4551 = vst.msk [vmem:[#allocation3 + $0x198] sm:$0xff] %vm338_vm0, %v6197_v22 }
 0x112   :  { %4552 = vst.msk [vmem:[#allocation3 + $0x1a0] sm:$0xff] %vm338_vm0, %v6197_v22 }
 0x113   :  { %4553 = vst.msk [vmem:[#allocation3 + $0x1a8] sm:$0xff] %vm338_vm0, %v6197_v22 }
 0x114   :  { %4554 = vst.msk [vmem:[#allocation3 + $0x1b0] sm:$0xff] %vm338_vm0, %v6197_v22 }
 0x115   :  { %4555 = vst.msk [vmem:[#allocation3 + $0x1b8] sm:$0xff] %vm338_vm0, %v6197_v22 }
 0x116   :  { %4556 = vst.msk [vmem:[#allocation3 + $0x1c0] sm:$0xff] %vm338_vm0, %v6197_v22 }
 0x117   :  { %4557 = vst.msk [vmem:[#allocation3 + $0x1c8] sm:$0xff] %vm338_vm0, %v6197_v22 }
 0x118   :  { %4558 = vst.msk [vmem:[#allocation3 + $0x1d0] sm:$0xff] %vm338_vm0, %v6197_v22 }
 0x119   :  { %4560 = vst.msk [vmem:[#allocation3 + $0x1e0] sm:$0xff] %vm338_vm0, %v6197_v22 }
 0x11a   :  { %4561 = vst.msk [vmem:[#allocation3 + $0x1e8] sm:$0xff] %vm338_vm0, %v6197_v22 }
 0x11b   :  { %4562 = vst.msk [vmem:[#allocation3 + $0x1f0] sm:$0xff] %vm338_vm0, %v6197_v22 }
 0x11c   :  { %4563 = vst.msk [vmem:[#allocation3 + $0x1f8] sm:$0xff] %vm338_vm0, %v6197_v22 }
 0x11d   :  { %4564 = vst.msk [vmem:[#allocation3 + $0x200] sm:$0xff] %vm338_vm0, %v6197_v22 }
 0x11e   :  { %4565 = vst.msk [vmem:[#allocation3 + $0x208] sm:$0xff] %vm338_vm0, %v6197_v22 }
 0x11f   :  { %4566 = vst.msk [vmem:[#allocation3 + $0x210] sm:$0xff] %vm338_vm0, %v6197_v22 }
 0x120   :  { %4567 = vst.msk [vmem:[#allocation3 + $0x218] sm:$0xff] %vm338_vm0, %v6197_v22 }
 0x121   :  { %4568 = vst.msk [vmem:[#allocation3 + $0x220] sm:$0xff] %vm338_vm0, %v6197_v22 }
 0x122   :  { %4570 = vst.msk [vmem:[#allocation3 + $0x230] sm:$0xff] %vm338_vm0, %v6197_v22 }
 0x123   :  { %4571 = vst.msk [vmem:[#allocation3 + $0x238] sm:$0xff] %vm338_vm0, %v6197_v22 }
 0x124   :  { %4572 = vst.msk [vmem:[#allocation3 + $0x240] sm:$0xff] %vm338_vm0, %v6197_v22 }
 0x125   :  { %4573 = vst.msk [vmem:[#allocation3 + $0x248] sm:$0xff] %vm338_vm0, %v6197_v22 }
 0x126   :  { %4574 = vst.msk [vmem:[#allocation3 + $0x250] sm:$0xff] %vm338_vm0, %v6197_v22 }
 0x127   :  { %4575 = vst.msk [vmem:[#allocation3 + $0x258] sm:$0xff] %vm338_vm0, %v6197_v22 }
 0x128   :  { %4576 = vst.msk [vmem:[#allocation3 + $0x260] sm:$0xff] %vm338_vm0, %v6197_v22 }
 0x129   :  { %4577 = vst.msk [vmem:[#allocation3 + $0x268] sm:$0xff] %vm338_vm0, %v6197_v22 }
 0x12a   :  { %4578 = vst.msk [vmem:[#allocation3 + $0x270] sm:$0xff] %vm338_vm0, %v6197_v22 }
 0x12b   :  { %4580 = vst.msk [vmem:[#allocation3 + $0x280] sm:$0xff] %vm338_vm0, %v6197_v22 }
 0x12c   :  { %4581 = vst.msk [vmem:[#allocation3 + $0x288] sm:$0xff] %vm338_vm0, %v6197_v22 }
 0x12d   :  { %4582 = vst.msk [vmem:[#allocation3 + $0x290] sm:$0xff] %vm338_vm0, %v6197_v22 }
 0x12e   :  { %4583 = vst.msk [vmem:[#allocation3 + $0x298] sm:$0xff] %vm338_vm0, %v6197_v22 }
 0x12f   :  { %4584 = vst.msk [vmem:[#allocation3 + $0x2a0] sm:$0xff] %vm338_vm0, %v6197_v22 }
 0x130   :  { %4585 = vst.msk [vmem:[#allocation3 + $0x2a8] sm:$0xff] %vm338_vm0, %v6197_v22 }
 0x131   :  { %4586 = vst.msk [vmem:[#allocation3 + $0x2b0] sm:$0xff] %vm338_vm0, %v6197_v22 }
 0x132   :  { %4587 = vst.msk [vmem:[#allocation3 + $0x2b8] sm:$0xff] %vm338_vm0, %v6197_v22 }
 0x133   :  { %4588 = vst.msk [vmem:[#allocation3 + $0x2c0] sm:$0xff] %vm338_vm0, %v6197_v22  ;;  %v2503_v22 = vpack.c.bf16 %v1789_v21, %v1787_v12  ;;  %v684_v12 = vpop.f32.mrf.mxu0 }
 0x134   :  { %1586 = vst.msk [vmem:[#allocation2 + $0x90] sm:$0xff] %vm338_vm0, %v1133_v49  ;;  %v1144_v49 = vmax.f32 %v673_v47, 0.0  ;;  %v685_v13 = vadd.f32 %v6365_v28, %v684_v12 }
 0x135   :  { %1587 = vst.msk [vmem:[#allocation2 + $0x98] sm:$0xff] %vm338_vm0, %v1134_v53  ;;  %5825 = vmatmul.msk.bf16.gmra.mxu3 %vm338_vm0, %v2503_v22  ;;  %v1145_v53 = vmax.f32 %v675_v52, 0.0 }
 0x136   :  { %1588 = vst.msk [vmem:[#allocation2 + $0xa0] sm:$0xff] %vm338_vm0, %v1135_v57  ;;  %v243_v57 = vpack.c.bf16 %v63_v55, %v62_v54  ;;  %v1149_v14 = vmax.f32 %v685_v13, 0.0 }
 0x137   :  { %1589 = vst.msk [vmem:[#allocation2 + $0xa8] sm:$0xff] %vm338_vm0, %v1136_v61  ;;  %v680_v61 = vadd.f32 %v6365_v28, %v679_v60 }
 0x138   :  { %1590 = vst.msk [vmem:[#allocation2 + $0xb0] sm:$0xff] %vm338_vm0, %v1137_v63  ;;  %5679 = vmatmul.msk.bf16.gmra.mxu0 %vm338_vm0, %v243_v57 }
 0x139   :  { %1591 = vst.msk [vmem:[#allocation2 + $0xb8] sm:$0xff] %vm338_vm0, %v1138_v3  ;;  %v1147_v63 = vmax.f32 %v680_v61, 0.0  ;;  %v65_v3 = vld [vmem:[%s9385_s0 + $0x108] sm:$0xff] }
 0x13a   :  { %1592 = vst.msk [vmem:[#allocation2 + $0xc0] sm:$0xff] %vm338_vm0, %v1139_v9  ;;  %v244_v5 = vpack.c.bf16 %v65_v3, %v64_v2  ;;  %v2617_v2 = vpop.f32.mrf.mxu3 }
 0x13b   :  { %1593 = vst.msk [vmem:[#allocation2 + $0xc8] sm:$0xff] %vm338_vm0, %v1140_v20  ;;  %v687_v20 = vpop.f32.mrf.mxu0 }
 0x13c   :  { %1594 = vst.msk [vmem:[#allocation2 + $0xd0] sm:$0xff] %vm338_vm0, %v1141_v25  ;;  %v688_v21 = vadd.f32 %v6365_v28, %v687_v20 }
 0x13d   :  { %1595 = vst.msk [vmem:[#allocation2 + $0xd8] sm:$0xff] %vm338_vm0, %v1142_v37 }
 0x13e   :  { %1596 = vst.msk [vmem:[#allocation2 + $0xe0] sm:$0xff] %vm338_vm0, %v1143_v42  ;;  %v1150_v22 = vmax.f32 %v688_v21, 0.0  ;;  %v70_v42 = vld [vmem:[%s9385_s0 + $0x130] sm:$0xff] }
 0x13f   :  { %9460 = vst [vmem:[#allocation4_spill] sm:$0xff] %v7016_v48  ;;  %v247_v47 = vpack.c.bf16 %v71_v43, %v70_v42 }
 0x140   :  { %1597 = vst.msk [vmem:[#allocation2 + $0xe8] sm:$0xff] %vm338_vm0, %v1144_v49 }
 0x141   :  { %1598 = vst.msk [vmem:[#allocation2 + $0xf0] sm:$0xff] %vm338_vm0, %v1145_v53  ;;  %v2379_v53 = vadd.f32 %v2378_v51, %v2164_v46  ;;  %v77_v51 = vld [vmem:[%s9385_s0 + $0x168] sm:$0xff] }
 0x142   :  { %1599 = vst.msk [vmem:[#allocation2 + $0x108] sm:$0xff] %vm338_vm0, %v1146_v59  ;;  %v7121_v59 = vpop.f32.mrf.mxu2  ;;  %v7142_v16 = vpop.f32.mrf.mxu3 }
 0x143   :  { %1600 = vst.msk [vmem:[#allocation2 + $0x110] sm:$0xff] %vm338_vm0, %v1147_v63  ;;  %v689_v25 = vpop.f32.mrf.mxu0  ;;  %v73_v63 = vld [vmem:[%s9385_s0 + $0x148] sm:$0xff]  ;;  %v7134_v3 = vadd.f32 %v2617_v2, %v2379_v53 }
 0x144   :  { %1601 = vst.msk [vmem:[#allocation2 + $0x118] sm:$0xff] %vm338_vm0, %v1148_v8  ;;  %v690_v26 = vadd.f32 %v6365_v28, %v689_v25  ;;  %v75_v25 = vld [vmem:[%s9385_s0 + $0x158] sm:$0xff] }
 0x145   :  { %5826 = vmatmul.msk.bf16.gmra.mxu3 %vm338_vm0, %v2504_v39  ;;  %1602 = vst.msk [vmem:[#allocation2 + $0x120] sm:$0xff] %vm338_vm0, %v1149_v14 }
 0x146   :  { %1603 = vst.msk [vmem:[#allocation2 + $0x128] sm:$0xff] %vm338_vm0, %v1150_v22  ;;  %v1151_v27 = vmax.f32 %v690_v26, 0.0 }
 0x148   :  { %5680 = vmatmul.msk.bf16.gmra.mxu0 %vm338_vm0, %v244_v5  ;;  %1604 = vst.msk [vmem:[#allocation2 + $0x130] sm:$0xff] %vm338_vm0, %v1151_v27 }
 0x149   :  { %v7034_v0 = vld [vmem:[#allocation2 + $0x108] sm:$0xff] }
 0x14a   :  { %9461 = vst [vmem:[#allocation5_spill] sm:$0xff] %v7034_v0  ;;  %v2052_v1 = vpack.c.bf16 %v7034_v0, %v1794_v62  ;;  %v7046_v9 = vld [vmem:[#allocation2 + $0x110] sm:$0xff]  ;;  %v72_v62 = vld [vmem:[%s9385_s0 + $0x140] sm:$0xff]  ;;  %v2383_v8 = vpop.f32.mrf.mxu2 }
 0x14b   :  { %9462 = vst [vmem:[#allocation6_spill] sm:$0xff] %v7046_v9  ;;  %v2505_v11 = vpack.c.bf16 %v7046_v9, %v1795_v7  ;;  %v7055_v15 = vld [vmem:[#allocation2 + $0x118] sm:$0xff]  ;;  %v692_v28 = vpop.f32.mrf.mxu0  ;;  %v248_v5 = vpack.c.bf16 %v73_v63, %v72_v62  ;;  %v2384_v12 = vadd.f32 %v2383_v8, %v2169_v4 }
 0x14c   :  { %5769 = vmatmul.msk.bf16.gmra.mxu1 %vm338_vm0, %v2052_v1  ;;  %9463 = vst [vmem:[#allocation7_spill] sm:$0xff] %v7055_v15  ;;  %v1815_v23 = vld [vmem:[#allocation2 + $0x120] sm:$0xff]  ;;  %v693_v35 = vadd.f32 %v7090_v34, %v692_v28 }
 0x14d   :  { %v7069_v24 = vpack.c.bf16 %v1815_v23, %v7046_v9  ;;  %v7075_v29 = vld [vmem:[#allocation2 + $0x128] sm:$0xff] }
 0x14e   :  { %9465 = vst [vmem:[#allocation9_spill] sm:$0xff] %v7075_v29  ;;  %v2053_v32 = vpack.c.bf16 %v7075_v29, %v7055_v15  ;;  %v1152_v36 = vmax.f32 %v693_v35, 0.0 }
 0x14f   :  { %9464 = vst [vmem:[#allocation8_spill] sm:$0xff] %v7069_v24  ;;  %5799 = vmatmul.msk.bf16.gmra.mxu2 %vm338_vm0, %v7069_v24  ;;  %v1817_v37 = vld [vmem:[#allocation2 + $0x130] sm:$0xff] }
 0x150   :  { %1605 = vst.msk [vmem:[#allocation2 + $0x138] sm:$0xff] %vm338_vm0, %v1152_v36  ;;  %v7095_v38 = vpack.c.bf16 %v1817_v37, %v1815_v23  ;;  %v74_v23 = vld [vmem:[%s9385_s0 + $0x150] sm:$0xff] }
 0x152   :  { %9466 = vst [vmem:[#allocation10_spill] sm:$0xff] %v7095_v38  ;;  %v7149_v21 = vpop.f32.mrf.mxu2 }
 0x153   :  { %v694_v39 = vpop.f32.mrf.mxu0 }
 0x154   :  { %v695_v40 = vadd.f32 %v7090_v34, %v694_v39 }
 0x155   :  { %5827 = vmatmul.msk.bf16.gmra.mxu3 %vm338_vm0, %v2505_v11 }
 0x156   :  { %v1153_v41 = vmax.f32 %v695_v40, 0.0 }
 0x157   :  { %v7106_v44 = vld [vmem:[#allocation2 + $0x138] sm:$0xff] }
 0x158   :  { %5681 = vmatmul.msk.bf16.gmra.mxu0 %vm338_vm0, %v245_v19  ;;  %9467 = vst [vmem:[#allocation11_spill] sm:$0xff] %v7106_v44  ;;  %v7146_v19 = vpop.f32.mrf.mxu1 }
 0x159   :  { %1606 = vst.msk [vmem:[#allocation2 + $0x140] sm:$0xff] %vm338_vm0, %v1153_v41 }
 0x15a   :  { %v2388_v36 = vpop.f32.mrf.mxu2 }
 0x15b   :  { %v697_v49 = vpop.f32.mrf.mxu0 }
 0x15c   :  { %5770 = vmatmul.msk.bf16.gmra.mxu1 %vm338_vm0, %v2053_v32  ;;  %v698_v50 = vadd.f32 %v7090_v34, %v697_v49  ;;  %v249_v32 = vpack.c.bf16 %v75_v25, %v74_v23 }
 0x15e   :  { %v1154_v52 = vmax.f32 %v698_v50, 0.0  ;;  %v76_v50 = vld [vmem:[%s9385_s0 + $0x160] sm:$0xff] }
 0x160   :  { %v1819_v54 = vld [vmem:[#allocation2 + $0x140] sm:$0xff]  ;;  %1607 = vst.msk [vmem:[#allocation2 + $0x148] sm:$0xff] %vm338_vm0, %v1154_v52  ;;  %v2174_v35 = vpop.f32.mrf.mxu1 }
 0x161   :  { %v7114_v55 = vpack.c.bf16 %v1819_v54, %v1817_v37  ;;  %v2389_v39 = vadd.f32 %v2388_v36, %v2174_v35  ;;  %v81_v35 = vld [vmem:[%s9385_s0 + $0x188] sm:$0xff] }
 0x163   :  { %9468 = vst [vmem:[#allocation12_spill] sm:$0xff] %v7114_v55  ;;  %5800 = vmatmul.msk.bf16.gmra.mxu2 %vm338_vm0, %v7114_v55  ;;  %v699_v57 = vpop.f32.mrf.mxu0 }
 0x164   :  { %v700_v58 = vadd.f32 %v7090_v34, %v699_v57  ;;  %v250_v57 = vpack.c.bf16 %v77_v51, %v76_v50 }
 0x165   :  { %5828 = vmatmul.msk.bf16.gmra.mxu3 %vm338_vm0, %v7095_v38 }
 0x166   :  { %v1155_v60 = vmax.f32 %v700_v58, 0.0 }
 0x167   :  { %v7123_v61 = vld [vmem:[#allocation2 + $0x148] sm:$0xff] }
 0x168   :  { %5682 = vmatmul.msk.bf16.gmra.mxu0 %vm338_vm0, %v246_v33  ;;  %9469 = vst [vmem:[#allocation13_spill] sm:$0xff] %v7123_v61  ;;  %v2054_v1 = vpack.c.bf16 %v7123_v61, %v7106_v44 }
 0x169   :  { %1608 = vst.msk [vmem:[#allocation2 + $0x150] sm:$0xff] %vm338_vm0, %v1155_v60 }
 0x16b   :  { %v702_v6 = vpop.f32.mrf.mxu0 }
 0x16c   :  { %5771 = vmatmul.msk.bf16.gmra.mxu1 %vm338_vm0, %v2054_v1  ;;  %v703_v7 = vadd.f32 %v7090_v34, %v702_v6  ;;  %v78_v6 = vld [vmem:[%s9385_s0 + $0x170] sm:$0xff] }
 0x16e   :  { %v1156_v11 = vmax.f32 %v703_v7, 0.0  ;;  %v79_v7 = vld [vmem:[%s9385_s0 + $0x178] sm:$0xff] }
 0x16f   :  { %v251_v8 = vpack.c.bf16 %v79_v7, %v78_v6 }
 0x170   :  { %v1821_v13 = vld [vmem:[#allocation2 + $0x150] sm:$0xff]  ;;  %1609 = vst.msk [vmem:[#allocation2 + $0x158] sm:$0xff] %vm338_vm0, %v1156_v11  ;;  %v7197_v11 = vpop.f32.mrf.mxu2 }
 0x171   :  { %v7140_v14 = vpack.c.bf16 %v1821_v13, %v1819_v54 }
 0x173   :  { %9470 = vst [vmem:[#allocation14_spill] sm:$0xff] %v7140_v14  ;;  %v704_v17 = vpop.f32.mrf.mxu0 }
 0x174   :  { %v705_v20 = vadd.f32 %v7090_v34, %v704_v17  ;;  %v7200_v17 = vpop.f32.mrf.mxu1 }
 0x175   :  { %5829 = vmatmul.msk.bf16.gmra.mxu3 %vm338_vm0, %v7140_v14 }
 0x176   :  { %v1157_v22 = vmax.f32 %v705_v20, 0.0 }
 0x177   :  { %v7157_v26 = vld [vmem:[#allocation2 + $0x158] sm:$0xff] }
 0x178   :  { %5683 = vmatmul.msk.bf16.gmra.mxu0 %vm338_vm0, %v247_v47  ;;  %9471 = vst [vmem:[#allocation15_spill] sm:$0xff] %v7157_v26  ;;  %v2393_v25 = vpop.f32.mrf.mxu2 }
 0x179   :  { %1610 = vst.msk [vmem:[#allocation2 + $0x160] sm:$0xff] %vm338_vm0, %v1157_v22 }
 0x17b   :  { %v707_v33 = vpop.f32.mrf.mxu0 }
 0x17c   :  { %v708_v28 = vadd.f32 %v7090_v34, %v707_v33 }
 0x17e   :  { %v1158_v37 = vmax.f32 %v708_v28, 0.0  ;;  %v80_v28 = vld [vmem:[%s9385_s0 + $0x180] sm:$0xff] }
 0x180   :  { %v1823_v40 = vld [vmem:[#allocation2 + $0x160] sm:$0xff]  ;;  %1611 = vst.msk [vmem:[#allocation2 + $0x168] sm:$0xff] %vm338_vm0, %v1158_v37  ;;  %v252_v37 = vpack.c.bf16 %v81_v35, %v80_v28 }
 0x181   :  { %v7167_v41 = vpack.c.bf16 %v1823_v40, %v1821_v13 }
 0x183   :  { %9472 = vst [vmem:[#allocation16_spill] sm:$0xff] %v7167_v41  ;;  %5801 = vmatmul.msk.bf16.gmra.mxu2 %vm338_vm0, %v7167_v41  ;;  %v709_v43 = vpop.f32.mrf.mxu0 }
 0x184   :  { %v710_v46 = vadd.f32 %v7090_v34, %v709_v43 }
 0x186   :  { %v1159_v47 = vmax.f32 %v710_v46, 0.0 }
 0x187   :  { %v1824_v49 = vld [vmem:[#allocation2 + $0x168] sm:$0xff] }
 0x188   :  { %5684 = vmatmul.msk.bf16.gmra.mxu0 %vm338_vm0, %v248_v5  ;;  %1612 = vst.msk [vmem:[#allocation2 + $0x170] sm:$0xff] %vm338_vm0, %v1159_v47  ;;  %v2055_v52 = vpack.c.bf16 %v1824_v49, %v7157_v26 }
 0x18a   :  { %5772 = vmatmul.msk.bf16.gmra.mxu1 %vm338_vm0, %v2055_v52  ;;  %v82_v52 = vld [vmem:[%s9385_s0 + $0x190] sm:$0xff] }
 0x18b   :  { %v712_v58 = vpop.f32.mrf.mxu0 }
 0x18c   :  { %v713_v60 = vadd.f32 %v7090_v34, %v712_v58 }
 0x18e   :  { %v1160_v62 = vmax.f32 %v713_v60, 0.0 }
 0x18f   :  { %v1825_v63 = vld [vmem:[#allocation2 + $0x170] sm:$0xff] }
 0x190   :  { %1613 = vst.msk [vmem:[#allocation2 + $0x188] sm:$0xff] %vm338_vm0, %v1160_v62  ;;  %v2508_v1 = vpack.c.bf16 %v1825_v63, %v1823_v40 }
 0x192   :  { %5830 = vmatmul.msk.bf16.gmra.mxu3 %vm338_vm0, %v2508_v1  ;;  %v7231_v1 = vpop.f32.mrf.mxu2 }
 0x193   :  { %v714_v2 = vpop.f32.mrf.mxu0 }
 0x194   :  { %v715_v4 = vadd.f32 %v7090_v34, %v714_v2 }
 0x196   :  { %v1161_v5 = vmax.f32 %v715_v4, 0.0 }
 0x198   :  { %5685 = vmatmul.msk.bf16.gmra.mxu0 %vm338_vm0, %v249_v32  ;;  %1614 = vst.msk [vmem:[#allocation2 + $0x190] sm:$0xff] %vm338_vm0, %v1161_v5 }
 0x1a8   :  { %5686 = vmatmul.msk.bf16.gmra.mxu0 %vm338_vm0, %v250_v57 }
 0x1b8   :  { %v2622_v30 = vpop.f32.mrf.mxu3  ;;  %5687 = vmatmul.msk.bf16.gmra.mxu0 %vm338_vm0, %v251_v8  ;;  %v84_v8 = vld [vmem:[%s9385_s0 + $0x1a0] sm:$0xff] }
 0x1b9   :  { %v7162_v31 = vadd.f32 %v2622_v30, %v2384_v12  ;;  %v717_v12 = vpop.f32.mrf.mxu0 }
 0x1ba   :  { %v718_v13 = vadd.f32 %v7090_v34, %v717_v12  ;;  %v85_v12 = vld [vmem:[%s9385_s0 + $0x1a8] sm:$0xff] }
 0x1bc   :  { %v1162_v20 = vmax.f32 %v718_v13, 0.0 }
 0x1be   :  { %1615 = vst.msk [vmem:[#allocation2 + $0x198] sm:$0xff] %vm338_vm0, %v1162_v20  ;;  %v254_v20 = vpack.c.bf16 %v85_v12, %v84_v8 }
 0x1c0   :  { %v7169_v42 = vpop.f32.mrf.mxu3 }
 0x1c1   :  { %v719_v22 = vpop.f32.mrf.mxu0 }
 0x1c2   :  { %v720_v23 = vadd.f32 %v7090_v34, %v719_v22 }
 0x1c4   :  { %v1163_v30 = vmax.f32 %v720_v23, 0.0 }
 0x1c6   :  { %1616 = vst.msk [vmem:[#allocation2 + $0x1a0] sm:$0xff] %vm338_vm0, %v1163_v30 }
 0x1c8   :  { %v2627_v53 = vpop.f32.mrf.mxu3  ;;  %5688 = vmatmul.msk.bf16.gmra.mxu0 %vm338_vm0, %v252_v37 }
 0x1c9   :  { %v7182_v54 = vadd.f32 %v2627_v53, %v2389_v39  ;;  %v2179_v32 = vpop.f32.mrf.mxu1  ;;  %v722_v39 = vpop.f32.mrf.mxu0  ;;  %v83_v53 = vld [vmem:[%s9385_s0 + $0x198] sm:$0xff] }
 0x1ca   :  { %v2394_v33 = vadd.f32 %v2393_v25, %v2179_v32  ;;  %v723_v40 = vadd.f32 %v7090_v34, %v722_v39  ;;  %v253_v57 = vpack.c.bf16 %v83_v53, %v82_v52  ;;  %v86_v39 = vld [vmem:[%s9385_s0 + $0x1b0] sm:$0xff] }
 0x1cc   :  { %v1164_v43 = vmax.f32 %v723_v40, 0.0  ;;  %v87_v40 = vld [vmem:[%s9385_s0 + $0x1b8] sm:$0xff] }
 0x1ce   :  { %1617 = vst.msk [vmem:[#allocation2 + $0x1a8] sm:$0xff] %vm338_vm0, %v1164_v43  ;;  %v255_v43 = vpack.c.bf16 %v87_v40, %v86_v39 }
 0x1d0   :  { %v7212_v36 = vpop.f32.mrf.mxu3 }
 0x1d1   :  { %v724_v46 = vpop.f32.mrf.mxu0  ;;  %v7229_v63 = vpop.f32.mrf.mxu1 }
 0x1d2   :  { %v725_v47 = vadd.f32 %v7090_v34, %v724_v46  ;;  %v2398_v6 = vpop.f32.mrf.mxu2 }
 0x1d4   :  { %v1165_v51 = vmax.f32 %v725_v47, 0.0 }
 0x1d6   :  { %1618 = vst.msk [vmem:[#allocation2 + $0x1b0] sm:$0xff] %vm338_vm0, %v1165_v51 }
 0x1d8   :  { %v2632_v49 = vpop.f32.mrf.mxu3  ;;  %5689 = vmatmul.msk.bf16.gmra.mxu0 %vm338_vm0, %v253_v57 }
 0x1d9   :  { %v7218_v50 = vadd.f32 %v2632_v49, %v2394_v33  ;;  %v727_v58 = vpop.f32.mrf.mxu0  ;;  %v2184_v7 = vpop.f32.mrf.mxu1 }
 0x1da   :  { %v728_v60 = vadd.f32 %v7090_v34, %v727_v58  ;;  %v2399_v13 = vadd.f32 %v2398_v6, %v2184_v7  ;;  %v7259_v51 = vpop.f32.mrf.mxu2 }
 0x1dc   :  { %v1166_v62 = vmax.f32 %v728_v60, 0.0 }
 0x1de   :  { %1619 = vst.msk [vmem:[#allocation2 + $0x1b8] sm:$0xff] %vm338_vm0, %v1166_v62 }
 0x1e0   :  { %v7243_v25 = vpop.f32.mrf.mxu3 }
 0x1e1   :  { %v729_v2 = vpop.f32.mrf.mxu0  ;;  %v7261_v52 = vpop.f32.mrf.mxu1 }
 0x1e2   :  { %v730_v4 = vadd.f32 %v7090_v34, %v729_v2  ;;  %v88_v2 = vld [vmem:[%s9385_s0 + $0x1c0] sm:$0xff] }
 0x1e4   :  { %v1167_v5 = vmax.f32 %v730_v4, 0.0  ;;  %v89_v4 = vld [vmem:[%s9385_s0 + $0x1c8] sm:$0xff] }
 0x1e5   :  { %v256_v6 = vpack.c.bf16 %v89_v4, %v88_v2  ;;  %v93_v2 = vld [vmem:[%s9385_s0 + $0x1e8] sm:$0xff] }
 0x1e6   :  { %1620 = vst.msk [vmem:[#allocation2 + $0x1c0] sm:$0xff] %vm338_vm0, %v1167_v5  ;;  %v2403_v60 = vpop.f32.mrf.mxu2 }
 0x1e8   :  { %5690 = vmatmul.msk.bf16.gmra.mxu0 %vm338_vm0, %v254_v20  ;;  %v2637_v28 = vpop.f32.mrf.mxu3 }
 0x1e9   :  { %v732_v22 = vpop.f32.mrf.mxu0  ;;  %v7248_v37 = vadd.f32 %v2637_v28, %v2399_v13  ;;  %v2189_v62 = vpop.f32.mrf.mxu1  ;;  %v91_v28 = vld [vmem:[%s9385_s0 + $0x1d8] sm:$0xff] }
 0x1ea   :  { %v733_v23 = vadd.f32 %v7090_v34, %v732_v22  ;;  %v2404_v5 = vadd.f32 %v2403_v60, %v2189_v62  ;;  %v92_v62 = vld [vmem:[%s9385_s0 + $0x1e0] sm:$0xff] }
 0x1ec   :  { %v1168_v30 = vmax.f32 %v733_v23, 0.0 }
 0x1ee   :  { %1621 = vst.msk [vmem:[#allocation2 + $0x1c8] sm:$0xff] %vm338_vm0, %v1168_v30 }
 0x1f0   :  { %v7273_v12 = vpop.f32.mrf.mxu3 }
 0x1f1   :  { %v734_v32 = vpop.f32.mrf.mxu0 }
 0x1f2   :  { %v735_v33 = vadd.f32 %v7090_v34, %v734_v32 }
 0x1f4   :  { %v1169_v35 = vmax.f32 %v735_v33, 0.0  ;;  %v90_v33 = vld [vmem:[%s9385_s0 + $0x1d0] sm:$0xff] }
 0x1f6   :  { %1622 = vst.msk [vmem:[#allocation2 + $0x1d0] sm:$0xff] %vm338_vm0, %v1169_v35  ;;  %v257_v35 = vpack.c.bf16 %v91_v28, %v90_v33 }
 0x1f8   :  { %5691 = vmatmul.msk.bf16.gmra.mxu0 %vm338_vm0, %v255_v43  ;;  %v2642_v23 = vpop.f32.mrf.mxu3 }
 0x1f9   :  { %v737_v46 = vpop.f32.mrf.mxu0  ;;  %v7278_v32 = vadd.f32 %v2642_v23, %v2404_v5  ;;  %v258_v5 = vpack.c.bf16 %v93_v2, %v92_v62 }
 0x1fa   :  { %v738_v47 = vadd.f32 %v7090_v34, %v737_v46  ;;  %v7289_v46 = vpop.f32.mrf.mxu2 }
 0x1fc   :  { %v1170_v49 = vmax.f32 %v738_v47, 0.0  ;;  %v7291_v47 = vpop.f32.mrf.mxu1 }
 0x1fe   :  { %1623 = vst.msk [vmem:[#allocation2 + $0x1d8] sm:$0xff] %vm338_vm0, %v1170_v49 }
 0x201   :  { %v739_v53 = vpop.f32.mrf.mxu0 }
 0x202   :  { %v740_v57 = vadd.f32 %v7090_v34, %v739_v53 }
 0x204   :  { %v1171_v58 = vmax.f32 %v740_v57, 0.0 }
 0x206   :  { %1624 = vst.msk [vmem:[#allocation2 + $0x1e0] sm:$0xff] %vm338_vm0, %v1171_v58  ;;  %v2408_v58 = vpop.f32.mrf.mxu2 }
 0x207   :  { %v2194_v60 = vpop.f32.mrf.mxu1 }
 0x208   :  { %5692 = vmatmul.msk.bf16.gmra.mxu0 %vm338_vm0, %v256_v6  ;;  %v2409_v4 = vadd.f32 %v2408_v58, %v2194_v60 }
 0x209   :  { %v742_v7 = vpop.f32.mrf.mxu0 }
 0x20a   :  { %v743_v8 = vadd.f32 %v7090_v34, %v742_v7 }
 0x20c   :  { %v1172_v13 = vmax.f32 %v743_v8, 0.0  ;;  %v7303_v8 = vpop.f32.mrf.mxu3 }
 0x20e   :  { %1625 = vst.msk [vmem:[#allocation2 + $0x1e8] sm:$0xff] %vm338_vm0, %v1172_v13 }
 0x211   :  { %v744_v20 = vpop.f32.mrf.mxu0 }
 0x212   :  { %v745_v22 = vadd.f32 %v7090_v34, %v744_v20  ;;  %v1841_v20 = vld [vmem:[#allocation2 + $0x200] sm:$0xff] }
 0x214   :  { %v1173_v30 = vmax.f32 %v745_v22, 0.0 }
 0x215   :  { %v2647_v28 = vpop.f32.mrf.mxu3 }
 0x216   :  { %1626 = vst.msk [vmem:[#allocation2 + $0x1f0] sm:$0xff] %vm338_vm0, %v1173_v30 }
 0x218   :  { %5693 = vmatmul.msk.bf16.gmra.mxu0 %vm338_vm0, %v257_v35 }
 0x219   :  { %v747_v39 = vpop.f32.mrf.mxu0 }
 0x21a   :  { %v748_v40 = vadd.f32 %v7090_v34, %v747_v39  ;;  %v7309_v39 = vadd.f32 %v2647_v28, %v2409_v4 }
 0x21c   :  { %v1174_v43 = vmax.f32 %v748_v40, 0.0  ;;  %v94_v40 = vld [vmem:[%s9385_s0 + $0x1f0] sm:$0xff] }
 0x21e   :  { %1627 = vst.msk [vmem:[#allocation2 + $0x208] sm:$0xff] %vm338_vm0, %v1174_v43 }
 0x221   :  { %v749_v49 = vpop.f32.mrf.mxu0 }
 0x222   :  { %v750_v53 = vadd.f32 %v7090_v34, %v749_v49 }
 0x224   :  { %v1175_v57 = vmax.f32 %v750_v53, 0.0  ;;  %v95_v53 = vld [vmem:[%s9385_s0 + $0x1f8] sm:$0xff] }
 0x225   :  { %v1842_v43 = vld [vmem:[#allocation2 + $0x208] sm:$0xff]  ;;  %v259_v58 = vpack.c.bf16 %v95_v53, %v94_v40 }
 0x226   :  { %1628 = vst.msk [vmem:[#allocation2 + $0x210] sm:$0xff] %vm338_vm0, %v1175_v57 }
 0x228   :  { %5694 = vmatmul.msk.bf16.gmra.mxu0 %vm338_vm0, %v258_v5 }
 0x229   :  { %v752_v6 = vpop.f32.mrf.mxu0 }
 0x22a   :  { %v753_v7 = vadd.f32 %v7090_v34, %v752_v6 }
 0x22c   :  { %v1176_v13 = vmax.f32 %v753_v7, 0.0 }
 0x22d   :  { %v1843_v22 = vld [vmem:[#allocation2 + $0x210] sm:$0xff] }
 0x22e   :  { %1629 = vst.msk [vmem:[#allocation2 + $0x218] sm:$0xff] %vm338_vm0, %v1176_v13  ;;  %v2031_v23 = vpack.c.bf16 %v1843_v22, %v1841_v20  ;;  %v96_v20 = vld [vmem:[%s9385_s0 + $0x200] sm:$0xff] }
 0x230   :  { %5802 = vmatmul.msk.bf16.gmra.mxu2 %vm338_vm0, %v2031_v23  ;;  %v97_v23 = vld [vmem:[%s9385_s0 + $0x208] sm:$0xff] }
 0x231   :  { %v754_v30 = vpop.f32.mrf.mxu0 }
 0x232   :  { %v755_v33 = vadd.f32 %v7090_v34, %v754_v30 }
 0x234   :  { %v1177_v35 = vmax.f32 %v755_v33, 0.0  ;;  %v260_v33 = vpack.c.bf16 %v97_v23, %v96_v20 }
 0x235   :  { %v7314_v49 = vld [vmem:[#allocation2 + $0x218] sm:$0xff] }
 0x236   :  { %9473 = vst [vmem:[#allocation17_spill] sm:$0xff] %v7314_v49  ;;  %v2056_v57 = vpack.c.bf16 %v7314_v49, %v1842_v43 }
 0x237   :  { %1630 = vst.msk [vmem:[#allocation2 + $0x220] sm:$0xff] %vm338_vm0, %v1177_v35 }
 0x238   :  { %5773 = vmatmul.msk.bf16.gmra.mxu1 %vm338_vm0, %v2056_v57  ;;  %5695 = vmatmul.msk.bf16.gmra.mxu0 %vm338_vm0, %v259_v58 }
 0x239   :  { %v757_v60 = vpop.f32.mrf.mxu0 }
 0x23a   :  { %v758_v62 = vadd.f32 %v7090_v34, %v757_v60 }
 0x23c   :  { %v1178_v2 = vmax.f32 %v758_v62, 0.0 }
 0x23e   :  { %v1845_v4 = vld [vmem:[#allocation2 + $0x220] sm:$0xff]  ;;  %1631 = vst.msk [vmem:[#allocation2 + $0x228] sm:$0xff] %vm338_vm0, %v1178_v2  ;;  %v98_v2 = vld [vmem:[%s9385_s0 + $0x210] sm:$0xff] }
 0x23f   :  { %v7325_v5 = vpack.c.bf16 %v1845_v4, %v1843_v22 }
 0x241   :  { %9474 = vst [vmem:[#allocation18_spill] sm:$0xff] %v7325_v5  ;;  %5831 = vmatmul.msk.bf16.gmra.mxu3 %vm338_vm0, %v7325_v5  ;;  %v759_v6 = vpop.f32.mrf.mxu0 }
 0x242   :  { %v760_v7 = vadd.f32 %v7090_v34, %v759_v6  ;;  %v99_v6 = vld [vmem:[%s9385_s0 + $0x218] sm:$0xff] }
 0x244   :  { %v1179_v13 = vmax.f32 %v760_v7, 0.0  ;;  %v261_v7 = vpack.c.bf16 %v99_v6, %v98_v2 }
 0x245   :  { %v7336_v30 = vld [vmem:[#allocation2 + $0x228] sm:$0xff] }
 0x246   :  { %9475 = vst [vmem:[#allocation19_spill] sm:$0xff] %v7336_v30 }
 0x247   :  { %1632 = vst.msk [vmem:[#allocation2 + $0x230] sm:$0xff] %vm338_vm0, %v1179_v13 }
 0x248   :  { %5696 = vmatmul.msk.bf16.gmra.mxu0 %vm338_vm0, %v260_v33 }
 0x249   :  { %v762_v28 = vpop.f32.mrf.mxu0 }
 0x24a   :  { %v763_v35 = vadd.f32 %v7090_v34, %v762_v28 }
 0x24c   :  { %v1180_v40 = vmax.f32 %v763_v35, 0.0 }
 0x24e   :  { %v1847_v43 = vld [vmem:[#allocation2 + $0x230] sm:$0xff]  ;;  %1633 = vst.msk [vmem:[#allocation2 + $0x238] sm:$0xff] %vm338_vm0, %v1180_v40 }
 0x24f   :  { %v7344_v53 = vpack.c.bf16 %v1847_v43, %v1845_v4 }
 0x251   :  { %9476 = vst [vmem:[#allocation20_spill] sm:$0xff] %v7344_v53  ;;  %5803 = vmatmul.msk.bf16.gmra.mxu2 %vm338_vm0, %v7344_v53  ;;  %v764_v57 = vpop.f32.mrf.mxu0 }
 0x252   :  { %v765_v58 = vadd.f32 %v7090_v34, %v764_v57 }
 0x254   :  { %v1181_v60 = vmax.f32 %v765_v58, 0.0  ;;  %v100_v58 = vld [vmem:[%s9385_s0 + $0x220] sm:$0xff] }
 0x255   :  { %v7349_v62 = vld [vmem:[#allocation2 + $0x238] sm:$0xff] }
 0x256   :  { %9477 = vst [vmem:[#allocation21_spill] sm:$0xff] %v7349_v62  ;;  %v2057_v4 = vpack.c.bf16 %v7349_v62, %v7336_v30 }
 0x257   :  { %1634 = vst.msk [vmem:[#allocation2 + $0x240] sm:$0xff] %vm338_vm0, %v1181_v60  ;;  %v101_v60 = vld [vmem:[%s9385_s0 + $0x228] sm:$0xff] }
 0x258   :  { %5774 = vmatmul.msk.bf16.gmra.mxu1 %vm338_vm0, %v2057_v4  ;;  %5697 = vmatmul.msk.bf16.gmra.mxu0 %vm338_vm0, %v261_v7  ;;  %v262_v6 = vpack.c.bf16 %v101_v60, %v100_v58  ;;  %v102_v58 = vld [vmem:[%s9385_s0 + $0x230] sm:$0xff]  ;;  %v103_v60 = vld [vmem:[%s9385_s0 + $0x238] sm:$0xff] }
 0x259   :  { %v767_v13 = vpop.f32.mrf.mxu0 }
 0x25a   :  { %v768_v20 = vadd.f32 %v7090_v34, %v767_v13 }
 0x25c   :  { %v1182_v23 = vmax.f32 %v768_v20, 0.0 }
 0x25e   :  { %v1849_v33 = vld [vmem:[#allocation2 + $0x240] sm:$0xff]  ;;  %1635 = vst.msk [vmem:[#allocation2 + $0x248] sm:$0xff] %vm338_vm0, %v1182_v23 }
 0x25f   :  { %v7364_v28 = vpack.c.bf16 %v1849_v33, %v1847_v43 }
 0x261   :  { %9478 = vst [vmem:[#allocation22_spill] sm:$0xff] %v7364_v28  ;;  %5832 = vmatmul.msk.bf16.gmra.mxu3 %vm338_vm0, %v7364_v28  ;;  %v769_v35 = vpop.f32.mrf.mxu0 }
 0x262   :  { %v770_v40 = vadd.f32 %v7090_v34, %v769_v35 }
 0x264   :  { %v1183_v57 = vmax.f32 %v770_v40, 0.0 }
 0x265   :  { %v7375_v2 = vld [vmem:[#allocation2 + $0x248] sm:$0xff] }
 0x266   :  { %9479 = vst [vmem:[#allocation23_spill] sm:$0xff] %v7375_v2 }
 0x267   :  { %1636 = vst.msk [vmem:[#allocation2 + $0x250] sm:$0xff] %vm338_vm0, %v1183_v57 }
 0x268   :  { %5698 = vmatmul.msk.bf16.gmra.mxu0 %vm338_vm0, %v262_v6  ;;  %v263_v6 = vpack.c.bf16 %v103_v60, %v102_v58  ;;  %v104_v60 = vld [vmem:[%s9385_s0 + $0x240] sm:$0xff] }
 0x269   :  { %v772_v4 = vpop.f32.mrf.mxu0 }
 0x26a   :  { %v773_v7 = vadd.f32 %v7090_v34, %v772_v4 }
 0x26c   :  { %v1184_v13 = vmax.f32 %v773_v7, 0.0 }
 0x26e   :  { %v1851_v20 = vld [vmem:[#allocation2 + $0x250] sm:$0xff]  ;;  %1637 = vst.msk [vmem:[#allocation2 + $0x258] sm:$0xff] %vm338_vm0, %v1184_v13  ;;  %v1871_v13 = vld [vmem:[#allocation2 + $0x300] sm:$0xff] }
 0x26f   :  { %v7383_v23 = vpack.c.bf16 %v1851_v20, %v1849_v33 }
 0x271   :  { %9480 = vst [vmem:[#allocation24_spill] sm:$0xff] %v7383_v23  ;;  %5804 = vmatmul.msk.bf16.gmra.mxu2 %vm338_vm0, %v7383_v23  ;;  %v774_v35 = vpop.f32.mrf.mxu0 }
 0x272   :  { %v775_v40 = vadd.f32 %v7090_v34, %v774_v35 }
 0x274   :  { %v1185_v57 = vmax.f32 %v775_v40, 0.0 }
 0x275   :  { %v1852_v43 = vld [vmem:[#allocation2 + $0x258] sm:$0xff] }
 0x276   :  { %1638 = vst.msk [vmem:[#allocation2 + $0x260] sm:$0xff] %vm338_vm0, %v1185_v57  ;;  %v2058_v33 = vpack.c.bf16 %v1852_v43, %v7375_v2 }
 0x278   :  { %5775 = vmatmul.msk.bf16.gmra.mxu1 %vm338_vm0, %v2058_v33  ;;  %5699 = vmatmul.msk.bf16.gmra.mxu0 %vm338_vm0, %v263_v6  ;;  %v105_v33 = vld [vmem:[%s9385_s0 + $0x248] sm:$0xff] }
 0x279   :  { %v777_v4 = vpop.f32.mrf.mxu0 }
 0x27a   :  { %v778_v7 = vadd.f32 %v7090_v34, %v777_v4 }
 0x27c   :  { %v1186_v35 = vmax.f32 %v778_v7, 0.0 }
 0x27d   :  { %v1853_v40 = vld [vmem:[#allocation2 + $0x260] sm:$0xff] }
 0x27e   :  { %1639 = vst.msk [vmem:[#allocation2 + $0x268] sm:$0xff] %vm338_vm0, %v1186_v35  ;;  %v2034_v22 = vpack.c.bf16 %v1871_v13, %v1853_v40  ;;  %v7400_v27 = vpack.c.bf16 %v1853_v40, %v1851_v20  ;;  %v264_v20 = vpack.c.bf16 %v105_v33, %v104_v60  ;;  %v106_v40 = vld [vmem:[%s9385_s0 + $0x250] sm:$0xff] }
 0x280   :  { %9481 = vst [vmem:[#allocation25_spill] sm:$0xff] %v7400_v27  ;;  %5833 = vmatmul.msk.bf16.gmra.mxu3 %vm338_vm0, %v7400_v27 }
 0x281   :  { %5805 = vmatmul.msk.bf16.gmra.mxu2 %vm338_vm0, %v2034_v22  ;;  %v779_v43 = vpop.f32.mrf.mxu0 }
 0x282   :  { %v780_v57 = vadd.f32 %v7090_v34, %v779_v43  ;;  %v107_v43 = vld [vmem:[%s9385_s0 + $0x258] sm:$0xff] }
 0x284   :  { %v1187_v58 = vmax.f32 %v780_v57, 0.0  ;;  %v265_v57 = vpack.c.bf16 %v107_v43, %v106_v40 }
 0x286   :  { %1640 = vst.msk [vmem:[#allocation2 + $0x270] sm:$0xff] %vm338_vm0, %v1187_v58 }
 0x288   :  { %5700 = vmatmul.msk.bf16.gmra.mxu0 %vm338_vm0, %v264_v20 }
 0x289   :  { %v782_v6 = vpop.f32.mrf.mxu0 }
 0x28a   :  { %v783_v22 = vadd.f32 %v7090_v34, %v782_v6 }
 0x28c   :  { %v1188_v4 = vmax.f32 %v783_v22, 0.0 }
 0x28e   :  { %1641 = vst.msk [vmem:[#allocation2 + $0x288] sm:$0xff] %vm338_vm0, %v1188_v4  ;;  %v108_v4 = vld [vmem:[%s9385_s0 + $0x260] sm:$0xff] }
 0x291   :  { %v784_v7 = vpop.f32.mrf.mxu0 }
 0x292   :  { %v785_v13 = vadd.f32 %v7090_v34, %v784_v7  ;;  %v109_v7 = vld [vmem:[%s9385_s0 + $0x268] sm:$0xff] }
 0x294   :  { %v1189_v35 = vmax.f32 %v785_v13, 0.0  ;;  %v266_v13 = vpack.c.bf16 %v109_v7, %v108_v4  ;;  %v111_v4 = vld [vmem:[%s9385_s0 + $0x278] sm:$0xff] }
 0x296   :  { %1642 = vst.msk [vmem:[#allocation2 + $0x290] sm:$0xff] %vm338_vm0, %v1189_v35 }
 0x298   :  { %5701 = vmatmul.msk.bf16.gmra.mxu0 %vm338_vm0, %v265_v57  ;;  %v7437_v57 = vpop.f32.mrf.mxu2 }
 0x299   :  { %v787_v58 = vpop.f32.mrf.mxu0 }
 0x29a   :  { %v788_v60 = vadd.f32 %v7090_v34, %v787_v58  ;;  %v7439_v58 = vpop.f32.mrf.mxu1 }
 0x29c   :  { %v1190_v33 = vmax.f32 %v788_v60, 0.0 }
 0x29e   :  { %1643 = vst.msk [vmem:[#allocation2 + $0x298] sm:$0xff] %vm338_vm0, %v1190_v33 }
 0x2a1   :  { %v789_v20 = vpop.f32.mrf.mxu0 }
 0x2a2   :  { %v790_v6 = vadd.f32 %v7090_v34, %v789_v20 }
 0x2a4   :  { %v1191_v22 = vmax.f32 %v790_v6, 0.0 }
 0x2a6   :  { %1644 = vst.msk [vmem:[#allocation2 + $0x2a0] sm:$0xff] %vm338_vm0, %v1191_v22  ;;  %v110_v22 = vld [vmem:[%s9385_s0 + $0x270] sm:$0xff] }
 0x2a8   :  { %5702 = vmatmul.msk.bf16.gmra.mxu0 %vm338_vm0, %v266_v13  ;;  %v267_v13 = vpack.c.bf16 %v111_v4, %v110_v22 }
 0x2a9   :  { %v792_v35 = vpop.f32.mrf.mxu0 }
 0x2aa   :  { %v793_v40 = vadd.f32 %v7090_v34, %v792_v35 }
 0x2ac   :  { %v1192_v43 = vmax.f32 %v793_v40, 0.0 }
 0x2ae   :  { %1645 = vst.msk [vmem:[#allocation2 + $0x2a8] sm:$0xff] %vm338_vm0, %v1192_v43  ;;  %v7451_v43 = vpop.f32.mrf.mxu3 }
 0x2b1   :  { %v794_v60 = vpop.f32.mrf.mxu0 }
 0x2b2   :  { %v795_v33 = vadd.f32 %v7090_v34, %v794_v60 }
 0x2b3   :  { %v2413_v6 = vpop.f32.mrf.mxu2 }
 0x2b4   :  { %v1193_v20 = vmax.f32 %v795_v33, 0.0 }
 0x2b5   :  { %v2199_v45 = vpop.f32.mrf.mxu1 }
 0x2b6   :  { %1646 = vst.msk [vmem:[#allocation2 + $0x2b0] sm:$0xff] %vm338_vm0, %v1193_v20  ;;  %v2414_v7 = vadd.f32 %v2413_v6, %v2199_v45  ;;  %v112_v45 = vld [vmem:[%s9385_s0 + $0x280] sm:$0xff]  ;;  %v113_v20 = vld [vmem:[%s9385_s0 + $0x288] sm:$0xff] }
 0x2b7   :  { %v268_v6 = vpack.c.bf16 %v113_v20, %v112_v45  ;;  %v115_v45 = vld [vmem:[%s9385_s0 + $0x298] sm:$0xff] }
 0x2b8   :  { %5703 = vmatmul.msk.bf16.gmra.mxu0 %vm338_vm0, %v267_v13 }
 0x2b9   :  { %v797_v35 = vpop.f32.mrf.mxu0 }
 0x2ba   :  { %v798_v40 = vadd.f32 %v7090_v34, %v797_v35 }
 0x2bc   :  { %v1194_v60 = vmax.f32 %v798_v40, 0.0 }
 0x2be   :  { %1647 = vst.msk [vmem:[#allocation2 + $0x2b8] sm:$0xff] %vm338_vm0, %v1194_v60 }
 0x2c1   :  { %v799_v33 = vpop.f32.mrf.mxu0 }
 0x2c2   :  { %v800_v10 = vadd.f32 %v7090_v34, %v799_v33 }
 0x2c4   :  { %v2652_v18 = vpop.f32.mrf.mxu3  ;;  %v1195_v27 = vmax.f32 %v800_v10, 0.0  ;;  %v7467_v10 = vpop.f32.mrf.mxu2 }
 0x2c5   :  { %v7456_v23 = vadd.f32 %v2652_v18, %v2414_v7  ;;  %v7469_v18 = vpop.f32.mrf.mxu1 }
 0x2c6   :  { %1648 = vst.msk [vmem:[#allocation2 + $0x2c0] sm:$0xff] %vm338_vm0, %v1195_v27  ;;  %v114_v27 = vld [vmem:[%s9385_s0 + $0x290] sm:$0xff] }
 0x2c8   :  { %5704 = vmatmul.msk.bf16.gmra.mxu0 %vm338_vm0, %v268_v6  ;;  %v269_v6 = vpack.c.bf16 %v115_v45, %v114_v27 }
 0x2c9   :  { %v802_v22 = vpop.f32.mrf.mxu0 }
 0x2ca   :  { %v803_v4 = vadd.f32 %v7090_v34, %v802_v22 }
 0x2cc   :  { %v1196_v13 = vmax.f32 %v803_v4, 0.0 }
 0x2ce   :  { %1649 = vst.msk [vmem:[#allocation2 + $0x2c8] sm:$0xff] %vm338_vm0, %v1196_v13  ;;  %v7481_v13 = vpop.f32.mrf.mxu3 }
 0x2d1   :  { %v804_v7 = vpop.f32.mrf.mxu0 }
 0x2d2   :  { %v805_v35 = vadd.f32 %v7090_v34, %v804_v7 }
 0x2d4   :  { %v1197_v40 = vmax.f32 %v805_v35, 0.0  ;;  %v2418_v60 = vpop.f32.mrf.mxu2 }
 0x2d5   :  { %v2204_v33 = vpop.f32.mrf.mxu1 }
 0x2d6   :  { %1650 = vst.msk [vmem:[#allocation2 + $0x2d0] sm:$0xff] %vm338_vm0, %v1197_v40  ;;  %v2419_v20 = vadd.f32 %v2418_v60, %v2204_v33  ;;  %v116_v40 = vld [vmem:[%s9385_s0 + $0x2a0] sm:$0xff]  ;;  %v117_v60 = vld [vmem:[%s9385_s0 + $0x2a8] sm:$0xff] }
 0x2d7   :  { %v270_v33 = vpack.c.bf16 %v117_v60, %v116_v40  ;;  %v119_v40 = vld [vmem:[%s9385_s0 + $0x2b8] sm:$0xff] }
 0x2d8   :  { %5705 = vmatmul.msk.bf16.gmra.mxu0 %vm338_vm0, %v269_v6 }
 0x2d9   :  { %v807_v22 = vpop.f32.mrf.mxu0 }
 0x2da   :  { %v808_v4 = vadd.f32 %v7090_v34, %v807_v22 }
 0x2dc   :  { %v1198_v7 = vmax.f32 %v808_v4, 0.0 }
 0x2de   :  { %1651 = vst.msk [vmem:[#allocation2 + $0x2d8] sm:$0xff] %vm338_vm0, %v1198_v7 }
 0x2e1   :  { %v809_v35 = vpop.f32.mrf.mxu0 }
 0x2e2   :  { %v810_v28 = vadd.f32 %v7090_v34, %v809_v35 }
 0x2e4   :  { %v2657_v53 = vpop.f32.mrf.mxu3  ;;  %v1199_v62 = vmax.f32 %v810_v28, 0.0  ;;  %v7497_v28 = vpop.f32.mrf.mxu2 }
 0x2e5   :  { %v7486_v2 = vadd.f32 %v2657_v53, %v2419_v20  ;;  %v7499_v53 = vpop.f32.mrf.mxu1 }
 0x2e6   :  { %1652 = vst.msk [vmem:[#allocation2 + $0x2e0] sm:$0xff] %vm338_vm0, %v1199_v62  ;;  %v118_v62 = vld [vmem:[%s9385_s0 + $0x2b0] sm:$0xff] }
 0x2e8   :  { %5706 = vmatmul.msk.bf16.gmra.mxu0 %vm338_vm0, %v270_v33  ;;  %v271_v33 = vpack.c.bf16 %v119_v40, %v118_v62  ;;  %v121_v62 = vld [vmem:[%s9385_s0 + $0x2c8] sm:$0xff] }
 0x2e9   :  { %v812_v27 = vpop.f32.mrf.mxu0 }
 0x2ea   :  { %v813_v45 = vadd.f32 %v7090_v34, %v812_v27 }
 0x2ec   :  { %v1200_v6 = vmax.f32 %v813_v45, 0.0 }
 0x2ee   :  { %1653 = vst.msk [vmem:[#allocation2 + $0x2e8] sm:$0xff] %vm338_vm0, %v1200_v6  ;;  %v7511_v6 = vpop.f32.mrf.mxu3 }
 0x2f1   :  { %v814_v20 = vpop.f32.mrf.mxu0 }
 0x2f2   :  { %v815_v22 = vadd.f32 %v7090_v34, %v814_v20 }
 0x2f4   :  { %v1201_v4 = vmax.f32 %v815_v22, 0.0  ;;  %v2423_v7 = vpop.f32.mrf.mxu2 }
 0x2f5   :  { %v2209_v35 = vpop.f32.mrf.mxu1 }
 0x2f6   :  { %1654 = vst.msk [vmem:[#allocation2 + $0x2f0] sm:$0xff] %vm338_vm0, %v1201_v4  ;;  %v2424_v60 = vadd.f32 %v2423_v7, %v2209_v35  ;;  %v1854_v4 = vld [vmem:[#allocation2 + $0x268] sm:$0xff]  ;;  %v120_v35 = vld [vmem:[%s9385_s0 + $0x2c0] sm:$0xff] }
 0x2f8   :  { %5707 = vmatmul.msk.bf16.gmra.mxu0 %vm338_vm0, %v271_v33 }
 0x2f9   :  { %v817_v27 = vpop.f32.mrf.mxu0 }
 0x2fa   :  { %v818_v45 = vadd.f32 %v7090_v34, %v817_v27  ;;  %v1855_v27 = vld [vmem:[#allocation2 + $0x270] sm:$0xff] }
 0x2fc   :  { %v1202_v20 = vmax.f32 %v818_v45, 0.0 }
 0x2fe   :  { %1655 = vst.msk [vmem:[#allocation2 + $0x308] sm:$0xff] %vm338_vm0, %v1202_v20 }
 0x301   :  { %v819_v22 = vpop.f32.mrf.mxu0 }
 0x302   :  { %v820_v5 = vadd.f32 %v7090_v34, %v819_v22 }
 0x303   :  { %v2662_v49 = vpop.f32.mrf.mxu3 }
 0x304   :  { %v1203_v30 = vmax.f32 %v820_v5, 0.0  ;;  %v7516_v41 = vadd.f32 %v2662_v49, %v2424_v60  ;;  %v272_v5 = vpack.c.bf16 %v121_v62, %v120_v35  ;;  %v122_v35 = vld [vmem:[%s9385_s0 + $0x2d0] sm:$0xff]  ;;  %v123_v62 = vld [vmem:[%s9385_s0 + $0x2d8] sm:$0xff] }
 0x305   :  { %v7518_v7 = vld [vmem:[#allocation2 + $0x308] sm:$0xff] }
 0x306   :  { %9482 = vst [vmem:[#allocation26_spill] sm:$0xff] %v7518_v7  ;;  %v2059_v40 = vpack.c.bf16 %v7518_v7, %v1854_v4 }
 0x307   :  { %1656 = vst.msk [vmem:[#allocation2 + $0x310] sm:$0xff] %vm338_vm0, %v1203_v30 }
 0x308   :  { %5776 = vmatmul.msk.bf16.gmra.mxu1 %vm338_vm0, %v2059_v40  ;;  %5708 = vmatmul.msk.bf16.gmra.mxu0 %vm338_vm0, %v272_v5 }
 0x309   :  { %v822_v49 = vpop.f32.mrf.mxu0 }
 0x30a   :  { %v823_v60 = vadd.f32 %v7090_v34, %v822_v49  ;;  %v273_v49 = vpack.c.bf16 %v123_v62, %v122_v35  ;;  %v124_v35 = vld [vmem:[%s9385_s0 + $0x2e0] sm:$0xff]  ;;  %v125_v62 = vld [vmem:[%s9385_s0 + $0x2e8] sm:$0xff] }
 0x30c   :  { %v1204_v33 = vmax.f32 %v823_v60, 0.0 }
 0x30e   :  { %v1873_v45 = vld [vmem:[#allocation2 + $0x310] sm:$0xff]  ;;  %1657 = vst.msk [vmem:[#allocation2 + $0x318] sm:$0xff] %vm338_vm0, %v1204_v33 }
 0x30f   :  { %v2512_v20 = vpack.c.bf16 %v1873_v45, %v1855_v27 }
 0x311   :  { %5834 = vmatmul.msk.bf16.gmra.mxu3 %vm338_vm0, %v2512_v20  ;;  %v824_v22 = vpop.f32.mrf.mxu0 }
 0x312   :  { %v825_v30 = vadd.f32 %v7090_v34, %v824_v22 }
 0x314   :  { %v1205_v4 = vmax.f32 %v825_v30, 0.0 }
 0x315   :  { %v7540_v40 = vld [vmem:[#allocation2 + $0x318] sm:$0xff] }
 0x316   :  { %9483 = vst [vmem:[#allocation27_spill] sm:$0xff] %v7540_v40 }
 0x317   :  { %1658 = vst.msk [vmem:[#allocation2 + $0x320] sm:$0xff] %vm338_vm0, %v1205_v4 }
 0x318   :  { %5709 = vmatmul.msk.bf16.gmra.mxu0 %vm338_vm0, %v273_v49  ;;  %v274_v49 = vpack.c.bf16 %v125_v62, %v124_v35  ;;  %v126_v35 = vld [vmem:[%s9385_s0 + $0x2f0] sm:$0xff]  ;;  %v127_v62 = vld [vmem:[%s9385_s0 + $0x2f8] sm:$0xff] }
 0x319   :  { %v827_v60 = vpop.f32.mrf.mxu0 }
 0x31a   :  { %v828_v33 = vadd.f32 %v7090_v34, %v827_v60 }
 0x31c   :  { %v1206_v27 = vmax.f32 %v828_v33, 0.0 }
 0x31e   :  { %v1875_v20 = vld [vmem:[#allocation2 + $0x320] sm:$0xff]  ;;  %1659 = vst.msk [vmem:[#allocation2 + $0x328] sm:$0xff] %vm338_vm0, %v1206_v27 }
 0x31f   :  { %v7548_v22 = vpack.c.bf16 %v1875_v20, %v1873_v45 }
 0x321   :  { %9484 = vst [vmem:[#allocation28_spill] sm:$0xff] %v7548_v22  ;;  %5806 = vmatmul.msk.bf16.gmra.mxu2 %vm338_vm0, %v7548_v22  ;;  %v829_v30 = vpop.f32.mrf.mxu0 }
 0x322   :  { %v830_v4 = vadd.f32 %v7090_v34, %v829_v30 }
 0x324   :  { %v1207_v14 = vmax.f32 %v830_v4, 0.0 }
 0x325   :  { %v7553_v5 = vld [vmem:[#allocation2 + $0x328] sm:$0xff] }
 0x326   :  { %9485 = vst [vmem:[#allocation29_spill] sm:$0xff] %v7553_v5  ;;  %v2060_v45 = vpack.c.bf16 %v7553_v5, %v7540_v40 }
 0x327   :  { %1660 = vst.msk [vmem:[#allocation2 + $0x330] sm:$0xff] %vm338_vm0, %v1207_v14 }
 0x328   :  { %5777 = vmatmul.msk.bf16.gmra.mxu1 %vm338_vm0, %v2060_v45  ;;  %5710 = vmatmul.msk.bf16.gmra.mxu0 %vm338_vm0, %v274_v49 }
 0x329   :  { %v832_v60 = vpop.f32.mrf.mxu0 }
 0x32a   :  { %v833_v33 = vadd.f32 %v7090_v34, %v832_v60 }
 0x32c   :  { %v1208_v27 = vmax.f32 %v833_v33, 0.0 }
 0x32e   :  { %v1877_v30 = vld [vmem:[#allocation2 + $0x330] sm:$0xff]  ;;  %1661 = vst.msk [vmem:[#allocation2 + $0x338] sm:$0xff] %vm338_vm0, %v1208_v27 }
 0x32f   :  { %v7568_v4 = vpack.c.bf16 %v1877_v30, %v1875_v20  ;;  %v275_v20 = vpack.c.bf16 %v127_v62, %v126_v35 }
 0x331   :  { %9486 = vst [vmem:[#allocation30_spill] sm:$0xff] %v7568_v4  ;;  %5835 = vmatmul.msk.bf16.gmra.mxu3 %vm338_vm0, %v7568_v4  ;;  %v834_v14 = vpop.f32.mrf.mxu0 }
 0x332   :  { %v835_v22 = vadd.f32 %v7090_v34, %v834_v14 }
 0x334   :  { %v1209_v7 = vmax.f32 %v835_v22, 0.0 }
 0x335   :  { %v7579_v45 = vld [vmem:[#allocation2 + $0x338] sm:$0xff] }
 0x336   :  { %9487 = vst [vmem:[#allocation31_spill] sm:$0xff] %v7579_v45 }
 0x337   :  { %1662 = vst.msk [vmem:[#allocation2 + $0x340] sm:$0xff] %vm338_vm0, %v1209_v7  ;;  %v7594_v7 = vld [vmem:[%s9386_s2] ss:$0 sm:$0xff] }
 0x338   :  { %5711 = vmatmul.msk.bf16.gmra.mxu0 %vm338_vm0, %v275_v20  ;;  %v128_v20 = vld [vmem:[%s9385_s0 + $0x300] sm:$0xff] }
 0x339   :  { %v837_v60 = vpop.f32.mrf.mxu0 }
 0x33a   :  { %v838_v33 = vadd.f32 %v7090_v34, %v837_v60 }
 0x33c   :  { %v1210_v22 = vmax.f32 %v838_v33, 0.0 }
 0x33e   :  { %v1879_v27 = vld [vmem:[#allocation2 + $0x340] sm:$0xff]  ;;  %1663 = vst.msk [vmem:[#allocation2 + $0x348] sm:$0xff] %vm338_vm0, %v1210_v22 }
 0x33f   :  { %v7587_v14 = vpack.c.bf16 %v1879_v27, %v1877_v30  ;;  %v129_v30 = vld [vmem:[%s9385_s0 + $0x308] sm:$0xff] }
 0x340   :  { %v276_v33 = vpack.c.bf16 %v129_v30, %v128_v20  ;;  %v130_v20 = vld [vmem:[%s9385_s0 + $0x310] sm:$0xff]  ;;  %v131_v30 = vld [vmem:[%s9385_s0 + $0x318] sm:$0xff] }
 0x341   :  { %9488 = vst [vmem:[#allocation32_spill] sm:$0xff] %v7587_v14  ;;  %5807 = vmatmul.msk.bf16.gmra.mxu2 %vm338_vm0, %v7587_v14  ;;  %v839_v4 = vpop.f32.mrf.mxu0 }
 0x342   :  { %v840_v35 = vadd.f32 %v7594_v7, %v839_v4 }
 0x344   :  { %v1211_v34 = vmax.f32 %v840_v35, 0.0 }
 0x345   :  { %v7597_v62 = vld [vmem:[#allocation2 + $0x348] sm:$0xff] }
 0x346   :  { %9489 = vst [vmem:[#allocation33_spill] sm:$0xff] %v7597_v62  ;;  %v2061_v60 = vpack.c.bf16 %v7597_v62, %v7579_v45 }
 0x347   :  { %1664 = vst.msk [vmem:[#allocation2 + $0x350] sm:$0xff] %vm338_vm0, %v1211_v34 }
 0x348   :  { %5778 = vmatmul.msk.bf16.gmra.mxu1 %vm338_vm0, %v2061_v60  ;;  %5712 = vmatmul.msk.bf16.gmra.mxu0 %vm338_vm0, %v276_v33 }
 0x349   :  { %v842_v4 = vpop.f32.mrf.mxu0 }
 0x34a   :  { %v843_v22 = vadd.f32 %v7594_v7, %v842_v4 }
 0x34c   :  { %v1212_v35 = vmax.f32 %v843_v22, 0.0 }
 0x34e   :  { %v1881_v49 = vld [vmem:[#allocation2 + $0x350] sm:$0xff]  ;;  %1665 = vst.msk [vmem:[#allocation2 + $0x358] sm:$0xff] %vm338_vm0, %v1212_v35 }
 0x34f   :  { %v7612_v14 = vpack.c.bf16 %v1881_v49, %v1879_v27  ;;  %v277_v27 = vpack.c.bf16 %v131_v30, %v130_v20 }
 0x351   :  { %9490 = vst [vmem:[#allocation34_spill] sm:$0xff] %v7612_v14  ;;  %5836 = vmatmul.msk.bf16.gmra.mxu3 %vm338_vm0, %v7612_v14  ;;  %v844_v34 = vpop.f32.mrf.mxu0 }
 0x352   :  { %v845_v5 = vadd.f32 %v7594_v7, %v844_v34 }
 0x354   :  { %v1213_v45 = vmax.f32 %v845_v5, 0.0 }
 0x355   :  { %v7623_v60 = vld [vmem:[#allocation2 + $0x358] sm:$0xff] }
 0x356   :  { %9491 = vst [vmem:[#allocation35_spill] sm:$0xff] %v7623_v60 }
 0x357   :  { %1666 = vst.msk [vmem:[#allocation2 + $0x360] sm:$0xff] %vm338_vm0, %v1213_v45 }
 0x358   :  { %5713 = vmatmul.msk.bf16.gmra.mxu0 %vm338_vm0, %v277_v27  ;;  %v133_v27 = vld [vmem:[%s9385_s0 + $0x328] sm:$0xff] }
 0x359   :  { %v847_v4 = vpop.f32.mrf.mxu0 }
 0x35a   :  { %v848_v22 = vadd.f32 %v7594_v7, %v847_v4  ;;  %v132_v4 = vld [vmem:[%s9385_s0 + $0x320] sm:$0xff] }
 0x35c   :  { %v1214_v5 = vmax.f32 %v848_v22, 0.0  ;;  %v278_v22 = vpack.c.bf16 %v133_v27, %v132_v4  ;;  %v135_v4 = vld [vmem:[%s9385_s0 + $0x338] sm:$0xff] }
 0x35e   :  { %v1883_v35 = vld [vmem:[#allocation2 + $0x360] sm:$0xff]  ;;  %1667 = vst.msk [vmem:[#allocation2 + $0x368] sm:$0xff] %vm338_vm0, %v1214_v5 }
 0x35f   :  { %v7631_v34 = vpack.c.bf16 %v1883_v35, %v1881_v49 }
 0x361   :  { %9492 = vst [vmem:[#allocation36_spill] sm:$0xff] %v7631_v34  ;;  %5808 = vmatmul.msk.bf16.gmra.mxu2 %vm338_vm0, %v7631_v34  ;;  %v849_v14 = vpop.f32.mrf.mxu0 }
 0x362   :  { %v850_v45 = vadd.f32 %v7594_v7, %v849_v14 }
 0x364   :  { %v1215_v20 = vmax.f32 %v850_v45, 0.0 }
 0x365   :  { %v1884_v30 = vld [vmem:[#allocation2 + $0x368] sm:$0xff] }
 0x366   :  { %1668 = vst.msk [vmem:[#allocation2 + $0x370] sm:$0xff] %vm338_vm0, %v1215_v20  ;;  %v2062_v49 = vpack.c.bf16 %v1884_v30, %v7623_v60  ;;  %v134_v30 = vld [vmem:[%s9385_s0 + $0x330] sm:$0xff] }
 0x367   :  { %v279_v27 = vpack.c.bf16 %v135_v4, %v134_v30 }
 0x368   :  { %5779 = vmatmul.msk.bf16.gmra.mxu1 %vm338_vm0, %v2062_v49  ;;  %5714 = vmatmul.msk.bf16.gmra.mxu0 %vm338_vm0, %v278_v22 }
 0x369   :  { %v852_v5 = vpop.f32.mrf.mxu0 }
 0x36a   :  { %v853_v14 = vadd.f32 %v7594_v7, %v852_v5  ;;  %v136_v5 = vld [vmem:[%s9385_s0 + $0x340] sm:$0xff] }
 0x36c   :  { %v1216_v45 = vmax.f32 %v853_v14, 0.0  ;;  %v7668_v14 = vpop.f32.mrf.mxu2 }
 0x36d   :  { %v1885_v33 = vld [vmem:[#allocation2 + $0x370] sm:$0xff] }
 0x36e   :  { %1669 = vst.msk [vmem:[#allocation2 + $0x388] sm:$0xff] %vm338_vm0, %v1216_v45  ;;  %v2515_v34 = vpack.c.bf16 %v1885_v33, %v1883_v35  ;;  %v7670_v45 = vpop.f32.mrf.mxu1 }
 0x370   :  { %5837 = vmatmul.msk.bf16.gmra.mxu3 %vm338_vm0, %v2515_v34 }
 0x371   :  { %v854_v62 = vpop.f32.mrf.mxu0 }
 0x372   :  { %v855_v20 = vadd.f32 %v7594_v7, %v854_v62 }
 0x374   :  { %v1217_v40 = vmax.f32 %v855_v20, 0.0 }
 0x376   :  { %1670 = vst.msk [vmem:[#allocation2 + $0x390] sm:$0xff] %vm338_vm0, %v1217_v40  ;;  %v137_v40 = vld [vmem:[%s9385_s0 + $0x348] sm:$0xff] }
 0x377   :  { %v280_v20 = vpack.c.bf16 %v137_v40, %v136_v5  ;;  %v138_v5 = vld [vmem:[%s9385_s0 + $0x350] sm:$0xff]  ;;  %v139_v40 = vld [vmem:[%s9385_s0 + $0x358] sm:$0xff] }
 0x378   :  { %5715 = vmatmul.msk.bf16.gmra.mxu0 %vm338_vm0, %v279_v27  ;;  %v7673_v27 = vpop.f32.mrf.mxu3 }
 0x379   :  { %v857_v49 = vpop.f32.mrf.mxu0 }
 0x37a   :  { %v858_v33 = vadd.f32 %v7594_v7, %v857_v49 }
 0x37c   :  { %v1218_v35 = vmax.f32 %v858_v33, 0.0 }
 0x37e   :  { %1671 = vst.msk [vmem:[#allocation2 + $0x398] sm:$0xff] %vm338_vm0, %v1218_v35  ;;  %v2428_v35 = vpop.f32.mrf.mxu2 }
 0x381   :  { %v859_v62 = vpop.f32.mrf.mxu0 }
 0x382   :  { %v860_v34 = vadd.f32 %v7594_v7, %v859_v62 }
 0x384   :  { %v1219_v22 = vmax.f32 %v860_v34, 0.0 }
 0x385   :  { %v2214_v33 = vpop.f32.mrf.mxu1 }
 0x386   :  { %1672 = vst.msk [vmem:[#allocation2 + $0x3a0] sm:$0xff] %vm338_vm0, %v1219_v22  ;;  %v2429_v34 = vadd.f32 %v2428_v35, %v2214_v33  ;;  %v7689_v33 = vpop.f32.mrf.mxu2 }
 0x388   :  { %5716 = vmatmul.msk.bf16.gmra.mxu0 %vm338_vm0, %v280_v20  ;;  %v281_v20 = vpack.c.bf16 %v139_v40, %v138_v5  ;;  %v141_v5 = vld [vmem:[%s9385_s0 + $0x368] sm:$0xff] }
 0x389   :  { %v862_v30 = vpop.f32.mrf.mxu0 }
 0x38a   :  { %v863_v4 = vadd.f32 %v7594_v7, %v862_v30 }
 0x38c   :  { %v1220_v49 = vmax.f32 %v863_v4, 0.0 }
 0x38e   :  { %1673 = vst.msk [vmem:[#allocation2 + $0x3a8] sm:$0xff] %vm338_vm0, %v1220_v49 }
 0x391   :  { %v864_v62 = vpop.f32.mrf.mxu0 }
 0x392   :  { %v865_v22 = vadd.f32 %v7594_v7, %v864_v62 }
 0x394   :  { %v2667_v60 = vpop.f32.mrf.mxu3  ;;  %v1221_v55 = vmax.f32 %v865_v22, 0.0 }
 0x395   :  { %v7678_v61 = vadd.f32 %v2667_v60, %v2429_v34  ;;  %v7691_v60 = vpop.f32.mrf.mxu1 }
 0x396   :  { %1674 = vst.msk [vmem:[#allocation2 + $0x3b0] sm:$0xff] %vm338_vm0, %v1221_v55  ;;  %v140_v55 = vld [vmem:[%s9385_s0 + $0x360] sm:$0xff] }
 0x398   :  { %5717 = vmatmul.msk.bf16.gmra.mxu0 %vm338_vm0, %v281_v20  ;;  %v282_v20 = vpack.c.bf16 %v141_v5, %v140_v55 }
 0x399   :  { %v867_v30 = vpop.f32.mrf.mxu0 }
 0x39a   :  { %v868_v4 = vadd.f32 %v7594_v7, %v867_v30 }
 0x39c   :  { %v1222_v49 = vmax.f32 %v868_v4, 0.0 }
 0x39e   :  { %1675 = vst.msk [vmem:[#allocation2 + $0x3b8] sm:$0xff] %vm338_vm0, %v1222_v49  ;;  %v7703_v49 = vpop.f32.mrf.mxu3 }
 0x3a1   :  { %v869_v35 = vpop.f32.mrf.mxu0 }
 0x3a2   :  { %v870_v62 = vadd.f32 %v7594_v7, %v869_v35 }
 0x3a4   :  { %v1223_v34 = vmax.f32 %v870_v62, 0.0  ;;  %v2433_v22 = vpop.f32.mrf.mxu2 }
 0x3a5   :  { %v2219_v26 = vpop.f32.mrf.mxu1 }
 0x3a6   :  { %1676 = vst.msk [vmem:[#allocation2 + $0x3c0] sm:$0xff] %vm338_vm0, %v1223_v34  ;;  %v2434_v40 = vadd.f32 %v2433_v22, %v2219_v26  ;;  %v142_v26 = vld [vmem:[%s9385_s0 + $0x370] sm:$0xff]  ;;  %v143_v34 = vld [vmem:[%s9385_s0 + $0x378] sm:$0xff] }
 0x3a7   :  { %v283_v22 = vpack.c.bf16 %v143_v34, %v142_v26  ;;  %v145_v26 = vld [vmem:[%s9385_s0 + $0x388] sm:$0xff] }
 0x3a8   :  { %5718 = vmatmul.msk.bf16.gmra.mxu0 %vm338_vm0, %v282_v20 }
 0x3a9   :  { %v872_v30 = vpop.f32.mrf.mxu0 }
 0x3aa   :  { %v873_v4 = vadd.f32 %v7594_v7, %v872_v30 }
 0x3ac   :  { %v1224_v35 = vmax.f32 %v873_v4, 0.0 }
 0x3ae   :  { %1677 = vst.msk [vmem:[#allocation2 + $0x3c8] sm:$0xff] %vm338_vm0, %v1224_v35 }
 0x3b1   :  { %v874_v62 = vpop.f32.mrf.mxu0 }
 0x3b2   :  { %v875_v38 = vadd.f32 %v7594_v7, %v874_v62 }
 0x3b4   :  { %v2672_v24 = vpop.f32.mrf.mxu3  ;;  %v1225_v29 = vmax.f32 %v875_v38, 0.0  ;;  %v7719_v38 = vpop.f32.mrf.mxu2 }
 0x3b5   :  { %v7708_v44 = vadd.f32 %v2672_v24, %v2434_v40  ;;  %9493 = vst [vmem:[#allocation37_spill] sm:$0xff] %v7719_v38  ;;  %v7721_v24 = vpop.f32.mrf.mxu1 }
 0x3b6   :  { %1678 = vst.msk [vmem:[#allocation2 + $0x3d0] sm:$0xff] %vm338_vm0, %v1225_v29  ;;  %v144_v29 = vld [vmem:[%s9385_s0 + $0x380] sm:$0xff] }
 0x3b7   :  { %9494 = vst [vmem:[#allocation38_spill] sm:$0xff] %v7721_v24 }
 0x3b8   :  { %5719 = vmatmul.msk.bf16.gmra.mxu0 %vm338_vm0, %v283_v22  ;;  %v284_v22 = vpack.c.bf16 %v145_v26, %v144_v29 }
 0x3b9   :  { %v877_v55 = vpop.f32.mrf.mxu0 }
 0x3ba   :  { %v878_v5 = vadd.f32 %v7594_v7, %v877_v55 }
 0x3bc   :  { %v1226_v20 = vmax.f32 %v878_v5, 0.0 }
 0x3be   :  { %1679 = vst.msk [vmem:[#allocation2 + $0x3d8] sm:$0xff] %vm338_vm0, %v1226_v20  ;;  %v7733_v20 = vpop.f32.mrf.mxu3 }
 0x3bf   :  { %9495 = vst [vmem:[#allocation39_spill] sm:$0xff] %v7733_v20 }
 0x3c1   :  { %v879_v40 = vpop.f32.mrf.mxu0 }
 0x3c2   :  { %v880_v30 = vadd.f32 %v7594_v7, %v879_v40 }
 0x3c4   :  { %v1227_v4 = vmax.f32 %v880_v30, 0.0  ;;  %v2438_v35 = vpop.f32.mrf.mxu2 }
 0x3c5   :  { %v2224_v62 = vpop.f32.mrf.mxu1 }
 0x3c6   :  { %1680 = vst.msk [vmem:[#allocation2 + $0x3e0] sm:$0xff] %vm338_vm0, %v1227_v4  ;;  %v2439_v34 = vadd.f32 %v2438_v35, %v2224_v62  ;;  %v146_v4 = vld [vmem:[%s9385_s0 + $0x390] sm:$0xff]  ;;  %v147_v35 = vld [vmem:[%s9385_s0 + $0x398] sm:$0xff] }
 0x3c7   :  { %v285_v62 = vpack.c.bf16 %v147_v35, %v146_v4  ;;  %v149_v4 = vld [vmem:[%s9385_s0 + $0x3a8] sm:$0xff] }
 0x3c8   :  { %5720 = vmatmul.msk.bf16.gmra.mxu0 %vm338_vm0, %v284_v22 }
 0x3c9   :  { %v882_v55 = vpop.f32.mrf.mxu0 }
 0x3ca   :  { %v883_v5 = vadd.f32 %v7594_v7, %v882_v55 }
 0x3cc   :  { %v1228_v40 = vmax.f32 %v883_v5, 0.0 }
 0x3ce   :  { %1681 = vst.msk [vmem:[#allocation2 + $0x3e8] sm:$0xff] %vm338_vm0, %v1228_v40 }
 0x3d1   :  { %v884_v30 = vpop.f32.mrf.mxu0 }
 0x3d2   :  { %v885_v48 = vadd.f32 %v7594_v7, %v884_v30 }
 0x3d4   :  { %v2677_v9 = vpop.f32.mrf.mxu3  ;;  %v1229_v0 = vmax.f32 %v885_v48, 0.0  ;;  %v7749_v48 = vpop.f32.mrf.mxu2 }
 0x3d5   :  { %v7738_v15 = vadd.f32 %v2677_v9, %v2439_v34  ;;  %9497 = vst [vmem:[#allocation41_spill] sm:$0xff] %v7749_v48  ;;  %v7751_v9 = vpop.f32.mrf.mxu1 }
 0x3d6   :  { %1682 = vst.msk [vmem:[#allocation2 + $0x3f0] sm:$0xff] %vm338_vm0, %v1229_v0  ;;  %v148_v0 = vld [vmem:[%s9385_s0 + $0x3a0] sm:$0xff] }
 0x3d7   :  { %9496 = vst [vmem:[#allocation40_spill] sm:$0xff] %v7738_v15 }
 0x3d8   :  { %5721 = vmatmul.msk.bf16.gmra.mxu0 %vm338_vm0, %v285_v62  ;;  %9498 = vst [vmem:[#allocation42_spill] sm:$0xff] %v7751_v9  ;;  %v286_v62 = vpack.c.bf16 %v149_v4, %v148_v0  ;;  %v150_v4 = vld [vmem:[%s9385_s0 + $0x3b0] sm:$0xff] }
 0x3d9   :  { %v887_v29 = vpop.f32.mrf.mxu0 }
 0x3da   :  { %v888_v26 = vadd.f32 %v7594_v7, %v887_v29 }
 0x3dc   :  { %v1230_v22 = vmax.f32 %v888_v26, 0.0 }
 0x3de   :  { %1683 = vst.msk [vmem:[#allocation2 + $0x408] sm:$0xff] %vm338_vm0, %v1230_v22  ;;  %v7763_v22 = vpop.f32.mrf.mxu3 }
 0x3df   :  { %9499 = vst [vmem:[#allocation43_spill] sm:$0xff] %v7763_v22 }
 0x3e1   :  { %v889_v34 = vpop.f32.mrf.mxu0 }
 0x3e2   :  { %v890_v55 = vadd.f32 %v7594_v7, %v889_v34 }
 0x3e4   :  { %v1231_v5 = vmax.f32 %v890_v55, 0.0  ;;  %v2443_v40 = vpop.f32.mrf.mxu2  ;;  %v1901_v55 = vld [vmem:[#allocation2 + $0x400] sm:$0xff] }
 0x3e5   :  { %v2229_v30 = vpop.f32.mrf.mxu1 }
 0x3e6   :  { %1684 = vst.msk [vmem:[#allocation2 + $0x410] sm:$0xff] %vm338_vm0, %v1231_v5  ;;  %v2444_v35 = vadd.f32 %v2443_v40, %v2229_v30 }
 0x3e8   :  { %5722 = vmatmul.msk.bf16.gmra.mxu0 %vm338_vm0, %v286_v62 }
 0x3e9   :  { %v892_v29 = vpop.f32.mrf.mxu0 }
 0x3ea   :  { %v893_v26 = vadd.f32 %v7594_v7, %v892_v29  ;;  %v1902_v29 = vld [vmem:[#allocation2 + $0x408] sm:$0xff] }
 0x3ec   :  { %v1232_v34 = vmax.f32 %v893_v26, 0.0  ;;  %v151_v26 = vld [vmem:[%s9385_s0 + $0x3b8] sm:$0xff] }
 0x3ed   :  { %v1903_v48 = vld [vmem:[#allocation2 + $0x410] sm:$0xff] }
 0x3ee   :  { %1685 = vst.msk [vmem:[#allocation2 + $0x418] sm:$0xff] %vm338_vm0, %v1232_v34  ;;  %v2038_v9 = vpack.c.bf16 %v1903_v48, %v1901_v55 }
 0x3f0   :  { %5809 = vmatmul.msk.bf16.gmra.mxu2 %vm338_vm0, %v2038_v9 }
 0x3f1   :  { %v894_v15 = vpop.f32.mrf.mxu0 }
 0x3f2   :  { %v895_v5 = vadd.f32 %v7594_v7, %v894_v15  ;;  %v287_v15 = vpack.c.bf16 %v151_v26, %v150_v4  ;;  %v152_v4 = vld [vmem:[%s9385_s0 + $0x3c0] sm:$0xff]  ;;  %v153_v26 = vld [vmem:[%s9385_s0 + $0x3c8] sm:$0xff] }
 0x3f3   :  { %v2682_v40 = vpop.f32.mrf.mxu3 }
 0x3f4   :  { %v1233_v30 = vmax.f32 %v895_v5, 0.0  ;;  %v7769_v0 = vadd.f32 %v2682_v40, %v2444_v35 }
 0x3f5   :  { %v7774_v62 = vld [vmem:[#allocation2 + $0x418] sm:$0xff] }
 0x3f6   :  { %9500 = vst [vmem:[#allocation44_spill] sm:$0xff] %v7769_v0  ;;  %v2063_v9 = vpack.c.bf16 %v7774_v62, %v1902_v29 }
 0x3f7   :  { %9501 = vst [vmem:[#allocation45_spill] sm:$0xff] %v7774_v62 }
 0x3f8   :  { %1686 = vst.msk [vmem:[#allocation2 + $0x420] sm:$0xff] %vm338_vm0, %v1233_v30  ;;  %5780 = vmatmul.msk.bf16.gmra.mxu1 %vm338_vm0, %v2063_v9  ;;  %5723 = vmatmul.msk.bf16.gmra.mxu0 %vm338_vm0, %v287_v15 }
 0x3f9   :  { %v897_v35 = vpop.f32.mrf.mxu0 }
 0x3fa   :  { %v898_v34 = vadd.f32 %v7594_v7, %v897_v35 }
 0x3fc   :  { %v1234_v55 = vmax.f32 %v898_v34, 0.0 }
 0x3fe   :  { %1687 = vst.msk [vmem:[#allocation2 + $0x428] sm:$0xff] %vm338_vm0, %v1234_v55 }
 0x3ff   :  { %v1905_v5 = vld [vmem:[#allocation2 + $0x420] sm:$0xff] }
 0x400   :  { %v7785_v40 = vpack.c.bf16 %v1905_v5, %v1903_v48  ;;  %v288_v48 = vpack.c.bf16 %v153_v26, %v152_v4 }
 0x401   :  { %v899_v30 = vpop.f32.mrf.mxu0 }
 0x402   :  { %9502 = vst [vmem:[#allocation46_spill] sm:$0xff] %v7785_v40  ;;  %5838 = vmatmul.msk.bf16.gmra.mxu3 %vm338_vm0, %v7785_v40  ;;  %v900_v29 = vadd.f32 %v7594_v7, %v899_v30 }
 0x404   :  { %v1235_v0 = vmax.f32 %v900_v29, 0.0 }
 0x405   :  { %v7796_v9 = vld [vmem:[#allocation2 + $0x428] sm:$0xff] }
 0x406   :  { %9503 = vst [vmem:[#allocation47_spill] sm:$0xff] %v7796_v9 }
 0x407   :  { %1688 = vst.msk [vmem:[#allocation2 + $0x430] sm:$0xff] %vm338_vm0, %v1235_v0 }
 0x408   :  { %5724 = vmatmul.msk.bf16.gmra.mxu0 %vm338_vm0, %v288_v48  ;;  %v155_v48 = vld [vmem:[%s9385_s0 + $0x3d8] sm:$0xff] }
 0x409   :  { %v902_v35 = vpop.f32.mrf.mxu0 }
 0x40a   :  { %v903_v34 = vadd.f32 %v7594_v7, %v902_v35  ;;  %v154_v35 = vld [vmem:[%s9385_s0 + $0x3d0] sm:$0xff] }
 0x40c   :  { %v1236_v55 = vmax.f32 %v903_v34, 0.0  ;;  %v289_v34 = vpack.c.bf16 %v155_v48, %v154_v35  ;;  %v156_v35 = vld [vmem:[%s9385_s0 + $0x3e0] sm:$0xff]  ;;  %v157_v48 = vld [vmem:[%s9385_s0 + $0x3e8] sm:$0xff] }
 0x40e   :  { %v1907_v30 = vld [vmem:[#allocation2 + $0x430] sm:$0xff]  ;;  %1689 = vst.msk [vmem:[#allocation2 + $0x438] sm:$0xff] %vm338_vm0, %v1236_v55 }
 0x40f   :  { %v7804_v29 = vpack.c.bf16 %v1907_v30, %v1905_v5 }
 0x411   :  { %9504 = vst [vmem:[#allocation48_spill] sm:$0xff] %v7804_v29  ;;  %5810 = vmatmul.msk.bf16.gmra.mxu2 %vm338_vm0, %v7804_v29  ;;  %v904_v40 = vpop.f32.mrf.mxu0 }
 0x412   :  { %v905_v0 = vadd.f32 %v7594_v7, %v904_v40 }
 0x414   :  { %v1237_v4 = vmax.f32 %v905_v0, 0.0 }
 0x415   :  { %v7809_v26 = vld [vmem:[#allocation2 + $0x438] sm:$0xff] }
 0x416   :  { %9505 = vst [vmem:[#allocation49_spill] sm:$0xff] %v7809_v26  ;;  %v2064_v5 = vpack.c.bf16 %v7809_v26, %v7796_v9 }
 0x417   :  { %1690 = vst.msk [vmem:[#allocation2 + $0x440] sm:$0xff] %vm338_vm0, %v1237_v4 }
 0x418   :  { %5781 = vmatmul.msk.bf16.gmra.mxu1 %vm338_vm0, %v2064_v5  ;;  %5725 = vmatmul.msk.bf16.gmra.mxu0 %vm338_vm0, %v289_v34 }
 0x419   :  { %v907_v40 = vpop.f32.mrf.mxu0 }
 0x41a   :  { %v908_v55 = vadd.f32 %v7594_v7, %v907_v40 }
 0x41c   :  { %v1238_v0 = vmax.f32 %v908_v55, 0.0 }
 0x41e   :  { %v1909_v15 = vld [vmem:[#allocation2 + $0x440] sm:$0xff]  ;;  %1691 = vst.msk [vmem:[#allocation2 + $0x448] sm:$0xff] %vm338_vm0, %v1238_v0 }
 0x41f   :  { %v7824_v29 = vpack.c.bf16 %v1909_v15, %v1907_v30  ;;  %v290_v30 = vpack.c.bf16 %v157_v48, %v156_v35 }
 0x421   :  { %9506 = vst [vmem:[#allocation50_spill] sm:$0xff] %v7824_v29  ;;  %5839 = vmatmul.msk.bf16.gmra.mxu3 %vm338_vm0, %v7824_v29  ;;  %v909_v4 = vpop.f32.mrf.mxu0 }
 0x422   :  { %v910_v62 = vadd.f32 %v7594_v7, %v909_v4 }
 0x424   :  { %v1239_v9 = vmax.f32 %v910_v62, 0.0 }
 0x425   :  { %v7835_v5 = vld [vmem:[#allocation2 + $0x448] sm:$0xff] }
 0x426   :  { %9507 = vst [vmem:[#allocation51_spill] sm:$0xff] %v7835_v5 }
 0x427   :  { %1692 = vst.msk [vmem:[#allocation2 + $0x450] sm:$0xff] %vm338_vm0, %v1239_v9 }
 0x428   :  { %5726 = vmatmul.msk.bf16.gmra.mxu0 %vm338_vm0, %v290_v30  ;;  %v159_v30 = vld [vmem:[%s9385_s0 + $0x3f8] sm:$0xff] }
 0x429   :  { %v912_v40 = vpop.f32.mrf.mxu0 }
 0x42a   :  { %v913_v55 = vadd.f32 %v7594_v7, %v912_v40  ;;  %v158_v40 = vld [vmem:[%s9385_s0 + $0x3f0] sm:$0xff] }
 0x42c   :  { %v1240_v62 = vmax.f32 %v913_v55, 0.0  ;;  %v291_v55 = vpack.c.bf16 %v159_v30, %v158_v40  ;;  %v160_v30 = vld [vmem:[%s9385_s0 + $0x400] sm:$0xff] }
 0x42e   :  { %v1911_v0 = vld [vmem:[#allocation2 + $0x450] sm:$0xff]  ;;  %1693 = vst.msk [vmem:[#allocation2 + $0x458] sm:$0xff] %vm338_vm0, %v1240_v62 }
 0x42f   :  { %v7843_v4 = vpack.c.bf16 %v1911_v0, %v1909_v15 }
 0x431   :  { %9508 = vst [vmem:[#allocation52_spill] sm:$0xff] %v7843_v4  ;;  %5811 = vmatmul.msk.bf16.gmra.mxu2 %vm338_vm0, %v7843_v4  ;;  %v914_v29 = vpop.f32.mrf.mxu0 }
 0x432   :  { %v915_v9 = vadd.f32 %v7594_v7, %v914_v29 }
 0x434   :  { %v1241_v35 = vmax.f32 %v915_v9, 0.0  ;;  %v1931_v9 = vld [vmem:[#allocation2 + $0x500] sm:$0xff] }
 0x435   :  { %v1912_v48 = vld [vmem:[#allocation2 + $0x458] sm:$0xff] }
 0x436   :  { %1694 = vst.msk [vmem:[#allocation2 + $0x460] sm:$0xff] %vm338_vm0, %v1241_v35  ;;  %v2065_v15 = vpack.c.bf16 %v1912_v48, %v7835_v5 }
 0x438   :  { %5782 = vmatmul.msk.bf16.gmra.mxu1 %vm338_vm0, %v2065_v15  ;;  %5727 = vmatmul.msk.bf16.gmra.mxu0 %vm338_vm0, %v291_v55 }
 0x439   :  { %v917_v62 = vpop.f32.mrf.mxu0 }
 0x43a   :  { %v918_v29 = vadd.f32 %v7594_v7, %v917_v62 }
 0x43c   :  { %v1242_v34 = vmax.f32 %v918_v29, 0.0 }
 0x43d   :  { %v1913_v4 = vld [vmem:[#allocation2 + $0x460] sm:$0xff] }
 0x43e   :  { %1695 = vst.msk [vmem:[#allocation2 + $0x468] sm:$0xff] %vm338_vm0, %v1242_v34  ;;  %v2041_v26 = vpack.c.bf16 %v1931_v9, %v1913_v4  ;;  %v7860_v22 = vpack.c.bf16 %v1913_v4, %v1911_v0  ;;  %v161_v34 = vld [vmem:[%s9385_s0 + $0x408] sm:$0xff]  ;;  %v162_v9 = vld [vmem:[%s9385_s0 + $0x410] sm:$0xff] }
 0x43f   :  { %v292_v0 = vpack.c.bf16 %v161_v34, %v160_v30 }
 0x440   :  { %9509 = vst [vmem:[#allocation53_spill] sm:$0xff] %v7860_v22  ;;  %5840 = vmatmul.msk.bf16.gmra.mxu3 %vm338_vm0, %v7860_v22 }
 0x441   :  { %5812 = vmatmul.msk.bf16.gmra.mxu2 %vm338_vm0, %v2041_v26  ;;  %v919_v35 = vpop.f32.mrf.mxu0 }
 0x442   :  { %v920_v48 = vadd.f32 %v7594_v7, %v919_v35  ;;  %v163_v35 = vld [vmem:[%s9385_s0 + $0x418] sm:$0xff] }
 0x444   :  { %v1243_v40 = vmax.f32 %v920_v48, 0.0  ;;  %v293_v48 = vpack.c.bf16 %v163_v35, %v162_v9 }
 0x446   :  { %1696 = vst.msk [vmem:[#allocation2 + $0x470] sm:$0xff] %vm338_vm0, %v1243_v40 }
 0x448   :  { %5728 = vmatmul.msk.bf16.gmra.mxu0 %vm338_vm0, %v292_v0 }
 0x449   :  { %v922_v4 = vpop.f32.mrf.mxu0 }
 0x44a   :  { %v923_v26 = vadd.f32 %v7594_v7, %v922_v4 }
 0x44c   :  { %v1244_v15 = vmax.f32 %v923_v26, 0.0 }
 0x44e   :  { %1697 = vst.msk [vmem:[#allocation2 + $0x488] sm:$0xff] %vm338_vm0, %v1244_v15  ;;  %v164_v15 = vld [vmem:[%s9385_s0 + $0x420] sm:$0xff] }
 0x451   :  { %v924_v55 = vpop.f32.mrf.mxu0 }
 0x452   :  { %v925_v62 = vadd.f32 %v7594_v7, %v924_v55  ;;  %v165_v55 = vld [vmem:[%s9385_s0 + $0x428] sm:$0xff] }
 0x454   :  { %v1245_v29 = vmax.f32 %v925_v62, 0.0  ;;  %v294_v62 = vpack.c.bf16 %v165_v55, %v164_v15 }
 0x456   :  { %1698 = vst.msk [vmem:[#allocation2 + $0x490] sm:$0xff] %vm338_vm0, %v1245_v29 }
 0x458   :  { %5729 = vmatmul.msk.bf16.gmra.mxu0 %vm338_vm0, %v293_v48  ;;  %v7897_v48 = vpop.f32.mrf.mxu2 }
 0x459   :  { %v927_v40 = vpop.f32.mrf.mxu0  ;;  %9510 = vst [vmem:[#allocation54_spill] sm:$0xff] %v7897_v48 }
 0x45a   :  { %v928_v30 = vadd.f32 %v7594_v7, %v927_v40  ;;  %v7899_v40 = vpop.f32.mrf.mxu1 }
 0x45b   :  { %9511 = vst [vmem:[#allocation55_spill] sm:$0xff] %v7899_v40 }
 0x45c   :  { %v1246_v34 = vmax.f32 %v928_v30, 0.0  ;;  %v6136_v30 = vld [vmem:[%s9387_s3 + $0x20] sm:$0xff] }
 0x45d   :  { %3191 = vmatpush.bf16.msrb.mxu2 %v6136_v30 }
 0x45e   :  { %1699 = vst.msk [vmem:[#allocation2 + $0x498] sm:$0xff] %vm338_vm0, %v1246_v34  ;;  %v6137_v34 = vld [vmem:[%s9387_s3 + $0x28] sm:$0xff] }
 0x45f   :  { %3479 = vmatpush.bf16.msrb.mxu3 %v6137_v34 }
 0x461   :  { %v929_v0 = vpop.f32.mrf.mxu0 }
 0x462   :  { %v930_v4 = vadd.f32 %v7594_v7, %v929_v0 }
 0x464   :  { %v1247_v26 = vmax.f32 %v930_v4, 0.0 }
 0x466   :  { %1700 = vst.msk [vmem:[#allocation2 + $0x4a0] sm:$0xff] %vm338_vm0, %v1247_v26 }
 0x468   :  { %5730 = vmatmul.msk.bf16.gmra.mxu0 %vm338_vm0, %v294_v62  ;;  %v166_v62 = vld [vmem:[%s9385_s0 + $0x430] sm:$0xff] }
 0x469   :  { %v932_v29 = vpop.f32.mrf.mxu0 }
 0x46a   :  { %v933_v9 = vadd.f32 %v7594_v7, %v932_v29  ;;  %v167_v29 = vld [vmem:[%s9385_s0 + $0x438] sm:$0xff] }
 0x46b   :  { %v295_v30 = vpack.c.bf16 %v167_v29, %v166_v62  ;;  %v168_v62 = vld [vmem:[%s9385_s0 + $0x440] sm:$0xff]  ;;  %v169_v29 = vld [vmem:[%s9385_s0 + $0x448] sm:$0xff] }
 0x46c   :  { %v1248_v35 = vmax.f32 %v933_v9, 0.0 }
 0x46e   :  { %1701 = vst.msk [vmem:[#allocation2 + $0x4a8] sm:$0xff] %vm338_vm0, %v1248_v35  ;;  %v6135_v35 = vld [vmem:[%s9387_s3 + $0x18] sm:$0xff] }
 0x46f   :  { %2903 = vmatpush.bf16.msrb.mxu1 %v6135_v35  ;;  %v296_v35 = vpack.c.bf16 %v169_v29, %v168_v62  ;;  %v171_v62 = vld [vmem:[%s9385_s0 + $0x458] sm:$0xff] }
 0x471   :  { %v934_v0 = vpop.f32.mrf.mxu0 }
 0x472   :  { %v935_v4 = vadd.f32 %v7594_v7, %v934_v0 }
 0x473   :  { %v2448_v15 = vpop.f32.mrf.mxu2 }
 0x474   :  { %v1249_v26 = vmax.f32 %v935_v4, 0.0  ;;  %v7920_v4 = vpop.f32.mrf.mxu3 }
 0x475   :  { %v2234_v55 = vpop.f32.mrf.mxu1  ;;  %9512 = vst [vmem:[#allocation56_spill] sm:$0xff] %v7920_v4 }
 0x476   :  { %1702 = vst.msk [vmem:[#allocation2 + $0x4b0] sm:$0xff] %vm338_vm0, %v1249_v26  ;;  %v2449_v9 = vadd.f32 %v2448_v15, %v2234_v55 }
 0x478   :  { %5731 = vmatmul.msk.bf16.gmra.mxu0 %vm338_vm0, %v295_v30 }
 0x479   :  { %v937_v34 = vpop.f32.mrf.mxu0 }
 0x47a   :  { %v938_v0 = vadd.f32 %v7594_v7, %v937_v34 }
 0x47c   :  { %v1250_v22 = vmax.f32 %v938_v0, 0.0 }
 0x47e   :  { %1703 = vst.msk [vmem:[#allocation2 + $0x4b8] sm:$0xff] %vm338_vm0, %v1250_v22 }
 0x481   :  { %v939_v5 = vpop.f32.mrf.mxu0 }
 0x482   :  { %v940_v26 = vadd.f32 %v7594_v7, %v939_v5  ;;  %v7936_v5 = vpop.f32.mrf.mxu2 }
 0x483   :  { %9514 = vst [vmem:[#allocation58_spill] sm:$0xff] %v7936_v5 }
 0x484   :  { %v1251_v55 = vmax.f32 %v940_v26, 0.0 }
 0x485   :  { %v2687_v15 = vpop.f32.mrf.mxu3 }
 0x486   :  { %v7925_v48 = vadd.f32 %v2687_v15, %v2449_v9  ;;  %1704 = vst.msk [vmem:[#allocation2 + $0x4c0] sm:$0xff] %vm338_vm0, %v1251_v55  ;;  %v7938_v9 = vpop.f32.mrf.mxu1  ;;  %v170_v55 = vld [vmem:[%s9385_s0 + $0x450] sm:$0xff] }
 0x487   :  { %9515 = vst [vmem:[#allocation59_spill] sm:$0xff] %v7938_v9 }
 0x488   :  { %9513 = vst [vmem:[#allocation57_spill] sm:$0xff] %v7925_v48  ;;  %5732 = vmatmul.msk.bf16.gmra.mxu0 %vm338_vm0, %v296_v35  ;;  %v297_v35 = vpack.c.bf16 %v171_v62, %v170_v55 }
 0x489   :  { %v942_v30 = vpop.f32.mrf.mxu0 }
 0x48a   :  { %v943_v22 = vadd.f32 %v7594_v7, %v942_v30 }
 0x48c   :  { %v1252_v34 = vmax.f32 %v943_v22, 0.0 }
 0x48e   :  { %1705 = vst.msk [vmem:[#allocation2 + $0x4c8] sm:$0xff] %vm338_vm0, %v1252_v34  ;;  %v7950_v34 = vpop.f32.mrf.mxu3 }
 0x48f   :  { %9516 = vst [vmem:[#allocation60_spill] sm:$0xff] %v7950_v34 }
 0x491   :  { %v944_v0 = vpop.f32.mrf.mxu0 }
 0x492   :  { %v945_v26 = vadd.f32 %v7594_v7, %v944_v0 }
 0x494   :  { %v1253_v15 = vmax.f32 %v945_v26, 0.0  ;;  %v2453_v48 = vpop.f32.mrf.mxu2 }
 0x495   :  { %v2239_v4 = vpop.f32.mrf.mxu1 }
 0x496   :  { %1706 = vst.msk [vmem:[#allocation2 + $0x4d0] sm:$0xff] %vm338_vm0, %v1253_v15  ;;  %v2454_v29 = vadd.f32 %v2453_v48, %v2239_v4  ;;  %v172_v48 = vld [vmem:[%s9385_s0 + $0x460] sm:$0xff]  ;;  %v173_v4 = vld [vmem:[%s9385_s0 + $0x468] sm:$0xff] }
 0x497   :  { %v298_v15 = vpack.c.bf16 %v173_v4, %v172_v48  ;;  %v175_v48 = vld [vmem:[%s9385_s0 + $0x478] sm:$0xff] }
 0x498   :  { %5733 = vmatmul.msk.bf16.gmra.mxu0 %vm338_vm0, %v297_v35 }
 0x499   :  { %v947_v30 = vpop.f32.mrf.mxu0 }
 0x49a   :  { %v948_v22 = vadd.f32 %v7594_v7, %v947_v30 }
 0x49c   :  { %v1254_v0 = vmax.f32 %v948_v22, 0.0 }
 0x49e   :  { %1707 = vst.msk [vmem:[#allocation2 + $0x4d8] sm:$0xff] %vm338_vm0, %v1254_v0 }
 0x4a1   :  { %v949_v26 = vpop.f32.mrf.mxu0 }
 0x4a2   :  { %v950_v5 = vadd.f32 %v7594_v7, %v949_v26 }
 0x4a4   :  { %v2692_v9 = vpop.f32.mrf.mxu3  ;;  %v1255_v40 = vmax.f32 %v950_v5, 0.0  ;;  %v7966_v5 = vpop.f32.mrf.mxu2 }
 0x4a5   :  { %v7955_v20 = vadd.f32 %v2692_v9, %v2454_v29  ;;  %9518 = vst [vmem:[#allocation62_spill] sm:$0xff] %v7966_v5  ;;  %v7968_v9 = vpop.f32.mrf.mxu1 }
 0x4a6   :  { %1708 = vst.msk [vmem:[#allocation2 + $0x4e0] sm:$0xff] %vm338_vm0, %v1255_v40  ;;  %v174_v40 = vld [vmem:[%s9385_s0 + $0x470] sm:$0xff] }
 0x4a7   :  { %9517 = vst [vmem:[#allocation61_spill] sm:$0xff] %v7955_v20 }
 0x4a8   :  { %5734 = vmatmul.msk.bf16.gmra.mxu0 %vm338_vm0, %v298_v15  ;;  %9519 = vst [vmem:[#allocation63_spill] sm:$0xff] %v7968_v9  ;;  %v299_v15 = vpack.c.bf16 %v175_v48, %v174_v40  ;;  %v177_v40 = vld [vmem:[%s9385_s0 + $0x488] sm:$0xff] }
 0x4a9   :  { %v952_v55 = vpop.f32.mrf.mxu0 }
 0x4aa   :  { %v953_v62 = vadd.f32 %v7594_v7, %v952_v55 }
 0x4ac   :  { %v1256_v35 = vmax.f32 %v953_v62, 0.0 }
 0x4ae   :  { %1709 = vst.msk [vmem:[#allocation2 + $0x4e8] sm:$0xff] %vm338_vm0, %v1256_v35  ;;  %v7980_v35 = vpop.f32.mrf.mxu3 }
 0x4af   :  { %9520 = vst [vmem:[#allocation64_spill] sm:$0xff] %v7980_v35 }
 0x4b1   :  { %v954_v29 = vpop.f32.mrf.mxu0 }
 0x4b2   :  { %v955_v30 = vadd.f32 %v7594_v7, %v954_v29 }
 0x4b4   :  { %v1257_v22 = vmax.f32 %v955_v30, 0.0  ;;  %v2458_v0 = vpop.f32.mrf.mxu2 }
 0x4b5   :  { %v2244_v26 = vpop.f32.mrf.mxu1 }
 0x4b6   :  { %1710 = vst.msk [vmem:[#allocation2 + $0x4f0] sm:$0xff] %vm338_vm0, %v1257_v22  ;;  %v2459_v4 = vadd.f32 %v2458_v0, %v2244_v26  ;;  %v1914_v22 = vld [vmem:[#allocation2 + $0x468] sm:$0xff]  ;;  %v176_v26 = vld [vmem:[%s9385_s0 + $0x480] sm:$0xff] }
 0x4b8   :  { %5735 = vmatmul.msk.bf16.gmra.mxu0 %vm338_vm0, %v299_v15 }
 0x4b9   :  { %v957_v55 = vpop.f32.mrf.mxu0 }
 0x4ba   :  { %v958_v62 = vadd.f32 %v7594_v7, %v957_v55  ;;  %v1915_v55 = vld [vmem:[#allocation2 + $0x470] sm:$0xff] }
 0x4bc   :  { %v1258_v29 = vmax.f32 %v958_v62, 0.0 }
 0x4be   :  { %1711 = vst.msk [vmem:[#allocation2 + $0x508] sm:$0xff] %vm338_vm0, %v1258_v29 }
 0x4c1   :  { %v959_v30 = vpop.f32.mrf.mxu0 }
 0x4c2   :  { %v960_v5 = vadd.f32 %v7594_v7, %v959_v30 }
 0x4c3   :  { %v2697_v9 = vpop.f32.mrf.mxu3 }
 0x4c4   :  { %v1259_v20 = vmax.f32 %v960_v5, 0.0  ;;  %v7985_v34 = vadd.f32 %v2697_v9, %v2459_v4  ;;  %v300_v5 = vpack.c.bf16 %v177_v40, %v176_v26  ;;  %v178_v26 = vld [vmem:[%s9385_s0 + $0x490] sm:$0xff]  ;;  %v179_v40 = vld [vmem:[%s9385_s0 + $0x498] sm:$0xff] }
 0x4c5   :  { %v7987_v0 = vld [vmem:[#allocation2 + $0x508] sm:$0xff] }
 0x4c6   :  { %9521 = vst [vmem:[#allocation65_spill] sm:$0xff] %v7985_v34  ;;  %v2066_v48 = vpack.c.bf16 %v7987_v0, %v1914_v22 }
 0x4c7   :  { %9522 = vst [vmem:[#allocation66_spill] sm:$0xff] %v7987_v0 }
 0x4c8   :  { %1712 = vst.msk [vmem:[#allocation2 + $0x510] sm:$0xff] %vm338_vm0, %v1259_v20  ;;  %5783 = vmatmul.msk.bf16.gmra.mxu1 %vm338_vm0, %v2066_v48  ;;  %5736 = vmatmul.msk.bf16.gmra.mxu0 %vm338_vm0, %v300_v5  ;;  %v301_v5 = vpack.c.bf16 %v179_v40, %v178_v26 }
 0x4c9   :  { %v962_v9 = vpop.f32.mrf.mxu0 }
 0x4ca   :  { %v963_v4 = vadd.f32 %v7594_v7, %v962_v9 }
 0x4cc   :  { %v1260_v15 = vmax.f32 %v963_v4, 0.0 }
 0x4ce   :  { %1713 = vst.msk [vmem:[#allocation2 + $0x518] sm:$0xff] %vm338_vm0, %v1260_v15 }
 0x4cf   :  { %v1933_v62 = vld [vmem:[#allocation2 + $0x510] sm:$0xff] }
 0x4d0   :  { %v2519_v29 = vpack.c.bf16 %v1933_v62, %v1915_v55 }
 0x4d1   :  { %v964_v30 = vpop.f32.mrf.mxu0 }
 0x4d2   :  { %5841 = vmatmul.msk.bf16.gmra.mxu3 %vm338_vm0, %v2519_v29  ;;  %v965_v20 = vadd.f32 %v7594_v7, %v964_v30 }
 0x4d4   :  { %v1261_v22 = vmax.f32 %v965_v20, 0.0 }
 0x4d5   :  { %v8009_v48 = vld [vmem:[#allocation2 + $0x518] sm:$0xff] }
 0x4d6   :  { %9523 = vst [vmem:[#allocation67_spill] sm:$0xff] %v8009_v48 }
 0x4d7   :  { %1714 = vst.msk [vmem:[#allocation2 + $0x520] sm:$0xff] %vm338_vm0, %v1261_v22 }
 0x4d8   :  { %5737 = vmatmul.msk.bf16.gmra.mxu0 %vm338_vm0, %v301_v5  ;;  %v181_v5 = vld [vmem:[%s9385_s0 + $0x4a8] sm:$0xff] }
 0x4d9   :  { %v967_v4 = vpop.f32.mrf.mxu0 }
 0x4da   :  { %v968_v15 = vadd.f32 %v7594_v7, %v967_v4  ;;  %v180_v4 = vld [vmem:[%s9385_s0 + $0x4a0] sm:$0xff] }
 0x4dc   :  { %v1262_v55 = vmax.f32 %v968_v15, 0.0  ;;  %v302_v15 = vpack.c.bf16 %v181_v5, %v180_v4  ;;  %v182_v4 = vld [vmem:[%s9385_s0 + $0x4b0] sm:$0xff]  ;;  %v183_v5 = vld [vmem:[%s9385_s0 + $0x4b8] sm:$0xff] }
 0x4de   :  { %v1935_v29 = vld [vmem:[#allocation2 + $0x520] sm:$0xff]  ;;  %1715 = vst.msk [vmem:[#allocation2 + $0x528] sm:$0xff] %vm338_vm0, %v1262_v55 }
 0x4df   :  { %v8017_v30 = vpack.c.bf16 %v1935_v29, %v1933_v62 }
 0x4e1   :  { %9524 = vst [vmem:[#allocation68_spill] sm:$0xff] %v8017_v30  ;;  %5813 = vmatmul.msk.bf16.gmra.mxu2 %vm338_vm0, %v8017_v30  ;;  %v969_v20 = vpop.f32.mrf.mxu0 }
 0x4e2   :  { %v970_v22 = vadd.f32 %v7594_v7, %v969_v20 }
 0x4e4   :  { %v1263_v26 = vmax.f32 %v970_v22, 0.0 }
 0x4e5   :  { %v8022_v40 = vld [vmem:[#allocation2 + $0x528] sm:$0xff] }
 0x4e6   :  { %9525 = vst [vmem:[#allocation69_spill] sm:$0xff] %v8022_v40  ;;  %v2067_v62 = vpack.c.bf16 %v8022_v40, %v8009_v48 }
 0x4e7   :  { %1716 = vst.msk [vmem:[#allocation2 + $0x530] sm:$0xff] %vm338_vm0, %v1263_v26 }
 0x4e8   :  { %5784 = vmatmul.msk.bf16.gmra.mxu1 %vm338_vm0, %v2067_v62  ;;  %5738 = vmatmul.msk.bf16.gmra.mxu0 %vm338_vm0, %v302_v15 }
 0x4e9   :  { %v972_v55 = vpop.f32.mrf.mxu0 }
 0x4ea   :  { %v973_v20 = vadd.f32 %v7594_v7, %v972_v55 }
 0x4ec   :  { %v1264_v22 = vmax.f32 %v973_v20, 0.0 }
 0x4ee   :  { %v1937_v9 = vld [vmem:[#allocation2 + $0x530] sm:$0xff]  ;;  %1717 = vst.msk [vmem:[#allocation2 + $0x538] sm:$0xff] %vm338_vm0, %v1264_v22 }
 0x4ef   :  { %v8037_v30 = vpack.c.bf16 %v1937_v9, %v1935_v29  ;;  %v303_v29 = vpack.c.bf16 %v183_v5, %v182_v4 }
 0x4f1   :  { %9526 = vst [vmem:[#allocation70_spill] sm:$0xff] %v8037_v30  ;;  %5842 = vmatmul.msk.bf16.gmra.mxu3 %vm338_vm0, %v8037_v30  ;;  %v974_v26 = vpop.f32.mrf.mxu0 }
 0x4f2   :  { %v975_v0 = vadd.f32 %v7594_v7, %v974_v26 }
 0x4f4   :  { %v1265_v48 = vmax.f32 %v975_v0, 0.0 }
 0x4f5   :  { %v8048_v62 = vld [vmem:[#allocation2 + $0x538] sm:$0xff] }
 0x4f6   :  { %9527 = vst [vmem:[#allocation71_spill] sm:$0xff] %v8048_v62 }
 0x4f7   :  { %1718 = vst.msk [vmem:[#allocation2 + $0x540] sm:$0xff] %vm338_vm0, %v1265_v48 }
 0x4f8   :  { %5739 = vmatmul.msk.bf16.gmra.mxu0 %vm338_vm0, %v303_v29  ;;  %v185_v29 = vld [vmem:[%s9385_s0 + $0x4c8] sm:$0xff] }
 0x4f9   :  { %v977_v55 = vpop.f32.mrf.mxu0 }
 0x4fa   :  { %v978_v20 = vadd.f32 %v7594_v7, %v977_v55  ;;  %v184_v55 = vld [vmem:[%s9385_s0 + $0x4c0] sm:$0xff] }
 0x4fc   :  { %v1266_v0 = vmax.f32 %v978_v20, 0.0  ;;  %v304_v20 = vpack.c.bf16 %v185_v29, %v184_v55  ;;  %v186_v55 = vld [vmem:[%s9385_s0 + $0x4d0] sm:$0xff]  ;;  %v187_v29 = vld [vmem:[%s9385_s0 + $0x4d8] sm:$0xff] }
 0x4fe   :  { %v1939_v22 = vld [vmem:[#allocation2 + $0x540] sm:$0xff]  ;;  %1719 = vst.msk [vmem:[#allocation2 + $0x548] sm:$0xff] %vm338_vm0, %v1266_v0 }
 0x4ff   :  { %v8056_v26 = vpack.c.bf16 %v1939_v22, %v1937_v9 }
 0x501   :  { %9528 = vst [vmem:[#allocation72_spill] sm:$0xff] %v8056_v26  ;;  %5814 = vmatmul.msk.bf16.gmra.mxu2 %vm338_vm0, %v8056_v26  ;;  %v979_v30 = vpop.f32.mrf.mxu0 }
 0x502   :  { %v980_v48 = vadd.f32 %v7594_v7, %v979_v30 }
 0x504   :  { %v1267_v4 = vmax.f32 %v980_v48, 0.0 }
 0x505   :  { %v8061_v5 = vld [vmem:[#allocation2 + $0x548] sm:$0xff] }
 0x506   :  { %9529 = vst [vmem:[#allocation73_spill] sm:$0xff] %v8061_v5  ;;  %v2068_v9 = vpack.c.bf16 %v8061_v5, %v8048_v62 }
 0x507   :  { %1720 = vst.msk [vmem:[#allocation2 + $0x550] sm:$0xff] %vm338_vm0, %v1267_v4 }
 0x508   :  { %5785 = vmatmul.msk.bf16.gmra.mxu1 %vm338_vm0, %v2068_v9  ;;  %5740 = vmatmul.msk.bf16.gmra.mxu0 %vm338_vm0, %v304_v20 }
 0x509   :  { %v982_v30 = vpop.f32.mrf.mxu0 }
 0x50a   :  { %v983_v0 = vadd.f32 %v7594_v7, %v982_v30 }
 0x50c   :  { %v1268_v48 = vmax.f32 %v983_v0, 0.0 }
 0x50e   :  { %v1941_v15 = vld [vmem:[#allocation2 + $0x550] sm:$0xff]  ;;  %1721 = vst.msk [vmem:[#allocation2 + $0x558] sm:$0xff] %vm338_vm0, %v1268_v48 }
 0x50f   :  { %v8076_v26 = vpack.c.bf16 %v1941_v15, %v1939_v22  ;;  %v305_v22 = vpack.c.bf16 %v187_v29, %v186_v55 }
 0x511   :  { %9530 = vst [vmem:[#allocation74_spill] sm:$0xff] %v8076_v26  ;;  %5843 = vmatmul.msk.bf16.gmra.mxu3 %vm338_vm0, %v8076_v26  ;;  %v984_v4 = vpop.f32.mrf.mxu0 }
 0x512   :  { %v985_v40 = vadd.f32 %v7594_v7, %v984_v4 }
 0x514   :  { %v1269_v62 = vmax.f32 %v985_v40, 0.0 }
 0x515   :  { %v8087_v9 = vld [vmem:[#allocation2 + $0x558] sm:$0xff] }
 0x516   :  { %9531 = vst [vmem:[#allocation75_spill] sm:$0xff] %v8087_v9 }
 0x517   :  { %1722 = vst.msk [vmem:[#allocation2 + $0x560] sm:$0xff] %vm338_vm0, %v1269_v62 }
 0x518   :  { %5741 = vmatmul.msk.bf16.gmra.mxu0 %vm338_vm0, %v305_v22  ;;  %v189_v22 = vld [vmem:[%s9385_s0 + $0x4e8] sm:$0xff] }
 0x519   :  { %v987_v30 = vpop.f32.mrf.mxu0 }
 0x51a   :  { %v988_v0 = vadd.f32 %v7594_v7, %v987_v30  ;;  %v188_v30 = vld [vmem:[%s9385_s0 + $0x4e0] sm:$0xff] }
 0x51c   :  { %v1270_v40 = vmax.f32 %v988_v0, 0.0  ;;  %v306_v0 = vpack.c.bf16 %v189_v22, %v188_v30 }
 0x51e   :  { %v1943_v48 = vld [vmem:[#allocation2 + $0x560] sm:$0xff]  ;;  %1723 = vst.msk [vmem:[#allocation2 + $0x568] sm:$0xff] %vm338_vm0, %v1270_v40 }
 0x51f   :  { %v8095_v4 = vpack.c.bf16 %v1943_v48, %v1941_v15 }
 0x521   :  { %9532 = vst [vmem:[#allocation76_spill] sm:$0xff] %v8095_v4  ;;  %5815 = vmatmul.msk.bf16.gmra.mxu2 %vm338_vm0, %v8095_v4  ;;  %v989_v26 = vpop.f32.mrf.mxu0 }
 0x522   :  { %v990_v62 = vadd.f32 %v7594_v7, %v989_v26  ;;  %v8112_v7 = vld [vmem:[%s9386_s2] ss:$0 sm:$0xff] }
 0x524   :  { %v1271_v55 = vmax.f32 %v990_v62, 0.0 }
 0x525   :  { %v1944_v29 = vld [vmem:[#allocation2 + $0x568] sm:$0xff] }
 0x526   :  { %1724 = vst.msk [vmem:[#allocation2 + $0x570] sm:$0xff] %vm338_vm0, %v1271_v55  ;;  %v2069_v15 = vpack.c.bf16 %v1944_v29, %v8087_v9 }
 0x528   :  { %5786 = vmatmul.msk.bf16.gmra.mxu1 %vm338_vm0, %v2069_v15  ;;  %5742 = vmatmul.msk.bf16.gmra.mxu0 %vm338_vm0, %v306_v0  ;;  %v190_v15 = vld [vmem:[%s9385_s0 + $0x4f0] sm:$0xff] }
 0x529   :  { %v992_v40 = vpop.f32.mrf.mxu0 }
 0x52a   :  { %v993_v26 = vadd.f32 %v8112_v7, %v992_v40  ;;  %v191_v40 = vld [vmem:[%s9385_s0 + $0x4f8] sm:$0xff] }
 0x52b   :  { %v307_v0 = vpack.c.bf16 %v191_v40, %v190_v15  ;;  %v8137_v15 = vpop.f32.mrf.mxu2  ;;  %v8139_v40 = vpop.f32.mrf.mxu1 }
 0x52c   :  { %v1272_v62 = vmax.f32 %v993_v26, 0.0  ;;  %9533 = vst [vmem:[#allocation77_spill] sm:$0xff] %v8137_v15 }
 0x52d   :  { %v1945_v20 = vld [vmem:[#allocation2 + $0x570] sm:$0xff]  ;;  %9534 = vst [vmem:[#allocation78_spill] sm:$0xff] %v8139_v40 }
 0x52e   :  { %1725 = vst.msk [vmem:[#allocation2 + $0x588] sm:$0xff] %vm338_vm0, %v1272_v62  ;;  %v2522_v55 = vpack.c.bf16 %v1945_v20, %v1943_v48 }
 0x530   :  { %5844 = vmatmul.msk.bf16.gmra.mxu3 %vm338_vm0, %v2522_v55 }
 0x531   :  { %v994_v29 = vpop.f32.mrf.mxu0 }
 0x532   :  { %v995_v30 = vadd.f32 %v8112_v7, %v994_v29 }
 0x533   :  { %v2463_v4 = vpop.f32.mrf.mxu2 }
 0x534   :  { %v1273_v22 = vmax.f32 %v995_v30, 0.0  ;;  %v192_v30 = vld [vmem:[%s9385_s0 + $0x500] sm:$0xff] }
 0x536   :  { %1726 = vst.msk [vmem:[#allocation2 + $0x590] sm:$0xff] %vm338_vm0, %v1273_v22  ;;  %v193_v22 = vld [vmem:[%s9385_s0 + $0x508] sm:$0xff] }
 0x538   :  { %5743 = vmatmul.msk.bf16.gmra.mxu0 %vm338_vm0, %v307_v0  ;;  %v308_v0 = vpack.c.bf16 %v193_v22, %v192_v30  ;;  %v194_v30 = vld [vmem:[%s9385_s0 + $0x510] sm:$0xff]  ;;  %v195_v22 = vld [vmem:[%s9385_s0 + $0x518] sm:$0xff] }
 0x539   :  { %v997_v26 = vpop.f32.mrf.mxu0 }
 0x53a   :  { %v998_v20 = vadd.f32 %v8112_v7, %v997_v26 }
 0x53c   :  { %v1274_v48 = vmax.f32 %v998_v20, 0.0 }
 0x53e   :  { %1727 = vst.msk [vmem:[#allocation2 + $0x598] sm:$0xff] %vm338_vm0, %v1274_v48  ;;  %v8142_v48 = vpop.f32.mrf.mxu3 }
 0x53f   :  { %9535 = vst [vmem:[#allocation79_spill] sm:$0xff] %v8142_v48 }
 0x541   :  { %v999_v62 = vpop.f32.mrf.mxu0 }
 0x542   :  { %v1000_v55 = vadd.f32 %v8112_v7, %v999_v62 }
 0x544   :  { %v1275_v29 = vmax.f32 %v1000_v55, 0.0 }
 0x545   :  { %v2249_v55 = vpop.f32.mrf.mxu1 }
 0x546   :  { %1728 = vst.msk [vmem:[#allocation2 + $0x5a0] sm:$0xff] %vm338_vm0, %v1275_v29  ;;  %v2464_v9 = vadd.f32 %v2463_v4, %v2249_v55 }
 0x548   :  { %5744 = vmatmul.msk.bf16.gmra.mxu0 %vm338_vm0, %v308_v0  ;;  %v309_v0 = vpack.c.bf16 %v195_v22, %v194_v30  ;;  %v197_v30 = vld [vmem:[%s9385_s0 + $0x528] sm:$0xff] }
 0x549   :  { %v1002_v26 = vpop.f32.mrf.mxu0 }
 0x54a   :  { %v1003_v20 = vadd.f32 %v8112_v7, %v1002_v26 }
 0x54c   :  { %v1276_v62 = vmax.f32 %v1003_v20, 0.0 }
 0x54e   :  { %1729 = vst.msk [vmem:[#allocation2 + $0x5a8] sm:$0xff] %vm338_vm0, %v1276_v62 }
 0x551   :  { %v1004_v5 = vpop.f32.mrf.mxu0 }
 0x552   :  { %v1005_v29 = vadd.f32 %v8112_v7, %v1004_v5  ;;  %v8158_v5 = vpop.f32.mrf.mxu2 }
 0x553   :  { %9537 = vst [vmem:[#allocation81_spill] sm:$0xff] %v8158_v5 }
 0x554   :  { %v1277_v34 = vmax.f32 %v1005_v29, 0.0 }
 0x555   :  { %v2702_v15 = vpop.f32.mrf.mxu3 }
 0x556   :  { %v8147_v40 = vadd.f32 %v2702_v15, %v2464_v9  ;;  %1730 = vst.msk [vmem:[#allocation2 + $0x5b0] sm:$0xff] %vm338_vm0, %v1277_v34  ;;  %v8160_v9 = vpop.f32.mrf.mxu1  ;;  %v196_v34 = vld [vmem:[%s9385_s0 + $0x520] sm:$0xff] }
 0x557   :  { %9538 = vst [vmem:[#allocation82_spill] sm:$0xff] %v8160_v9 }
 0x558   :  { %9536 = vst [vmem:[#allocation80_spill] sm:$0xff] %v8147_v40  ;;  %5745 = vmatmul.msk.bf16.gmra.mxu0 %vm338_vm0, %v309_v0  ;;  %v310_v0 = vpack.c.bf16 %v197_v30, %v196_v34 }
 0x559   :  { %v1007_v26 = vpop.f32.mrf.mxu0 }
 0x55a   :  { %v1008_v4 = vadd.f32 %v8112_v7, %v1007_v26 }
 0x55c   :  { %v1278_v20 = vmax.f32 %v1008_v4, 0.0 }
 0x55e   :  { %1731 = vst.msk [vmem:[#allocation2 + $0x5b8] sm:$0xff] %vm338_vm0, %v1278_v20  ;;  %v8172_v20 = vpop.f32.mrf.mxu3 }
 0x55f   :  { %9539 = vst [vmem:[#allocation83_spill] sm:$0xff] %v8172_v20 }
 0x561   :  { %v1009_v15 = vpop.f32.mrf.mxu0 }
 0x562   :  { %v1010_v62 = vadd.f32 %v8112_v7, %v1009_v15 }
 0x564   :  { %v1279_v55 = vmax.f32 %v1010_v62, 0.0  ;;  %v2468_v29 = vpop.f32.mrf.mxu2 }
 0x565   :  { %v2254_v40 = vpop.f32.mrf.mxu1 }
 0x566   :  { %1732 = vst.msk [vmem:[#allocation2 + $0x5c0] sm:$0xff] %vm338_vm0, %v1279_v55  ;;  %v2469_v22 = vadd.f32 %v2468_v29, %v2254_v40  ;;  %v198_v40 = vld [vmem:[%s9385_s0 + $0x530] sm:$0xff]  ;;  %v199_v55 = vld [vmem:[%s9385_s0 + $0x538] sm:$0xff] }
 0x567   :  { %v311_v29 = vpack.c.bf16 %v199_v55, %v198_v40 }
 0x568   :  { %5746 = vmatmul.msk.bf16.gmra.mxu0 %vm338_vm0, %v310_v0 }
 0x569   :  { %v1012_v26 = vpop.f32.mrf.mxu0 }
 0x56a   :  { %v1013_v4 = vadd.f32 %v8112_v7, %v1012_v26 }
 0x56c   :  { %v1280_v15 = vmax.f32 %v1013_v4, 0.0 }
 0x56e   :  { %1733 = vst.msk [vmem:[#allocation2 + $0x5c8] sm:$0xff] %vm338_vm0, %v1280_v15 }
 0x571   :  { %v1014_v62 = vpop.f32.mrf.mxu0 }
 0x572   :  { %v1015_v5 = vadd.f32 %v8112_v7, %v1014_v62 }
 0x574   :  { %v2707_v9 = vpop.f32.mrf.mxu3  ;;  %v1281_v48 = vmax.f32 %v1015_v5, 0.0  ;;  %v8188_v5 = vpop.f32.mrf.mxu2 }
 0x575   :  { %v8177_v35 = vadd.f32 %v2707_v9, %v2469_v22  ;;  %9541 = vst [vmem:[#allocation85_spill] sm:$0xff] %v8188_v5  ;;  %v8190_v9 = vpop.f32.mrf.mxu1 }
 0x576   :  { %1734 = vst.msk [vmem:[#allocation2 + $0x5d0] sm:$0xff] %vm338_vm0, %v1281_v48 }
 0x577   :  { %9540 = vst [vmem:[#allocation84_spill] sm:$0xff] %v8177_v35 }
 0x578   :  { %5747 = vmatmul.msk.bf16.gmra.mxu0 %vm338_vm0, %v311_v29  ;;  %9542 = vst [vmem:[#allocation86_spill] sm:$0xff] %v8190_v9 }
 0x579   :  { %v1017_v34 = vpop.f32.mrf.mxu0 }
 0x57a   :  { %v1018_v30 = vadd.f32 %v8112_v7, %v1017_v34 }
 0x57c   :  { %v1282_v0 = vmax.f32 %v1018_v30, 0.0  ;;  %v8196_v34 = vpop.f32.mrf.mxu3 }
 0x57d   :  { %9543 = vst [vmem:[#allocation87_spill] sm:$0xff] %v8196_v34 }
 0x57e   :  { %1735 = vst.msk [vmem:[#allocation2 + $0x5d8] sm:$0xff] %vm338_vm0, %v1282_v0 }
 0x581   :  { %v1019_v22 = vpop.f32.mrf.mxu0 }
 0x582   :  { %v1020_v26 = vadd.f32 %v8112_v7, %v1019_v22 }
 0x584   :  { %v1283_v4 = vmax.f32 %v1020_v26, 0.0  ;;  %v2473_v15 = vpop.f32.mrf.mxu2 }
 0x585   :  { %v2259_v62 = vpop.f32.mrf.mxu1 }
 0x586   :  { %1736 = vst.msk [vmem:[#allocation2 + $0x5e0] sm:$0xff] %vm338_vm0, %v1283_v4  ;;  %v2474_v48 = vadd.f32 %v2473_v15, %v2259_v62 }
 0x589   :  { %v1022_v40 = vpop.f32.mrf.mxu0 }
 0x58a   :  { %v1023_v55 = vadd.f32 %v8112_v7, %v1022_v40 }
 0x58c   :  { %v1284_v29 = vmax.f32 %v1023_v55, 0.0  ;;  %v8204_v62 = vpop.f32.mrf.mxu2 }
 0x58d   :  { %9545 = vst [vmem:[#allocation89_spill] sm:$0xff] %v8204_v62  ;;  %v8206_v40 = vpop.f32.mrf.mxu1  ;;  %v1961_v62 = vld [vmem:[#allocation2 + $0x600] sm:$0xff] }
 0x58e   :  { %1737 = vst.msk [vmem:[#allocation2 + $0x5e8] sm:$0xff] %vm338_vm0, %v1284_v29 }
 0x58f   :  { %9546 = vst [vmem:[#allocation90_spill] sm:$0xff] %v8206_v40 }
 0x591   :  { %v1024_v30 = vpop.f32.mrf.mxu0 }
 0x592   :  { %v1025_v0 = vadd.f32 %v8112_v7, %v1024_v30 }
 0x594   :  { %v2712_v5 = vpop.f32.mrf.mxu3  ;;  %v1285_v9 = vmax.f32 %v1025_v0, 0.0 }
 0x595   :  { %v8200_v22 = vadd.f32 %v2712_v5, %v2474_v48 }
 0x596   :  { %1738 = vst.msk [vmem:[#allocation2 + $0x5f0] sm:$0xff] %vm338_vm0, %v1285_v9 }
 0x597   :  { %9544 = vst [vmem:[#allocation88_spill] sm:$0xff] %v8200_v22 }
 0x599   :  { %v1027_v26 = vpop.f32.mrf.mxu0 }
 0x59a   :  { %v1028_v4 = vadd.f32 %v8112_v7, %v1027_v26 }
 0x59c   :  { %v1286_v15 = vmax.f32 %v1028_v4, 0.0  ;;  %v8212_v26 = vpop.f32.mrf.mxu3 }
 0x59d   :  { %9547 = vst [vmem:[#allocation91_spill] sm:$0xff] %v8212_v26  ;;  %v1809_v26 = vld [vmem:[#allocation2 + $0xe8] sm:$0xff] }
 0x59e   :  { %1739 = vst.msk [vmem:[#allocation2 + $0x608] sm:$0xff] %vm338_vm0, %v1286_v15 }
 0x5a1   :  { %v1029_v55 = vpop.f32.mrf.mxu0 }
 0x5a2   :  { %v1030_v29 = vadd.f32 %v8112_v7, %v1029_v55 }
 0x5a4   :  { %v1287_v30 = vmax.f32 %v1030_v29, 0.0  ;;  %v2478_v34 = vpop.f32.mrf.mxu2 }
 0x5a5   :  { %v2264_v0 = vpop.f32.mrf.mxu1 }
 0x5a6   :  { %1740 = vst.msk [vmem:[#allocation2 + $0x610] sm:$0xff] %vm338_vm0, %v1287_v30  ;;  %v2479_v5 = vadd.f32 %v2478_v34, %v2264_v0  ;;  %v1962_v34 = vld [vmem:[#allocation2 + $0x608] sm:$0xff] }
 0x5a9   :  { %v1032_v9 = vpop.f32.mrf.mxu0 }
 0x5aa   :  { %v1033_v48 = vadd.f32 %v8112_v7, %v1032_v9 }
 0x5ac   :  { %v1288_v4 = vmax.f32 %v1033_v48, 0.0 }
 0x5ad   :  { %v1963_v22 = vld [vmem:[#allocation2 + $0x610] sm:$0xff] }
 0x5ae   :  { %1741 = vst.msk [vmem:[#allocation2 + $0x618] sm:$0xff] %vm338_vm0, %v1288_v4  ;;  %v2045_v15 = vpack.c.bf16 %v1963_v22, %v1961_v62 }
 0x5b0   :  { %5816 = vmatmul.msk.bf16.gmra.mxu2 %vm338_vm0, %v2045_v15 }
 0x5b1   :  { %v1034_v55 = vpop.f32.mrf.mxu0 }
 0x5b2   :  { %v1035_v29 = vadd.f32 %v8112_v7, %v1034_v55 }
 0x5b3   :  { %v2717_v40 = vpop.f32.mrf.mxu3 }
 0x5b4   :  { %v1289_v35 = vmax.f32 %v1035_v29, 0.0  ;;  %v8217_v30 = vadd.f32 %v2717_v40, %v2479_v5 }
 0x5b5   :  { %v8219_v0 = vld [vmem:[#allocation2 + $0x618] sm:$0xff] }
 0x5b6   :  { %9548 = vst [vmem:[#allocation92_spill] sm:$0xff] %v8217_v30  ;;  %v2070_v9 = vpack.c.bf16 %v8219_v0, %v1962_v34 }
 0x5b7   :  { %9549 = vst [vmem:[#allocation93_spill] sm:$0xff] %v8219_v0 }
 0x5b8   :  { %1742 = vst.msk [vmem:[#allocation2 + $0x620] sm:$0xff] %vm338_vm0, %v1289_v35  ;;  %5787 = vmatmul.msk.bf16.gmra.mxu1 %vm338_vm0, %v2070_v9 }
 0x5b9   :  { %v1037_v48 = vpop.f32.mrf.mxu0 }
 0x5ba   :  { %v1038_v62 = vadd.f32 %v8112_v7, %v1037_v48 }
 0x5bc   :  { %v1290_v4 = vmax.f32 %v1038_v62, 0.0 }
 0x5be   :  { %1743 = vst.msk [vmem:[#allocation2 + $0x628] sm:$0xff] %vm338_vm0, %v1290_v4 }
 0x5bf   :  { %v1965_v15 = vld [vmem:[#allocation2 + $0x620] sm:$0xff] }
 0x5c0   :  { %v8226_v55 = vpack.c.bf16 %v1965_v15, %v1963_v22 }
 0x5c1   :  { %v1039_v40 = vpop.f32.mrf.mxu0 }
 0x5c2   :  { %9550 = vst [vmem:[#allocation94_spill] sm:$0xff] %v8226_v55  ;;  %5845 = vmatmul.msk.bf16.gmra.mxu3 %vm338_vm0, %v8226_v55  ;;  %v1040_v5 = vadd.f32 %v8112_v7, %v1039_v40 }
 0x5c4   :  { %v1291_v35 = vmax.f32 %v1040_v5, 0.0 }
 0x5c5   :  { %v8231_v29 = vld [vmem:[#allocation2 + $0x628] sm:$0xff] }
 0x5c6   :  { %9551 = vst [vmem:[#allocation95_spill] sm:$0xff] %v8231_v29 }
 0x5c7   :  { %1744 = vst.msk [vmem:[#allocation2 + $0x630] sm:$0xff] %vm338_vm0, %v1291_v35 }
 0x5c9   :  { %v1042_v9 = vpop.f32.mrf.mxu0 }
 0x5ca   :  { %v1043_v48 = vadd.f32 %v8112_v7, %v1042_v9 }
 0x5cc   :  { %v1292_v62 = vmax.f32 %v1043_v48, 0.0 }
 0x5ce   :  { %v1967_v22 = vld [vmem:[#allocation2 + $0x630] sm:$0xff]  ;;  %1745 = vst.msk [vmem:[#allocation2 + $0x638] sm:$0xff] %vm338_vm0, %v1292_v62 }
 0x5cf   :  { %v8238_v4 = vpack.c.bf16 %v1967_v22, %v1965_v15 }
 0x5d1   :  { %9552 = vst [vmem:[#allocation96_spill] sm:$0xff] %v8238_v4  ;;  %5817 = vmatmul.msk.bf16.gmra.mxu2 %vm338_vm0, %v8238_v4  ;;  %v1044_v40 = vpop.f32.mrf.mxu0 }
 0x5d2   :  { %v1045_v5 = vadd.f32 %v8112_v7, %v1044_v40 }
 0x5d4   :  { %v1293_v55 = vmax.f32 %v1045_v5, 0.0 }
 0x5d5   :  { %v8243_v35 = vld [vmem:[#allocation2 + $0x638] sm:$0xff] }
 0x5d6   :  { %9553 = vst [vmem:[#allocation97_spill] sm:$0xff] %v8243_v35  ;;  %v2071_v9 = vpack.c.bf16 %v8243_v35, %v8231_v29 }
 0x5d7   :  { %1746 = vst.msk [vmem:[#allocation2 + $0x640] sm:$0xff] %vm338_vm0, %v1293_v55 }
 0x5d8   :  { %5788 = vmatmul.msk.bf16.gmra.mxu1 %vm338_vm0, %v2071_v9 }
 0x5d9   :  { %v1047_v48 = vpop.f32.mrf.mxu0 }
 0x5da   :  { %v1048_v15 = vadd.f32 %v8112_v7, %v1047_v48 }
 0x5dc   :  { %v1294_v62 = vmax.f32 %v1048_v15, 0.0 }
 0x5de   :  { %v1969_v34 = vld [vmem:[#allocation2 + $0x640] sm:$0xff]  ;;  %1747 = vst.msk [vmem:[#allocation2 + $0x648] sm:$0xff] %vm338_vm0, %v1294_v62 }
 0x5df   :  { %v8251_v4 = vpack.c.bf16 %v1969_v34, %v1967_v22 }
 0x5e1   :  { %9554 = vst [vmem:[#allocation98_spill] sm:$0xff] %v8251_v4  ;;  %5846 = vmatmul.msk.bf16.gmra.mxu3 %vm338_vm0, %v8251_v4  ;;  %v1049_v40 = vpop.f32.mrf.mxu0 }
 0x5e2   :  { %v1050_v55 = vadd.f32 %v8112_v7, %v1049_v40 }
 0x5e4   :  { %v1295_v5 = vmax.f32 %v1050_v55, 0.0 }
 0x5e5   :  { %v8256_v0 = vld [vmem:[#allocation2 + $0x648] sm:$0xff] }
 0x5e6   :  { %9555 = vst [vmem:[#allocation99_spill] sm:$0xff] %v8256_v0 }
 0x5e7   :  { %1748 = vst.msk [vmem:[#allocation2 + $0x650] sm:$0xff] %vm338_vm0, %v1295_v5 }
 0x5e9   :  { %v1052_v48 = vpop.f32.mrf.mxu0 }
 0x5ea   :  { %v1053_v15 = vadd.f32 %v8112_v7, %v1052_v48 }
 0x5ec   :  { %v1296_v62 = vmax.f32 %v1053_v15, 0.0 }
 0x5ee   :  { %v1971_v22 = vld [vmem:[#allocation2 + $0x650] sm:$0xff]  ;;  %1749 = vst.msk [vmem:[#allocation2 + $0x658] sm:$0xff] %vm338_vm0, %v1296_v62 }
 0x5ef   :  { %v8263_v29 = vpack.c.bf16 %v1971_v22, %v1969_v34  ;;  %v6139_v34 = vld [vmem:[%s9387_s3 + $0x38] sm:$0xff] }
 0x5f0   :  { %3995 = vmatpush.bf16.msra.mxu2 %v6139_v34  ;;  %v6138_v34 = vld [vmem:[%s9387_s3 + $0x30] sm:$0xff] }
 0x5f1   :  { %9556 = vst [vmem:[#allocation100_spill] sm:$0xff] %v8263_v29  ;;  %5818 = vmatmul.msk.bf16.gmra.mxu2 %vm338_vm0, %v8263_v29  ;;  %v1054_v40 = vpop.f32.mrf.mxu0  ;;  %3707 = vmatpush.bf16.msra.mxu1 %v6138_v34  ;;  %v1799_v29 = vld [vmem:[#allocation2 + $0x98] sm:$0xff]  ;;  %v8316_v34 = vpop.f32.mrf.mxu2 }
 0x5f2   :  { %v1055_v55 = vadd.f32 %v8112_v7, %v1054_v40  ;;  %9562 = vst [vmem:[#allocation106_spill] sm:$0xff] %v8316_v34  ;;  %v1808_v34 = vld [vmem:[#allocation2 + $0xe0] sm:$0xff] }
 0x5f4   :  { %v1297_v4 = vmax.f32 %v1055_v55, 0.0 }
 0x5f5   :  { %v8268_v5 = vld [vmem:[#allocation2 + $0x658] sm:$0xff] }
 0x5f6   :  { %9557 = vst [vmem:[#allocation101_spill] sm:$0xff] %v8268_v5  ;;  %v2072_v48 = vpack.c.bf16 %v8268_v5, %v8256_v0  ;;  %v1797_v0 = vld [vmem:[#allocation2 + $0x88] sm:$0xff] }
 0x5f7   :  { %1750 = vst.msk [vmem:[#allocation2 + $0x660] sm:$0xff] %vm338_vm0, %v1297_v4  ;;  %v1801_v5 = vld [vmem:[#allocation2 + $0xa8] sm:$0xff] }
 0x5f8   :  { %5789 = vmatmul.msk.bf16.gmra.mxu1 %vm338_vm0, %v2072_v48  ;;  %v6140_v48 = vld [vmem:[%s9387_s3 + $0x40] sm:$0xff] }
 0x5f9   :  { %v1057_v15 = vpop.f32.mrf.mxu0  ;;  %4223 = vmatpush.bf16.msra.mxu3 %v6140_v48  ;;  %v3078_v48 = vpack.c.bf16 %v1799_v29, %v1797_v0  ;;  %v1802_v0 = vld [vmem:[#allocation2 + $0xb0] sm:$0xff] }
 0x5fa   :  { %v1058_v62 = vadd.f32 %v8112_v7, %v1057_v15 }
 0x5fc   :  { %v1298_v9 = vmax.f32 %v1058_v62, 0.0 }
 0x5fe   :  { %v8278_v40 = vld [vmem:[#allocation2 + $0x660] sm:$0xff]  ;;  %1751 = vst.msk [vmem:[#allocation2 + $0x668] sm:$0xff] %vm338_vm0, %v1298_v9 }
 0x5ff   :  { %9558 = vst [vmem:[#allocation102_spill] sm:$0xff] %v8278_v40  ;;  %v2048_v4 = vpack.c.bf16 %v8278_v40, %v8278_v40  ;;  %v8284_v55 = vpack.c.bf16 %v8278_v40, %v1971_v22 }
 0x601   :  { %9559 = vst [vmem:[#allocation103_spill] sm:$0xff] %v8284_v55  ;;  %5819 = vmatmul.msk.bf16.gmra.mxu2 %vm338_vm0, %v2048_v4  ;;  %5847 = vmatmul.msk.bf16.gmra.mxu3 %vm338_vm0, %v8284_v55  ;;  %v1059_v9 = vpop.f32.mrf.mxu0  ;;  %v1800_v55 = vld [vmem:[#allocation2 + $0xa0] sm:$0xff] }
 0x602   :  { %v1060_v15 = vadd.f32 %v8112_v7, %v1059_v9  ;;  %v1796_v9 = vld [vmem:[#allocation2 + $0x80] sm:$0xff]  ;;  %v2791_v29 = vpack.c.bf16 %v1802_v0, %v1800_v55 }
 0x604   :  { %v1299_v22 = vmax.f32 %v1060_v15, 0.0  ;;  %v1798_v15 = vld [vmem:[#allocation2 + $0x90] sm:$0xff] }
 0x605   :  { %v8296_v62 = vld [vmem:[#allocation2 + $0x668] sm:$0xff]  ;;  %v3366_v30 = vpack.c.bf16 %v1800_v55, %v1798_v15 }
 0x606   :  { %9560 = vst [vmem:[#allocation104_spill] sm:$0xff] %v8296_v62  ;;  %v2073_v4 = vpack.c.bf16 %v8296_v62, %v8296_v62 }
 0x607   :  { %1752 = vst.msk [vmem:[#allocation2 + $0x670] sm:$0xff] %vm338_vm0, %v1299_v22  ;;  %v2790_v22 = vpack.c.bf16 %v1798_v15, %v1796_v9  ;;  %v8318_v9 = vpop.f32.mrf.mxu1 }
 0x608   :  { %5790 = vmatmul.msk.bf16.gmra.mxu1 %vm338_vm0, %v2073_v4  ;;  %v1803_v4 = vld [vmem:[#allocation2 + $0xb8] sm:$0xff]  ;;  %9563 = vst [vmem:[#allocation107_spill] sm:$0xff] %v8318_v9 }
 0x609   :  { %v3079_v62 = vpack.c.bf16 %v1803_v4, %v1801_v5  ;;  %v1806_v5 = vld [vmem:[#allocation2 + $0xd0] sm:$0xff]  ;;  %v8323_v4 = vpop.f32.mrf.mxu3 }
 0x60a   :  { %9564 = vst [vmem:[#allocation108_spill] sm:$0xff] %v8323_v4  ;;  %v3368_v20 = vpack.c.bf16 %v1808_v34, %v1806_v5 }
 0x60e   :  { %v8304_v35 = vld [vmem:[#allocation2 + $0x670] sm:$0xff] }
 0x60f   :  { %9561 = vst [vmem:[#allocation105_spill] sm:$0xff] %v8304_v35  ;;  %v2526_v7 = vpack.c.bf16 %v8304_v35, %v8304_v35 }
 0x611   :  { %5848 = vmatmul.msk.bf16.gmra.mxu3 %vm338_vm0, %v2526_v7  ;;  %5882 = vmatmul.msk.bf16.vlgmr.msrb.gmra.mxu2 %vm338_vm0, %v3078_v48  ;;  %v1807_v7 = vld [vmem:[#allocation2 + $0xd8] sm:$0xff]  ;;  %v1804_v48 = vld [vmem:[#allocation2 + $0xc0] sm:$0xff] }
 0x612   :  { %v3367_v35 = vpack.c.bf16 %v1804_v48, %v1802_v0  ;;  %v2792_v55 = vpack.c.bf16 %v1806_v5, %v1804_v48  ;;  %v1831_v48 = vld [vmem:[#allocation2 + $0x1a8] sm:$0xff] }
 0x618   :  { %5853 = vmatmul.msk.bf16.vlgmr.msrb.gmra.mxu1 %vm338_vm0, %v2790_v22  ;;  %v1805_v22 = vld [vmem:[#allocation2 + $0xc8] sm:$0xff] }
 0x619   :  { %v3080_v40 = vpack.c.bf16 %v1807_v7, %v1805_v22  ;;  %v1828_v22 = vld [vmem:[#allocation2 + $0x190] sm:$0xff] }
 0x621   :  { %5883 = vmatmul.msk.bf16.gmra.mxu2 %vm338_vm0, %v3079_v62  ;;  %5911 = vmatmul.msk.bf16.vlgmr.msrb.gmra.mxu3 %vm338_vm0, %v3366_v30 }
 0x628   :  { %5854 = vmatmul.msk.bf16.gmra.mxu1 %vm338_vm0, %v2791_v29  ;;  %v1827_v29 = vld [vmem:[#allocation2 + $0x188] sm:$0xff] }
 0x629   :  { %v3081_v9 = vpack.c.bf16 %v1827_v29, %v1809_v26  ;;  %v1810_v26 = vld [vmem:[#allocation2 + $0xf0] sm:$0xff] }
 0x62a   :  { %v3369_v29 = vpack.c.bf16 %v1828_v22, %v1810_v26 }
 0x631   :  { %5884 = vmatmul.msk.bf16.gmra.mxu2 %vm338_vm0, %v3080_v40  ;;  %5912 = vmatmul.msk.bf16.gmra.mxu3 %vm338_vm0, %v3367_v35  ;;  %v1826_v35 = vld [vmem:[#allocation2 + $0x180] sm:$0xff] }
 0x632   :  { %v2793_v7 = vpack.c.bf16 %v1826_v35, %v1808_v34 }
 0x633   :  { %v2483_v62 = vpop.f32.mrf.mxu2 }
 0x635   :  { %v2269_v30 = vpop.f32.mrf.mxu1 }
 0x636   :  { %v2484_v15 = vadd.f32 %v2483_v62, %v2269_v30 }
 0x638   :  { %5855 = vmatmul.msk.bf16.gmra.mxu1 %vm338_vm0, %v2792_v55  ;;  %v1829_v55 = vld [vmem:[#allocation2 + $0x198] sm:$0xff] }
 0x639   :  { %v3082_v5 = vpack.c.bf16 %v1831_v48, %v1829_v55  ;;  %v1834_v55 = vld [vmem:[#allocation2 + $0x1c0] sm:$0xff] }
 0x63b   :  { %v8330_v62 = vpop.f32.mrf.mxu2 }
 0x63c   :  { %9566 = vst [vmem:[#allocation110_spill] sm:$0xff] %v8330_v62  ;;  %v1832_v62 = vld [vmem:[#allocation2 + $0x1b0] sm:$0xff] }
 0x63d   :  { %v8332_v30 = vpop.f32.mrf.mxu1 }
 0x63e   :  { %9567 = vst [vmem:[#allocation111_spill] sm:$0xff] %v8332_v30  ;;  %v1833_v30 = vld [vmem:[#allocation2 + $0x1b8] sm:$0xff] }
 0x641   :  { %5885 = vmatmul.msk.bf16.gmra.mxu2 %vm338_vm0, %v3081_v9  ;;  %5913 = vmatmul.msk.bf16.gmra.mxu3 %vm338_vm0, %v3368_v20  ;;  %v1830_v20 = vld [vmem:[#allocation2 + $0x1a0] sm:$0xff] }
 0x642   :  { %v3370_v4 = vpack.c.bf16 %v1832_v62, %v1830_v20 }
 0x645   :  { %v2722_v40 = vpop.f32.mrf.mxu3 }
 0x646   :  { %v8327_v0 = vadd.f32 %v2722_v40, %v2484_v15  ;;  %v2794_v40 = vpack.c.bf16 %v1830_v20, %v1828_v22 }
 0x648   :  { %9565 = vst [vmem:[#allocation109_spill] sm:$0xff] %v8327_v0  ;;  %5856 = vmatmul.msk.bf16.gmra.mxu1 %vm338_vm0, %v2793_v7  ;;  %v1835_v7 = vld [vmem:[#allocation2 + $0x1c8] sm:$0xff] }
 0x649   :  { %v3083_v0 = vpack.c.bf16 %v1835_v7, %v1833_v30 }
 0x64d   :  { %v8337_v35 = vpop.f32.mrf.mxu3 }
 0x64e   :  { %9568 = vst [vmem:[#allocation112_spill] sm:$0xff] %v8337_v35 }
 0x651   :  { %5886 = vmatmul.msk.bf16.gmra.mxu2 %vm338_vm0, %v3082_v5  ;;  %5914 = vmatmul.msk.bf16.gmra.mxu3 %vm338_vm0, %v3369_v29  ;;  %v2795_v5 = vpack.c.bf16 %v1834_v55, %v1832_v62  ;;  %v1839_v29 = vld [vmem:[#allocation2 + $0x1e8] sm:$0xff]  ;;  %v200_v62 = vld [vmem:[%s9385_s0 + $0x540] sm:$0xff] }
 0x654   :  { %v2488_v9 = vpop.f32.mrf.mxu2 }
 0x655   :  { %v2274_v15 = vpop.f32.mrf.mxu1 }
 0x656   :  { %v2489_v34 = vadd.f32 %v2488_v9, %v2274_v15  ;;  %v1836_v9 = vld [vmem:[#allocation2 + $0x1d0] sm:$0xff] }
 0x657   :  { %v3371_v20 = vpack.c.bf16 %v1836_v9, %v1834_v55 }
 0x658   :  { %5857 = vmatmul.msk.bf16.gmra.mxu1 %vm338_vm0, %v2794_v40  ;;  %v1837_v40 = vld [vmem:[#allocation2 + $0x1d8] sm:$0xff] }
 0x659   :  { %v3084_v30 = vpack.c.bf16 %v1839_v29, %v1837_v40  ;;  %v1859_v40 = vld [vmem:[#allocation2 + $0x298] sm:$0xff] }
 0x65c   :  { %v8344_v22 = vpop.f32.mrf.mxu2 }
 0x65d   :  { %9570 = vst [vmem:[#allocation114_spill] sm:$0xff] %v8344_v22  ;;  %v8346_v15 = vpop.f32.mrf.mxu1 }
 0x65e   :  { %9571 = vst [vmem:[#allocation115_spill] sm:$0xff] %v8346_v15  ;;  %v1857_v15 = vld [vmem:[#allocation2 + $0x288] sm:$0xff] }
 0x65f   :  { %v3085_v35 = vpack.c.bf16 %v1859_v40, %v1857_v15 }
 0x661   :  { %5887 = vmatmul.msk.bf16.gmra.mxu2 %vm338_vm0, %v3083_v0  ;;  %5915 = vmatmul.msk.bf16.gmra.mxu3 %vm338_vm0, %v3370_v4  ;;  %v1838_v0 = vld [vmem:[#allocation2 + $0x1e0] sm:$0xff] }
 0x662   :  { %v2796_v22 = vpack.c.bf16 %v1838_v0, %v1836_v9 }
 0x664   :  { %v2727_v48 = vpop.f32.mrf.mxu3 }
 0x665   :  { %v8341_v26 = vadd.f32 %v2727_v48, %v2489_v34  ;;  %v201_v34 = vld [vmem:[%s9385_s0 + $0x548] sm:$0xff] }
 0x666   :  { %v312_v48 = vpack.c.bf16 %v201_v34, %v200_v62  ;;  %v1856_v62 = vld [vmem:[#allocation2 + $0x280] sm:$0xff]  ;;  %v1858_v34 = vld [vmem:[#allocation2 + $0x290] sm:$0xff] }
 0x667   :  { %9569 = vst [vmem:[#allocation113_spill] sm:$0xff] %v8341_v26 }
 0x668   :  { %5858 = vmatmul.msk.bf16.gmra.mxu1 %vm338_vm0, %v2795_v5  ;;  %5748 = vmatmul.msk.bf16.gmra.mxu0 %vm338_vm0, %v312_v48  ;;  %v203_v48 = vld [vmem:[%s9385_s0 + $0x558] sm:$0xff] }
 0x66c   :  { %v8358_v55 = vpop.f32.mrf.mxu3 }
 0x66d   :  { %9572 = vst [vmem:[#allocation116_spill] sm:$0xff] %v8358_v55 }
 0x671   :  { %5888 = vmatmul.msk.bf16.gmra.mxu2 %vm338_vm0, %v3084_v30  ;;  %5916 = vmatmul.msk.bf16.gmra.mxu3 %vm338_vm0, %v3371_v20  ;;  %v1840_v30 = vld [vmem:[#allocation2 + $0x1f0] sm:$0xff] }
 0x672   :  { %v3372_v38 = vpack.c.bf16 %v1840_v30, %v1838_v0  ;;  %v1860_v30 = vld [vmem:[#allocation2 + $0x2a0] sm:$0xff] }
 0x673   :  { %v3373_v24 = vpack.c.bf16 %v1860_v30, %v1858_v34 }
 0x674   :  { %v2493_v4 = vpop.f32.mrf.mxu2 }
 0x675   :  { %v2279_v7 = vpop.f32.mrf.mxu1 }
 0x676   :  { %v2494_v5 = vadd.f32 %v2493_v4, %v2279_v7 }
 0x678   :  { %5859 = vmatmul.msk.bf16.gmra.mxu1 %vm338_vm0, %v2796_v22  ;;  %v202_v22 = vld [vmem:[%s9385_s0 + $0x550] sm:$0xff] }
 0x679   :  { %v313_v0 = vpack.c.bf16 %v203_v48, %v202_v22  ;;  %v1862_v22 = vld [vmem:[#allocation2 + $0x2b0] sm:$0xff] }
 0x67b   :  { %5749 = vmatmul.msk.bf16.gmra.mxu0 %vm338_vm0, %v313_v0 }
 0x67c   :  { %v2495_v29 = vpop.f32.mrf.mxu2 }
 0x67d   :  { %v2281_v20 = vpop.f32.mrf.mxu1 }
 0x67e   :  { %v2496_v26 = vadd.f32 %v2495_v29, %v2281_v20 }
 0x681   :  { %5889 = vmatmul.msk.bf16.gmra.mxu2 %vm338_vm0, %v3085_v35  ;;  %5917 = vmatmul.msk.bf16.gmra.mxu3 %vm338_vm0, %v3372_v38  ;;  %v2797_v35 = vpack.c.bf16 %v1858_v34, %v1856_v62 }
 0x684   :  { %v2498_v4 = vpop.f32.mrf.mxu2  ;;  %v2732_v9 = vpop.f32.mrf.mxu3 }
 0x685   :  { %v8362_v7 = vadd.f32 %v2732_v9, %v2494_v5  ;;  %v2284_v15 = vpop.f32.mrf.mxu1  ;;  %v1863_v5 = vld [vmem:[#allocation2 + $0x2b8] sm:$0xff] }
 0x686   :  { %v2499_v29 = vadd.f32 %v2498_v4, %v2284_v15  ;;  %v204_v15 = vld [vmem:[%s9385_s0 + $0x560] sm:$0xff] }
 0x687   :  { %9573 = vst [vmem:[#allocation117_spill] sm:$0xff] %v8362_v7  ;;  %v1861_v7 = vld [vmem:[#allocation2 + $0x2a8] sm:$0xff] }
 0x688   :  { %5860 = vmatmul.msk.bf16.gmra.mxu1 %vm338_vm0, %v2797_v35  ;;  %v3086_v55 = vpack.c.bf16 %v1863_v5, %v1861_v7  ;;  %v1864_v5 = vld [vmem:[#allocation2 + $0x2c0] sm:$0xff] }
 0x68c   :  { %v2500_v38 = vpop.f32.mrf.mxu2  ;;  %v2734_v40 = vpop.f32.mrf.mxu3 }
 0x68d   :  { %v8372_v20 = vadd.f32 %v2734_v40, %v2496_v26  ;;  %v2286_v9 = vpop.f32.mrf.mxu1  ;;  %v205_v26 = vld [vmem:[%s9385_s0 + $0x568] sm:$0xff]  ;;  %v1867_v40 = vld [vmem:[#allocation2 + $0x2d8] sm:$0xff] }
 0x68e   :  { %v314_v7 = vpack.c.bf16 %v205_v26, %v204_v15 }
 0x690   :  { %5750 = vmatmul.msk.bf16.gmra.mxu0 %vm338_vm0, %v314_v7  ;;  %v206_v7 = vld [vmem:[%s9385_s0 + $0x570] sm:$0xff] }
 0x691   :  { %5890 = vmatmul.msk.bf16.gmra.mxu2 %vm338_vm0, %v3086_v55  ;;  %5918 = vmatmul.msk.bf16.gmra.mxu3 %vm338_vm0, %v3373_v24  ;;  %v2798_v55 = vpack.c.bf16 %v1862_v22, %v1860_v30  ;;  %v2381_v24 = vadd.f32 %v7121_v59, %v7116_v56 }
 0x693   :  { %v2742_v9 = vadd.f32 %v7142_v16, %v2381_v24  ;;  %v207_v16 = vld [vmem:[%s9385_s0 + $0x578] sm:$0xff]  ;;  %v2386_v24 = vadd.f32 %v7149_v21, %v7146_v19 }
 0x694   :  { %v2737_v4 = vpop.f32.mrf.mxu3  ;;  %v3193_v62 = vpop.f32.mrf.mxu2 }
 0x695   :  { %v8376_v48 = vadd.f32 %v2737_v4, %v2499_v29  ;;  %v2905_v0 = vpop.f32.mrf.mxu1 }
 0x696   :  { %v3029_v34 = vadd.f32 %v2905_v0, %v7134_v3  ;;  %v3374_v3 = vpack.c.bf16 %v1864_v5, %v1862_v22  ;;  %v1866_v0 = vld [vmem:[#allocation2 + $0x2d0] sm:$0xff]  ;;  %v315_v22 = vpack.c.bf16 %v207_v16, %v206_v7  ;;  %v1886_v7 = vld [vmem:[#allocation2 + $0x380] sm:$0xff] }
 0x697   :  { %9574 = vst [vmem:[#allocation118_spill] sm:$0xff] %v8376_v48  ;;  %v1865_v48 = vld [vmem:[#allocation2 + $0x2c8] sm:$0xff] }
 0x698   :  { %5861 = vmatmul.msk.bf16.gmra.mxu1 %vm338_vm0, %v2798_v55  ;;  %v3317_v29 = vadd.f32 %v3193_v62, %v3029_v34  ;;  %v3087_v26 = vpack.c.bf16 %v1867_v40, %v1865_v48  ;;  %v2799_v55 = vpack.c.bf16 %v1866_v0, %v1864_v5  ;;  %v1887_v40 = vld [vmem:[#allocation2 + $0x388] sm:$0xff] }
 0x69c   :  { %v2739_v35 = vpop.f32.mrf.mxu3  ;;  %v3195_v38 = vpop.f32.mrf.mxu2 }
 0x69d   :  { %v2907_v4 = vpop.f32.mrf.mxu1 }
 0x69e   :  { %v3030_v15 = vadd.f32 %v2907_v4, %v2742_v9  ;;  %v1868_v9 = vld [vmem:[#allocation2 + $0x2e0] sm:$0xff]  ;;  %v2744_v4 = vadd.f32 %v7169_v42, %v2386_v24 }
 0x69f   :  { %v208_v42 = vld [vmem:[%s9385_s0 + $0x580] sm:$0xff] }
 0x6a0   :  { %v3318_v30 = vadd.f32 %v3195_v38, %v3030_v15  ;;  %5751 = vmatmul.msk.bf16.gmra.mxu0 %vm338_vm0, %v315_v22 }
 0x6a1   :  { %5891 = vmatmul.msk.bf16.gmra.mxu2 %vm338_vm0, %v3087_v26  ;;  %5919 = vmatmul.msk.bf16.gmra.mxu3 %vm338_vm0, %v3374_v3  ;;  %v1869_v3 = vld [vmem:[#allocation2 + $0x2e8] sm:$0xff] }
 0x6a2   :  { %v3088_v5 = vpack.c.bf16 %v1887_v40, %v1869_v3  ;;  %v1888_v40 = vld [vmem:[#allocation2 + $0x390] sm:$0xff] }
 0x6a4   :  { %v3198_v56 = vpop.f32.mrf.mxu2  ;;  %v3481_v59 = vpop.f32.mrf.mxu3 }
 0x6a5   :  { %v8392_v62 = vadd.f32 %v3481_v59, %v3317_v29  ;;  %v2910_v48 = vpop.f32.mrf.mxu1  ;;  %v3375_v59 = vpack.c.bf16 %v1868_v9, %v1866_v0 }
 0x6a6   :  { %v3031_v34 = vadd.f32 %v2910_v48, %v7162_v31 }
 0x6a8   :  { %5862 = vmatmul.msk.bf16.gmra.mxu1 %vm338_vm0, %v2799_v55  ;;  %v3319_v29 = vadd.f32 %v3198_v56, %v3031_v34  ;;  %v2800_v34 = vpack.c.bf16 %v1886_v7, %v1868_v9  ;;  %v2391_v55 = vadd.f32 %v7197_v11, %v7200_v17 }
 0x6ac   :  { %v3200_v35 = vpop.f32.mrf.mxu2  ;;  %v3483_v38 = vpop.f32.mrf.mxu3 }
 0x6ad   :  { %v8406_v15 = vadd.f32 %v3483_v38, %v3318_v30  ;;  %v2912_v26 = vpop.f32.mrf.mxu1  ;;  %v209_v30 = vld [vmem:[%s9385_s0 + $0x588] sm:$0xff] }
 0x6ae   :  { %v3032_v31 = vadd.f32 %v2912_v26, %v2744_v4  ;;  %v316_v0 = vpack.c.bf16 %v209_v30, %v208_v42  ;;  %v1891_v38 = vld [vmem:[#allocation2 + $0x3a8] sm:$0xff]  ;;  %v2746_v4 = vadd.f32 %v7212_v36, %v2391_v55  ;;  %v210_v36 = vld [vmem:[%s9385_s0 + $0x590] sm:$0xff] }
 0x6b0   :  { %v3320_v19 = vadd.f32 %v3200_v35, %v3032_v31  ;;  %5752 = vmatmul.msk.bf16.gmra.mxu0 %vm338_vm0, %v316_v0  ;;  %v1889_v31 = vld [vmem:[#allocation2 + $0x398] sm:$0xff] }
 0x6b1   :  { %5892 = vmatmul.msk.bf16.gmra.mxu2 %vm338_vm0, %v3088_v5  ;;  %5920 = vmatmul.msk.bf16.gmra.mxu3 %vm338_vm0, %v3375_v59  ;;  %v3089_v5 = vpack.c.bf16 %v1891_v38, %v1889_v31  ;;  %v1893_v31 = vld [vmem:[#allocation2 + $0x3b8] sm:$0xff] }
 0x6b4   :  { %v3203_v21 = vpop.f32.mrf.mxu2  ;;  %v3486_v56 = vpop.f32.mrf.mxu3 }
 0x6b5   :  { %v8410_v16 = vadd.f32 %v3486_v56, %v3319_v29  ;;  %v2915_v48 = vpop.f32.mrf.mxu1  ;;  %v1890_v56 = vld [vmem:[#allocation2 + $0x3a0] sm:$0xff] }
 0x6b6   :  { %v3033_v22 = vadd.f32 %v2915_v48, %v7182_v54  ;;  %v1870_v54 = vld [vmem:[#allocation2 + $0x2f0] sm:$0xff]  ;;  %v2801_v0 = vpack.c.bf16 %v1890_v56, %v1888_v40 }
 0x6b7   :  { %v3376_v59 = vpack.c.bf16 %v1888_v40, %v1870_v54 }
 0x6b8   :  { %5863 = vmatmul.msk.bf16.gmra.mxu1 %vm338_vm0, %v2800_v34  ;;  %v3321_v24 = vadd.f32 %v3203_v21, %v3033_v22  ;;  %v2396_v34 = vadd.f32 %v7231_v1, %v7229_v63  ;;  %v1894_v1 = vld [vmem:[#allocation2 + $0x3c0] sm:$0xff] }
 0x6ba   :  { %v2748_v38 = vadd.f32 %v7243_v25, %v2396_v34  ;;  %v1897_v34 = vld [vmem:[#allocation2 + $0x3d8] sm:$0xff] }
 0x6bc   :  { %v3205_v29 = vpop.f32.mrf.mxu2  ;;  %v3488_v35 = vpop.f32.mrf.mxu3 }
 0x6bd   :  { %v8424_v26 = vadd.f32 %v3488_v35, %v3320_v19  ;;  %v2917_v3 = vpop.f32.mrf.mxu1  ;;  %v211_v19 = vld [vmem:[%s9385_s0 + $0x598] sm:$0xff]  ;;  %v1892_v35 = vld [vmem:[#allocation2 + $0x3b0] sm:$0xff] }
 0x6be   :  { %v3034_v9 = vadd.f32 %v2917_v3, %v2746_v4  ;;  %v317_v30 = vpack.c.bf16 %v211_v19, %v210_v36  ;;  %v3377_v54 = vpack.c.bf16 %v1892_v35, %v1890_v56  ;;  %v2401_v56 = vadd.f32 %v7259_v51, %v7261_v52  ;;  %v1898_v52 = vld [vmem:[#allocation2 + $0x3e0] sm:$0xff] }
 0x6c0   :  { %v3322_v11 = vadd.f32 %v3205_v29, %v3034_v9  ;;  %5753 = vmatmul.msk.bf16.gmra.mxu0 %vm338_vm0, %v317_v30  ;;  %v1895_v29 = vld [vmem:[#allocation2 + $0x3c8] sm:$0xff]  ;;  %v1896_v30 = vld [vmem:[#allocation2 + $0x3d0] sm:$0xff] }
 0x6c1   :  { %5893 = vmatmul.msk.bf16.gmra.mxu2 %vm338_vm0, %v3089_v5  ;;  %5921 = vmatmul.msk.bf16.gmra.mxu3 %vm338_vm0, %v3376_v59  ;;  %v3090_v40 = vpack.c.bf16 %v1895_v29, %v1893_v31 }
 0x6c4   :  { %v3208_v17 = vpop.f32.mrf.mxu2  ;;  %v3491_v21 = vpop.f32.mrf.mxu3 }
 0x6c5   :  { %v8428_v7 = vadd.f32 %v3491_v21, %v3321_v24  ;;  %v2920_v42 = vpop.f32.mrf.mxu1 }
 0x6c6   :  { %v3035_v48 = vadd.f32 %v2920_v42, %v7218_v50  ;;  %v1899_v42 = vld [vmem:[#allocation2 + $0x3e8] sm:$0xff] }
 0x6c8   :  { %5864 = vmatmul.msk.bf16.gmra.mxu1 %vm338_vm0, %v2801_v0  ;;  %v3323_v22 = vadd.f32 %v3208_v17, %v3035_v48  ;;  %v2750_v48 = vadd.f32 %v7273_v12, %v2401_v56  ;;  %v212_v12 = vld [vmem:[%s9385_s0 + $0x5a0] sm:$0xff] }
 0x6cc   :  { %v3210_v55 = vpop.f32.mrf.mxu2  ;;  %v3493_v24 = vpop.f32.mrf.mxu3 }
 0x6cd   :  { %v8442_v4 = vadd.f32 %v3493_v24, %v3322_v11  ;;  %v2922_v3 = vpop.f32.mrf.mxu1  ;;  %v2802_v11 = vpack.c.bf16 %v1894_v1, %v1892_v35  ;;  %v3091_v24 = vpack.c.bf16 %v1899_v42, %v1897_v34 }
 0x6ce   :  { %v3036_v50 = vadd.f32 %v2922_v3, %v2748_v38  ;;  %v213_v3 = vld [vmem:[%s9385_s0 + $0x5a8] sm:$0xff] }
 0x6d0   :  { %v3324_v9 = vadd.f32 %v3210_v55, %v3036_v50  ;;  %v318_v50 = vpack.c.bf16 %v213_v3, %v212_v12  ;;  %v2411_v12 = vadd.f32 %v7437_v57, %v7439_v58 }
 0x6d1   :  { %5894 = vmatmul.msk.bf16.gmra.mxu2 %vm338_vm0, %v3090_v40  ;;  %5922 = vmatmul.msk.bf16.gmra.mxu3 %vm338_vm0, %v3377_v54  ;;  %v2803_v54 = vpack.c.bf16 %v1898_v52, %v1896_v30 }
 0x6d2   :  { %5754 = vmatmul.msk.bf16.gmra.mxu0 %vm338_vm0, %v318_v50  ;;  %v1923_v50 = vld [vmem:[#allocation2 + $0x4b8] sm:$0xff] }
 0x6d4   :  { %v3213_v5 = vpop.f32.mrf.mxu2  ;;  %v3496_v63 = vpop.f32.mrf.mxu3 }
 0x6d5   :  { %v8446_v59 = vadd.f32 %v3496_v63, %v3323_v22  ;;  %v2925_v17 = vpop.f32.mrf.mxu1 }
 0x6d6   :  { %v3037_v25 = vadd.f32 %v2925_v17, %v7248_v37  ;;  %v3378_v37 = vpack.c.bf16 %v1896_v30, %v1894_v1  ;;  %v1919_v17 = vld [vmem:[#allocation2 + $0x498] sm:$0xff] }
 0x6d8   :  { %5865 = vmatmul.msk.bf16.gmra.mxu1 %vm338_vm0, %v2802_v11  ;;  %v3325_v21 = vadd.f32 %v3213_v5, %v3037_v25  ;;  %v2406_v5 = vadd.f32 %v7289_v46, %v7291_v47  ;;  %v1900_v25 = vld [vmem:[#allocation2 + $0x3f0] sm:$0xff]  ;;  %v1916_v47 = vld [vmem:[#allocation2 + $0x480] sm:$0xff] }
 0x6d9   :  { %v3379_v42 = vpack.c.bf16 %v1900_v25, %v1898_v52 }
 0x6da   :  { %v2752_v11 = vadd.f32 %v7303_v8, %v2406_v5 }
 0x6dc   :  { %v3215_v36 = vpop.f32.mrf.mxu2  ;;  %v3498_v19 = vpop.f32.mrf.mxu3 }
 0x6dd   :  { %v8453_v0 = vadd.f32 %v3498_v19, %v3324_v9  ;;  %v2927_v22 = vpop.f32.mrf.mxu1 }
 0x6de   :  { %v3038_v55 = vadd.f32 %v2927_v22, %v2750_v48  ;;  %v1918_v22 = vld [vmem:[#allocation2 + $0x490] sm:$0xff] }
 0x6e0   :  { %v3326_v29 = vadd.f32 %v3215_v36, %v3038_v55  ;;  %v1917_v36 = vld [vmem:[#allocation2 + $0x488] sm:$0xff] }
 0x6e1   :  { %5895 = vmatmul.msk.bf16.gmra.mxu2 %vm338_vm0, %v3091_v24  ;;  %5923 = vmatmul.msk.bf16.gmra.mxu3 %vm338_vm0, %v3378_v37  ;;  %v3092_v19 = vpack.c.bf16 %v1919_v17, %v1917_v36  ;;  %v8480_v24 = vld [vmem:[%s9386_s2] ss:$0 sm:$0xff]  ;;  %v1922_v36 = vld [vmem:[#allocation2 + $0x4b0] sm:$0xff] }
 0x6e4   :  { %v3218_v35 = vpop.f32.mrf.mxu2  ;;  %v3501_v51 = vpop.f32.mrf.mxu3 }
 0x6e5   :  { %v8457_v38 = vadd.f32 %v3501_v51, %v3325_v21  ;;  %v2930_v31 = vpop.f32.mrf.mxu1  ;;  %v1062_v55 = vpop.f32.mrf.mxu0 }
 0x6e6   :  { %v3039_v40 = vadd.f32 %v2930_v31, %v7278_v32  ;;  %v1063_v37 = vadd.f32 %v8480_v24, %v1062_v55  ;;  %v2416_v55 = vadd.f32 %v7467_v10, %v7469_v18 }
 0x6e8   :  { %5866 = vmatmul.msk.bf16.gmra.mxu1 %vm338_vm0, %v2803_v54  ;;  %v3327_v9 = vadd.f32 %v3218_v35, %v3039_v40  ;;  %v2804_v35 = vpack.c.bf16 %v1918_v22, %v1916_v47  ;;  %v1300_v51 = vmax.f32 %v1063_v37, 0.0  ;;  %v1920_v40 = vld [vmem:[#allocation2 + $0x4a0] sm:$0xff]  ;;  %v2754_v54 = vadd.f32 %v7451_v43, %v2411_v12 }
 0x6ea   :  { %1753 = vst.msk [vmem:[#allocation2 + $0x688] sm:$0xff] %vm338_vm0, %v1300_v51  ;;  %v2756_v51 = vadd.f32 %v7481_v13, %v2416_v55 }
 0x6ec   :  { %v3220_v63 = vpop.f32.mrf.mxu2  ;;  %v3503_v1 = vpop.f32.mrf.mxu3 }
 0x6ed   :  { %v8471_v21 = vadd.f32 %v3503_v1, %v3326_v29  ;;  %v2932_v56 = vpop.f32.mrf.mxu1  ;;  %v1064_v5 = vpop.f32.mrf.mxu0 }
 0x6ee   :  { %v3040_v32 = vadd.f32 %v2932_v56, %v2752_v11  ;;  %v1065_v1 = vadd.f32 %v8480_v24, %v1064_v5  ;;  %v3380_v11 = vpack.c.bf16 %v1920_v40, %v1918_v22 }
 0x6f0   :  { %v3328_v30 = vadd.f32 %v3220_v63, %v3040_v32  ;;  %v1921_v63 = vld [vmem:[#allocation2 + $0x4a8] sm:$0xff]  ;;  %v1301_v56 = vmax.f32 %v1065_v1, 0.0 }
 0x6f1   :  { %5896 = vmatmul.msk.bf16.gmra.mxu2 %vm338_vm0, %v3092_v19  ;;  %5924 = vmatmul.msk.bf16.gmra.mxu3 %vm338_vm0, %v3379_v42  ;;  %v3093_v25 = vpack.c.bf16 %v1923_v50, %v1921_v63 }
 0x6f2   :  { %1754 = vst.msk [vmem:[#allocation2 + $0x690] sm:$0xff] %vm338_vm0, %v1301_v56 }
 0x6f4   :  { %v3223_v48 = vpop.f32.mrf.mxu2  ;;  %v3506_v46 = vpop.f32.mrf.mxu3 }
 0x6f5   :  { %v8475_v34 = vadd.f32 %v3506_v46, %v3327_v9  ;;  %v2935_v8 = vpop.f32.mrf.mxu1  ;;  %v2805_v46 = vpack.c.bf16 %v1922_v36, %v1920_v40 }
 0x6f6   :  { %v3041_v29 = vadd.f32 %v2935_v8, %v7309_v39 }
 0x6f8   :  { %5867 = vmatmul.msk.bf16.gmra.mxu1 %vm338_vm0, %v2804_v35  ;;  %v3329_v52 = vadd.f32 %v3223_v48, %v3041_v29  ;;  %v1067_v19 = vpop.f32.mrf.mxu0  ;;  %v1927_v29 = vld [vmem:[#allocation2 + $0x4d8] sm:$0xff]  ;;  %v1924_v35 = vld [vmem:[#allocation2 + $0x4c0] sm:$0xff] }
 0x6fc   :  { %v3225_v3 = vpop.f32.mrf.mxu2  ;;  %v3508_v31 = vpop.f32.mrf.mxu3 }
 0x6fd   :  { %v8489_v9 = vadd.f32 %v3508_v31, %v3328_v30  ;;  %v2937_v39 = vpop.f32.mrf.mxu1  ;;  %v1068_v30 = vadd.f32 %v8480_v24, %v1067_v19 }
 0x6fe   :  { %v3042_v17 = vadd.f32 %v2937_v39, %v2754_v54  ;;  %v3381_v54 = vpack.c.bf16 %v1924_v35, %v1922_v36  ;;  %v1926_v39 = vld [vmem:[#allocation2 + $0x4d0] sm:$0xff] }
 0x6ff   :  { %v1302_v47 = vmax.f32 %v1068_v30, 0.0  ;;  %v2806_v56 = vpack.c.bf16 %v1926_v39, %v1924_v35  ;;  %v1928_v30 = vld [vmem:[#allocation2 + $0x4e0] sm:$0xff] }
 0x700   :  { %v3330_v57 = vadd.f32 %v3225_v3, %v3042_v17  ;;  %v1069_v12 = vpop.f32.mrf.mxu0  ;;  %v1925_v3 = vld [vmem:[#allocation2 + $0x4c8] sm:$0xff] }
 0x701   :  { %5897 = vmatmul.msk.bf16.gmra.mxu2 %vm338_vm0, %v3093_v25  ;;  %5925 = vmatmul.msk.bf16.gmra.mxu3 %vm338_vm0, %v3380_v11  ;;  %1755 = vst.msk [vmem:[#allocation2 + $0x698] sm:$0xff] %vm338_vm0, %v1302_v47  ;;  %v1070_v31 = vadd.f32 %v8480_v24, %v1069_v12  ;;  %v3094_v40 = vpack.c.bf16 %v1927_v29, %v1925_v3 }
 0x702   :  { %v3382_v29 = vpack.c.bf16 %v1928_v30, %v1926_v39  ;;  %v1951_v39 = vld [vmem:[#allocation2 + $0x5a8] sm:$0xff] }
 0x703   :  { %v1303_v5 = vmax.f32 %v1070_v31, 0.0 }
 0x704   :  { %v3228_v58 = vpop.f32.mrf.mxu2  ;;  %v3511_v43 = vpop.f32.mrf.mxu3 }
 0x705   :  { %v8495_v32 = vadd.f32 %v3511_v43, %v3329_v52  ;;  %v2940_v42 = vpop.f32.mrf.mxu1  ;;  %1756 = vst.msk [vmem:[#allocation2 + $0x6a0] sm:$0xff] %vm338_vm0, %v1303_v5  ;;  %v2421_v43 = vadd.f32 %v7497_v28, %v7499_v53 }
 0x706   :  { %v3043_v48 = vadd.f32 %v2940_v42, %v7456_v23  ;;  %v1947_v42 = vld [vmem:[#allocation2 + $0x588] sm:$0xff] }
 0x708   :  { %5868 = vmatmul.msk.bf16.gmra.mxu1 %vm338_vm0, %v2805_v46  ;;  %v3331_v22 = vadd.f32 %v3228_v58, %v3043_v48  ;;  %v2758_v48 = vadd.f32 %v7511_v6, %v2421_v43 }
 0x70c   :  { %v3230_v8 = vpop.f32.mrf.mxu2  ;;  %v3513_v37 = vpop.f32.mrf.mxu3 }
 0x70d   :  { %v8504_v52 = vadd.f32 %v3513_v37, %v3330_v57  ;;  %v2942_v23 = vpop.f32.mrf.mxu1  ;;  %v1072_v1 = vpop.f32.mrf.mxu0 }
 0x70e   :  { %v3044_v50 = vadd.f32 %v2942_v23, %v2756_v51  ;;  %v1073_v25 = vadd.f32 %v8480_v24, %v1072_v1  ;;  %v1946_v51 = vld [vmem:[#allocation2 + $0x580] sm:$0xff]  ;;  %v1948_v1 = vld [vmem:[#allocation2 + $0x590] sm:$0xff] }
 0x710   :  { %v3332_v10 = vadd.f32 %v3230_v8, %v3044_v50  ;;  %v1304_v57 = vmax.f32 %v1073_v25, 0.0 }
 0x711   :  { %5898 = vmatmul.msk.bf16.gmra.mxu2 %vm338_vm0, %v3094_v40  ;;  %5926 = vmatmul.msk.bf16.gmra.mxu3 %vm338_vm0, %v3381_v54  ;;  %v2807_v40 = vpack.c.bf16 %v1946_v51, %v1928_v30  ;;  %v1950_v30 = vld [vmem:[#allocation2 + $0x5a0] sm:$0xff]  ;;  %v1952_v51 = vld [vmem:[#allocation2 + $0x5b0] sm:$0xff] }
 0x712   :  { %1757 = vst.msk [vmem:[#allocation2 + $0x6a8] sm:$0xff] %vm338_vm0, %v1304_v57  ;;  %v1930_v57 = vld [vmem:[#allocation2 + $0x4f0] sm:$0xff] }
 0x714   :  { %v3233_v18 = vpop.f32.mrf.mxu2  ;;  %v3516_v13 = vpop.f32.mrf.mxu3 }
 0x715   :  { %v8510_v63 = vadd.f32 %v3516_v13, %v3331_v22  ;;  %v2945_v17 = vpop.f32.mrf.mxu1  ;;  %v1074_v47 = vpop.f32.mrf.mxu0  ;;  %v1929_v22 = vld [vmem:[#allocation2 + $0x4e8] sm:$0xff] }
 0x716   :  { %v3045_v11 = vadd.f32 %v2945_v17, %v7486_v2  ;;  %v1075_v55 = vadd.f32 %v8480_v24, %v1074_v47  ;;  %v3095_v37 = vpack.c.bf16 %v1947_v42, %v1929_v22 }
 0x718   :  { %5869 = vmatmul.msk.bf16.gmra.mxu1 %vm338_vm0, %v2806_v56  ;;  %v3333_v58 = vadd.f32 %v3233_v18, %v3045_v11  ;;  %v1305_v35 = vmax.f32 %v1075_v55, 0.0  ;;  %v1949_v56 = vld [vmem:[#allocation2 + $0x598] sm:$0xff] }
 0x71a   :  { %1758 = vst.msk [vmem:[#allocation2 + $0x6b0] sm:$0xff] %vm338_vm0, %v1305_v35  ;;  %v2431_v35 = vadd.f32 %v7689_v33, %v7691_v60 }
 0x71c   :  { %v3235_v36 = vpop.f32.mrf.mxu2  ;;  %v3518_v19 = vpop.f32.mrf.mxu3 }
 0x71d   :  { %v8519_v46 = vadd.f32 %v3518_v19, %v3332_v10  ;;  %v2947_v2 = vpop.f32.mrf.mxu1  ;;  %v1077_v23 = vpop.f32.mrf.mxu0  ;;  %v2426_v10 = vadd.f32 %v7668_v14, %v7670_v45  ;;  %v3383_v19 = vpack.c.bf16 %v1948_v1, %v1930_v57 }
 0x71e   :  { %v3046_v8 = vadd.f32 %v2947_v2, %v2758_v48  ;;  %v1078_v31 = vadd.f32 %v8480_v24, %v1077_v23  ;;  %v2762_v23 = vadd.f32 %v7703_v49, %v2431_v35 }
 0x71f   :  { %v2760_v17 = vadd.f32 %v7673_v27, %v2426_v10  ;;  %v3384_v10 = vpack.c.bf16 %v1952_v51, %v1950_v30 }
 0x720   :  { %v3334_v28 = vadd.f32 %v3235_v36, %v3046_v8  ;;  %v1306_v54 = vmax.f32 %v1078_v31, 0.0  ;;  %v3096_v36 = vpack.c.bf16 %v1951_v39, %v1949_v56  ;;  %v2808_v8 = vpack.c.bf16 %v1950_v30, %v1948_v1  ;;  %v9577_v30 = vld [vmem:[#allocation39_spill] sm:$0xff] }
 0x721   :  { %5899 = vmatmul.msk.bf16.gmra.mxu2 %vm338_vm0, %v3095_v37  ;;  %5927 = vmatmul.msk.bf16.gmra.mxu3 %vm338_vm0, %v3382_v29 }
 0x722   :  { %1759 = vst.msk [vmem:[#allocation2 + $0x6b8] sm:$0xff] %vm338_vm0, %v1306_v54 }
 0x724   :  { %v3238_v53 = vpop.f32.mrf.mxu2  ;;  %v3521_v6 = vpop.f32.mrf.mxu3 }
 0x725   :  { %v8525_v12 = vadd.f32 %v3521_v6, %v3333_v58  ;;  %v2950_v3 = vpop.f32.mrf.mxu1  ;;  %v1079_v11 = vpop.f32.mrf.mxu0  ;;  %v1955_v6 = vld [vmem:[#allocation2 + $0x5c8] sm:$0xff] }
 0x726   :  { %v3047_v50 = vadd.f32 %v2950_v3, %v7516_v41  ;;  %v1080_v58 = vadd.f32 %v8480_v24, %v1079_v11 }
 0x728   :  { %5870 = vmatmul.msk.bf16.gmra.mxu1 %vm338_vm0, %v2807_v40  ;;  %v3335_v5 = vadd.f32 %v3238_v53, %v3047_v50  ;;  %v1307_v42 = vmax.f32 %v1080_v58, 0.0  ;;  %v1953_v50 = vld [vmem:[#allocation2 + $0x5b8] sm:$0xff] }
 0x72a   :  { %1760 = vst.msk [vmem:[#allocation2 + $0x6c0] sm:$0xff] %vm338_vm0, %v1307_v42 }
 0x72c   :  { %v3240_v18 = vpop.f32.mrf.mxu2  ;;  %v3523_v13 = vpop.f32.mrf.mxu3 }
 0x72d   :  { %v8534_v25 = vadd.f32 %v3523_v13, %v3334_v28  ;;  %v2952_v41 = vpop.f32.mrf.mxu1  ;;  %v1082_v47 = vpop.f32.mrf.mxu0  ;;  %v1954_v13 = vld [vmem:[#allocation2 + $0x5c0] sm:$0xff] }
 0x72e   :  { %v3048_v43 = vadd.f32 %v2952_v41, %v2760_v17  ;;  %v1083_v22 = vadd.f32 %v8480_v24, %v1082_v47  ;;  %v2809_v56 = vpack.c.bf16 %v1954_v13, %v1952_v51 }
 0x730   :  { %v3336_v14 = vadd.f32 %v3240_v18, %v3048_v43  ;;  %v1308_v37 = vmax.f32 %v1083_v22, 0.0  ;;  %v9575_v43 = vld [vmem:[#allocation38_spill] sm:$0xff] }
 0x731   :  { %5900 = vmatmul.msk.bf16.gmra.mxu2 %vm338_vm0, %v3096_v36  ;;  %5928 = vmatmul.msk.bf16.gmra.mxu3 %vm338_vm0, %v3383_v19  ;;  %v9576_v36 = vld [vmem:[#allocation37_spill] sm:$0xff] }
 0x732   :  { %1761 = vst.msk [vmem:[#allocation2 + $0x6c8] sm:$0xff] %vm338_vm0, %v1308_v37  ;;  %v2436_v19 = vadd.f32 %v9576_v36, %v9575_v43 }
 0x734   :  { %v3243_v45 = vpop.f32.mrf.mxu2  ;;  %v3526_v27 = vpop.f32.mrf.mxu3  ;;  %v2764_v47 = vadd.f32 %v9577_v30, %v2436_v19 }
 0x735   :  { %v8540_v48 = vadd.f32 %v3526_v27, %v3335_v5  ;;  %v2955_v2 = vpop.f32.mrf.mxu1  ;;  %v1084_v31 = vpop.f32.mrf.mxu0  ;;  %v3097_v5 = vpack.c.bf16 %v1955_v6, %v1953_v50  ;;  %v1956_v27 = vld [vmem:[#allocation2 + $0x5d0] sm:$0xff]  ;;  %v9578_v50 = vld [vmem:[#allocation40_spill] sm:$0xff] }
 0x736   :  { %v3049_v55 = vadd.f32 %v2955_v2, %v7678_v61  ;;  %v1085_v40 = vadd.f32 %v8480_v24, %v1084_v31  ;;  %v3385_v35 = vpack.c.bf16 %v1956_v27, %v1954_v13  ;;  %v1977_v13 = vld [vmem:[#allocation2 + $0x688] sm:$0xff] }
 0x738   :  { %5871 = vmatmul.msk.bf16.gmra.mxu1 %vm338_vm0, %v2808_v8  ;;  %v3337_v29 = vadd.f32 %v3243_v45, %v3049_v55  ;;  %v1309_v18 = vmax.f32 %v1085_v40, 0.0  ;;  %v1959_v45 = vld [vmem:[#allocation2 + $0x5e8] sm:$0xff]  ;;  %v1957_v55 = vld [vmem:[#allocation2 + $0x5d8] sm:$0xff] }
 0x73a   :  { %1762 = vst.msk [vmem:[#allocation2 + $0x6d0] sm:$0xff] %vm338_vm0, %v1309_v18  ;;  %v9580_v18 = vld [vmem:[#allocation41_spill] sm:$0xff] }
 0x73c   :  { %v3245_v28 = vpop.f32.mrf.mxu2  ;;  %v3528_v53 = vpop.f32.mrf.mxu3 }
 0x73d   :  { %v8549_v3 = vadd.f32 %v3528_v53, %v3336_v14  ;;  %v2957_v61 = vpop.f32.mrf.mxu1  ;;  %v1087_v1 = vpop.f32.mrf.mxu0 }
 0x73e   :  { %v3050_v54 = vadd.f32 %v2957_v61, %v2762_v23  ;;  %v1088_v11 = vadd.f32 %v8480_v24, %v1087_v1  ;;  %v1958_v23 = vld [vmem:[#allocation2 + $0x5e0] sm:$0xff]  ;;  %v1979_v1 = vld [vmem:[#allocation2 + $0x698] sm:$0xff] }
 0x73f   :  { %v3099_v43 = vpack.c.bf16 %v1979_v1, %v1977_v13 }
 0x740   :  { %v3338_v33 = vadd.f32 %v3245_v28, %v3050_v54  ;;  %v1310_v57 = vmax.f32 %v1088_v11, 0.0  ;;  %v2810_v54 = vpack.c.bf16 %v1958_v23, %v1956_v27  ;;  %v9581_v11 = vld [vmem:[#allocation43_spill] sm:$0xff]  ;;  %v1978_v27 = vld [vmem:[#allocation2 + $0x690] sm:$0xff] }
 0x741   :  { %5901 = vmatmul.msk.bf16.gmra.mxu2 %vm338_vm0, %v3097_v5  ;;  %5929 = vmatmul.msk.bf16.gmra.mxu3 %vm338_vm0, %v3384_v10  ;;  %v9579_v10 = vld [vmem:[#allocation42_spill] sm:$0xff] }
 0x742   :  { %1763 = vst.msk [vmem:[#allocation2 + $0x6d8] sm:$0xff] %vm338_vm0, %v1310_v57 }
 0x744   :  { %v3248_v60 = vpop.f32.mrf.mxu2  ;;  %v3531_v49 = vpop.f32.mrf.mxu3 }
 0x745   :  { %v8555_v39 = vadd.f32 %v3531_v49, %v3337_v29  ;;  %v2960_v17 = vpop.f32.mrf.mxu1  ;;  %v1089_v22 = vpop.f32.mrf.mxu0  ;;  %v3098_v29 = vpack.c.bf16 %v1959_v45, %v1957_v55  ;;  %v1976_v45 = vld [vmem:[#allocation2 + $0x680] sm:$0xff] }
 0x746   :  { %v3051_v41 = vadd.f32 %v2960_v17, %v7708_v44  ;;  %v1090_v8 = vadd.f32 %v8480_v24, %v1089_v22  ;;  %v1960_v17 = vld [vmem:[#allocation2 + $0x5f0] sm:$0xff]  ;;  %v9582_v55 = vld [vmem:[#allocation44_spill] sm:$0xff] }
 0x747   :  { %v3386_v36 = vpack.c.bf16 %v1960_v17, %v1958_v23 }
 0x748   :  { %5872 = vmatmul.msk.bf16.gmra.mxu1 %vm338_vm0, %v2809_v56  ;;  %v3339_v58 = vadd.f32 %v3248_v60, %v3051_v41  ;;  %v1311_v28 = vmax.f32 %v1090_v8, 0.0 }
 0x74a   :  { %1764 = vst.msk [vmem:[#allocation2 + $0x6e0] sm:$0xff] %vm338_vm0, %v1311_v28  ;;  %v9583_v28 = vld [vmem:[#allocation55_spill] sm:$0xff] }
 0x74c   :  { %v3250_v42 = vpop.f32.mrf.mxu2  ;;  %v3533_v14 = vpop.f32.mrf.mxu3 }
 0x74d   :  { %v8564_v2 = vadd.f32 %v3533_v14, %v3338_v33  ;;  %v2962_v44 = vpop.f32.mrf.mxu1  ;;  %v2441_v33 = vadd.f32 %v9580_v18, %v9579_v10 }
 0x74e   :  { %v3052_v37 = vadd.f32 %v2962_v44, %v2764_v47 }
 0x74f   :  { %v2766_v41 = vadd.f32 %v9581_v11, %v2441_v33  ;;  %v1092_v47 = vpop.f32.mrf.mxu0 }
 0x750   :  { %v3340_v53 = vadd.f32 %v3250_v42, %v3052_v37  ;;  %v1093_v44 = vadd.f32 %v8480_v24, %v1092_v47  ;;  %v2811_v37 = vpack.c.bf16 %v1978_v27, %v1976_v45  ;;  %v9587_v45 = vld [vmem:[#allocation59_spill] sm:$0xff] }
 0x751   :  { %5902 = vmatmul.msk.bf16.gmra.mxu2 %vm338_vm0, %v3098_v29  ;;  %5930 = vmatmul.msk.bf16.gmra.mxu3 %vm338_vm0, %v3385_v35 }
 0x752   :  { %v1312_v29 = vmax.f32 %v1093_v44, 0.0 }
 0x754   :  { %v3253_v6 = vpop.f32.mrf.mxu2  ;;  %v3536_v51 = vpop.f32.mrf.mxu3  ;;  %1765 = vst.msk [vmem:[#allocation2 + $0x6e8] sm:$0xff] %vm338_vm0, %v1312_v29  ;;  %v9589_v29 = vld [vmem:[#allocation60_spill] sm:$0xff] }
 0x755   :  { %v8570_v31 = vadd.f32 %v3536_v51, %v3339_v58  ;;  %v2965_v61 = vpop.f32.mrf.mxu1 }
 0x756   :  { %v3053_v40 = vadd.f32 %v2965_v61, %v9578_v50  ;;  %v1981_v61 = vld [vmem:[#allocation2 + $0x6a8] sm:$0xff]  ;;  %v1983_v50 = vld [vmem:[#allocation2 + $0x6b8] sm:$0xff] }
 0x757   :  { %v1094_v18 = vpop.f32.mrf.mxu0  ;;  %v3100_v13 = vpack.c.bf16 %v1983_v50, %v1981_v61 }
 0x758   :  { %5873 = vmatmul.msk.bf16.gmra.mxu1 %vm338_vm0, %v2810_v54  ;;  %v3341_v5 = vadd.f32 %v3253_v6, %v3053_v40  ;;  %v1980_v40 = vld [vmem:[#allocation2 + $0x6a0] sm:$0xff] }
 0x759   :  { %v9585_v54 = vld [vmem:[#allocation56_spill] sm:$0xff]  ;;  %v3387_v1 = vpack.c.bf16 %v1980_v40, %v1978_v27  ;;  %v9588_v27 = vld [vmem:[#allocation58_spill] sm:$0xff] }
 0x75a   :  { %v2451_v47 = vadd.f32 %v9588_v27, %v9587_v45 }
 0x75c   :  { %v3255_v60 = vpop.f32.mrf.mxu2  ;;  %v3538_v49 = vpop.f32.mrf.mxu3 }
 0x75d   :  { %v8577_v56 = vadd.f32 %v3538_v49, %v3340_v53  ;;  %v2967_v57 = vpop.f32.mrf.mxu1  ;;  %v9584_v53 = vld [vmem:[#allocation54_spill] sm:$0xff] }
 0x75e   :  { %v3054_v58 = vadd.f32 %v2967_v57, %v2766_v41  ;;  %v2446_v6 = vadd.f32 %v9584_v53, %v9583_v28  ;;  %v2770_v28 = vadd.f32 %v9589_v29, %v2451_v47 }
 0x760   :  { %v3342_v19 = vadd.f32 %v3255_v60, %v3054_v58  ;;  %v1095_v60 = vadd.f32 %v8480_v24, %v1094_v18  ;;  %v1982_v58 = vld [vmem:[#allocation2 + $0x6b0] sm:$0xff] }
 0x761   :  { %5903 = vmatmul.msk.bf16.gmra.mxu2 %vm338_vm0, %v3099_v43  ;;  %5931 = vmatmul.msk.bf16.gmra.mxu3 %vm338_vm0, %v3386_v36  ;;  %v2812_v24 = vpack.c.bf16 %v1982_v58, %v1980_v40 }
 0x762   :  { %v1313_v17 = vmax.f32 %v1095_v60, 0.0 }
 0x764   :  { %v3258_v42 = vpop.f32.mrf.mxu2  ;;  %v3541_v14 = vpop.f32.mrf.mxu3  ;;  %1766 = vst.msk [vmem:[#allocation2 + $0x6f0] sm:$0xff] %vm338_vm0, %v1313_v17  ;;  %v9591_v17 = vld [vmem:[#allocation63_spill] sm:$0xff] }
 0x765   :  { %v8581_v30 = vadd.f32 %v3541_v14, %v3341_v5  ;;  %v2970_v22 = vpop.f32.mrf.mxu1  ;;  %v2768_v5 = vadd.f32 %v9585_v54, %v2446_v6  ;;  %v1986_v54 = vld [vmem:[#allocation2 + $0x6d0] sm:$0xff] }
 0x766   :  { %v3055_v8 = vadd.f32 %v2970_v22, %v9582_v55  ;;  %v1985_v55 = vld [vmem:[#allocation2 + $0x6c8] sm:$0xff] }
 0x768   :  { %5874 = vmatmul.msk.bf16.gmra.mxu1 %vm338_vm0, %v2811_v37  ;;  %v3343_v35 = vadd.f32 %v3258_v42, %v3055_v8  ;;  %v1987_v8 = vld [vmem:[#allocation2 + $0x6d8] sm:$0xff]  ;;  %v1984_v37 = vld [vmem:[#allocation2 + $0x6c0] sm:$0xff] }
 0x76c   :  { %v3260_v51 = vpop.f32.mrf.mxu2  ;;  %v3543_v23 = vpop.f32.mrf.mxu3 }
 0x76d   :  { %v8590_v10 = vadd.f32 %v3543_v23, %v3342_v19  ;;  %v2972_v33 = vpop.f32.mrf.mxu1  ;;  %v9586_v19 = vld [vmem:[#allocation57_spill] sm:$0xff]  ;;  %v3388_v23 = vpack.c.bf16 %v1984_v37, %v1982_v58 }
 0x76e   :  { %v3056_v49 = vadd.f32 %v2972_v33, %v2768_v5  ;;  %v9590_v33 = vld [vmem:[#allocation61_spill] sm:$0xff] }
 0x770   :  { %v3344_v11 = vadd.f32 %v3260_v51, %v3056_v49  ;;  %v3101_v51 = vpack.c.bf16 %v1987_v8, %v1985_v55  ;;  %v2813_v49 = vpack.c.bf16 %v1986_v54, %v1984_v37  ;;  %v6143_v55 = vld [vmem:[%s9388_s5 + $0x10] sm:$0xff]  ;;  %v6142_v8 = vld [vmem:[%s9388_s5 + $0x8] sm:$0xff] }
 0x771   :  { %5904 = vmatmul.msk.bf16.gmra.mxu2 %vm338_vm0, %v3100_v13  ;;  %5932 = vmatmul.msk.bf16.gmra.mxu3 %vm338_vm0, %v3387_v1  ;;  %v1989_v1 = vld [vmem:[#allocation2 + $0x6e8] sm:$0xff] }
 0x772   :  { %4968 = vmatpush.bf16.msrb.mxu3 %v6143_v55  ;;  %4802 = vmatpush.bf16.msrb.mxu1 %v6142_v8  ;;  %v9603_v55 = vld [vmem:[#allocation4_spill] sm:$0xff] }
 0x774   :  { %v3263_v41 = vpop.f32.mrf.mxu2  ;;  %v3546_v57 = vpop.f32.mrf.mxu3 }
 0x775   :  { %v8596_v43 = vadd.f32 %v3546_v57, %v3343_v35  ;;  %v2975_v36 = vpop.f32.mrf.mxu1 }
 0x776   :  { %v3057_v42 = vadd.f32 %v2975_v36, %v9586_v19  ;;  %v1988_v36 = vld [vmem:[#allocation2 + $0x6e0] sm:$0xff] }
 0x777   :  { %v9593_v19 = vld [vmem:[#allocation64_spill] sm:$0xff]  ;;  %v3389_v47 = vpack.c.bf16 %v1988_v36, %v1986_v54 }
 0x778   :  { %5875 = vmatmul.msk.bf16.gmra.mxu1 %vm338_vm0, %v2812_v24  ;;  %v3345_v14 = vadd.f32 %v3263_v41, %v3057_v42 }
 0x77c   :  { %v3265_v22 = vpop.f32.mrf.mxu2  ;;  %v3548_v44 = vpop.f32.mrf.mxu3 }
 0x77d   :  { %v8603_v53 = vadd.f32 %v3548_v44, %v3344_v11  ;;  %v2977_v35 = vpop.f32.mrf.mxu1  ;;  %v9592_v11 = vld [vmem:[#allocation62_spill] sm:$0xff] }
 0x77e   :  { %v3058_v6 = vadd.f32 %v2977_v35, %v2770_v28  ;;  %v2456_v41 = vadd.f32 %v9592_v11, %v9591_v17 }
 0x780   :  { %v3346_v61 = vadd.f32 %v3265_v22, %v3058_v6  ;;  %v2772_v42 = vadd.f32 %v9593_v19, %v2456_v41  ;;  %v6141_v22 = vld [vmem:[%s9388_s5] sm:$0xff]  ;;  %v9594_v6 = vld [vmem:[#allocation65_spill] sm:$0xff] }
 0x781   :  { %5905 = vmatmul.msk.bf16.gmra.mxu2 %vm338_vm0, %v3101_v51  ;;  %5933 = vmatmul.msk.bf16.gmra.mxu3 %vm338_vm0, %v3388_v23  ;;  %v2814_v23 = vpack.c.bf16 %v1988_v36, %v1988_v36 }
 0x782   :  { %4881 = vmatpush.bf16.msrb.mxu2 %v6141_v22 }
 0x784   :  { %v3268_v50 = vpop.f32.mrf.mxu2  ;;  %v3551_v40 = vpop.f32.mrf.mxu3 }
 0x785   :  { %v8607_v5 = vadd.f32 %v3551_v40, %v3345_v14  ;;  %v2980_v18 = vpop.f32.mrf.mxu1  ;;  %v3102_v14 = vpack.c.bf16 %v1989_v1, %v1989_v1  ;;  %v9596_v40 = vld [vmem:[#allocation77_spill] sm:$0xff] }
 0x786   :  { %v3059_v60 = vadd.f32 %v2980_v18, %v9590_v33 }
 0x788   :  { %5876 = vmatmul.msk.bf16.gmra.mxu1 %vm338_vm0, %v2813_v49  ;;  %v3347_v13 = vadd.f32 %v3268_v50, %v3059_v60  ;;  %v9595_v50 = vld [vmem:[#allocation78_spill] sm:$0xff]  ;;  %v9597_v49 = vld [vmem:[#allocation79_spill] sm:$0xff] }
 0x789   :  { %v2461_v54 = vadd.f32 %v9596_v40, %v9595_v50  ;;  %v1990_v60 = vld [vmem:[#allocation2 + $0x6f0] sm:$0xff]  ;;  %v9607_v50 = vld [vmem:[#allocation83_spill] sm:$0xff] }
 0x78a   :  { %v3390_v41 = vpack.c.bf16 %v1990_v60, %v1990_v60  ;;  %v9609_v60 = vld [vmem:[#allocation9_spill] sm:$0xff] }
 0x78b   :  { %v2774_v1 = vadd.f32 %v9597_v49, %v2461_v54 }
 0x78c   :  { %v3270_v57 = vpop.f32.mrf.mxu2  ;;  %v3553_v58 = vpop.f32.mrf.mxu3 }
 0x78d   :  { %v8614_v24 = vadd.f32 %v3553_v58, %v3346_v61  ;;  %v2982_v45 = vpop.f32.mrf.mxu1  ;;  %v9599_v58 = vld [vmem:[#allocation5_spill] sm:$0xff] }
 0x78e   :  { %v3060_v27 = vadd.f32 %v2982_v45, %v2772_v42 }
 0x790   :  { %v3348_v44 = vadd.f32 %v3270_v57, %v3060_v27  ;;  %v9598_v57 = vld [vmem:[#allocation7_spill] sm:$0xff] }
 0x791   :  { %5906 = vmatmul.msk.bf16.gmra.mxu2 %vm338_vm0, %v3102_v14  ;;  %5934 = vmatmul.msk.bf16.gmra.mxu3 %vm338_vm0, %v3389_v47  ;;  %v9600_v36 = vpack.c.bf16 %v9598_v57, %v9599_v58  ;;  %v9601_v47 = vld [vmem:[#allocation80_spill] sm:$0xff] }
 0x794   :  { %v3273_v37 = vpop.f32.mrf.mxu2  ;;  %v3556_v29 = vpop.f32.mrf.mxu3 }
 0x795   :  { %v8627_v28 = vadd.f32 %v3556_v29, %v3347_v13  ;;  %v2985_v35 = vpop.f32.mrf.mxu1  ;;  %v9605_v29 = vld [vmem:[#allocation82_spill] sm:$0xff] }
 0x796   :  { %v3061_v51 = vadd.f32 %v2985_v35, %v9594_v6  ;;  %v9606_v35 = vld [vmem:[#allocation81_spill] sm:$0xff] }
 0x797   :  { %v2466_v6 = vadd.f32 %v9606_v35, %v9605_v29 }
 0x798   :  { %5877 = vmatmul.msk.bf16.gmra.mxu1 %vm338_vm0, %v2814_v23  ;;  %v3349_v61 = vadd.f32 %v3273_v37, %v3061_v51 }
 0x799   :  { %v2776_v40 = vadd.f32 %v9607_v50, %v2466_v6 }
 0x79c   :  { %v3275_v18 = vpop.f32.mrf.mxu2  ;;  %v3558_v33 = vpop.f32.mrf.mxu3 }
 0x79d   :  { %v8634_v17 = vadd.f32 %v3558_v33, %v3348_v44  ;;  %v2987_v11 = vpop.f32.mrf.mxu1  ;;  %v9602_v44 = vld [vmem:[#allocation6_spill] sm:$0xff]  ;;  %v9608_v33 = vld [vmem:[#allocation11_spill] sm:$0xff] }
 0x79e   :  { %v3062_v13 = vadd.f32 %v2987_v11, %v2774_v1  ;;  %v9604_v8 = vpack.c.bf16 %v9602_v44, %v9603_v55  ;;  %v9610_v49 = vpack.c.bf16 %v9608_v33, %v9609_v60  ;;  %v9611_v1 = vld [vmem:[#allocation8_spill] sm:$0xff] }
 0x7a0   :  { %v3350_v19 = vadd.f32 %v3275_v18, %v3062_v13 }
 0x7a1   :  { %5935 = vmatmul.msk.bf16.gmra.mxu3 %vm338_vm0, %v3390_v41  ;;  %5969 = vmatmul.msk.bf16.vlgmr.msra.gmra.mxu2 %vm338_vm0, %v9600_v36  ;;  %v9612_v36 = vld [vmem:[#allocation84_spill] sm:$0xff] }
 0x7a4   :  { %v3278_v42 = vpop.f32.mrf.mxu2  ;;  %v3561_v14 = vpop.f32.mrf.mxu3 }
 0x7a5   :  { %v8641_v45 = vadd.f32 %v3561_v14, %v3349_v61  ;;  %v2990_v27 = vpop.f32.mrf.mxu1 }
 0x7a6   :  { %v3063_v22 = vadd.f32 %v2990_v27, %v9601_v47  ;;  %v9614_v27 = vld [vmem:[#allocation86_spill] sm:$0xff]  ;;  %v9615_v47 = vld [vmem:[#allocation85_spill] sm:$0xff] }
 0x7a8   :  { %5940 = vmatmul.msk.bf16.vlgmr.msra.gmra.mxu1 %vm338_vm0, %v9604_v8  ;;  %v3351_v37 = vadd.f32 %v3278_v42, %v3063_v22  ;;  %v2471_v22 = vadd.f32 %v9615_v47, %v9614_v27  ;;  %v9616_v8 = vld [vmem:[#allocation87_spill] sm:$0xff] }
 0x7a9   :  { %v9625_v47 = vld [vmem:[#allocation91_spill] sm:$0xff] }
 0x7aa   :  { %v2778_v29 = vadd.f32 %v9616_v8, %v2471_v22  ;;  %v6165_v8 = vld [vmem:[#allocation2 + $0x168] sm:$0xff] }
 0x7ac   :  { %v3280_v51 = vpop.f32.mrf.mxu2  ;;  %v3563_v23 = vpop.f32.mrf.mxu3 }
 0x7ad   :  { %v8651_v54 = vadd.f32 %v3563_v23, %v3350_v19  ;;  %v2992_v61 = vpop.f32.mrf.mxu1  ;;  %v9613_v19 = vld [vmem:[#allocation10_spill] sm:$0xff]  ;;  %v9618_v23 = vld [vmem:[#allocation13_spill] sm:$0xff] }
 0x7ae   :  { %v3064_v18 = vadd.f32 %v2992_v61, %v2776_v40  ;;  %v9620_v40 = vld [vmem:[#allocation12_spill] sm:$0xff] }
 0x7b0   :  { %v3352_v11 = vadd.f32 %v3280_v51, %v3064_v18 }
 0x7b1   :  { %5970 = vmatmul.msk.bf16.gmra.mxu2 %vm338_vm0, %v9610_v49  ;;  %5998 = vmatmul.msk.bf16.vlgmr.msra.gmra.mxu3 %vm338_vm0, %v9611_v1  ;;  %v9621_v1 = vld [vmem:[#allocation88_spill] sm:$0xff] }
 0x7b4   :  { %v3283_v13 = vpop.f32.mrf.mxu2  ;;  %v3566_v41 = vpop.f32.mrf.mxu3 }
 0x7b5   :  { %v8659_v57 = vadd.f32 %v3566_v41, %v3351_v37  ;;  %v2995_v58 = vpop.f32.mrf.mxu1  ;;  %v9617_v37 = vld [vmem:[#allocation15_spill] sm:$0xff] }
 0x7b6   :  { %v3065_v42 = vadd.f32 %v2995_v58, %v9612_v36  ;;  %v9619_v50 = vpack.c.bf16 %v9617_v37, %v9618_v23  ;;  %v9623_v58 = vld [vmem:[#allocation90_spill] sm:$0xff]  ;;  %v9624_v36 = vld [vmem:[#allocation89_spill] sm:$0xff] }
 0x7b8   :  { %5941 = vmatmul.msk.bf16.gmra.mxu1 %vm338_vm0, %v9613_v19  ;;  %v3353_v14 = vadd.f32 %v3283_v13, %v3065_v42  ;;  %v2476_v42 = vadd.f32 %v9624_v36, %v9623_v58  ;;  %v9628_v58 = vld [vmem:[#allocation107_spill] sm:$0xff]  ;;  %v9629_v36 = vld [vmem:[#allocation106_spill] sm:$0xff] }
 0x7ba   :  { %v2780_v22 = vadd.f32 %v9625_v47, %v2476_v42  ;;  %v2481_v42 = vadd.f32 %v9629_v36, %v9628_v58  ;;  %v9635_v58 = vld [vmem:[#allocation18_spill] sm:$0xff] }
 0x7bc   :  { %v3285_v44 = vpop.f32.mrf.mxu2  ;;  %v3568_v55 = vpop.f32.mrf.mxu3 }
 0x7bd   :  { %v8667_v35 = vadd.f32 %v3568_v55, %v3352_v11  ;;  %v2997_v6 = vpop.f32.mrf.mxu1  ;;  %v9622_v11 = vld [vmem:[#allocation14_spill] sm:$0xff] }
 0x7be   :  { %v3066_v51 = vadd.f32 %v2997_v6, %v2778_v29 }
 0x7c0   :  { %v3354_v61 = vadd.f32 %v3285_v44, %v3066_v51  ;;  %v9626_v51 = vld [vmem:[#allocation16_spill] sm:$0xff] }
 0x7c1   :  { %5971 = vmatmul.msk.bf16.gmra.mxu2 %vm338_vm0, %v9619_v50  ;;  %5999 = vmatmul.msk.bf16.gmra.mxu3 %vm338_vm0, %v9620_v40 }
 0x7c4   :  { %v3288_v18 = vpop.f32.mrf.mxu2  ;;  %v3571_v33 = vpop.f32.mrf.mxu3 }
 0x7c5   :  { %v8675_v60 = vadd.f32 %v3571_v33, %v3353_v14  ;;  %v3000_v49 = vpop.f32.mrf.mxu1  ;;  %v6166_v14 = vld [vmem:[#allocation2 + $0x208] sm:$0xff]  ;;  %v6167_v33 = vld [vmem:[#allocation2 + $0x160] sm:$0xff] }
 0x7c6   :  { %v3067_v13 = vadd.f32 %v3000_v49, %v9621_v1  ;;  %v3885_v29 = vpack.c.bf16 %v6166_v14, %v6165_v8  ;;  %v6168_v49 = vld [vmem:[#allocation2 + $0x200] sm:$0xff]  ;;  %v6169_v14 = vld [vmem:[#allocation2 + $0x170] sm:$0xff] }
 0x7c7   :  { %v9627_v1 = vld [vmem:[#allocation92_spill] sm:$0xff] }
 0x7c8   :  { %5942 = vmatmul.msk.bf16.gmra.mxu1 %vm338_vm0, %v9622_v11  ;;  %v3355_v41 = vadd.f32 %v3288_v18, %v3067_v13 }
 0x7cc   :  { %v3290_v19 = vpop.f32.mrf.mxu2  ;;  %v3573_v27 = vpop.f32.mrf.mxu3 }
 0x7cd   :  { %v8683_v55 = vadd.f32 %v3573_v27, %v3354_v61  ;;  %v3002_v44 = vpop.f32.mrf.mxu1  ;;  %v3655_v61 = vpack.c.bf16 %v6168_v49, %v6167_v33 }
 0x7ce   :  { %v3068_v6 = vadd.f32 %v3002_v44, %v2780_v22  ;;  %v9630_v22 = vld [vmem:[#allocation108_spill] sm:$0xff] }
 0x7d0   :  { %v3356_v37 = vadd.f32 %v3290_v19, %v3068_v6  ;;  %v2782_v19 = vadd.f32 %v9630_v22, %v2481_v42  ;;  %v9636_v42 = vld [vmem:[#allocation111_spill] sm:$0xff] }
 0x7d1   :  { %5972 = vmatmul.msk.bf16.gmra.mxu2 %vm338_vm0, %v3885_v29  ;;  %6000 = vmatmul.msk.bf16.gmra.mxu3 %vm338_vm0, %v9626_v51  ;;  %v6170_v29 = vld [vmem:[#allocation2 + $0x210] sm:$0xff]  ;;  %v9631_v51 = vld [vmem:[#allocation19_spill] sm:$0xff] }
 0x7d2   :  { %v4170_v6 = vpack.c.bf16 %v6170_v29, %v6169_v14  ;;  %v9638_v14 = vld [vmem:[#allocation112_spill] sm:$0xff] }
 0x7d4   :  { %v3293_v23 = vpop.f32.mrf.mxu2  ;;  %v3576_v50 = vpop.f32.mrf.mxu3 }
 0x7d5   :  { %v8688_v40 = vadd.f32 %v3576_v50, %v3355_v41  ;;  %v3005_v18 = vpop.f32.mrf.mxu1  ;;  %v9632_v50 = vld [vmem:[#allocation17_spill] sm:$0xff] }
 0x7d6   :  { %v3069_v13 = vadd.f32 %v3005_v18, %v9627_v1  ;;  %v9633_v18 = vpack.c.bf16 %v9631_v51, %v9632_v50  ;;  %v9640_v51 = vld [vmem:[#allocation21_spill] sm:$0xff] }
 0x7d8   :  { %5943 = vmatmul.msk.bf16.gmra.mxu1 %vm338_vm0, %v3655_v61  ;;  %v3357_v11 = vadd.f32 %v3293_v23, %v3069_v13 }
 0x7dc   :  { %v3295_v27 = vpop.f32.mrf.mxu2  ;;  %v3578_v47 = vpop.f32.mrf.mxu3 }
 0x7dd   :  { %v8695_v44 = vadd.f32 %v3578_v47, %v3356_v37  ;;  %v3007_v41 = vpop.f32.mrf.mxu1  ;;  %v9634_v37 = vld [vmem:[#allocation109_spill] sm:$0xff]  ;;  %v9637_v47 = vld [vmem:[#allocation110_spill] sm:$0xff] }
 0x7de   :  { %v3070_v8 = vadd.f32 %v3007_v41, %v2782_v19  ;;  %v2486_v22 = vadd.f32 %v9637_v47, %v9636_v42 }
 0x7e0   :  { %v3358_v23 = vadd.f32 %v3295_v27, %v3070_v8  ;;  %v2784_v29 = vadd.f32 %v9638_v14, %v2486_v22  ;;  %v9645_v22 = vld [vmem:[#allocation115_spill] sm:$0xff] }
 0x7e1   :  { %5973 = vmatmul.msk.bf16.gmra.mxu2 %vm338_vm0, %v9633_v18  ;;  %6001 = vmatmul.msk.bf16.gmra.mxu3 %vm338_vm0, %v4170_v6  ;;  %v9642_v18 = vld [vmem:[#allocation20_spill] sm:$0xff] }
 0x7e4   :  { %v3298_v33 = vpop.f32.mrf.mxu2  ;;  %v3581_v49 = vpop.f32.mrf.mxu3 }
 0x7e5   :  { %v8702_v61 = vadd.f32 %v3581_v49, %v3357_v11  ;;  %v3010_v1 = vpop.f32.mrf.mxu1  ;;  %v9639_v11 = vld [vmem:[#allocation23_spill] sm:$0xff] }
 0x7e6   :  { %v3071_v13 = vadd.f32 %v3010_v1, %v9634_v37  ;;  %v9641_v50 = vpack.c.bf16 %v9639_v11, %v9640_v51  ;;  %v9647_v11 = vld [vmem:[#allocation116_spill] sm:$0xff] }
 0x7e8   :  { %5944 = vmatmul.msk.bf16.gmra.mxu1 %vm338_vm0, %v9635_v58  ;;  %v3359_v36 = vadd.f32 %v3298_v33, %v3071_v13  ;;  %v9643_v58 = vld [vmem:[#allocation113_spill] sm:$0xff] }
 0x7ec   :  { %v3300_v19 = vpop.f32.mrf.mxu2  ;;  %v3583_v41 = vpop.f32.mrf.mxu3 }
 0x7ed   :  { %v8710_v6 = vadd.f32 %v3583_v41, %v3358_v23  ;;  %v3012_v27 = vpop.f32.mrf.mxu1  ;;  %v9644_v23 = vld [vmem:[#allocation22_spill] sm:$0xff] }
 0x7ee   :  { %v3072_v8 = vadd.f32 %v3012_v27, %v2784_v29  ;;  %v9646_v41 = vld [vmem:[#allocation114_spill] sm:$0xff] }
 0x7ef   :  { %v2491_v14 = vadd.f32 %v9646_v41, %v9645_v22  ;;  %v215_v22 = vld [vmem:[%s9385_s0 + $0x5b8] sm:$0xff] }
 0x7f0   :  { %v3360_v33 = vadd.f32 %v3300_v19, %v3072_v8  ;;  %v6171_v8 = vld [vmem:[#allocation2 + $0x258] sm:$0xff] }
 0x7f1   :  { %5974 = vmatmul.msk.bf16.gmra.mxu2 %vm338_vm0, %v9641_v50  ;;  %6002 = vmatmul.msk.bf16.gmra.mxu3 %vm338_vm0, %v9642_v18  ;;  %v2786_v51 = vadd.f32 %v9647_v11, %v2491_v14 }
 0x7f4   :  { %v3303_v49 = vpop.f32.mrf.mxu2  ;;  %v3586_v1 = vpop.f32.mrf.mxu3 }
 0x7f5   :  { %v8718_v37 = vadd.f32 %v3586_v1, %v3359_v36  ;;  %v3015_v13 = vpop.f32.mrf.mxu1  ;;  %v6172_v36 = vld [vmem:[#allocation2 + $0x268] sm:$0xff] }
 0x7f6   :  { %v3073_v42 = vadd.f32 %v3015_v13, %v9643_v58  ;;  %v3888_v18 = vpack.c.bf16 %v6172_v36, %v6171_v8  ;;  %v9648_v13 = vld [vmem:[#allocation24_spill] sm:$0xff] }
 0x7f8   :  { %5945 = vmatmul.msk.bf16.gmra.mxu1 %vm338_vm0, %v9644_v23  ;;  %v3361_v47 = vadd.f32 %v3303_v49, %v3073_v42 }
 0x7fc   :  { %v3305_v29 = vpop.f32.mrf.mxu2  ;;  %v3588_v27 = vpop.f32.mrf.mxu3 }
 0x7fd   :  { %v8726_v50 = vadd.f32 %v3588_v27, %v3360_v33  ;;  %v3017_v19 = vpop.f32.mrf.mxu1  ;;  %v214_v33 = vld [vmem:[%s9385_s0 + $0x5b0] sm:$0xff]  ;;  %v9650_v27 = vld [vmem:[#allocation117_spill] sm:$0xff] }
 0x7fe   :  { %v3074_v1 = vadd.f32 %v3017_v19, %v2786_v51  ;;  %v319_v14 = vpack.c.bf16 %v215_v22, %v214_v33  ;;  %v9651_v51 = vld [vmem:[#allocation25_spill] sm:$0xff]  ;;  %v9654_v33 = vld [vmem:[#allocation26_spill] sm:$0xff] }
 0x800   :  { %v3362_v49 = vadd.f32 %v3305_v29, %v3074_v1  ;;  %5755 = vmatmul.msk.bf16.gmra.mxu0 %vm338_vm0, %v319_v14  ;;  %v6174_v1 = vld [vmem:[#allocation2 + $0x270] sm:$0xff] }
 0x801   :  { %5975 = vmatmul.msk.bf16.gmra.mxu2 %vm338_vm0, %v3888_v18  ;;  %6003 = vmatmul.msk.bf16.gmra.mxu3 %vm338_vm0, %v9648_v13  ;;  %v6173_v18 = vld [vmem:[#allocation2 + $0x260] sm:$0xff] }
 0x802   :  { %v4171_v13 = vpack.c.bf16 %v6174_v1, %v6173_v18 }
 0x804   :  { %v3308_v58 = vpop.f32.mrf.mxu2  ;;  %v3591_v42 = vpop.f32.mrf.mxu3 }
 0x805   :  { %v8731_v23 = vadd.f32 %v3591_v42, %v3361_v47  ;;  %v3020_v41 = vpop.f32.mrf.mxu1 }
 0x806   :  { %v3075_v11 = vadd.f32 %v3020_v41, %v9650_v27 }
 0x807   :  { %9649 = vst [vmem:[#allocation38_spill] sm:$0xff] %v8731_v23  ;;  %v9653_v23 = vld [vmem:[#allocation27_spill] sm:$0xff] }
 0x808   :  { %5946 = vmatmul.msk.bf16.gmra.mxu1 %vm338_vm0, %v9651_v51  ;;  %v3363_v29 = vadd.f32 %v3308_v58, %v3075_v11  ;;  %v9655_v22 = vpack.c.bf16 %v9653_v23, %v9654_v33  ;;  %v9656_v11 = vld [vmem:[#allocation118_spill] sm:$0xff]  ;;  %v216_v23 = vld [vmem:[%s9385_s0 + $0x5c0] sm:$0xff]  ;;  %v9658_v33 = vld [vmem:[#allocation29_spill] sm:$0xff] }
 0x80c   :  { %v3310_v47 = vpop.f32.mrf.mxu2  ;;  %v3593_v19 = vpop.f32.mrf.mxu3 }
 0x80d   :  { %v8743_v8 = vadd.f32 %v3593_v19, %v3362_v49  ;;  %v3022_v36 = vpop.f32.mrf.mxu1  ;;  %v6175_v19 = vld [vmem:[#allocation2 + $0x300] sm:$0xff] }
 0x80e   :  { %v3076_v42 = vadd.f32 %v3022_v36, %v8372_v20 }
 0x80f   :  { %9652 = vst [vmem:[#allocation37_spill] sm:$0xff] %v8743_v8  ;;  %v6176_v8 = vld [vmem:[#allocation2 + $0x310] sm:$0xff] }
 0x810   :  { %v3364_v41 = vadd.f32 %v3310_v47, %v3076_v42  ;;  %v3656_v18 = vpack.c.bf16 %v6176_v8, %v6175_v19  ;;  %v217_v47 = vld [vmem:[%s9385_s0 + $0x5c8] sm:$0xff]  ;;  %v9657_v8 = vld [vmem:[#allocation31_spill] sm:$0xff]  ;;  %v9661_v19 = vld [vmem:[#allocation30_spill] sm:$0xff] }
 0x811   :  { %5976 = vmatmul.msk.bf16.gmra.mxu2 %vm338_vm0, %v9655_v22  ;;  %6004 = vmatmul.msk.bf16.gmra.mxu3 %vm338_vm0, %v4171_v13  ;;  %v320_v1 = vpack.c.bf16 %v217_v47, %v216_v23  ;;  %v9659_v22 = vpack.c.bf16 %v9657_v8, %v9658_v33  ;;  %v9665_v33 = vld [vmem:[#allocation32_spill] sm:$0xff] }
 0x813   :  { %5756 = vmatmul.msk.bf16.gmra.mxu0 %vm338_vm0, %v320_v1  ;;  %v9662_v1 = vld [vmem:[#allocation35_spill] sm:$0xff] }
 0x814   :  { %v3313_v14 = vpop.f32.mrf.mxu2  ;;  %v3596_v58 = vpop.f32.mrf.mxu3 }
 0x815   :  { %v8751_v27 = vadd.f32 %v3596_v58, %v3363_v29  ;;  %v3025_v49 = vpop.f32.mrf.mxu1 }
 0x816   :  { %v3077_v51 = vadd.f32 %v3025_v49, %v9656_v11 }
 0x818   :  { %5947 = vmatmul.msk.bf16.gmra.mxu1 %vm338_vm0, %v3656_v18  ;;  %v3365_v20 = vadd.f32 %v3313_v14, %v3077_v51  ;;  %v9660_v14 = vld [vmem:[#allocation28_spill] sm:$0xff]  ;;  %v219_v18 = vld [vmem:[%s9385_s0 + $0x5d8] sm:$0xff] }
 0x81c   :  { %v3315_v36 = vpop.f32.mrf.mxu2  ;;  %v3598_v29 = vpop.f32.mrf.mxu3 }
 0x81d   :  { %v8761_v13 = vadd.f32 %v3598_v29, %v3364_v41  ;;  %v3027_v42 = vpop.f32.mrf.mxu1  ;;  %v218_v41 = vld [vmem:[%s9385_s0 + $0x5d0] sm:$0xff] }
 0x81e   :  { %v321_v36 = vpack.c.bf16 %v219_v18, %v218_v41  ;;  %v9663_v42 = vld [vmem:[#allocation33_spill] sm:$0xff] }
 0x81f   :  { %v9664_v8 = vpack.c.bf16 %v9662_v1, %v9663_v42  ;;  %v221_v1 = vld [vmem:[%s9385_s0 + $0x5e8] sm:$0xff] }
 0x821   :  { %5977 = vmatmul.msk.bf16.gmra.mxu2 %vm338_vm0, %v9659_v22  ;;  %6005 = vmatmul.msk.bf16.gmra.mxu3 %vm338_vm0, %v9660_v14  ;;  %v8791_v14 = vld [vmem:[%s9389_s4] ss:$0 sm:$0xff] }
 0x823   :  { %5757 = vmatmul.msk.bf16.gmra.mxu0 %vm338_vm0, %v321_v36  ;;  %v9666_v36 = vld [vmem:[#allocation34_spill] sm:$0xff] }
 0x824   :  { %v3601_v58 = vpop.f32.mrf.mxu3  ;;  %v3997_v49 = vpop.f32.mrf.mxu2 }
 0x825   :  { %v8770_v11 = vadd.f32 %v3601_v58, %v3365_v20  ;;  %v3709_v51 = vpop.f32.mrf.mxu1 }
 0x826   :  { %v3833_v20 = vadd.f32 %v3709_v51, %v8392_v62 }
 0x828   :  { %5948 = vmatmul.msk.bf16.gmra.mxu1 %vm338_vm0, %v9661_v19  ;;  %v4121_v22 = vadd.f32 %v3997_v49, %v3833_v20  ;;  %v220_v20 = vld [vmem:[%s9385_s0 + $0x5e0] sm:$0xff] }
 0x82c   :  { %v3603_v23 = vpop.f32.mrf.mxu3  ;;  %v3999_v47 = vpop.f32.mrf.mxu2 }
 0x82d   :  { %v3711_v29 = vpop.f32.mrf.mxu1 }
 0x82e   :  { %v3834_v62 = vadd.f32 %v3711_v29, %v8406_v15  ;;  %v322_v15 = vpack.c.bf16 %v221_v1, %v220_v20 }
 0x830   :  { %v4122_v49 = vadd.f32 %v3999_v47, %v3834_v62  ;;  %v6177_v47 = vld [vmem:[#allocation2 + $0x368] sm:$0xff] }
 0x831   :  { %5978 = vmatmul.msk.bf16.gmra.mxu2 %vm338_vm0, %v9664_v8  ;;  %6006 = vmatmul.msk.bf16.gmra.mxu3 %vm338_vm0, %v9665_v33 }
 0x833   :  { %5758 = vmatmul.msk.bf16.gmra.mxu0 %vm338_vm0, %v322_v15  ;;  %v6179_v15 = vld [vmem:[#allocation2 + $0x360] sm:$0xff] }
 0x834   :  { %v4002_v58 = vpop.f32.mrf.mxu2  ;;  %v4225_v19 = vpop.f32.mrf.mxu3 }
 0x835   :  { %v4349_v41 = vadd.f32 %v4225_v19, %v4121_v22  ;;  %v3714_v18 = vpop.f32.mrf.mxu1 }
 0x836   :  { %v3835_v22 = vadd.f32 %v3714_v18, %v8410_v16 }
 0x837   :  { %v4402_v51 = vadd.f32 %v8791_v14, %v4349_v41  ;;  %v6178_v41 = vld [vmem:[#allocation2 + $0x408] sm:$0xff] }
 0x838   :  { %5949 = vmatmul.msk.bf16.gmra.mxu1 %vm338_vm0, %v9666_v36  ;;  %v3892_v62 = vpack.c.bf16 %v6178_v41, %v6177_v47  ;;  %v4123_v36 = vadd.f32 %v4002_v58, %v3835_v22  ;;  %v222_v58 = vld [vmem:[%s9385_s0 + $0x5f0] sm:$0xff]  ;;  %v223_v22 = vld [vmem:[%s9385_s0 + $0x5f8] sm:$0xff] }
 0x839   :  { %v4451_v23 = vmax.f32 %v4402_v51, 0.0 }
 0x83b   :  { %4601 = vst.msk [vmem:[#allocation3 + $0x58] sm:$0xff] %vm338_vm0, %v4451_v23  ;;  %v9667_v23 = vld [vmem:[#allocation36_spill] sm:$0xff] }
 0x83c   :  { %v4004_v42 = vpop.f32.mrf.mxu2  ;;  %v4227_v8 = vpop.f32.mrf.mxu3 }
 0x83d   :  { %v4350_v29 = vadd.f32 %v4227_v8, %v4122_v49  ;;  %v3716_v33 = vpop.f32.mrf.mxu1 }
 0x83e   :  { %v3836_v16 = vadd.f32 %v3716_v33, %v8424_v26 }
 0x83f   :  { %v4403_v19 = vadd.f32 %v8791_v14, %v4350_v29  ;;  %v6180_v29 = vld [vmem:[#allocation2 + $0x400] sm:$0xff] }
 0x840   :  { %v3657_v47 = vpack.c.bf16 %v6180_v29, %v6179_v15  ;;  %v4124_v41 = vadd.f32 %v4004_v42, %v3836_v16  ;;  %v6181_v42 = vld [vmem:[#allocation2 + $0x370] sm:$0xff]  ;;  %v9668_v15 = vld [vmem:[#allocation47_spill] sm:$0xff]  ;;  %v9669_v29 = vld [vmem:[#allocation45_spill] sm:$0xff] }
 0x841   :  { %v4452_v51 = vmax.f32 %v4403_v19, 0.0  ;;  %5979 = vmatmul.msk.bf16.gmra.mxu2 %vm338_vm0, %v3892_v62  ;;  %6007 = vmatmul.msk.bf16.gmra.mxu3 %vm338_vm0, %v9667_v23  ;;  %v323_v62 = vpack.c.bf16 %v223_v22, %v222_v58 }
 0x843   :  { %4602 = vst.msk [vmem:[#allocation3 + $0x60] sm:$0xff] %vm338_vm0, %v4452_v51  ;;  %5759 = vmatmul.msk.bf16.gmra.mxu0 %vm338_vm0, %v323_v62 }
 0x844   :  { %v4007_v49 = vpop.f32.mrf.mxu2  ;;  %v4230_v20 = vpop.f32.mrf.mxu3 }
 0x845   :  { %v4351_v1 = vadd.f32 %v4230_v20, %v4123_v36  ;;  %v3719_v8 = vpop.f32.mrf.mxu1 }
 0x846   :  { %v3837_v36 = vadd.f32 %v3719_v8, %v8428_v7 }
 0x847   :  { %v4404_v18 = vadd.f32 %v8791_v14, %v4351_v1  ;;  %v6182_v1 = vld [vmem:[#allocation2 + $0x410] sm:$0xff] }
 0x848   :  { %5950 = vmatmul.msk.bf16.gmra.mxu1 %vm338_vm0, %v3657_v47  ;;  %v4172_v16 = vpack.c.bf16 %v6182_v1, %v6181_v42  ;;  %v9670_v47 = vpack.c.bf16 %v9668_v15, %v9669_v29  ;;  %v224_v42 = vld [vmem:[%s9385_s0 + $0x600] sm:$0xff]  ;;  %v9672_v29 = vld [vmem:[#allocation51_spill] sm:$0xff] }
 0x849   :  { %v4453_v19 = vmax.f32 %v4404_v18, 0.0 }
 0x84b   :  { %4603 = vst.msk [vmem:[#allocation3 + $0x68] sm:$0xff] %vm338_vm0, %v4453_v19  ;;  %v4125_v19 = vadd.f32 %v4007_v49, %v3837_v36  ;;  %v225_v49 = vld [vmem:[%s9385_s0 + $0x608] sm:$0xff] }
 0x84c   :  { %v4009_v26 = vpop.f32.mrf.mxu2  ;;  %v4232_v33 = vpop.f32.mrf.mxu3 }
 0x84d   :  { %v4352_v51 = vadd.f32 %v4232_v33, %v4124_v41  ;;  %v3721_v23 = vpop.f32.mrf.mxu1 }
 0x84e   :  { %v3838_v8 = vadd.f32 %v3721_v23, %v8442_v4  ;;  %v324_v4 = vpack.c.bf16 %v225_v49, %v224_v42  ;;  %v9676_v42 = vld [vmem:[#allocation50_spill] sm:$0xff] }
 0x84f   :  { %v4405_v20 = vadd.f32 %v8791_v14, %v4352_v51  ;;  %v9671_v51 = vld [vmem:[#allocation46_spill] sm:$0xff] }
 0x851   :  { %v4454_v18 = vmax.f32 %v4405_v20, 0.0  ;;  %5980 = vmatmul.msk.bf16.gmra.mxu2 %vm338_vm0, %v9670_v47  ;;  %6008 = vmatmul.msk.bf16.gmra.mxu3 %vm338_vm0, %v4172_v16  ;;  %v4126_v20 = vadd.f32 %v4009_v26, %v3838_v8  ;;  %v9673_v47 = vld [vmem:[#allocation49_spill] sm:$0xff] }
 0x853   :  { %4604 = vst.msk [vmem:[#allocation3 + $0x70] sm:$0xff] %vm338_vm0, %v4454_v18  ;;  %5760 = vmatmul.msk.bf16.gmra.mxu0 %vm338_vm0, %v324_v4 }
 0x854   :  { %v4012_v41 = vpop.f32.mrf.mxu2  ;;  %v4235_v58 = vpop.f32.mrf.mxu3 }
 0x855   :  { %v4353_v22 = vadd.f32 %v4235_v58, %v4125_v19  ;;  %v3724_v7 = vpop.f32.mrf.mxu1  ;;  %v9674_v19 = vpack.c.bf16 %v9672_v29, %v9673_v47  ;;  %v9675_v58 = vld [vmem:[#allocation48_spill] sm:$0xff]  ;;  %v6184_v29 = vld [vmem:[#allocation2 + $0x468] sm:$0xff] }
 0x856   :  { %v3839_v18 = vadd.f32 %v3724_v7, %v8446_v59  ;;  %v9677_v47 = vld [vmem:[#allocation52_spill] sm:$0xff] }
 0x857   :  { %v4406_v33 = vadd.f32 %v8791_v14, %v4353_v22 }
 0x858   :  { %5951 = vmatmul.msk.bf16.gmra.mxu1 %vm338_vm0, %v9671_v51  ;;  %v4127_v22 = vadd.f32 %v4012_v41, %v3839_v18 }
 0x859   :  { %v4455_v62 = vmax.f32 %v4406_v33, 0.0 }
 0x85b   :  { %4605 = vst.msk [vmem:[#allocation3 + $0x78] sm:$0xff] %vm338_vm0, %v4455_v62 }
 0x85c   :  { %v4014_v36 = vpop.f32.mrf.mxu2  ;;  %v4237_v1 = vpop.f32.mrf.mxu3 }
 0x85d   :  { %v4354_v23 = vadd.f32 %v4237_v1, %v4126_v20  ;;  %v3726_v16 = vpop.f32.mrf.mxu1 }
 0x85e   :  { %v3840_v59 = vadd.f32 %v3726_v16, %v8453_v0 }
 0x85f   :  { %v4407_v15 = vadd.f32 %v8791_v14, %v4354_v23 }
 0x860   :  { %v4128_v49 = vadd.f32 %v4014_v36, %v3840_v59  ;;  %v9678_v59 = vld [vmem:[#allocation53_spill] sm:$0xff] }
 0x861   :  { %v4456_v26 = vmax.f32 %v4407_v15, 0.0  ;;  %5981 = vmatmul.msk.bf16.gmra.mxu2 %vm338_vm0, %v9674_v19  ;;  %6009 = vmatmul.msk.bf16.gmra.mxu3 %vm338_vm0, %v9675_v58 }
 0x863   :  { %4606 = vst.msk [vmem:[#allocation3 + $0x80] sm:$0xff] %vm338_vm0, %v4456_v26  ;;  %v6183_v26 = vld [vmem:[#allocation2 + $0x458] sm:$0xff] }
 0x864   :  { %v4017_v8 = vpop.f32.mrf.mxu2  ;;  %v4240_v33 = vpop.f32.mrf.mxu3  ;;  %v3895_v0 = vpack.c.bf16 %v6184_v29, %v6183_v26 }
 0x865   :  { %v4355_v62 = vadd.f32 %v4240_v33, %v4127_v22  ;;  %v3729_v51 = vpop.f32.mrf.mxu1 }
 0x866   :  { %v3841_v41 = vadd.f32 %v3729_v51, %v8457_v38 }
 0x867   :  { %v4408_v7 = vadd.f32 %v8791_v14, %v4355_v62 }
 0x868   :  { %5952 = vmatmul.msk.bf16.gmra.mxu1 %vm338_vm0, %v9676_v42  ;;  %v4129_v36 = vadd.f32 %v4017_v8, %v3841_v41  ;;  %v227_v8 = vld [vmem:[%s9385_s0 + $0x618] sm:$0xff] }
 0x869   :  { %v4457_v20 = vmax.f32 %v4408_v7, 0.0 }
 0x86b   :  { %4607 = vst.msk [vmem:[#allocation3 + $0x88] sm:$0xff] %vm338_vm0, %v4457_v20  ;;  %v226_v20 = vld [vmem:[%s9385_s0 + $0x610] sm:$0xff] }
 0x86c   :  { %v4019_v1 = vpop.f32.mrf.mxu2  ;;  %v4242_v4 = vpop.f32.mrf.mxu3 }
 0x86d   :  { %v4356_v23 = vadd.f32 %v4242_v4, %v4128_v49  ;;  %v3731_v15 = vpop.f32.mrf.mxu1 }
 0x86e   :  { %v3842_v38 = vadd.f32 %v3731_v15, %v8471_v21  ;;  %v325_v21 = vpack.c.bf16 %v227_v8, %v226_v20  ;;  %v6188_v20 = vld [vmem:[#allocation2 + $0x500] sm:$0xff]  ;;  %v6189_v8 = vld [vmem:[#allocation2 + $0x510] sm:$0xff] }
 0x86f   :  { %v4409_v18 = vadd.f32 %v8791_v14, %v4356_v23 }
 0x870   :  { %v4130_v7 = vadd.f32 %v4019_v1, %v3842_v38  ;;  %5761 = vmatmul.msk.bf16.gmra.mxu0 %vm338_vm0, %v325_v21  ;;  %v6185_v1 = vld [vmem:[#allocation2 + $0x460] sm:$0xff] }
 0x871   :  { %v4458_v16 = vmax.f32 %v4409_v18, 0.0  ;;  %5982 = vmatmul.msk.bf16.gmra.mxu2 %vm338_vm0, %v3895_v0  ;;  %6010 = vmatmul.msk.bf16.gmra.mxu3 %vm338_vm0, %v9677_v47  ;;  %v6186_v18 = vld [vmem:[#allocation2 + $0x470] sm:$0xff]  ;;  %v9679_v0 = vld [vmem:[#allocation67_spill] sm:$0xff] }
 0x872   :  { %v4173_v26 = vpack.c.bf16 %v6186_v18, %v6185_v1 }
 0x873   :  { %4608 = vst.msk [vmem:[#allocation3 + $0xa8] sm:$0xff] %vm338_vm0, %v4458_v16  ;;  %v9680_v16 = vld [vmem:[#allocation66_spill] sm:$0xff] }
 0x874   :  { %v4022_v19 = vpop.f32.mrf.mxu2  ;;  %v4245_v58 = vpop.f32.mrf.mxu3  ;;  %v9681_v47 = vpack.c.bf16 %v9679_v0, %v9680_v16 }
 0x875   :  { %v4357_v22 = vadd.f32 %v4245_v58, %v4129_v36  ;;  %v3734_v33 = vpop.f32.mrf.mxu1 }
 0x876   :  { %v3843_v15 = vadd.f32 %v3734_v33, %v8475_v34 }
 0x877   :  { %v4410_v62 = vadd.f32 %v8791_v14, %v4357_v22 }
 0x878   :  { %5953 = vmatmul.msk.bf16.gmra.mxu1 %vm338_vm0, %v9678_v59  ;;  %v4131_v36 = vadd.f32 %v4022_v19, %v3843_v15 }
 0x879   :  { %v4459_v51 = vmax.f32 %v4410_v62, 0.0  ;;  %v8885_v62 = vld [vmem:[%s9386_s2] ss:$0 sm:$0xff] }
 0x87b   :  { %4609 = vst.msk [vmem:[#allocation3 + $0xb0] sm:$0xff] %vm338_vm0, %v4459_v51 }
 0x87c   :  { %v4024_v42 = vpop.f32.mrf.mxu2  ;;  %v4247_v49 = vpop.f32.mrf.mxu3 }
 0x87d   :  { %v4358_v4 = vadd.f32 %v4247_v49, %v4130_v7  ;;  %v3736_v23 = vpop.f32.mrf.mxu1  ;;  %v1097_v34 = vpop.f32.mrf.mxu0  ;;  %v3658_v49 = vpack.c.bf16 %v6189_v8, %v6188_v20  ;;  %v9686_v8 = vld [vmem:[#allocation70_spill] sm:$0xff] }
 0x87e   :  { %v1098_v51 = vadd.f32 %v8885_v62, %v1097_v34  ;;  %v3844_v59 = vadd.f32 %v3736_v23, %v8489_v9 }
 0x87f   :  { %v4411_v41 = vadd.f32 %v8791_v14, %v4358_v4 }
 0x880   :  { %v1314_v19 = vmax.f32 %v1098_v51, 0.0  ;;  %v4132_v4 = vadd.f32 %v4024_v42, %v3844_v59 }
 0x881   :  { %v4460_v29 = vmax.f32 %v4411_v41, 0.0  ;;  %5983 = vmatmul.msk.bf16.gmra.mxu2 %vm338_vm0, %v9681_v47  ;;  %6011 = vmatmul.msk.bf16.gmra.mxu3 %vm338_vm0, %v4173_v26  ;;  %v9682_v47 = vld [vmem:[#allocation71_spill] sm:$0xff] }
 0x882   :  { %1767 = vst.msk [vmem:[#allocation2 + $0x708] sm:$0xff] %vm338_vm0, %v1314_v19 }
 0x883   :  { %4610 = vst.msk [vmem:[#allocation3 + $0xb8] sm:$0xff] %vm338_vm0, %v4460_v29 }
 0x884   :  { %v4027_v58 = vpop.f32.mrf.mxu2  ;;  %v4250_v22 = vpop.f32.mrf.mxu3 }
 0x885   :  { %v4359_v38 = vadd.f32 %v4250_v22, %v4131_v36  ;;  %v3739_v33 = vpop.f32.mrf.mxu1  ;;  %v1099_v18 = vpop.f32.mrf.mxu0  ;;  %v9683_v36 = vld [vmem:[#allocation69_spill] sm:$0xff] }
 0x886   :  { %v1100_v9 = vadd.f32 %v8885_v62, %v1099_v18  ;;  %v3845_v23 = vadd.f32 %v3739_v33, %v8495_v32  ;;  %v9684_v22 = vpack.c.bf16 %v9682_v47, %v9683_v36 }
 0x887   :  { %v4412_v7 = vadd.f32 %v8791_v14, %v4359_v38  ;;  %v9685_v38 = vld [vmem:[#allocation68_spill] sm:$0xff] }
 0x888   :  { %5954 = vmatmul.msk.bf16.gmra.mxu1 %vm338_vm0, %v3658_v49  ;;  %v1315_v0 = vmax.f32 %v1100_v9, 0.0  ;;  %v4133_v42 = vadd.f32 %v4027_v58, %v3845_v23  ;;  %v9687_v23 = vld [vmem:[#allocation75_spill] sm:$0xff] }
 0x889   :  { %v4461_v21 = vmax.f32 %v4412_v7, 0.0 }
 0x88a   :  { %1768 = vst.msk [vmem:[#allocation2 + $0x710] sm:$0xff] %vm338_vm0, %v1315_v0 }
 0x88b   :  { %4611 = vst.msk [vmem:[#allocation3 + $0xc0] sm:$0xff] %vm338_vm0, %v4461_v21 }
 0x88c   :  { %v4029_v15 = vpop.f32.mrf.mxu2  ;;  %v4252_v41 = vpop.f32.mrf.mxu3 }
 0x88d   :  { %v4360_v1 = vadd.f32 %v4252_v41, %v4132_v4  ;;  %v3741_v26 = vpop.f32.mrf.mxu1 }
 0x88e   :  { %v3846_v59 = vadd.f32 %v3741_v26, %v8504_v52 }
 0x88f   :  { %v4413_v29 = vadd.f32 %v8791_v14, %v4360_v1 }
 0x890   :  { %v4134_v49 = vadd.f32 %v4029_v15, %v3846_v59  ;;  %v1102_v19 = vpop.f32.mrf.mxu0  ;;  %v9690_v15 = vld [vmem:[#allocation72_spill] sm:$0xff] }
 0x891   :  { %v4462_v16 = vmax.f32 %v4413_v29, 0.0  ;;  %5984 = vmatmul.msk.bf16.gmra.mxu2 %vm338_vm0, %v9684_v22  ;;  %6012 = vmatmul.msk.bf16.gmra.mxu3 %vm338_vm0, %v9685_v38  ;;  %v1103_v58 = vadd.f32 %v8885_v62, %v1102_v19  ;;  %v9688_v29 = vld [vmem:[#allocation73_spill] sm:$0xff] }
 0x892   :  { %v9689_v0 = vpack.c.bf16 %v9687_v23, %v9688_v29 }
 0x893   :  { %4612 = vst.msk [vmem:[#allocation3 + $0xc8] sm:$0xff] %vm338_vm0, %v4462_v16  ;;  %v1316_v18 = vmax.f32 %v1103_v58, 0.0 }
 0x894   :  { %v4032_v34 = vpop.f32.mrf.mxu2  ;;  %v4255_v51 = vpop.f32.mrf.mxu3 }
 0x895   :  { %v4361_v32 = vadd.f32 %v4255_v51, %v4133_v42  ;;  %v3744_v33 = vpop.f32.mrf.mxu1  ;;  %1769 = vst.msk [vmem:[#allocation2 + $0x718] sm:$0xff] %vm338_vm0, %v1316_v18  ;;  %v6190_v18 = vld [vmem:[#allocation2 + $0x568] sm:$0xff] }
 0x896   :  { %v3847_v9 = vadd.f32 %v3744_v33, %v8510_v63 }
 0x897   :  { %v4414_v7 = vadd.f32 %v8791_v14, %v4361_v32 }
 0x898   :  { %5955 = vmatmul.msk.bf16.gmra.mxu1 %vm338_vm0, %v9686_v8  ;;  %v4135_v16 = vadd.f32 %v4032_v34, %v3847_v9  ;;  %v1104_v47 = vpop.f32.mrf.mxu0  ;;  %v6191_v9 = vld [vmem:[#allocation2 + $0x608] sm:$0xff] }
 0x899   :  { %v4463_v20 = vmax.f32 %v4414_v7, 0.0  ;;  %v1105_v63 = vadd.f32 %v8885_v62, %v1104_v47  ;;  %v9691_v7 = vld [vmem:[#allocation74_spill] sm:$0xff] }
 0x89b   :  { %4613 = vst.msk [vmem:[#allocation3 + $0xd0] sm:$0xff] %vm338_vm0, %v4463_v20  ;;  %v1317_v51 = vmax.f32 %v1105_v63, 0.0 }
 0x89c   :  { %v4034_v21 = vpop.f32.mrf.mxu2  ;;  %v4257_v4 = vpop.f32.mrf.mxu3 }
 0x89d   :  { %v4362_v41 = vadd.f32 %v4257_v4, %v4134_v49  ;;  %v3746_v1 = vpop.f32.mrf.mxu1  ;;  %1770 = vst.msk [vmem:[#allocation2 + $0x720] sm:$0xff] %vm338_vm0, %v1317_v51  ;;  %v6193_v51 = vld [vmem:[#allocation2 + $0x600] sm:$0xff] }
 0x89e   :  { %v3848_v32 = vadd.f32 %v3746_v1, %v8519_v46 }
 0x89f   :  { %v4415_v52 = vadd.f32 %v8791_v14, %v4362_v41 }
 0x8a0   :  { %v4136_v34 = vadd.f32 %v4034_v21, %v3848_v32  ;;  %v1107_v20 = vpop.f32.mrf.mxu0  ;;  %v9692_v21 = vld [vmem:[#allocation76_spill] sm:$0xff] }
 0x8a1   :  { %v4464_v26 = vmax.f32 %v4415_v52, 0.0  ;;  %5985 = vmatmul.msk.bf16.gmra.mxu2 %vm338_vm0, %v9689_v0  ;;  %6013 = vmatmul.msk.bf16.gmra.mxu3 %vm338_vm0, %v9690_v15  ;;  %v1108_v19 = vadd.f32 %v8885_v62, %v1107_v20  ;;  %v3899_v52 = vpack.c.bf16 %v6191_v9, %v6190_v18  ;;  %v9693_v9 = vld [vmem:[#allocation95_spill] sm:$0xff] }
 0x8a3   :  { %4614 = vst.msk [vmem:[#allocation3 + $0xd8] sm:$0xff] %vm338_vm0, %v4464_v26  ;;  %v1318_v41 = vmax.f32 %v1108_v19, 0.0 }
 0x8a4   :  { %v4037_v36 = vpop.f32.mrf.mxu2  ;;  %v4260_v22 = vpop.f32.mrf.mxu3 }
 0x8a5   :  { %v4363_v38 = vadd.f32 %v4260_v22, %v4135_v16  ;;  %v3749_v42 = vpop.f32.mrf.mxu1  ;;  %1771 = vst.msk [vmem:[#allocation2 + $0x728] sm:$0xff] %vm338_vm0, %v1318_v41  ;;  %v6194_v41 = vld [vmem:[#allocation2 + $0x570] sm:$0xff] }
 0x8a6   :  { %v3849_v46 = vadd.f32 %v3749_v42, %v8525_v12  ;;  %v6192_v42 = vld [vmem:[#allocation2 + $0x560] sm:$0xff] }
 0x8a7   :  { %v4416_v33 = vadd.f32 %v8791_v14, %v4363_v38  ;;  %v3659_v32 = vpack.c.bf16 %v6193_v51, %v6192_v42 }
 0x8a8   :  { %5956 = vmatmul.msk.bf16.gmra.mxu1 %vm338_vm0, %v9691_v7  ;;  %v4137_v23 = vadd.f32 %v4037_v36, %v3849_v46  ;;  %v1109_v29 = vpop.f32.mrf.mxu0  ;;  %v6195_v46 = vld [vmem:[#allocation2 + $0x610] sm:$0xff] }
 0x8a9   :  { %v4465_v59 = vmax.f32 %v4416_v33, 0.0  ;;  %v1110_v12 = vadd.f32 %v8885_v62, %v1109_v29 }
 0x8ab   :  { %4615 = vst.msk [vmem:[#allocation3 + $0xf8] sm:$0xff] %vm338_vm0, %v4465_v59  ;;  %v1319_v22 = vmax.f32 %v1110_v12, 0.0 }
 0x8ac   :  { %v4039_v8 = vpop.f32.mrf.mxu2  ;;  %v4262_v49 = vpop.f32.mrf.mxu3 }
 0x8ad   :  { %v4364_v4 = vadd.f32 %v4262_v49, %v4136_v34  ;;  %v3751_v58 = vpop.f32.mrf.mxu1  ;;  %1772 = vst.msk [vmem:[#allocation2 + $0x730] sm:$0xff] %vm338_vm0, %v1319_v22 }
 0x8ae   :  { %v3850_v63 = vadd.f32 %v3751_v58, %v8534_v25 }
 0x8af   :  { %v4417_v1 = vadd.f32 %v8791_v14, %v4364_v4 }
 0x8b0   :  { %v4138_v36 = vadd.f32 %v4039_v8, %v3850_v63  ;;  %v1112_v59 = vpop.f32.mrf.mxu0  ;;  %v9694_v8 = vld [vmem:[#allocation93_spill] sm:$0xff] }
 0x8b1   :  { %v4466_v26 = vmax.f32 %v4417_v1, 0.0  ;;  %5986 = vmatmul.msk.bf16.gmra.mxu2 %vm338_vm0, %v3899_v52  ;;  %6014 = vmatmul.msk.bf16.gmra.mxu3 %vm338_vm0, %v9692_v21  ;;  %v1113_v20 = vadd.f32 %v8885_v62, %v1112_v59  ;;  %v4174_v1 = vpack.c.bf16 %v6195_v46, %v6194_v41  ;;  %v9695_v52 = vpack.c.bf16 %v9693_v9, %v9694_v8 }
 0x8b3   :  { %4616 = vst.msk [vmem:[#allocation3 + $0x100] sm:$0xff] %vm338_vm0, %v4466_v26  ;;  %v1320_v19 = vmax.f32 %v1113_v20, 0.0 }
 0x8b4   :  { %v4042_v0 = vpop.f32.mrf.mxu2  ;;  %v4265_v15 = vpop.f32.mrf.mxu3 }
 0x8b5   :  { %v4365_v16 = vadd.f32 %v4265_v15, %v4137_v23  ;;  %v3754_v47 = vpop.f32.mrf.mxu1  ;;  %1773 = vst.msk [vmem:[#allocation2 + $0x738] sm:$0xff] %vm338_vm0, %v1320_v19  ;;  %v9698_v19 = vld [vmem:[#allocation97_spill] sm:$0xff] }
 0x8b6   :  { %v3851_v4 = vadd.f32 %v3754_v47, %v8540_v48 }
 0x8b7   :  { %v4418_v38 = vadd.f32 %v8791_v14, %v4365_v16 }
 0x8b8   :  { %5957 = vmatmul.msk.bf16.gmra.mxu1 %vm338_vm0, %v3659_v32  ;;  %v4139_v26 = vadd.f32 %v4042_v0, %v3851_v4  ;;  %v1114_v21 = vpop.f32.mrf.mxu0 }
 0x8b9   :  { %v4467_v33 = vmax.f32 %v4418_v38, 0.0  ;;  %v1115_v29 = vadd.f32 %v8885_v62, %v1114_v21  ;;  %v9696_v38 = vld [vmem:[#allocation94_spill] sm:$0xff] }
 0x8bb   :  { %4617 = vst.msk [vmem:[#allocation3 + $0x108] sm:$0xff] %vm338_vm0, %v4467_v33  ;;  %v1321_v16 = vmax.f32 %v1115_v29, 0.0 }
 0x8bc   :  { %v4044_v7 = vpop.f32.mrf.mxu2  ;;  %v4267_v34 = vpop.f32.mrf.mxu3 }
 0x8bd   :  { %v4366_v49 = vadd.f32 %v4267_v34, %v4138_v36  ;;  %v3756_v25 = vpop.f32.mrf.mxu1  ;;  %1774 = vst.msk [vmem:[#allocation2 + $0x740] sm:$0xff] %vm338_vm0, %v1321_v16 }
 0x8be   :  { %v3852_v47 = vadd.f32 %v3756_v25, %v8549_v3  ;;  %v9697_v25 = vld [vmem:[#allocation99_spill] sm:$0xff] }
 0x8bf   :  { %v4419_v58 = vadd.f32 %v8791_v14, %v4366_v49  ;;  %v9699_v4 = vpack.c.bf16 %v9697_v25, %v9698_v19 }
 0x8c0   :  { %v4140_v0 = vadd.f32 %v4044_v7, %v3852_v47  ;;  %v1117_v42 = vpop.f32.mrf.mxu0  ;;  %v9700_v7 = vld [vmem:[#allocation96_spill] sm:$0xff] }
 0x8c1   :  { %v4468_v18 = vmax.f32 %v4419_v58, 0.0  ;;  %5987 = vmatmul.msk.bf16.gmra.mxu2 %vm338_vm0, %v9695_v52  ;;  %6015 = vmatmul.msk.bf16.gmra.mxu3 %vm338_vm0, %v4174_v1  ;;  %v1118_v33 = vadd.f32 %v8885_v62, %v1117_v42  ;;  %v9702_v42 = vld [vmem:[#allocation104_spill] sm:$0xff] }
 0x8c3   :  { %4618 = vst.msk [vmem:[#allocation3 + $0x110] sm:$0xff] %vm338_vm0, %v4468_v18  ;;  %v1322_v34 = vmax.f32 %v1118_v33, 0.0 }
 0x8c4   :  { %v4047_v48 = vpop.f32.mrf.mxu2  ;;  %v4270_v23 = vpop.f32.mrf.mxu3 }
 0x8c5   :  { %v4367_v15 = vadd.f32 %v4270_v23, %v4139_v26  ;;  %v3759_v12 = vpop.f32.mrf.mxu1  ;;  %1775 = vst.msk [vmem:[#allocation2 + $0x748] sm:$0xff] %vm338_vm0, %v1322_v34  ;;  %v9701_v23 = vld [vmem:[#allocation98_spill] sm:$0xff] }
 0x8c6   :  { %v3853_v3 = vadd.f32 %v3759_v12, %v8555_v39 }
 0x8c7   :  { %v4420_v22 = vadd.f32 %v8791_v14, %v4367_v15 }
 0x8c8   :  { %5958 = vmatmul.msk.bf16.gmra.mxu1 %vm338_vm0, %v9696_v38  ;;  %v4141_v58 = vadd.f32 %v4047_v48, %v3853_v3  ;;  %v1119_v41 = vpop.f32.mrf.mxu0 }
 0x8c9   :  { %v4469_v63 = vmax.f32 %v4420_v22, 0.0  ;;  %v1120_v39 = vadd.f32 %v8885_v62, %v1119_v41 }
 0x8cb   :  { %4619 = vst.msk [vmem:[#allocation3 + $0x118] sm:$0xff] %vm338_vm0, %v4469_v63  ;;  %v1323_v8 = vmax.f32 %v1120_v39, 0.0  ;;  %v1992_v39 = vld [vmem:[#allocation2 + $0x708] sm:$0xff] }
 0x8cc   :  { %v4049_v51 = vpop.f32.mrf.mxu2  ;;  %v4272_v32 = vpop.f32.mrf.mxu3 }
 0x8cd   :  { %v4368_v36 = vadd.f32 %v4272_v32, %v4140_v0  ;;  %v3761_v59 = vpop.f32.mrf.mxu1  ;;  %1776 = vst.msk [vmem:[#allocation2 + $0x750] sm:$0xff] %vm338_vm0, %v1323_v8  ;;  %v9703_v32 = vld [vmem:[#allocation101_spill] sm:$0xff] }
 0x8ce   :  { %v3854_v52 = vadd.f32 %v3761_v59, %v8564_v2  ;;  %v9704_v33 = vpack.c.bf16 %v9702_v42, %v9703_v32 }
 0x8cf   :  { %v4421_v20 = vadd.f32 %v8791_v14, %v4368_v36 }
 0x8d0   :  { %v4142_v48 = vadd.f32 %v4049_v51, %v3854_v52  ;;  %v1122_v29 = vpop.f32.mrf.mxu0  ;;  %v9705_v51 = vld [vmem:[#allocation100_spill] sm:$0xff] }
 0x8d1   :  { %v4470_v49 = vmax.f32 %v4421_v20, 0.0  ;;  %5988 = vmatmul.msk.bf16.gmra.mxu2 %vm338_vm0, %v9699_v4  ;;  %6016 = vmatmul.msk.bf16.gmra.mxu3 %vm338_vm0, %v9700_v7  ;;  %v1123_v16 = vadd.f32 %v8885_v62, %v1122_v29 }
 0x8d3   :  { %4620 = vst.msk [vmem:[#allocation3 + $0x120] sm:$0xff] %vm338_vm0, %v4470_v49  ;;  %v1324_v63 = vmax.f32 %v1123_v16, 0.0 }
 0x8d4   :  { %v4052_v46 = vpop.f32.mrf.mxu2  ;;  %v4275_v1 = vpop.f32.mrf.mxu3 }
 0x8d5   :  { %v4369_v18 = vadd.f32 %v4275_v1, %v4141_v58  ;;  %v3764_v9 = vpop.f32.mrf.mxu1  ;;  %1777 = vst.msk [vmem:[#allocation2 + $0x758] sm:$0xff] %vm338_vm0, %v1324_v63  ;;  %v9706_v58 = vld [vmem:[#allocation103_spill] sm:$0xff] }
 0x8d6   :  { %v3855_v2 = vadd.f32 %v3764_v9, %v8570_v31 }
 0x8d7   :  { %v4422_v26 = vadd.f32 %v8791_v14, %v4369_v18  ;;  %v1994_v18 = vld [vmem:[#allocation2 + $0x718] sm:$0xff] }
 0x8d8   :  { %5959 = vmatmul.msk.bf16.gmra.mxu1 %vm338_vm0, %v9701_v23  ;;  %v4143_v36 = vadd.f32 %v4052_v46, %v3855_v2  ;;  %v1124_v59 = vpop.f32.mrf.mxu0  ;;  %v9707_v23 = vld [vmem:[#allocation105_spill] sm:$0xff] }
 0x8d9   :  { %v4471_v21 = vmax.f32 %v4422_v26, 0.0  ;;  %v1125_v31 = vadd.f32 %v8885_v62, %v1124_v59  ;;  %v3903_v26 = vpack.c.bf16 %v1994_v18, %v1992_v39  ;;  %v1996_v59 = vld [vmem:[#allocation2 + $0x728] sm:$0xff]  ;;  %v1997_v18 = vld [vmem:[#allocation2 + $0x730] sm:$0xff] }
 0x8db   :  { %4621 = vst.msk [vmem:[#allocation3 + $0x128] sm:$0xff] %vm338_vm0, %v4471_v21  ;;  %v1325_v25 = vmax.f32 %v1125_v31, 0.0 }
 0x8dc   :  { %v4054_v15 = vpop.f32.mrf.mxu2  ;;  %v4277_v12 = vpop.f32.mrf.mxu3 }
 0x8dd   :  { %v4370_v47 = vadd.f32 %v4277_v12, %v4142_v48  ;;  %v3766_v22 = vpop.f32.mrf.mxu1  ;;  %1778 = vst.msk [vmem:[#allocation2 + $0x760] sm:$0xff] %vm338_vm0, %v1325_v25  ;;  %v9708_v48 = vld [vmem:[#allocation102_spill] sm:$0xff] }
 0x8de   :  { %v3856_v19 = vadd.f32 %v3766_v22, %v8577_v56  ;;  %v9709_v29 = vpack.c.bf16 %v9707_v23, %v9708_v48  ;;  %v1993_v22 = vld [vmem:[#allocation2 + $0x710] sm:$0xff] }
 0x8df   :  { %v4423_v38 = vadd.f32 %v8791_v14, %v4370_v47  ;;  %v1991_v47 = vld [vmem:[#allocation2 + $0x700] sm:$0xff] }
 0x8e0   :  { %v4144_v41 = vadd.f32 %v4054_v15, %v3856_v19 }
 0x8e1   :  { %v4472_v0 = vmax.f32 %v4423_v38, 0.0  ;;  %5989 = vmatmul.msk.bf16.gmra.mxu2 %vm338_vm0, %v9704_v33  ;;  %6017 = vmatmul.msk.bf16.gmra.mxu3 %vm338_vm0, %v9705_v51 }
 0x8e3   :  { %4622 = vst.msk [vmem:[#allocation3 + $0x148] sm:$0xff] %vm338_vm0, %v4472_v0  ;;  %v3660_v0 = vpack.c.bf16 %v1993_v22, %v1991_v47 }
 0x8e4   :  { %v4057_v34 = vpop.f32.mrf.mxu2  ;;  %v4280_v3 = vpop.f32.mrf.mxu3 }
 0x8e5   :  { %v4371_v20 = vadd.f32 %v4280_v3, %v4143_v36  ;;  %v3769_v49 = vpop.f32.mrf.mxu1  ;;  %v1995_v3 = vld [vmem:[#allocation2 + $0x720] sm:$0xff] }
 0x8e6   :  { %v3857_v52 = vadd.f32 %v3769_v49, %v8581_v30 }
 0x8e7   :  { %v4424_v4 = vadd.f32 %v8791_v14, %v4371_v20 }
 0x8e8   :  { %5960 = vmatmul.msk.bf16.gmra.mxu1 %vm338_vm0, %v9706_v58  ;;  %v4145_v15 = vadd.f32 %v4057_v34, %v3857_v52  ;;  %v1998_v34 = vld [vmem:[#allocation2 + $0x738] sm:$0xff] }
 0x8e9   :  { %v4473_v7 = vmax.f32 %v4424_v4, 0.0  ;;  %v3904_v4 = vpack.c.bf16 %v1998_v34, %v1996_v59 }
 0x8eb   :  { %4623 = vst.msk [vmem:[#allocation3 + $0x150] sm:$0xff] %vm338_vm0, %v4473_v7  ;;  %v4176_v7 = vpack.c.bf16 %v1995_v3, %v1993_v22 }
 0x8ec   :  { %v4059_v46 = vpop.f32.mrf.mxu2  ;;  %v4282_v1 = vpop.f32.mrf.mxu3 }
 0x8ed   :  { %v4372_v9 = vadd.f32 %v4282_v1, %v4144_v41  ;;  %v3771_v8 = vpop.f32.mrf.mxu1  ;;  %v1127_v33 = vpop.f32.mrf.mxu0 }
 0x8ee   :  { %v3858_v2 = vadd.f32 %v3771_v8, %v8590_v10  ;;  %v1128_v31 = vadd.f32 %v8885_v62, %v1127_v33  ;;  %v2001_v33 = vld [vmem:[#allocation2 + $0x750] sm:$0xff] }
 0x8ef   :  { %v4425_v56 = vadd.f32 %v8791_v14, %v4372_v9 }
 0x8f0   :  { %v4146_v32 = vadd.f32 %v4059_v46, %v3858_v2  ;;  %v1326_v10 = vmax.f32 %v1128_v31, 0.0 }
 0x8f1   :  { %v4474_v21 = vmax.f32 %v4425_v56, 0.0  ;;  %5990 = vmatmul.msk.bf16.gmra.mxu2 %vm338_vm0, %v3903_v26  ;;  %6018 = vmatmul.msk.bf16.gmra.mxu3 %vm338_vm0, %v9709_v29 }
 0x8f2   :  { %1779 = vst.msk [vmem:[#allocation2 + $0x768] sm:$0xff] %vm338_vm0, %v1326_v10 }
 0x8f3   :  { %4624 = vst.msk [vmem:[#allocation3 + $0x158] sm:$0xff] %vm338_vm0, %v4474_v21  ;;  %v3661_v21 = vpack.c.bf16 %v1997_v18, %v1995_v3 }
 0x8f4   :  { %v4062_v12 = vpop.f32.mrf.mxu2  ;;  %v4285_v16 = vpop.f32.mrf.mxu3 }
 0x8f5   :  { %v4373_v63 = vadd.f32 %v4285_v16, %v4145_v15  ;;  %v3774_v30 = vpop.f32.mrf.mxu1  ;;  %v1129_v46 = vpop.f32.mrf.mxu0  ;;  %v1999_v16 = vld [vmem:[#allocation2 + $0x740] sm:$0xff] }
 0x8f6   :  { %v3859_v25 = vadd.f32 %v3774_v30, %v8596_v43  ;;  %v1130_v43 = vadd.f32 %v8885_v62, %v1129_v46  ;;  %v2002_v62 = vld [vmem:[#allocation2 + $0x758] sm:$0xff]  ;;  %v4177_v2 = vpack.c.bf16 %v1999_v16, %v1997_v18  ;;  %v3662_v34 = vpack.c.bf16 %v2001_v33, %v1999_v16 }
 0x8f7   :  { %v4426_v38 = vadd.f32 %v8791_v14, %v4373_v63 }
 0x8f8   :  { %5961 = vmatmul.msk.bf16.gmra.mxu1 %vm338_vm0, %v3660_v0  ;;  %v4147_v41 = vadd.f32 %v4062_v12, %v3859_v25  ;;  %v1327_v52 = vmax.f32 %v1130_v43, 0.0  ;;  %v2000_v12 = vld [vmem:[#allocation2 + $0x748] sm:$0xff]  ;;  %v2003_v25 = vld [vmem:[#allocation2 + $0x760] sm:$0xff] }
 0x8f9   :  { %v4475_v42 = vmax.f32 %v4426_v38, 0.0  ;;  %v3905_v30 = vpack.c.bf16 %v2002_v62, %v2000_v12  ;;  %v2004_v31 = vld [vmem:[#allocation2 + $0x768] sm:$0xff] }
 0x8fa   :  { %1780 = vst.msk [vmem:[#allocation2 + $0x770] sm:$0xff] %vm338_vm0, %v1327_v52 }
 0x8fb   :  { %4625 = vst.msk [vmem:[#allocation3 + $0x160] sm:$0xff] %vm338_vm0, %v4475_v42 }
 0x8fc   :  { %v4064_v51 = vpop.f32.mrf.mxu2  ;;  %v4287_v36 = vpop.f32.mrf.mxu3 }
 0x8fd   :  { %v4374_v20 = vadd.f32 %v4287_v36, %v4146_v32  ;;  %v3776_v49 = vpop.f32.mrf.mxu1 }
 0x8fe   :  { %v3860_v56 = vadd.f32 %v3776_v49, %v8603_v53 }
 0x8ff   :  { %v4427_v19 = vadd.f32 %v8791_v14, %v4374_v20 }
 0x900   :  { %v4148_v48 = vadd.f32 %v4064_v51, %v3860_v56 }
 0x901   :  { %v4476_v58 = vmax.f32 %v4427_v19, 0.0  ;;  %5991 = vmatmul.msk.bf16.gmra.mxu2 %vm338_vm0, %v3904_v4  ;;  %6019 = vmatmul.msk.bf16.gmra.mxu3 %vm338_vm0, %v4176_v7  ;;  %v3906_v4 = vpack.c.bf16 %v2004_v31, %v2004_v31  ;;  %v2005_v16 = vld [vmem:[#allocation2 + $0x770] sm:$0xff] }
 0x902   :  { %v4656_v31 = vld [vmem:[#allocation3 + $0x30] sm:$0xff] }
 0x903   :  { %4626 = vst.msk [vmem:[#allocation3 + $0x168] sm:$0xff] %vm338_vm0, %v4476_v58 }
 0x904   :  { %v4067_v1 = vpop.f32.mrf.mxu2  ;;  %v4290_v39 = vpop.f32.mrf.mxu3 }
 0x905   :  { %v4375_v9 = vadd.f32 %v4290_v39, %v4147_v41  ;;  %v3779_v8 = vpop.f32.mrf.mxu1  ;;  %v4178_v41 = vpack.c.bf16 %v2003_v25, %v2001_v33  ;;  %v6145_v39 = vld [vmem:[%s9388_s5 + $0x20] sm:$0xff] }
 0x906   :  { %v3861_v53 = vadd.f32 %v3779_v8, %v8607_v5  ;;  %5174 = vmatpush.bf16.msra.mxu2 %v6145_v39 }
 0x907   :  { %v4428_v26 = vadd.f32 %v8791_v14, %v4375_v9  ;;  %v6144_v9 = vld [vmem:[%s9388_s5 + $0x18] sm:$0xff] }
 0x908   :  { %5962 = vmatmul.msk.bf16.gmra.mxu1 %vm338_vm0, %v3661_v21  ;;  %v4149_v0 = vadd.f32 %v4067_v1, %v3861_v53  ;;  %v3663_v21 = vpack.c.bf16 %v2003_v25, %v2003_v25 }
 0x909   :  { %v4477_v23 = vmax.f32 %v4428_v26, 0.0  ;;  %5071 = vmatpush.bf16.msra.mxu1 %v6144_v9 }
 0x90b   :  { %4627 = vst.msk [vmem:[#allocation3 + $0x170] sm:$0xff] %vm338_vm0, %v4477_v23 }
 0x90c   :  { %v4069_v29 = vpop.f32.mrf.mxu2  ;;  %v4292_v15 = vpop.f32.mrf.mxu3 }
 0x90d   :  { %v4376_v47 = vadd.f32 %v4292_v15, %v4148_v48  ;;  %v3781_v22 = vpop.f32.mrf.mxu1  ;;  %v4650_v48 = vld [vmem:[#allocation3] sm:$0xff] }
 0x90e   :  { %v3862_v59 = vadd.f32 %v3781_v22, %v8614_v24 }
 0x90f   :  { %v4429_v63 = vadd.f32 %v8791_v14, %v4376_v47 }
 0x910   :  { %v4150_v20 = vadd.f32 %v4069_v29, %v3862_v59  ;;  %v4652_v29 = vld [vmem:[#allocation3 + $0x10] sm:$0xff] }
 0x911   :  { %v4478_v38 = vmax.f32 %v4429_v63, 0.0  ;;  %5992 = vmatmul.msk.bf16.gmra.mxu2 %vm338_vm0, %v3905_v30  ;;  %6020 = vmatmul.msk.bf16.gmra.mxu3 %vm338_vm0, %v4177_v2  ;;  %v4749_v22 = vpack.c.bf16 %v4652_v29, %v4650_v48  ;;  %v4179_v30 = vpack.c.bf16 %v2005_v16, %v2005_v16  ;;  %v4668_v48 = vld [vmem:[#allocation3 + $0xa0] sm:$0xff] }
 0x913   :  { %4628 = vst.msk [vmem:[#allocation3 + $0x178] sm:$0xff] %vm338_vm0, %v4478_v38  ;;  %v4651_v38 = vld [vmem:[#allocation3 + $0x8] sm:$0xff] }
 0x914   :  { %v4072_v42 = vpop.f32.mrf.mxu2  ;;  %v4295_v32 = vpop.f32.mrf.mxu3 }
 0x915   :  { %v4377_v51 = vadd.f32 %v4295_v32, %v4149_v0  ;;  %v3784_v36 = vpop.f32.mrf.mxu1  ;;  %v4653_v0 = vld [vmem:[#allocation3 + $0x18] sm:$0xff] }
 0x916   :  { %v3863_v58 = vadd.f32 %v3784_v36, %v8627_v28  ;;  %v6146_v28 = vld [vmem:[%s9388_s5 + $0x28] sm:$0xff]  ;;  %v4757_v36 = vpack.c.bf16 %v4653_v0, %v4651_v38 }
 0x917   :  { %v4430_v5 = vadd.f32 %v8791_v14, %v4377_v51  ;;  %5277 = vmatpush.bf16.msra.mxu3 %v6146_v28  ;;  %v4669_v0 = vld [vmem:[#allocation3 + $0xa8] sm:$0xff] }
 0x918   :  { %5963 = vmatmul.msk.bf16.gmra.mxu1 %vm338_vm0, %v3662_v34  ;;  %v4151_v1 = vadd.f32 %v4072_v42, %v3863_v58 }
 0x919   :  { %v4479_v3 = vmax.f32 %v4430_v5, 0.0 }
 0x91b   :  { %4629 = vst.msk [vmem:[#allocation3 + $0x198] sm:$0xff] %vm338_vm0, %v4479_v3  ;;  %v4654_v3 = vld [vmem:[#allocation3 + $0x20] sm:$0xff] }
 0x91c   :  { %v4074_v49 = vpop.f32.mrf.mxu2  ;;  %v4297_v10 = vpop.f32.mrf.mxu3 }
 0x91d   :  { %v4378_v19 = vadd.f32 %v4297_v10, %v4150_v20  ;;  %v3786_v7 = vpop.f32.mrf.mxu1 }
 0x91e   :  { %v3864_v56 = vadd.f32 %v3786_v7, %v8634_v17 }
 0x91f   :  { %v4431_v24 = vadd.f32 %v8791_v14, %v4378_v19  ;;  %v4750_v19 = vpack.c.bf16 %v4656_v31, %v4654_v3 }
 0x920   :  { %v4152_v15 = vadd.f32 %v4074_v49, %v3864_v56  ;;  %v4658_v56 = vld [vmem:[#allocation3 + $0x40] sm:$0xff] }
 0x921   :  { %v4480_v46 = vmax.f32 %v4431_v24, 0.0  ;;  %5993 = vmatmul.msk.bf16.gmra.mxu2 %vm338_vm0, %v3906_v4  ;;  %6021 = vmatmul.msk.bf16.gmra.mxu3 %vm338_vm0, %v4178_v41  ;;  %v4923_v4 = vpack.c.bf16 %v4654_v3, %v4652_v29  ;;  %v4655_v41 = vld [vmem:[#allocation3 + $0x28] sm:$0xff]  ;;  %v4670_v29 = vld [vmem:[#allocation3 + $0xb0] sm:$0xff] }
 0x923   :  { %4630 = vst.msk [vmem:[#allocation3 + $0x1a0] sm:$0xff] %vm338_vm0, %v4480_v46  ;;  %v4657_v46 = vld [vmem:[#allocation3 + $0x38] sm:$0xff] }
 0x924   :  { %v4077_v18 = vpop.f32.mrf.mxu2  ;;  %v4300_v43 = vpop.f32.mrf.mxu3  ;;  %v4758_v28 = vpack.c.bf16 %v4657_v46, %v4655_v41 }
 0x925   :  { %v4379_v8 = vadd.f32 %v4300_v43, %v4151_v1  ;;  %v3789_v52 = vpop.f32.mrf.mxu1 }
 0x926   :  { %v3865_v63 = vadd.f32 %v3789_v52, %v8641_v45 }
 0x927   :  { %v4432_v26 = vadd.f32 %v8791_v14, %v4379_v8 }
 0x928   :  { %5964 = vmatmul.msk.bf16.gmra.mxu1 %vm338_vm0, %v3663_v21  ;;  %v4153_v42 = vadd.f32 %v4077_v18, %v3865_v63 }
 0x929   :  { %v4481_v23 = vmax.f32 %v4432_v26, 0.0 }
 0x92b   :  { %4631 = vst.msk [vmem:[#allocation3 + $0x1a8] sm:$0xff] %vm338_vm0, %v4481_v23 }
 0x92c   :  { %v4079_v12 = vpop.f32.mrf.mxu2  ;;  %v4302_v62 = vpop.f32.mrf.mxu3 }
 0x92d   :  { %v4380_v47 = vadd.f32 %v4302_v62, %v4152_v15  ;;  %v3791_v53 = vpop.f32.mrf.mxu1 }
 0x92e   :  { %v3866_v45 = vadd.f32 %v3791_v53, %v8651_v54 }
 0x92f   :  { %v4433_v17 = vadd.f32 %v8791_v14, %v4380_v47  ;;  %v9066_v47 = vpack.c.bf16 %v4670_v29, %v4668_v48 }
 0x930   :  { %v4154_v20 = vadd.f32 %v4079_v12, %v3866_v45  ;;  %v4924_v12 = vpack.c.bf16 %v4658_v56, %v4656_v31  ;;  %v4672_v45 = vld [vmem:[#allocation3 + $0xc0] sm:$0xff] }
 0x931   :  { %v4482_v2 = vmax.f32 %v4433_v17, 0.0  ;;  %6022 = vmatmul.msk.bf16.gmra.mxu3 %vm338_vm0, %v4179_v30  ;;  %6039 = vmatmul.msk.bf16.vlgmr.msrb.gmra.mxu2 %vm338_vm0, %v4749_v22  ;;  %v4671_v30 = vld [vmem:[#allocation3 + $0xb8] sm:$0xff] }
 0x933   :  { %4632 = vst.msk [vmem:[#allocation3 + $0x1b0] sm:$0xff] %vm338_vm0, %v4482_v2 }
 0x934   :  { %v4082_v32 = vpop.f32.mrf.mxu2  ;;  %v4305_v33 = vpop.f32.mrf.mxu3 }
 0x935   :  { %v4381_v51 = vadd.f32 %v4305_v33, %v4153_v42  ;;  %v3794_v59 = vpop.f32.mrf.mxu1 }
 0x936   :  { %v3867_v58 = vadd.f32 %v3794_v59, %v8659_v57 }
 0x937   :  { %v4434_v5 = vadd.f32 %v8791_v14, %v4381_v51 }
 0x938   :  { %6027 = vmatmul.msk.bf16.vlgmr.msrb.gmra.mxu1 %vm338_vm0, %v4757_v36  ;;  %v4155_v1 = vadd.f32 %v4082_v32, %v3867_v58  ;;  %v9079_v32 = vpack.c.bf16 %v4671_v30, %v4669_v0  ;;  %v4692_v0 = vld [vmem:[#allocation3 + $0x170] sm:$0xff] }
 0x939   :  { %v4483_v34 = vmax.f32 %v4434_v5, 0.0 }
 0x93b   :  { %4633 = vst.msk [vmem:[#allocation3 + $0x1b8] sm:$0xff] %vm338_vm0, %v4483_v34 }
 0x93c   :  { %v4084_v49 = vpop.f32.mrf.mxu2  ;;  %v4307_v10 = vpop.f32.mrf.mxu3 }
 0x93d   :  { %v4382_v25 = vadd.f32 %v4307_v10, %v4154_v20  ;;  %v3796_v7 = vpop.f32.mrf.mxu1 }
 0x93e   :  { %v3868_v8 = vadd.f32 %v3796_v7, %v8667_v35  ;;  %v4675_v7 = vld [vmem:[#allocation3 + $0xd8] sm:$0xff] }
 0x93f   :  { %v4435_v54 = vadd.f32 %v8791_v14, %v4382_v25 }
 0x940   :  { %v4156_v26 = vadd.f32 %v4084_v49, %v3868_v8  ;;  %v9088_v49 = vpack.c.bf16 %v4672_v45, %v4670_v29  ;;  %v4676_v8 = vld [vmem:[#allocation3 + $0xe0] sm:$0xff] }
 0x941   :  { %v4484_v24 = vmax.f32 %v4435_v54, 0.0  ;;  %6040 = vmatmul.msk.bf16.gmra.mxu2 %vm338_vm0, %v4750_v19  ;;  %6051 = vmatmul.msk.bf16.vlgmr.msrb.gmra.mxu3 %vm338_vm0, %v4923_v4  ;;  %v4673_v54 = vld [vmem:[#allocation3 + $0xc8] sm:$0xff] }
 0x942   :  { %v9097_v46 = vpack.c.bf16 %v4675_v7, %v4673_v54  ;;  %v4704_v54 = vld [vmem:[#allocation3 + $0x1e0] sm:$0xff] }
 0x943   :  { %4634 = vst.msk [vmem:[#allocation3 + $0x1c0] sm:$0xff] %vm338_vm0, %v4484_v24 }
 0x944   :  { %v4087_v39 = vpop.f32.mrf.mxu2  ;;  %v4310_v18 = vpop.f32.mrf.mxu3 }
 0x945   :  { %v4383_v43 = vadd.f32 %v4310_v18, %v4155_v1  ;;  %v3799_v9 = vpop.f32.mrf.mxu1 }
 0x946   :  { %v3869_v16 = vadd.f32 %v3799_v9, %v8675_v60  ;;  %v4688_v9 = vld [vmem:[#allocation3 + $0x150] sm:$0xff] }
 0x947   :  { %v4436_v57 = vadd.f32 %v8791_v14, %v4383_v43 }
 0x948   :  { %6028 = vmatmul.msk.bf16.gmra.mxu1 %vm338_vm0, %v4758_v28  ;;  %v4157_v53 = vadd.f32 %v4087_v39, %v3869_v16  ;;  %v4686_v28 = vld [vmem:[#allocation3 + $0x140] sm:$0xff]  ;;  %v4687_v16 = vld [vmem:[#allocation3 + $0x148] sm:$0xff] }
 0x949   :  { %v4485_v52 = vmax.f32 %v4436_v57, 0.0 }
 0x94b   :  { %4635 = vst.msk [vmem:[#allocation3 + $0x1c8] sm:$0xff] %vm338_vm0, %v4485_v52 }
 0x94c   :  { %v4089_v21 = vpop.f32.mrf.mxu2  ;;  %v4312_v23 = vpop.f32.mrf.mxu3 }
 0x94d   :  { %v4384_v15 = vadd.f32 %v4312_v23, %v4156_v26  ;;  %v3801_v62 = vpop.f32.mrf.mxu1  ;;  %v9104_v26 = vpack.c.bf16 %v4688_v9, %v4686_v28 }
 0x94e   :  { %v3870_v60 = vadd.f32 %v3801_v62, %v8683_v55  ;;  %v4674_v55 = vld [vmem:[#allocation3 + $0xd0] sm:$0xff] }
 0x94f   :  { %v4437_v35 = vadd.f32 %v8791_v14, %v4384_v15  ;;  %v9076_v14 = vld [vmem:[%s9389_s4] ss:$0 sm:$0xff]  ;;  %v9086_v20 = vpack.c.bf16 %v4674_v55, %v4672_v45 }
 0x950   :  { %v4158_v51 = vadd.f32 %v4089_v21, %v3870_v60  ;;  %v9106_v21 = vpack.c.bf16 %v4676_v8, %v4674_v55 }
 0x951   :  { %v4486_v22 = vmax.f32 %v4437_v35, 0.0  ;;  %6041 = vmatmul.msk.bf16.gmra.mxu2 %vm338_vm0, %v9066_v47  ;;  %6052 = vmatmul.msk.bf16.gmra.mxu3 %vm338_vm0, %v4924_v12  ;;  %v4689_v12 = vld [vmem:[#allocation3 + $0x158] sm:$0xff] }
 0x953   :  { %4636 = vst.msk [vmem:[#allocation3 + $0x1e8] sm:$0xff] %vm338_vm0, %v4486_v22 }
 0x954   :  { %v4092_v63 = vpop.f32.mrf.mxu2  ;;  %v4315_v17 = vpop.f32.mrf.mxu3 }
 0x955   :  { %v4385_v2 = vadd.f32 %v4315_v17, %v4157_v53  ;;  %v3804_v38 = vpop.f32.mrf.mxu1  ;;  %v9115_v53 = vpack.c.bf16 %v4689_v12, %v4687_v16 }
 0x956   :  { %v3871_v3 = vadd.f32 %v3804_v38, %v8688_v40  ;;  %v4690_v38 = vld [vmem:[#allocation3 + $0x160] sm:$0xff] }
 0x957   :  { %v4438_v42 = vadd.f32 %v9076_v14, %v4385_v2 }
 0x958   :  { %6029 = vmatmul.msk.bf16.gmra.mxu1 %vm338_vm0, %v9079_v32  ;;  %v4159_v25 = vadd.f32 %v4092_v63, %v3871_v3 }
 0x959   :  { %v4487_v33 = vmax.f32 %v4438_v42, 0.0 }
 0x95b   :  { %4637 = vst.msk [vmem:[#allocation3 + $0x1f0] sm:$0xff] %vm338_vm0, %v4487_v33 }
 0x95c   :  { %v4094_v36 = vpop.f32.mrf.mxu2  ;;  %v4317_v59 = vpop.f32.mrf.mxu3 }
 0x95d   :  { %v4386_v5 = vadd.f32 %v4317_v59, %v4158_v51  ;;  %v3806_v34 = vpop.f32.mrf.mxu1  ;;  %v9122_v51 = vpack.c.bf16 %v4692_v0, %v4690_v38 }
 0x95e   :  { %v3872_v24 = vadd.f32 %v3806_v34, %v8695_v44  ;;  %v4693_v34 = vld [vmem:[#allocation3 + $0x178] sm:$0xff] }
 0x95f   :  { %v4439_v31 = vadd.f32 %v9076_v14, %v4386_v5 }
 0x960   :  { %v4160_v39 = vadd.f32 %v4094_v36, %v3872_v24  ;;  %v9124_v36 = vpack.c.bf16 %v4690_v38, %v4688_v9 }
 0x961   :  { %v4488_v10 = vmax.f32 %v4439_v31, 0.0  ;;  %6042 = vmatmul.msk.bf16.gmra.mxu2 %vm338_vm0, %v9086_v20  ;;  %6053 = vmatmul.msk.bf16.gmra.mxu3 %vm338_vm0, %v9088_v49  ;;  %v4691_v31 = vld [vmem:[#allocation3 + $0x168] sm:$0xff] }
 0x962   :  { %v4706_v24 = vld [vmem:[#allocation3 + $0x1f0] sm:$0xff] }
 0x963   :  { %4638 = vst.msk [vmem:[#allocation3 + $0x1f8] sm:$0xff] %vm338_vm0, %v4488_v10  ;;  %v9140_v28 = vpack.c.bf16 %v4706_v24, %v4704_v54 }
 0x964   :  { %v4097_v19 = vpop.f32.mrf.mxu2  ;;  %v4320_v4 = vpop.f32.mrf.mxu3 }
 0x965   :  { %v4387_v40 = vadd.f32 %v4320_v4, %v4159_v25  ;;  %v3809_v58 = vpop.f32.mrf.mxu1 }
 0x966   :  { %v3873_v44 = vadd.f32 %v3809_v58, %v8702_v61 }
 0x967   :  { %v4440_v41 = vadd.f32 %v9076_v14, %v4387_v40 }
 0x968   :  { %6030 = vmatmul.msk.bf16.gmra.mxu1 %vm338_vm0, %v9097_v46  ;;  %v4161_v48 = vadd.f32 %v4097_v19, %v3873_v44  ;;  %v9133_v19 = vpack.c.bf16 %v4693_v34, %v4691_v31 }
 0x969   :  { %v4489_v1 = vmax.f32 %v4440_v41, 0.0  ;;  %v4694_v41 = vld [vmem:[#allocation3 + $0x180] sm:$0xff] }
 0x96a   :  { %v9142_v9 = vpack.c.bf16 %v4694_v41, %v4692_v0  ;;  %v4712_v41 = vld [vmem:[#allocation3 + $0x220] sm:$0xff] }
 0x96b   :  { %4639 = vst.msk [vmem:[#allocation3 + $0x200] sm:$0xff] %vm338_vm0, %v4489_v1 }
 0x96c   :  { %v4099_v18 = vpop.f32.mrf.mxu2  ;;  %v4322_v43 = vpop.f32.mrf.mxu3 }
 0x96d   :  { %v4388_v57 = vadd.f32 %v4322_v43, %v4160_v39  ;;  %v3811_v52 = vpop.f32.mrf.mxu1 }
 0x96e   :  { %v3874_v35 = vadd.f32 %v3811_v52, %v8710_v6 }
 0x96f   :  { %v4441_v56 = vadd.f32 %v9076_v14, %v4388_v57 }
 0x970   :  { %v4162_v17 = vadd.f32 %v4099_v18, %v3874_v35  ;;  %v9710_v18 = vld [vmem:[#allocation38_spill] sm:$0xff] }
 0x971   :  { %v4490_v23 = vmax.f32 %v4441_v56, 0.0  ;;  %6043 = vmatmul.msk.bf16.gmra.mxu2 %vm338_vm0, %v9104_v26  ;;  %6054 = vmatmul.msk.bf16.gmra.mxu3 %vm338_vm0, %v9106_v21  ;;  %v4707_v56 = vld [vmem:[#allocation3 + $0x1f8] sm:$0xff] }
 0x973   :  { %4640 = vst.msk [vmem:[#allocation3 + $0x208] sm:$0xff] %vm338_vm0, %v4490_v23 }
 0x974   :  { %v4102_v29 = vpop.f32.mrf.mxu2  ;;  %v4325_v15 = vpop.f32.mrf.mxu3 }
 0x975   :  { %v4389_v61 = vadd.f32 %v4325_v15, %v4161_v48  ;;  %v3814_v62 = vpop.f32.mrf.mxu1  ;;  %v9711_v15 = vld [vmem:[#allocation37_spill] sm:$0xff] }
 0x976   :  { %v3875_v33 = vadd.f32 %v3814_v62, %v8718_v37 }
 0x977   :  { %v4442_v22 = vadd.f32 %v9076_v14, %v4389_v61 }
 0x978   :  { %6031 = vmatmul.msk.bf16.gmra.mxu1 %vm338_vm0, %v9115_v53  ;;  %v4163_v45 = vadd.f32 %v4102_v29, %v3875_v33  ;;  %v4705_v29 = vld [vmem:[#allocation3 + $0x1e8] sm:$0xff] }
 0x979   :  { %v4491_v63 = vmax.f32 %v4442_v22, 0.0  ;;  %v9151_v62 = vpack.c.bf16 %v4707_v56, %v4705_v29  ;;  %v4661_v29 = vld [vmem:[#allocation3 + $0x60] sm:$0xff] }
 0x97b   :  { %4641 = vst.msk [vmem:[#allocation3 + $0x210] sm:$0xff] %vm338_vm0, %v4491_v63 }
 0x97c   :  { %v4104_v30 = vpop.f32.mrf.mxu2  ;;  %v4327_v2 = vpop.f32.mrf.mxu3 }
 0x97d   :  { %v4390_v60 = vadd.f32 %v4327_v2, %v4162_v17  ;;  %v3816_v42 = vpop.f32.mrf.mxu1  ;;  %v4708_v17 = vld [vmem:[#allocation3 + $0x200] sm:$0xff] }
 0x97e   :  { %v3876_v10 = vadd.f32 %v3816_v42, %v8726_v50  ;;  %v9160_v33 = vpack.c.bf16 %v4708_v17, %v4706_v24 }
 0x97f   :  { %v4443_v6 = vadd.f32 %v9076_v14, %v4390_v60 }
 0x980   :  { %v4164_v7 = vadd.f32 %v4104_v30, %v3876_v10  ;;  %v4709_v10 = vld [vmem:[#allocation3 + $0x208] sm:$0xff] }
 0x981   :  { %v4492_v59 = vmax.f32 %v4443_v6, 0.0  ;;  %6044 = vmatmul.msk.bf16.gmra.mxu2 %vm338_vm0, %v9122_v51  ;;  %6055 = vmatmul.msk.bf16.gmra.mxu3 %vm338_vm0, %v9124_v36  ;;  %v6148_v6 = vld [vmem:[%s9388_s5 + $0x38] sm:$0xff] }
 0x982   :  { %v4710_v30 = vld [vmem:[#allocation3 + $0x210] sm:$0xff]  ;;  %5435 = vmatpush.bf16.msrb.mxu2 %v6148_v6 }
 0x983   :  { %4642 = vst.msk [vmem:[#allocation3 + $0x218] sm:$0xff] %vm338_vm0, %v4492_v59  ;;  %v9158_v42 = vpack.c.bf16 %v4710_v30, %v4708_v17  ;;  %v4666_v17 = vld [vmem:[#allocation3 + $0x88] sm:$0xff] }
 0x984   :  { %v4107_v55 = vpop.f32.mrf.mxu2  ;;  %v4330_v5 = vpop.f32.mrf.mxu3 }
 0x985   :  { %v4391_v37 = vadd.f32 %v4330_v5, %v4163_v45  ;;  %v3819_v3 = vpop.f32.mrf.mxu1  ;;  %v6147_v45 = vld [vmem:[%s9388_s5 + $0x30] sm:$0xff] }
 0x986   :  { %v3877_v50 = vadd.f32 %v3819_v3, %v9710_v18  ;;  %5356 = vmatpush.bf16.msrb.mxu1 %v6147_v45 }
 0x987   :  { %v4444_v25 = vadd.f32 %v9076_v14, %v4391_v37 }
 0x988   :  { %6032 = vmatmul.msk.bf16.gmra.mxu1 %vm338_vm0, %v9133_v19  ;;  %v4165_v57 = vadd.f32 %v4107_v55, %v3877_v50  ;;  %v4660_v50 = vld [vmem:[#allocation3 + $0x58] sm:$0xff] }
 0x989   :  { %v4493_v4 = vmax.f32 %v4444_v25, 0.0 }
 0x98a   :  { %v4711_v37 = vld [vmem:[#allocation3 + $0x218] sm:$0xff] }
 0x98b   :  { %4643 = vst.msk [vmem:[#allocation3 + $0x238] sm:$0xff] %vm338_vm0, %v4493_v4 }
 0x98c   :  { %v4109_v40 = vpop.f32.mrf.mxu2  ;;  %v4332_v58 = vpop.f32.mrf.mxu3 }
 0x98d   :  { %v4392_v1 = vadd.f32 %v4332_v58, %v4164_v7  ;;  %v3821_v39 = vpop.f32.mrf.mxu1  ;;  %v9178_v7 = vpack.c.bf16 %v4711_v37, %v4709_v10  ;;  %v4667_v10 = vld [vmem:[#allocation3 + $0x90] sm:$0xff] }
 0x98e   :  { %v3878_v12 = vadd.f32 %v3821_v39, %v9711_v15 }
 0x98f   :  { %v4445_v43 = vadd.f32 %v9076_v14, %v4392_v1  ;;  %v4662_v1 = vld [vmem:[#allocation3 + $0x68] sm:$0xff] }
 0x990   :  { %v4166_v35 = vadd.f32 %v4109_v40, %v3878_v12 }
 0x991   :  { %v4494_v8 = vmax.f32 %v4445_v43, 0.0  ;;  %6045 = vmatmul.msk.bf16.gmra.mxu2 %vm338_vm0, %v9140_v28  ;;  %6056 = vmatmul.msk.bf16.gmra.mxu3 %vm338_vm0, %v9142_v9 }
 0x993   :  { %4644 = vst.msk [vmem:[#allocation3 + $0x240] sm:$0xff] %vm338_vm0, %v4494_v8  ;;  %v9185_v8 = vpack.c.bf16 %v4712_v41, %v4710_v30  ;;  %v4663_v30 = vld [vmem:[#allocation3 + $0x70] sm:$0xff] }
 0x994   :  { %v4112_v52 = vpop.f32.mrf.mxu2  ;;  %v4335_v44 = vpop.f32.mrf.mxu3  ;;  %v5232_v6 = vpack.c.bf16 %v4663_v30, %v4661_v29 }
 0x995   :  { %v4393_v23 = vadd.f32 %v4335_v44, %v4165_v57  ;;  %v3824_v48 = vpop.f32.mrf.mxu1  ;;  %v5129_v57 = vpack.c.bf16 %v4662_v1, %v4660_v50 }
 0x996   :  { %v3879_v0 = vadd.f32 %v3824_v48, %v8751_v27  ;;  %v6149_v27 = vld [vmem:[%s9388_s5 + $0x40] sm:$0xff]  ;;  %v4659_v48 = vld [vmem:[#allocation3 + $0x50] sm:$0xff] }
 0x997   :  { %v4446_v61 = vadd.f32 %v9076_v14, %v4393_v23  ;;  %5514 = vmatpush.bf16.msrb.mxu3 %v6149_v27  ;;  %v4665_v27 = vld [vmem:[#allocation3 + $0x80] sm:$0xff] }
 0x998   :  { %6033 = vmatmul.msk.bf16.gmra.mxu1 %vm338_vm0, %v9151_v62  ;;  %v4167_v55 = vadd.f32 %v4112_v52, %v3879_v0 }
 0x999   :  { %v4495_v16 = vmax.f32 %v4446_v61, 0.0 }
 0x99b   :  { %4645 = vst.msk [vmem:[#allocation3 + $0x248] sm:$0xff] %vm338_vm0, %v4495_v16  ;;  %v5026_v16 = vpack.c.bf16 %v4661_v29, %v4659_v48 }
 0x99c   :  { %v4114_v22 = vpop.f32.mrf.mxu2  ;;  %v4337_v63 = vpop.f32.mrf.mxu3 }
 0x99d   :  { %v4394_v2 = vadd.f32 %v4337_v63, %v4166_v35  ;;  %v3826_v38 = vpop.f32.mrf.mxu1 }
 0x99e   :  { %v3880_v25 = vadd.f32 %v3826_v38, %v8761_v13  ;;  %v4664_v38 = vld [vmem:[#allocation3 + $0x78] sm:$0xff] }
 0x99f   :  { %v4447_v60 = vadd.f32 %v9076_v14, %v4394_v2 }
 0x9a0   :  { %v4168_v58 = vadd.f32 %v4114_v22, %v3880_v25 }
 0x9a1   :  { %v4496_v59 = vmax.f32 %v4447_v60, 0.0  ;;  %6046 = vmatmul.msk.bf16.gmra.mxu2 %vm338_vm0, %v9158_v42  ;;  %6057 = vmatmul.msk.bf16.gmra.mxu3 %vm338_vm0, %v9160_v33  ;;  %v5130_v60 = vpack.c.bf16 %v4666_v17, %v4664_v38 }
 0x9a3   :  { %4646 = vst.msk [vmem:[#allocation3 + $0x250] sm:$0xff] %vm338_vm0, %v4496_v59 }
 0x9a4   :  { %v4117_v5 = vpop.f32.mrf.mxu2  ;;  %v4340_v34 = vpop.f32.mrf.mxu3 }
 0x9a5   :  { %v4395_v3 = vadd.f32 %v4340_v34, %v4167_v55  ;;  %v3829_v31 = vpop.f32.mrf.mxu1  ;;  %v5027_v34 = vpack.c.bf16 %v4665_v27, %v4663_v30 }
 0x9a6   :  { %v3881_v13 = vadd.f32 %v3829_v31, %v8770_v11  ;;  %v4680_v31 = vld [vmem:[#allocation3 + $0x108] sm:$0xff] }
 0x9a7   :  { %v4448_v4 = vadd.f32 %v9076_v14, %v4395_v3 }
 0x9a8   :  { %6034 = vmatmul.msk.bf16.gmra.mxu1 %vm338_vm0, %v9178_v7  ;;  %v4169_v44 = vadd.f32 %v4117_v5, %v3881_v13 }
 0x9a9   :  { %v4497_v40 = vmax.f32 %v4448_v4, 0.0 }
 0x9ab   :  { %4647 = vst.msk [vmem:[#allocation3 + $0x258] sm:$0xff] %vm338_vm0, %v4497_v40  ;;  %v4678_v40 = vld [vmem:[#allocation3 + $0xf8] sm:$0xff] }
 0x9ac   :  { %v4119_v54 = vpop.f32.mrf.mxu2  ;;  %v4342_v24 = vpop.f32.mrf.mxu3 }
 0x9ad   :  { %v4396_v39 = vadd.f32 %v4342_v24, %v4168_v58  ;;  %v3831_v18 = vpop.f32.mrf.mxu1  ;;  %v5131_v54 = vpack.c.bf16 %v4680_v31, %v4678_v40  ;;  %v5233_v24 = vpack.c.bf16 %v4667_v10, %v4665_v27  ;;  %v4696_v27 = vld [vmem:[#allocation3 + $0x198] sm:$0xff]  ;;  %v4695_v31 = vld [vmem:[#allocation3 + $0x190] sm:$0xff]  ;;  %v4697_v10 = vld [vmem:[#allocation3 + $0x1a0] sm:$0xff] }
 0x9ae   :  { %v4679_v18 = vld [vmem:[#allocation3 + $0x100] sm:$0xff] }
 0x9af   :  { %v4449_v43 = vadd.f32 %v9076_v14, %v4396_v39  ;;  %v4677_v39 = vld [vmem:[#allocation3 + $0xf0] sm:$0xff] }
 0x9b1   :  { %v4498_v52 = vmax.f32 %v4449_v43, 0.0  ;;  %6058 = vmatmul.msk.bf16.gmra.mxu3 %vm338_vm0, %v9185_v8  ;;  %6075 = vmatmul.msk.bf16.vlgmr.msra.gmra.mxu2 %vm338_vm0, %v5129_v57  ;;  %v5028_v57 = vpack.c.bf16 %v4679_v18, %v4677_v39  ;;  %v4699_v39 = vld [vmem:[#allocation3 + $0x1b0] sm:$0xff] }
 0x9b3   :  { %4648 = vst.msk [vmem:[#allocation3 + $0x260] sm:$0xff] %vm338_vm0, %v4498_v52 }
 0x9b4   :  { %v4345_v56 = vpop.f32.mrf.mxu3  ;;  %v4883_v23 = vpop.f32.mrf.mxu2 }
 0x9b5   :  { %v4397_v15 = vadd.f32 %v4345_v56, %v4169_v44  ;;  %v4804_v11 = vpop.f32.mrf.mxu1  ;;  %v4684_v56 = vld [vmem:[#allocation3 + $0x128] sm:$0xff] }
 0x9b6   :  { %v4884_v61 = vadd.f32 %v4883_v23, %v4804_v11  ;;  %v4681_v23 = vld [vmem:[#allocation3 + $0x110] sm:$0xff] }
 0x9b7   :  { %v4450_v12 = vadd.f32 %v9076_v14, %v4397_v15  ;;  %v4682_v15 = vld [vmem:[#allocation3 + $0x118] sm:$0xff] }
 0x9b8   :  { %6063 = vmatmul.msk.bf16.vlgmr.msra.gmra.mxu1 %vm338_vm0, %v5026_v16 }
 0x9b9   :  { %v4499_v35 = vmax.f32 %v4450_v12, 0.0  ;;  %v5132_v12 = vpack.c.bf16 %v4684_v56, %v4682_v15 }
 0x9bb   :  { %4649 = vst.msk [vmem:[#allocation3 + $0x268] sm:$0xff] %vm338_vm0, %v4499_v35 }
 0x9bc   :  { %v4347_v22 = vpop.f32.mrf.mxu3  ;;  %v4885_v63 = vpop.f32.mrf.mxu2 }
 0x9bd   :  { %v4806_v2 = vpop.f32.mrf.mxu1  ;;  %v4683_v22 = vld [vmem:[#allocation3 + $0x120] sm:$0xff] }
 0x9be   :  { %v4886_v0 = vadd.f32 %v4885_v63, %v4806_v2  ;;  %v5029_v2 = vpack.c.bf16 %v4683_v22, %v4681_v23 }
 0x9c1   :  { %6076 = vmatmul.msk.bf16.gmra.mxu2 %vm338_vm0, %v5130_v60  ;;  %6087 = vmatmul.msk.bf16.vlgmr.msra.gmra.mxu3 %vm338_vm0, %v5232_v6  ;;  %v4698_v60 = vld [vmem:[#allocation3 + $0x1a8] sm:$0xff]  ;;  %v4685_v6 = vld [vmem:[#allocation3 + $0x130] sm:$0xff] }
 0x9c4   :  { %v4888_v14 = vpop.f32.mrf.mxu2  ;;  %v4970_v59 = vpop.f32.mrf.mxu3 }
 0x9c5   :  { %v9196_v45 = vadd.f32 %v4970_v59, %v4884_v61  ;;  %v4809_v55 = vpop.f32.mrf.mxu1  ;;  %v5234_v61 = vpack.c.bf16 %v4681_v23, %v4679_v18 }
 0x9c6   :  { %v4889_v5 = vadd.f32 %v4888_v14, %v4809_v55 }
 0x9c8   :  { %6064 = vmatmul.msk.bf16.gmra.mxu1 %vm338_vm0, %v5027_v34  ;;  %v5235_v34 = vpack.c.bf16 %v4685_v6, %v4683_v22  ;;  %v4716_v22 = vld [vmem:[#allocation3 + $0x248] sm:$0xff] }
 0x9cc   :  { %v4890_v37 = vpop.f32.mrf.mxu2  ;;  %v4972_v3 = vpop.f32.mrf.mxu3 }
 0x9cd   :  { %v9199_v25 = vadd.f32 %v4972_v3, %v4886_v0  ;;  %v4811_v4 = vpop.f32.mrf.mxu1 }
 0x9ce   :  { %v4891_v58 = vadd.f32 %v4890_v37, %v4811_v4 }
 0x9d1   :  { %6077 = vmatmul.msk.bf16.gmra.mxu2 %vm338_vm0, %v5131_v54  ;;  %6088 = vmatmul.msk.bf16.gmra.mxu3 %vm338_vm0, %v5233_v24  ;;  %v5030_v54 = vpack.c.bf16 %v4697_v10, %v4695_v31 }
 0x9d4   :  { %v4893_v41 = vpop.f32.mrf.mxu2  ;;  %v4975_v1 = vpop.f32.mrf.mxu3 }
 0x9d5   :  { %v9203_v50 = vadd.f32 %v4975_v1, %v4889_v5  ;;  %v4814_v13 = vpop.f32.mrf.mxu1  ;;  %v5133_v5 = vpack.c.bf16 %v4698_v60, %v4696_v27  ;;  %v4702_v1 = vld [vmem:[#allocation3 + $0x1c8] sm:$0xff] }
 0x9d6   :  { %v4894_v43 = vadd.f32 %v4893_v41, %v4814_v13 }
 0x9d8   :  { %6065 = vmatmul.msk.bf16.gmra.mxu1 %vm338_vm0, %v5028_v57 }
 0x9dc   :  { %v4895_v52 = vpop.f32.mrf.mxu2  ;;  %v4977_v44 = vpop.f32.mrf.mxu3 }
 0x9dd   :  { %v9206_v48 = vadd.f32 %v4977_v44, %v4891_v58  ;;  %v4816_v29 = vpop.f32.mrf.mxu1  ;;  %v5236_v44 = vpack.c.bf16 %v4699_v39, %v4697_v10 }
 0x9de   :  { %v4896_v11 = vadd.f32 %v4895_v52, %v4816_v29  ;;  %v4701_v29 = vld [vmem:[#allocation3 + $0x1c0] sm:$0xff] }
 0x9e1   :  { %6078 = vmatmul.msk.bf16.gmra.mxu2 %vm338_vm0, %v5132_v12  ;;  %6089 = vmatmul.msk.bf16.gmra.mxu3 %vm338_vm0, %v5234_v61  ;;  %v5031_v61 = vpack.c.bf16 %v4701_v29, %v4699_v39 }
 0x9e4   :  { %v4898_v16 = vpop.f32.mrf.mxu2  ;;  %v4980_v35 = vpop.f32.mrf.mxu3 }
 0x9e5   :  { %v9210_v63 = vadd.f32 %v4980_v35, %v4894_v43  ;;  %v4819_v17 = vpop.f32.mrf.mxu1  ;;  %v4700_v43 = vld [vmem:[#allocation3 + $0x1b8] sm:$0xff] }
 0x9e6   :  { %v4899_v30 = vadd.f32 %v4898_v16, %v4819_v17  ;;  %v5134_v52 = vpack.c.bf16 %v4702_v1, %v4700_v43  ;;  %v4703_v17 = vld [vmem:[#allocation3 + $0x1d0] sm:$0xff]  ;;  %v4718_v1 = vld [vmem:[#allocation3 + $0x258] sm:$0xff] }
 0x9e7   :  { %v5237_v6 = vpack.c.bf16 %v4703_v17, %v4701_v29 }
 0x9e8   :  { %6066 = vmatmul.msk.bf16.gmra.mxu1 %vm338_vm0, %v5029_v2 }
 0x9ec   :  { %v4900_v38 = vpop.f32.mrf.mxu2  ;;  %v4982_v0 = vpop.f32.mrf.mxu3 }
 0x9ed   :  { %v9213_v14 = vadd.f32 %v4982_v0, %v4896_v11  ;;  %v4821_v59 = vpop.f32.mrf.mxu1 }
 0x9ee   :  { %v4901_v55 = vadd.f32 %v4900_v38, %v4821_v59  ;;  %v4714_v38 = vld [vmem:[#allocation3 + $0x238] sm:$0xff] }
 0x9ef   :  { %v5135_v60 = vpack.c.bf16 %v4716_v22, %v4714_v38 }
 0x9f1   :  { %6079 = vmatmul.msk.bf16.gmra.mxu2 %vm338_vm0, %v5133_v5  ;;  %6090 = vmatmul.msk.bf16.gmra.mxu3 %vm338_vm0, %v5235_v34  ;;  %v4715_v5 = vld [vmem:[#allocation3 + $0x240] sm:$0xff] }
 0x9f4   :  { %v4903_v37 = vpop.f32.mrf.mxu2  ;;  %v4985_v3 = vpop.f32.mrf.mxu3 }
 0x9f5   :  { %v9217_v4 = vadd.f32 %v4985_v3, %v4899_v30  ;;  %v4824_v40 = vpop.f32.mrf.mxu1 }
 0x9f6   :  { %v4904_v58 = vadd.f32 %v4903_v37, %v4824_v40 }
 0x9f8   :  { %6067 = vmatmul.msk.bf16.gmra.mxu1 %vm338_vm0, %v5030_v54  ;;  %v4717_v54 = vld [vmem:[#allocation3 + $0x250] sm:$0xff] }
 0x9f9   :  { %v5238_v43 = vpack.c.bf16 %v4717_v54, %v4715_v5 }
 0x9fc   :  { %v4905_v24 = vpop.f32.mrf.mxu2  ;;  %v4987_v41 = vpop.f32.mrf.mxu3 }
 0x9fd   :  { %v9220_v18 = vadd.f32 %v4987_v41, %v4901_v55  ;;  %v4826_v13 = vpop.f32.mrf.mxu1  ;;  %v4713_v55 = vld [vmem:[#allocation3 + $0x230] sm:$0xff] }
 0x9fe   :  { %v4906_v57 = vadd.f32 %v4905_v24, %v4826_v13  ;;  %v5032_v31 = vpack.c.bf16 %v4715_v5, %v4713_v55 }
 0xa01   :  { %6080 = vmatmul.msk.bf16.gmra.mxu2 %vm338_vm0, %v5134_v52  ;;  %6091 = vmatmul.msk.bf16.gmra.mxu3 %vm338_vm0, %v5236_v44  ;;  %v4719_v44 = vld [vmem:[#allocation3 + $0x260] sm:$0xff] }
 0xa04   :  { %v4908_v56 = vpop.f32.mrf.mxu2  ;;  %v4990_v23 = vpop.f32.mrf.mxu3 }
 0xa05   :  { %v9224_v15 = vadd.f32 %v4990_v23, %v4904_v58  ;;  %v4829_v11 = vpop.f32.mrf.mxu1  ;;  %v4720_v58 = vld [vmem:[#allocation3 + $0x268] sm:$0xff] }
 0xa06   :  { %v4909_v12 = vadd.f32 %v4908_v56, %v4829_v11  ;;  %v5136_v13 = vpack.c.bf16 %v4720_v58, %v4718_v1  ;;  %v5033_v11 = vpack.c.bf16 %v4719_v44, %v4717_v54 }
 0xa08   :  { %6068 = vmatmul.msk.bf16.gmra.mxu1 %vm338_vm0, %v5031_v61 }
 0xa0c   :  { %v4910_v16 = vpop.f32.mrf.mxu2  ;;  %v4992_v35 = vpop.f32.mrf.mxu3 }
 0xa0d   :  { %v9227_v30 = vadd.f32 %v4992_v35, %v4906_v57  ;;  %v4831_v2 = vpop.f32.mrf.mxu1 }
 0xa0e   :  { %v4911_v0 = vadd.f32 %v4910_v16, %v4831_v2  ;;  %v4721_v16 = vld [vmem:[#allocation3 + $0x270] sm:$0xff] }
 0xa0f   :  { %v5239_v2 = vpack.c.bf16 %v4721_v16, %v4719_v44 }
 0xa11   :  { %6081 = vmatmul.msk.bf16.gmra.mxu2 %vm338_vm0, %v5135_v60  ;;  %6092 = vmatmul.msk.bf16.gmra.mxu3 %vm338_vm0, %v5237_v6 }
 0xa14   :  { %v4913_v59 = vpop.f32.mrf.mxu2  ;;  %v4995_v27 = vpop.f32.mrf.mxu3 }
 0xa15   :  { %v9231_v34 = vadd.f32 %v4995_v27, %v4909_v12  ;;  %v4834_v37 = vpop.f32.mrf.mxu1 }
 0xa16   :  { %v4914_v3 = vadd.f32 %v4913_v59, %v4834_v37 }
 0xa18   :  { %6069 = vmatmul.msk.bf16.gmra.mxu1 %vm338_vm0, %v5032_v31 }
 0xa1c   :  { %v4915_v10 = vpop.f32.mrf.mxu2  ;;  %v4997_v40 = vpop.f32.mrf.mxu3 }
 0xa1d   :  { %v9234_v24 = vadd.f32 %v4997_v40, %v4911_v0  ;;  %v4836_v41 = vpop.f32.mrf.mxu1 }
 0xa1e   :  { %v4916_v39 = vadd.f32 %v4915_v10, %v4836_v41 }
 0xa21   :  { %6082 = vmatmul.msk.bf16.gmra.mxu2 %vm338_vm0, %v5136_v13  ;;  %6093 = vmatmul.msk.bf16.gmra.mxu3 %vm338_vm0, %v5238_v43 }
 0xa24   :  { %v4918_v57 = vpop.f32.mrf.mxu2  ;;  %v5000_v52 = vpop.f32.mrf.mxu3 }
 0xa25   :  { %v9238_v56 = vadd.f32 %v5000_v52, %v4914_v3  ;;  %v4839_v23 = vpop.f32.mrf.mxu1 }
 0xa26   :  { %v4919_v29 = vadd.f32 %v4918_v57, %v4839_v23 }
 0xa28   :  { %6070 = vmatmul.msk.bf16.gmra.mxu1 %vm338_vm0, %v5033_v11 }
 0xa2c   :  { %v4920_v12 = vpop.f32.mrf.mxu2  ;;  %v5002_v61 = vpop.f32.mrf.mxu3 }
 0xa2d   :  { %v9241_v35 = vadd.f32 %v5002_v61, %v4916_v39  ;;  %v4841_v22 = vpop.f32.mrf.mxu1 }
 0xa2e   :  { %v4921_v17 = vadd.f32 %v4920_v12, %v4841_v22 }
 0xa31   :  { %6094 = vmatmul.msk.bf16.gmra.mxu3 %vm338_vm0, %v5239_v2  ;;  %6111 = vmatmul.msk.bf16.vlgmr.msrb.gmra.mxu2 %vm338_vm0, %v9079_v32 }
 0xa34   :  { %v5005_v38 = vpop.f32.mrf.mxu3  ;;  %v5176_v0 = vpop.f32.mrf.mxu2 }
 0xa35   :  { %v9246_v60 = vadd.f32 %v5005_v38, %v4919_v29  ;;  %v5073_v6 = vpop.f32.mrf.mxu1 }
 0xa36   :  { %v5113_v59 = vadd.f32 %v5073_v6, %v9196_v45 }
 0xa38   :  { %6099 = vmatmul.msk.bf16.vlgmr.msrb.gmra.mxu1 %vm338_vm0, %v9066_v47  ;;  %v5216_v27 = vadd.f32 %v5176_v0, %v5113_v59 }
 0xa3c   :  { %v5007_v55 = vpop.f32.mrf.mxu3  ;;  %v5178_v5 = vpop.f32.mrf.mxu2 }
 0xa3d   :  { %v9251_v37 = vadd.f32 %v5007_v55, %v4921_v17  ;;  %v5075_v3 = vpop.f32.mrf.mxu1 }
 0xa3e   :  { %v5114_v31 = vadd.f32 %v5075_v3, %v9199_v25 }
 0xa40   :  { %v5217_v32 = vadd.f32 %v5178_v5, %v5114_v31 }
 0xa41   :  { %6112 = vmatmul.msk.bf16.gmra.mxu2 %vm338_vm0, %v9097_v46  ;;  %6123 = vmatmul.msk.bf16.vlgmr.msrb.gmra.mxu3 %vm338_vm0, %v9088_v49 }
 0xa44   :  { %v5181_v10 = vpop.f32.mrf.mxu2  ;;  %v5279_v45 = vpop.f32.mrf.mxu3 }
 0xa45   :  { %v9258_v40 = vadd.f32 %v5279_v45, %v5216_v27  ;;  %v5078_v47 = vpop.f32.mrf.mxu1  ;;  %v4723_v45 = vld [vmem:[#allocation3 + $0x288] sm:$0xff] }
 0xa46   :  { %v5115_v58 = vadd.f32 %v5078_v47, %v9203_v50 }
 0xa48   :  { %6100 = vmatmul.msk.bf16.gmra.mxu1 %vm338_vm0, %v9086_v20  ;;  %v5218_v54 = vadd.f32 %v5181_v10, %v5115_v58 }
 0xa4c   :  { %v5183_v41 = vpop.f32.mrf.mxu2  ;;  %v5281_v25 = vpop.f32.mrf.mxu3 }
 0xa4d   :  { %v9263_v1 = vadd.f32 %v5281_v25, %v5217_v32  ;;  %v5080_v46 = vpop.f32.mrf.mxu1  ;;  %v4722_v25 = vld [vmem:[#allocation3 + $0x280] sm:$0xff] }
 0xa4e   :  { %v5116_v39 = vadd.f32 %v5080_v46, %v9206_v48  ;;  %v4724_v46 = vld [vmem:[#allocation3 + $0x290] sm:$0xff] }
 0xa50   :  { %v5219_v49 = vadd.f32 %v5183_v41, %v5116_v39 }
 0xa51   :  { %6113 = vmatmul.msk.bf16.gmra.mxu2 %vm338_vm0, %v9115_v53  ;;  %6124 = vmatmul.msk.bf16.gmra.mxu3 %vm338_vm0, %v9106_v21 }
 0xa54   :  { %v5186_v13 = vpop.f32.mrf.mxu2  ;;  %v5284_v50 = vpop.f32.mrf.mxu3 }
 0xa55   :  { %v9270_v43 = vadd.f32 %v5284_v50, %v5218_v54  ;;  %v5083_v20 = vpop.f32.mrf.mxu1 }
 0xa56   :  { %v5117_v57 = vadd.f32 %v5083_v20, %v9210_v63 }
 0xa58   :  { %6101 = vmatmul.msk.bf16.gmra.mxu1 %vm338_vm0, %v9104_v26  ;;  %v5220_v52 = vadd.f32 %v5186_v13, %v5117_v57  ;;  %v5335_v13 = vpack.c.bf16 %v4724_v46, %v4722_v25 }
 0xa5c   :  { %v5188_v44 = vpop.f32.mrf.mxu2  ;;  %v5286_v48 = vpop.f32.mrf.mxu3 }
 0xa5d   :  { %v9275_v23 = vadd.f32 %v5286_v48, %v5219_v49  ;;  %v5085_v53 = vpop.f32.mrf.mxu1 }
 0xa5e   :  { %v5118_v29 = vadd.f32 %v5085_v53, %v9213_v14 }
 0xa60   :  { %v5221_v21 = vadd.f32 %v5188_v44, %v5118_v29  ;;  %v4729_v44 = vld [vmem:[#allocation3 + $0x2b8] sm:$0xff] }
 0xa61   :  { %6114 = vmatmul.msk.bf16.gmra.mxu2 %vm338_vm0, %v9133_v19  ;;  %6125 = vmatmul.msk.bf16.gmra.mxu3 %vm338_vm0, %v9124_v36 }
 0xa64   :  { %v5191_v11 = vpop.f32.mrf.mxu2  ;;  %v5289_v63 = vpop.f32.mrf.mxu3 }
 0xa65   :  { %v9282_v12 = vadd.f32 %v5289_v63, %v5220_v52  ;;  %v5088_v26 = vpop.f32.mrf.mxu1  ;;  %v4727_v52 = vld [vmem:[#allocation3 + $0x2a8] sm:$0xff] }
 0xa66   :  { %v5119_v61 = vadd.f32 %v5088_v26, %v9217_v4  ;;  %v4728_v26 = vld [vmem:[#allocation3 + $0x2b0] sm:$0xff] }
 0xa68   :  { %6102 = vmatmul.msk.bf16.gmra.mxu1 %vm338_vm0, %v9122_v51  ;;  %v5222_v16 = vadd.f32 %v5191_v11, %v5119_v61 }
 0xa6c   :  { %v5193_v22 = vpop.f32.mrf.mxu2  ;;  %v5291_v14 = vpop.f32.mrf.mxu3 }
 0xa6d   :  { %v9287_v17 = vadd.f32 %v5291_v14, %v5221_v21  ;;  %v5090_v19 = vpop.f32.mrf.mxu1  ;;  %v5415_v21 = vpack.c.bf16 %v4729_v44, %v4727_v52 }
 0xa6e   :  { %v5120_v2 = vadd.f32 %v5090_v19, %v9220_v18 }
 0xa70   :  { %v5223_v36 = vadd.f32 %v5193_v22, %v5120_v2 }
 0xa71   :  { %6115 = vmatmul.msk.bf16.gmra.mxu2 %vm338_vm0, %v9151_v62  ;;  %6126 = vmatmul.msk.bf16.gmra.mxu3 %vm338_vm0, %v9142_v9 }
 0xa74   :  { %v5196_v38 = vpop.f32.mrf.mxu2  ;;  %v5294_v4 = vpop.f32.mrf.mxu3 }
 0xa75   :  { %v9294_v0 = vadd.f32 %v5294_v4, %v5222_v16  ;;  %v5093_v51 = vpop.f32.mrf.mxu1 }
 0xa76   :  { %v5121_v6 = vadd.f32 %v5093_v51, %v9224_v15 }
 0xa78   :  { %6103 = vmatmul.msk.bf16.gmra.mxu1 %vm338_vm0, %v9140_v28  ;;  %v5224_v59 = vadd.f32 %v5196_v38, %v5121_v6  ;;  %v4730_v38 = vld [vmem:[#allocation3 + $0x2c0] sm:$0xff] }
 0xa79   :  { %v5494_v6 = vpack.c.bf16 %v4730_v38, %v4728_v26 }
 0xa7c   :  { %v5198_v27 = vpop.f32.mrf.mxu2  ;;  %v5296_v18 = vpop.f32.mrf.mxu3 }
 0xa7d   :  { %v9299_v55 = vadd.f32 %v5296_v18, %v5223_v36  ;;  %v5095_v62 = vpop.f32.mrf.mxu1 }
 0xa7e   :  { %v5122_v5 = vadd.f32 %v5095_v62, %v9227_v30  ;;  %v4725_v30 = vld [vmem:[#allocation3 + $0x298] sm:$0xff] }
 0xa7f   :  { %v5414_v54 = vpack.c.bf16 %v4725_v30, %v4723_v45 }
 0xa80   :  { %v5225_v9 = vadd.f32 %v5198_v27, %v5122_v5 }
 0xa81   :  { %6116 = vmatmul.msk.bf16.gmra.mxu2 %vm338_vm0, %v9178_v7  ;;  %6127 = vmatmul.msk.bf16.gmra.mxu3 %vm338_vm0, %v9160_v33 }
 0xa84   :  { %v5201_v3 = vpop.f32.mrf.mxu2  ;;  %v5299_v15 = vpop.f32.mrf.mxu3 }
 0xa85   :  { %v9306_v31 = vadd.f32 %v5299_v15, %v5224_v59  ;;  %v5098_v28 = vpop.f32.mrf.mxu1 }
 0xa86   :  { %v5123_v32 = vadd.f32 %v5098_v28, %v9231_v34 }
 0xa88   :  { %6104 = vmatmul.msk.bf16.gmra.mxu1 %vm338_vm0, %v9158_v42  ;;  %v5226_v10 = vadd.f32 %v5201_v3, %v5123_v32 }
 0xa8c   :  { %v5203_v47 = vpop.f32.mrf.mxu2  ;;  %v5301_v58 = vpop.f32.mrf.mxu3 }
 0xa8d   :  { %v9311_v7 = vadd.f32 %v5301_v58, %v5225_v9  ;;  %v5100_v33 = vpop.f32.mrf.mxu1 }
 0xa8e   :  { %v5124_v41 = vadd.f32 %v5100_v33, %v9234_v24  ;;  %v4726_v24 = vld [vmem:[#allocation3 + $0x2a0] sm:$0xff] }
 0xa8f   :  { %v5493_v29 = vpack.c.bf16 %v4726_v24, %v4724_v46  ;;  %v5336_v14 = vpack.c.bf16 %v4728_v26, %v4726_v24 }
 0xa90   :  { %v5227_v34 = vadd.f32 %v5203_v47, %v5124_v41 }
 0xa91   :  { %6128 = vmatmul.msk.bf16.gmra.mxu3 %vm338_vm0, %v9185_v8  ;;  %6117 = vmatmul.msk.bf16.gmra.mxu2 %vm338_vm0, %v5414_v54 }
 0xa94   :  { %v5206_v42 = vpop.f32.mrf.mxu2  ;;  %v5304_v39 = vpop.f32.mrf.mxu3 }
 0xa95   :  { %v9317_v49 = vadd.f32 %v5304_v39, %v5226_v10  ;;  %v5103_v50 = vpop.f32.mrf.mxu1 }
 0xa96   :  { %v5125_v20 = vadd.f32 %v5103_v50, %v9238_v56 }
 0xa98   :  { %6105 = vmatmul.msk.bf16.gmra.mxu1 %vm338_vm0, %v5335_v13  ;;  %v5228_v57 = vadd.f32 %v5206_v42, %v5125_v20 }
 0xa9c   :  { %v5208_v8 = vpop.f32.mrf.mxu2  ;;  %v5306_v48 = vpop.f32.mrf.mxu3 }
 0xa9d   :  { %v9321_v53 = vadd.f32 %v5306_v48, %v5227_v34  ;;  %v5105_v11 = vpop.f32.mrf.mxu1  ;;  %v9344_v34 = vld [vmem:[%s9390_s6] ss:$0 sm:$0xff] }
 0xa9e   :  { %v5126_v63 = vadd.f32 %v5105_v11, %v9241_v35 }
 0xaa0   :  { %v5229_v56 = vadd.f32 %v5208_v8, %v5126_v63 }
 0xaa1   :  { %6129 = vmatmul.msk.bf16.gmra.mxu3 %vm338_vm0, %v5493_v29  ;;  %6118 = vmatmul.msk.bf16.gmra.mxu2 %vm338_vm0, %v5415_v21 }
 0xaa4   :  { %v5211_v61 = vpop.f32.mrf.mxu2  ;;  %v5309_v16 = vpop.f32.mrf.mxu3 }
 0xaa5   :  { %v9326_v22 = vadd.f32 %v5309_v16, %v5228_v57  ;;  %v5108_v19 = vpop.f32.mrf.mxu1 }
 0xaa6   :  { %v5127_v2 = vadd.f32 %v5108_v19, %v9246_v60 }
 0xaa8   :  { %6106 = vmatmul.msk.bf16.gmra.mxu1 %vm338_vm0, %v5336_v14  ;;  %v5230_v36 = vadd.f32 %v5211_v61, %v5127_v2 }
 0xaac   :  { %v5213_v4 = vpop.f32.mrf.mxu2  ;;  %v5311_v35 = vpop.f32.mrf.mxu3 }
 0xaad   :  { %v9330_v51 = vadd.f32 %v5311_v35, %v5229_v56  ;;  %v5110_v59 = vpop.f32.mrf.mxu1 }
 0xaae   :  { %v5128_v27 = vadd.f32 %v5110_v59, %v9251_v37 }
 0xab0   :  { %v5231_v18 = vadd.f32 %v5213_v4, %v5128_v27 }
 0xab1   :  { %6130 = vmatmul.msk.bf16.gmra.mxu3 %vm338_vm0, %v5494_v6 }
 0xab4   :  { %v5314_v62 = vpop.f32.mrf.mxu3  ;;  %v5437_v5 = vpop.f32.mrf.mxu2 }
 0xab5   :  { %v9334_v9 = vadd.f32 %v5314_v62, %v5230_v36  ;;  %v5358_v60 = vpop.f32.mrf.mxu1 }
 0xab6   :  { %v5398_v3 = vadd.f32 %v5358_v60, %v9258_v40 }
 0xab8   :  { %v5477_v15 = vadd.f32 %v5437_v5, %v5398_v3 }
 0xabc   :  { %v5316_v28 = vpop.f32.mrf.mxu3  ;;  %v5439_v32 = vpop.f32.mrf.mxu2 }
 0xabd   :  { %v9337_v10 = vadd.f32 %v5316_v28, %v5231_v18  ;;  %v5360_v45 = vpop.f32.mrf.mxu1 }
 0xabe   :  { %v5399_v30 = vadd.f32 %v5360_v45, %v9263_v1 }
 0xac0   :  { %v5478_v47 = vadd.f32 %v5439_v32, %v5399_v30 }
 0xac4   :  { %v5442_v37 = vpop.f32.mrf.mxu2  ;;  %v5516_v58 = vpop.f32.mrf.mxu3 }
 0xac5   :  { %v5556_v54 = vadd.f32 %v5516_v58, %v5477_v15  ;;  %v5363_v33 = vpop.f32.mrf.mxu1 }
 0xac6   :  { %v5400_v41 = vadd.f32 %v5363_v33, %v9270_v43 }
 0xac7   :  { %v5576_v42 = vadd.f32 %v9344_v34, %v5556_v54 }
 0xac8   :  { %v5479_v40 = vadd.f32 %v5442_v37, %v5400_v41 }
 0xac9   :  { %v5592_v20 = vmax.f32 %v5576_v42, 0.0 }
 0xacc   :  { %v5444_v25 = vpop.f32.mrf.mxu2  ;;  %v5518_v46 = vpop.f32.mrf.mxu3 }
 0xacd   :  { %v5557_v39 = vadd.f32 %v5518_v46, %v5478_v47  ;;  %v5365_v13 = vpop.f32.mrf.mxu1 }
 0xace   :  { %v5401_v50 = vadd.f32 %v5365_v13, %v9275_v23 }
 0xacf   :  { %v5577_v1 = vadd.f32 %v9344_v34, %v5557_v39 }
 0xad0   :  { %v5480_v24 = vadd.f32 %v5444_v25, %v5401_v50 }
 0xad1   :  { %v5593_v57 = vmax.f32 %v5577_v1, 0.0 }
 0xad3   :  { %v5608_v43 = vadd.f32 %v5593_v57, %v5592_v20 }
 0xad4   :  { %v5447_v52 = vpop.f32.mrf.mxu2  ;;  %v5521_v44 = vpop.f32.mrf.mxu3 }
 0xad5   :  { %v5558_v8 = vadd.f32 %v5521_v44, %v5479_v40  ;;  %v5368_v48 = vpop.f32.mrf.mxu1 }
 0xad6   :  { %v5402_v21 = vadd.f32 %v5368_v48, %v9282_v12 }
 0xad7   :  { %v5578_v29 = vadd.f32 %v9344_v34, %v5558_v8 }
 0xad8   :  { %v5481_v63 = vadd.f32 %v5447_v52, %v5402_v21 }
 0xad9   :  { %v5594_v11 = vmax.f32 %v5578_v29, 0.0 }
 0xadb   :  { %v5609_v56 = vadd.f32 %v5608_v43, %v5594_v11 }
 0xadc   :  { %v5449_v26 = vpop.f32.mrf.mxu2  ;;  %v5523_v61 = vpop.f32.mrf.mxu3 }
 0xadd   :  { %v5559_v16 = vadd.f32 %v5523_v61, %v5480_v24  ;;  %v5370_v14 = vpop.f32.mrf.mxu1 }
 0xade   :  { %v5403_v6 = vadd.f32 %v5370_v14, %v9287_v17 }
 0xadf   :  { %v5579_v23 = vadd.f32 %v9344_v34, %v5559_v16 }
 0xae0   :  { %v5482_v18 = vadd.f32 %v5449_v26, %v5403_v6 }
 0xae1   :  { %v5595_v19 = vmax.f32 %v5579_v23, 0.0 }
 0xae3   :  { %v5610_v2 = vadd.f32 %v5609_v56, %v5595_v19 }
 0xae4   :  { %v5452_v36 = vpop.f32.mrf.mxu2  ;;  %v5526_v38 = vpop.f32.mrf.mxu3 }
 0xae5   :  { %v5560_v4 = vadd.f32 %v5526_v38, %v5481_v63  ;;  %v5373_v35 = vpop.f32.mrf.mxu1 }
 0xae6   :  { %v5404_v15 = vadd.f32 %v5373_v35, %v9294_v0 }
 0xae7   :  { %v5580_v59 = vadd.f32 %v9344_v34, %v5560_v4 }
 0xae8   :  { %v5483_v30 = vadd.f32 %v5452_v36, %v5404_v15 }
 0xae9   :  { %v5596_v12 = vmax.f32 %v5580_v59, 0.0 }
 0xaeb   :  { %v5611_v27 = vadd.f32 %v5610_v2, %v5596_v12 }
 0xaec   :  { %v5454_v62 = vpop.f32.mrf.mxu2  ;;  %v5528_v5 = vpop.f32.mrf.mxu3 }
 0xaed   :  { %v5561_v60 = vadd.f32 %v5528_v5, %v5482_v18  ;;  %v5375_v3 = vpop.f32.mrf.mxu1 }
 0xaee   :  { %v5405_v54 = vadd.f32 %v5375_v3, %v9299_v55 }
 0xaef   :  { %v5581_v28 = vadd.f32 %v9344_v34, %v5561_v60 }
 0xaf0   :  { %v5484_v25 = vadd.f32 %v5454_v62, %v5405_v54 }
 0xaf1   :  { %v5597_v32 = vmax.f32 %v5581_v28, 0.0 }
 0xaf3   :  { %v5612_v45 = vadd.f32 %v5611_v27, %v5597_v32 }
 0xaf4   :  { %v5457_v47 = vpop.f32.mrf.mxu2  ;;  %v5531_v37 = vpop.f32.mrf.mxu3 }
 0xaf5   :  { %v5562_v58 = vadd.f32 %v5531_v37, %v5483_v30  ;;  %v5378_v17 = vpop.f32.mrf.mxu1 }
 0xaf6   :  { %v5406_v13 = vadd.f32 %v5378_v17, %v9306_v31 }
 0xaf7   :  { %v5582_v33 = vadd.f32 %v9344_v34, %v5562_v58 }
 0xaf8   :  { %v5485_v57 = vadd.f32 %v5457_v47, %v5406_v13  ;;  %v6198_v47 = vmov 16.0  }
 0xaf9   :  { %v5598_v41 = vmax.f32 %v5582_v33, 0.0  ;;  %6155 = vrcp.f32 %v6198_v47 }
 0xafb   :  { %v5613_v40 = vadd.f32 %v5612_v45, %v5598_v41 }
 0xafc   :  { %v5533_v46 = vpop.f32.mrf.mxu3  ;;  %v5459_v39 = vpop.f32.mrf.mxu2 }
 0xafd   :  { %v5563_v42 = vadd.f32 %v5533_v46, %v5484_v25  ;;  %v5380_v0 = vpop.f32.mrf.mxu1 }
 0xafe   :  { %v5407_v55 = vadd.f32 %v5380_v0, %v9311_v7 }
 0xaff   :  { %v5583_v1 = vadd.f32 %v9344_v34, %v5563_v42  ;;  %v6156_v41 = vpop.eup %6155 }
 0xb00   :  { %v5486_v21 = vadd.f32 %v5459_v39, %v5407_v55  ;;  %v5624_v42 = vmul.f32 16.0, %v6156_v41  ;;  %vm5628_vm1 = vweird.f32 %v6156_v41 }
 0xb01   :  { %v5599_v50 = vmax.f32 %v5583_v1, 0.0 }
 0xb03   :  { %v5614_v20 = vadd.f32 %v5613_v40, %v5599_v50  ;;  %v5625_v50 = vsub.f32 1.0, %v5624_v42 }
 0xb04   :  { %v5536_v24 = vpop.f32.mrf.mxu3  ;;  %v5462_v8 = vpop.f32.mrf.mxu2 }
 0xb05   :  { %v5564_v43 = vadd.f32 %v5536_v24, %v5485_v57  ;;  %v5383_v52 = vpop.f32.mrf.mxu1 }
 0xb06   :  { %v5408_v31 = vadd.f32 %v5383_v52, %v9317_v49  ;;  %v5626_v52 = vmul.f32 %v6156_v41, %v5625_v50 }
 0xb07   :  { %v5584_v44 = vadd.f32 %v9344_v34, %v5564_v43 }
 0xb08   :  { %v5487_v23 = vadd.f32 %v5462_v8, %v5408_v31  ;;  %v5632_v8 = vlaneseq }
 0xb09   :  { %v5600_v48 = vmax.f32 %v5584_v44, 0.0 }
 0xb0b   :  { %v5615_v29 = vadd.f32 %v5614_v20, %v5600_v48 }
 0xb0c   :  { %v5538_v11 = vpop.f32.mrf.mxu3  ;;  %v5464_v16 = vpop.f32.mrf.mxu2 }
 0xb0d   :  { %v5565_v63 = vadd.f32 %v5538_v11, %v5486_v21  ;;  %v5385_v56 = vpop.f32.mrf.mxu1  ;;  %v5633_v11 = vand.u32 127, %v5632_v8 }
 0xb0e   :  { %v5409_v36 = vadd.f32 %v5385_v56, %v9321_v53 }
 0xb0f   :  { %v5585_v26 = vadd.f32 %v9344_v34, %v5565_v63  ;;  %vm5634_vm2 = vcmp.lt.s32.totalorder %v5633_v11, 10 }
 0xb10   :  { %v5488_v59 = vadd.f32 %v5464_v16, %v5409_v36 }
 0xb11   :  { %v5601_v61 = vmax.f32 %v5585_v26, 0.0 }
 0xb13   :  { %v5616_v14 = vadd.f32 %v5615_v29, %v5601_v61  ;;  %v5627_v29 = vadd.f32 %v6156_v41, %v5626_v52 }
 0xb14   :  { %v5541_v19 = vpop.f32.mrf.mxu3  ;;  %v5467_v35 = vpop.f32.mrf.mxu2 }
 0xb15   :  { %v5566_v2 = vadd.f32 %v5541_v19, %v5487_v23  ;;  %v5388_v7 = vpop.f32.mrf.mxu1  ;;  %v5629_v56 = vsel %vm5628_vm1, %v6156_v41, %v5627_v29 }
 0xb16   :  { %v5410_v49 = vadd.f32 %v5388_v7, %v9326_v22 }
 0xb17   :  { %v5586_v38 = vadd.f32 %v9344_v34, %v5566_v2 }
 0xb18   :  { %v5489_v60 = vadd.f32 %v5467_v35, %v5410_v49 }
 0xb19   :  { %v5602_v4 = vmax.f32 %v5586_v38, 0.0 }
 0xb1b   :  { %v5617_v6 = vadd.f32 %v5616_v14, %v5602_v4 }
 0xb1c   :  { %v5543_v12 = vpop.f32.mrf.mxu3  ;;  %v5469_v15 = vpop.f32.mrf.mxu2 }
 0xb1d   :  { %v5567_v27 = vadd.f32 %v5543_v12, %v5488_v59  ;;  %v5390_v62 = vpop.f32.mrf.mxu1 }
 0xb1e   :  { %v5411_v53 = vadd.f32 %v5390_v62, %v9330_v51 }
 0xb1f   :  { %v5587_v18 = vadd.f32 %v9344_v34, %v5567_v27 }
 0xb20   :  { %v5490_v58 = vadd.f32 %v5469_v15, %v5411_v53 }
 0xb21   :  { %v5603_v5 = vmax.f32 %v5587_v18, 0.0 }
 0xb23   :  { %v5618_v3 = vadd.f32 %v5617_v6, %v5603_v5 }
 0xb24   :  { %v5546_v28 = vpop.f32.mrf.mxu3  ;;  %v5472_v33 = vpop.f32.mrf.mxu2 }
 0xb25   :  { %v5568_v32 = vadd.f32 %v5546_v28, %v5489_v60  ;;  %v5393_v37 = vpop.f32.mrf.mxu1 }
 0xb26   :  { %v5412_v40 = vadd.f32 %v5393_v37, %v9334_v9 }
 0xb27   :  { %v5588_v45 = vadd.f32 %v9344_v34, %v5568_v32 }
 0xb28   :  { %v5491_v39 = vadd.f32 %v5472_v33, %v5412_v40 }
 0xb29   :  { %v5604_v30 = vmax.f32 %v5588_v45, 0.0 }
 0xb2b   :  { %v5619_v17 = vadd.f32 %v5618_v3, %v5604_v30 }
 0xb2c   :  { %v5548_v22 = vpop.f32.mrf.mxu3  ;;  %v5474_v24 = vpop.f32.mrf.mxu2 }
 0xb2d   :  { %v5569_v54 = vadd.f32 %v5548_v22, %v5490_v58  ;;  %v5395_v0 = vpop.f32.mrf.mxu1 }
 0xb2e   :  { %v5413_v20 = vadd.f32 %v5395_v0, %v9337_v10  ;;  %v5646_v10 = vld [vmem:[%s9391_s7] sm:$0xff] }
 0xb2f   :  { %v5589_v25 = vadd.f32 %v9344_v34, %v5569_v54 }
 0xb30   :  { %v5492_v55 = vadd.f32 %v5474_v24, %v5413_v20 }
 0xb31   :  { %v5605_v46 = vmax.f32 %v5589_v25, 0.0 }
 0xb33   :  { %v5620_v51 = vadd.f32 %v5619_v17, %v5605_v46 }
 0xb34   :  { %v5551_v13 = vpop.f32.mrf.mxu3 }
 0xb35   :  { %v5570_v1 = vadd.f32 %v5551_v13, %v5491_v39 }
 0xb37   :  { %v5590_v57 = vadd.f32 %v9344_v34, %v5570_v1 }
 0xb39   :  { %v5606_v43 = vmax.f32 %v5590_v57, 0.0 }
 0xb3b   :  { %v5621_v44 = vadd.f32 %v5620_v51, %v5606_v43 }
 0xb3c   :  { %v5553_v9 = vpop.f32.mrf.mxu3 }
 0xb3d   :  { %v5571_v48 = vadd.f32 %v5553_v9, %v5492_v55 }
 0xb3f   :  { %v5591_v21 = vadd.f32 %v9344_v34, %v5571_v48 }
 0xb41   :  { %v5607_v63 = vmax.f32 %v5591_v21, 0.0 }
 0xb43   :  { %v5622_v31 = vadd.f32 %v5621_v44, %v5607_v63 }
 0xb45   :  { %v5630_v26 = vmul.f32 %v5629_v56, %v5622_v31 }
 0xb47   :  { %v5635_v61 = vsel %vm5634_vm2, %v5630_v26, -1e+30  ;;  %5631 = vst [vmem:[%s9392_s8] sm:$0xff] %v5630_v26  ;;  %v5647_v16 = vmul.f32 %v5646_v10, %v5630_v26 }
 0xb48   :  { %5636 = vmax.xlane.f32.xlu0 %v5635_v61 }
 0xb49   :  { %5648 = vadd.xlane.f32.xlu1 %v5647_v16 }
 0xbbb   :  { %v5637_v34 = vpop.xlane.xlu0 %5636 }
 0xbbc   :  { %v5638_v14 = vsub.f32 %v5635_v61, %v5637_v34  ;;  %v5649_v4 = vpop.xlane.xlu1 %5648 }
 0xbbe   :  { %v5639_v23 = vmul.f32 1.442695, %v5638_v14 }
 0xbc0   :  { %6157 = vpow2.f32 %v5639_v23 }
 0xbc6   :  { %v6158_v19 = vpop.eup %6157 }
 0xbc7   :  { %5641 = vadd.xlane.f32.xlu0 %v6158_v19 }
 0xc3a   :  { %v5642_v2 = vpop.xlane.xlu0 %5641 }
 0xc3b   :  { %6159 = vlog2.f32 %v5642_v2 }
 0xc41   :  { %v6160_v7 = vpop.eup %6159 }
 0xc42   :  { %v5644_v36 = vmul.f32 0.6931472, %v6160_v7 }
 0xc44   :  { %v5645_v38 = vadd.f32 %v5644_v36, %v5637_v34 }
 0xc46   :  { %v5650_v35 = vsub.f32 %v5645_v38, %v5649_v4 }
 0xc48   :  { %5651 = vst [vmem:[%s9393_s9] sm:$0xff] %v5650_v35 }

</bundles_post_ra>
